<compile_context>
chip_gen: v6e
topology: v6e:2x2x1
jax: 0.10.0
libtpu: 0.0.40
codegen_flags: <defaults>
</compile_context>

<pallas_src>
import math
import numpy as np

import jax
import jax.numpy as jnp
from jax.experimental import pallas as pl
from jax.experimental.pallas import tpu as pltpu

# ----------------------------- config (small) --------------------------------
B = 2                     # batch
C = 3                     # image channels
H_IN = W_IN = 20          # raw image size
RS = 32                   # resize target (stand-in for 336)
P = 8                     # patch size (stand-in for 14)
N_SIDE = RS // P          # 4
NP = N_SIDE * N_SIDE      # 16 patch tokens
NTOK = NP + 1             # + CLS slot (CLS embedding folded into pos row NP)
NTOK_PAD = 24             # vision sequence padded to a multiple of 8 sublanes

VW = 128                  # vision tower width (lane-dense)
TW = 128                  # language tower width (lane-dense)
N_HEADS = 4
N_LAYERS = 2              # per tower
V = 64                    # vocab size (stand-in for the LLaMA vocab)
L = 8                     # text context length
S_LLM = NP + L            # 24 multimodal sequence length
OUT_PAD = 128             # lane-padded score output

assert NTOK_PAD == S_LLM  # lets the two towers share iota-built masks / pos packing
assert VW == TW           # lets both towers share the packed weight blobs

CLIP_MEAN = (0.48145466, 0.4578275, 0.40821073)
CLIP_STD = (0.26862954, 0.26130258, 0.27577711)

_PARAM_ORDER = ('rh_perm', 'rwt_wide', 'patch_g', 'pos_all', 'misc', 'ln_blk',
                'qkvo', 'fc', 'pr', 'mm_proj', 'tok_emb')


# ========================= in-kernel building blocks ==========================

def _layer_norm(x, g, b, eps=1e-5):
    # f32 elementwise math (v5e has no bf16 VPU/EUP)
    mean = jnp.mean(x, axis=-1, keepdims=True)
    var = jnp.mean(jnp.square(x - mean), axis=-1, keepdims=True)
    y = (x - mean) * jax.lax.rsqrt(var + eps)
    return y * g + b


def _gelu(x):
    # TODO(synk): LLaMA uses SwiGLU/RMSNorm/RoPE and CLIP uses exact erf-GELU;
    #             the synthetic towers use tanh-GELU + LayerNorm + learned positions.
    return 0.5 * x * (1.0 + jnp.tanh(0.7978845608028654 * (x + 0.044715 * x * x * x)))


def _softmax_rows(s):
    # NOTE: pl.reciprocal(approx=True) -> ~1e-3 relative error in the softmax
    # normalization; scores will not bit-match a PyTorch reference.
    m = jnp.max(s, axis=-1, keepdims=True)
    e = jnp.exp(s - m)
    return e * pl.reciprocal(jnp.sum(e, axis=-1, keepdims=True), approx=True)


def _block(x, l, qkvo_ref, fc_ref, pr_ref, ln_ref, mask):
    """Fused pre-LN transformer block on a (S, W) f32 activation (VMEM/vregs)."""
    S, W = x.shape
    hd = W // N_HEADS
    scale = 1.0 / math.sqrt(hd)

    ln = ln_ref[l]                                              # (4, W) f32
    xn = _layer_norm(x, ln[0:1], ln[1:2]).astype(jnp.bfloat16)  # (S, W)

    # fused full-width QKV projections: 3x (S,128)x(128,128) MXU matmuls
    qkv = []
    for i in range(3):
        w = qkvo_ref[l, i, :W, :]                               # (W, W) bf16
        bias = qkvo_ref[l, i, W:W + 1, :].astype(jnp.float32)   # (1, W)
        qkv.append(jnp.dot(xn, w, preferred_element_type=jnp.float32) + bias)
    q, k, v = qkv

    # per-head attention; O-projection accumulated per head (== fused W_o)
    attn = qkvo_ref[l, 3, W:W + 1, :].astype(jnp.float32)       # b_o, broadcasts over S
    for h in range(N_HEADS):
        sl = slice(h * hd, (h + 1) * hd)
        qh = (q[:, sl] * scale).astype(jnp.bfloat16)
        kh = k[:, sl].astype(jnp.bfloat16)
        vh = v[:, sl].astype(jnp.bfloat16)
        s = jax.lax.dot_general(qh, kh, (((1,), (1,)), ((), ())),
                                preferred_element_type=jnp.float32) + mask
        p = _softmax_rows(s).astype(jnp.bfloat16)
        ctx = jnp.dot(p, vh, preferred_element_type=jnp.float32)      # (S, hd)
        attn = attn + jnp.dot(ctx.astype(jnp.bfloat16),
                              qkvo_ref[l, 3, h * hd:(h + 1) * hd, :],
                              preferred_element_type=jnp.float32)     # (S, W)
    x = x + attn

    # MLP
    xn2 = _layer_norm(x, ln[2:3], ln[3:4]).astype(jnp.bfloat16)
    h1 = jnp.dot(xn2, fc_ref[l, :W, :], preferred_element_type=jnp.float32) \
        + fc_ref[l, W:W + 1, :].astype(jnp.float32)                   # (S, 4W)
    h1 = _gelu(h1).astype(jnp.bfloat16)
    x = x + jnp.dot(h1, pr_ref[l, :4 * W, :], preferred_element_type=jnp.float32) \
        + pr_ref[l, 4 * W:4 * W + 1, :].astype(jnp.float32)
    return x


# ============================ the single fused kernel =========================

def _vllava_kernel(tok_ref,                       # SMEM scalar-prefetch: (B, L) int32
                   img_ref,                       # (1, C, H_IN, W_IN) f32
                   rh_ref, rwt_ref, g_ref,        # resize + folded patch-embed weights
                   pos_ref, misc_ref, ln_ref,     # positions / LN / head params (f32)
                   qkvo_ref, fc_ref, pr_ref,      # packed transformer weights (bf16)
                   mm_ref, emb_ref,               # mm projector / token embedding table
                   o_ref):                        # (1, 1, OUT_PAD) f32
    b = pl.program_id(0)

    # ---- stage 1: bicubic resize (2 bf16 matmuls / channel) + CLIP normalize --
    rh = rh_ref[...]                                              # (RS, H_IN) bf16
    y = jnp.zeros((RS, C * RS), jnp.float32)
    for c in range(C):                                            # static unroll
        xc = img_ref[0, c].astype(jnp.bfloat16)                   # (H_IN, W_IN)
        t = jnp.dot(rh, xc, preferred_element_type=jnp.float32)   # (RS, W_IN)
        # per-channel block of rwt is zero-padded so channel results SUM into y
        y = y + jnp.dot(t.astype(jnp.bfloat16), rwt_ref[c],
                        preferred_element_type=jnp.float32)       # (RS, C*RS)
    lane = jax.lax.broadcasted_iota(jnp.int32, (RS, C * RS), 1)
    mean = jnp.where(lane < RS, CLIP_MEAN[0],
                     jnp.where(lane < 2 * RS, CLIP_MEAN[1], CLIP_MEAN[2]))
    inv_std = jnp.where(lane < RS, 1.0 / CLIP_STD[0],
                        jnp.where(lane < 2 * RS, 1.0 / CLIP_STD[1], 1.0 / CLIP_STD[2]))
    y = (y - mean) * inv_std                 # rows ordered (ph, i); cols (c, j*P+pw)

    # ---- stage 2: patch embedding (patchify folded into g_ref at init) --------
    e = jnp.zeros((N_SIDE, N_SIDE * VW), jnp.float32)
    for ph in range(P):
        rows = y[ph * N_SIDE:(ph + 1) * N_SIDE, :].astype(jnp.bfloat16)   # (4, C*RS)
        e = e + jnp.dot(rows, g_ref[ph], preferred_element_type=jnp.float32)
    # expand (N_SIDE, N_SIDE*VW) -> (NP, VW); patch token row = j*N_SIDE + i
    r16 = jax.lax.broadcasted_iota(jnp.int32, (NP, N_SIDE), 0)
    c16 = jax.lax.broadcasted_iota(jnp.int32, (NP, N_SIDE), 1)
    patch = jnp.zeros((NP, VW), jnp.float32)
    for j in range(N_SIDE):
        sel = ((r16 - c16) == j * N_SIDE).astype(jnp.float32)             # (NP, N_SIDE)
        patch = patch + jnp.dot(sel, e[:, j * VW:(j + 1) * VW],
                                preferred_element_type=jnp.float32)

    # ---- masks (NTOK_PAD == S_LLM, so the iotas are shared) -------------------
    rows_i = jax.lax.broadcasted_iota(jnp.int32, (S_LLM, S_LLM), 0)
    cols_i = jax.lax.broadcasted_iota(jnp.int32, (S_LLM, S_LLM), 1)
    vis_mask = jnp.where(cols_i >= NTOK, -1e9, 0.0)      # key bias on vision pad tokens
    causal_mask = jnp.where(cols_i > rows_i, -1e9, 0.0)

    # ---- stage 3: ViT vision tower + mm projector ----------------------------
    x = jnp.concatenate(
        [patch, jnp.zeros((NTOK_PAD - NP, VW), jnp.float32)], axis=0)     # (24, VW)
    x = x + pos_ref[0]                        # CLS embedding lives in pos row NP
    x = _layer_norm(x, misc_ref[0:1, :], misc_ref[1:2, :])
    for l in range(N_LAYERS):                 # static unroll over layers
        x = _block(x, l, qkvo_ref, fc_ref, pr_ref, ln_ref, vis_mask)
    x = _layer_norm(x, misc_ref[2:3, :], misc_ref[3:4, :])
    img = jnp.dot(x[:NP, :].astype(jnp.bfloat16), mm_ref[:TW, :],
                  preferred_element_type=jnp.float32) \
        + mm_ref[TW:TW + 1, :].astype(jnp.float32)                         # (NP, TW)

    # ---- text embedding gather (one-hot matmul from SMEM token ids) ----------
    # TODO(synk): HF tokenizer / conversation templating (string processing) has
    #             no Pallas equivalent; token ids are supplied directly.
    r_lv = jax.lax.broadcasted_iota(jnp.int32, (L, V), 0)
    c_lv = jax.lax.broadcasted_iota(jnp.int32, (L, V), 1)
    ids = jnp.zeros((L, V), jnp.int32)
    for j in range(L):
        ids = jnp.where(r_lv == j, tok_ref[b, j], ids)
    onehot = (c_lv == ids).astype(jnp.bfloat16)                            # (L, V)
    txt = jnp.dot(onehot, emb_ref[...], preferred_element_type=jnp.float32)  # (L, TW)

    # ---- stage 4: causal LM over [image ; text] + score head -----------------
    x = jnp.concatenate([img, txt], axis=0) + pos_ref[1]                   # (S_LLM, TW)
    for l in range(N_LAYERS):
        x = _block(x, N_LAYERS + l, qkvo_ref, fc_ref, pr_ref, ln_ref, causal_mask)
    x = _layer_norm(x, misc_ref[4:5, :], misc_ref[5:6, :])
    # TODO(synk): the real module gathers at the last non-pad position using the
    #             attention_mask; fixed-length (un-padded) sequences are used here.
    pooled = x[S_LLM - 1:S_LLM, :]                                         # (1, TW)
    score = jnp.sum(pooled * misc_ref[6:7, :], axis=-1, keepdims=True) \
        + misc_ref[7:8, 0:1]                                               # (1, 1)
    o_ref[0] = jnp.broadcast_to(score, (1, OUT_PAD))                       # lane-padded


# ============================== host-side wrapper =============================

def _full_spec(a):
    zeros = (0,) * a.ndim
    return pl.BlockSpec(a.shape, lambda b, tok, _z=zeros: _z)


def vllava_reward_forward(images, tokens, params):
    batch = images.shape[0]
    arrays = [params[k] for k in _PARAM_ORDER]
    in_specs = [pl.BlockSpec((1, C, H_IN, W_IN), lambda b, tok: (b, 0, 0, 0))]
    in_specs += [_full_spec(a) for a in arrays]

    scores = pl.pallas_call(
        _vllava_kernel,
        out_shape=jax.ShapeDtypeStruct((batch, 1, OUT_PAD), jnp.float32),
        grid_spec=pltpu.PrefetchScalarGridSpec(
            num_scalar_prefetch=1,           # token ids -> SMEM
            grid=(batch,),
            in_specs=in_specs,
            out_specs=pl.BlockSpec((1, 1, OUT_PAD), lambda b, tok: (b, 0, 0)),
        ),
        compiler_params=pltpu.CompilerParams(
            dimension_semantics=("parallel",)),   # batch shards across v7x's 2 TCs
    )(tokens, images, *arrays)

    return scores[:, 0, 0]        # end_scores.squeeze(-1)


# ============================== parameter init ================================

def _bicubic_matrix(in_size, out_size, a=-0.75):
    """Separable bicubic interpolation weights (half-pixel centers, a=-0.75)."""
    def cubic(x):
        x = abs(x)
        if x <= 1.0:
            return (a + 2.0) * x ** 3 - (a + 3.0) * x ** 2 + 1.0
        if x < 2.0:
            return a * x ** 3 - 5.0 * a * x ** 2 + 8.0 * a * x - 4.0 * a
        return 0.0
    scale = in_size / out_size
    W = np.zeros((out_size, in_size), np.float32)
    for i in range(out_size):
        src = (i + 0.5) * scale - 0.5
        f = math.floor(src)
        t = src - f
        for k in range(-1, 3):
            wgt = cubic(k - t)
            idx = min(max(f + k, 0), in_size - 1)
            W[i, idx] += wgt
    return W


def _dense_np(key, shape, scale=0.02):
    return np.asarray(jax.random.normal(key, shape, jnp.float32)) * scale


def init_params(key):
    # TODO(synk): real LlavaLlamaForScore checkpoint loading is not reproducible
    #             here; synthetic bf16 parameters are used instead.
    ks = jax.random.split(key, 10)

    # bicubic resize matrices; left matrix row-permuted to (ph, i) order so the
    # patchify becomes static row slices inside the kernel.
    RH = _bicubic_matrix(H_IN, RS)                     # (RS, H_IN)
    RWt = _bicubic_matrix(W_IN, RS).T                  # (W_IN, RS)
    perm = np.array([i * P + ph for ph in range(P) for i in range(N_SIDE)])
    rh_perm = RH[perm]                                 # (RS, H_IN)
    rwt_wide = np.zeros((C, W_IN, C * RS), np.float32)
    for c in range(C):
        rwt_wide[c, :, c * RS:(c + 1) * RS] = RWt      # channel blocks sum into one slab

    # patch-embedding weights with the (j, pw) extraction folded in:
    #   g[ph, c*RS + j*P + pw, j*VW + d] = w4[c, ph, pw, d]
    w4 = _dense_np(ks[0], (C, P, P, VW))
    g = np.zeros((P, C * RS, N_SIDE * VW), np.float32)
    for c in range(C):
        for j in range(N_SIDE):
            g[:, c * RS + j * P:c * RS + (j + 1) * P, j * VW:(j + 1) * VW] = w4[c]

    vis_pos = np.zeros((NTOK_PAD, VW), np.float32)     # pad rows stay zero (masked keys)
    vis_pos[:NTOK] = _dense_np(ks[1], (NTOK, VW))      # CLS embedding folded in row NP
    llm_pos = _dense_np(ks[2], (S_LLM, TW))
    pos_all = np.stack([vis_pos, llm_pos])             # (2, 24, W)

    # misc rows: ln_pre_g, ln_pre_b, ln_post_g, ln_post_b, ln_f_g, ln_f_b, score_w, score_b
    misc = np.zeros((8, TW), np.float32)
    misc[0] = 1.0
    misc[2] = 1.0
    misc[4] = 1.0
    misc[6] = _dense_np(ks[3], (TW,))
    misc[7] = float(_dense_np(ks[4], ()))              # score bias replicated along row

    n_total = 2 * N_LAYERS                             # layers 0..1 vision, 2..3 LLM
    ln_blk = np.zeros((n_total, 4, TW), np.float32)    # [ln1_g, ln1_b, ln2_g, ln2_b]
    ln_blk[:, 0] = 1.0
    ln_blk[:, 2] = 1.0

    qkvo = _dense_np(ks[5], (n_total, 4, TW + 1, TW))  # [W ; bias-row] per matrix
    fc = _dense_np(ks[6], (n_total, TW + 1, 4 * TW))
    pr = _dense_np(ks[7], (n_total, 4 * TW + 1, TW))
    mm = _dense_np(ks[8], (TW + 1, TW))
    tok_emb = _dense_np(ks[9], (V, TW))

    bf = lambda a: jnp.asarray(a, jnp.bfloat16)
    f32 = lambda a: jnp.asarray(a, jnp.float32)
    return dict(
        rh_perm=bf(rh_perm), rwt_wide=bf(rwt_wide), patch_g=bf(g),
        pos_all=f32(pos_all), misc=f32(misc), ln_blk=f32(ln_blk),
        qkvo=bf(qkvo), fc=bf(fc), pr=bf(pr), mm_proj=bf(mm), tok_emb=bf(tok_emb),
    )


# ==================================== main ====================================

if __name__ == "__main__":
    key = jax.random.PRNGKey(0)
    k_img, k_tok, k_par = jax.random.split(key, 3)

    images = jax.random.uniform(k_img, (B, C, H_IN, W_IN), jnp.float32)   # NCHW in [0,1]
    tokens = jax.random.randint(k_tok, (B, L), 1, V - 1, dtype=jnp.int32)
    params = init_params(k_par)

    fwd = jax.jit(vllava_reward_forward)
    scores = fwd(images, tokens, params)
    jax.block_until_ready(scores)

    assert scores.shape == (B,)
    assert bool(jnp.all(jnp.isfinite(scores)))
    print("KERNEL_OK")
</pallas_src>

<mosaic_0001>
module attributes {stable_mosaic.version = 11 : i64} {
  func.func @_vllava_kernel(%arg0: i32, %arg1: memref<2x8xi32, #tpu.memory_space<smem>>, %arg2: memref<1x3x20x20xf32, #tpu.memory_space<vmem>>, %arg3: memref<32x20xbf16, #tpu.memory_space<vmem>>, %arg4: memref<3x20x96xbf16, #tpu.memory_space<vmem>>, %arg5: memref<8x96x512xbf16, #tpu.memory_space<vmem>>, %arg6: memref<2x24x128xf32, #tpu.memory_space<vmem>>, %arg7: memref<8x128xf32, #tpu.memory_space<vmem>>, %arg8: memref<4x4x128xf32, #tpu.memory_space<vmem>>, %arg9: memref<4x4x129x128xbf16, #tpu.memory_space<vmem>>, %arg10: memref<4x129x512xbf16, #tpu.memory_space<vmem>>, %arg11: memref<4x513x128xbf16, #tpu.memory_space<vmem>>, %arg12: memref<129x128xbf16, #tpu.memory_space<vmem>>, %arg13: memref<64x128xbf16, #tpu.memory_space<vmem>>, %arg14: memref<1x1x128xf32, #tpu.memory_space<vmem>>) attributes {dimension_semantics = [#tpu.dimension_semantics<parallel>], iteration_bounds = array<i64: 2>, scalar_prefetch = 1 : i64, scratch_operands = 0 : i64, tpu.core_type = #tpu.core_type<tc>, window_params = [{transform_indices = @transform_0, window_bounds = array<i64: 1, 3, 20, 20>}, {pipeline_mode = #tpu.pipeline_mode<synchronous>, transform_indices = @transform_1, window_bounds = array<i64: 32, 20>}, {pipeline_mode = #tpu.pipeline_mode<synchronous>, transform_indices = @transform_2, window_bounds = array<i64: 3, 20, 96>}, {pipeline_mode = #tpu.pipeline_mode<synchronous>, transform_indices = @transform_3, window_bounds = array<i64: 8, 96, 512>}, {pipeline_mode = #tpu.pipeline_mode<synchronous>, transform_indices = @transform_4, window_bounds = array<i64: 2, 24, 128>}, {pipeline_mode = #tpu.pipeline_mode<synchronous>, transform_indices = @transform_5, window_bounds = array<i64: 8, 128>}, {pipeline_mode = #tpu.pipeline_mode<synchronous>, transform_indices = @transform_6, window_bounds = array<i64: 4, 4, 128>}, {pipeline_mode = #tpu.pipeline_mode<synchronous>, transform_indices = @transform_7, window_bounds = array<i64: 4, 4, 129, 128>}, {pipeline_mode = #tpu.pipeline_mode<synchronous>, transform_indices = @transform_8, window_bounds = array<i64: 4, 129, 512>}, {pipeline_mode = #tpu.pipeline_mode<synchronous>, transform_indices = @transform_9, window_bounds = array<i64: 4, 513, 128>}, {pipeline_mode = #tpu.pipeline_mode<synchronous>, transform_indices = @transform_10, window_bounds = array<i64: 129, 128>}, {pipeline_mode = #tpu.pipeline_mode<synchronous>, transform_indices = @transform_11, window_bounds = array<i64: 64, 128>}, {transform_indices = @transform_12, window_bounds = array<i64: 1, 1, 128>}]} {
    %c0 = arith.constant 0 : index
    %c0_0 = arith.constant 0 : index
    %0 = vector.load %arg3[%c0, %c0_0] : memref<32x20xbf16, #tpu.memory_space<vmem>>, vector<32x20xbf16>
    %cst = arith.constant 0.000000e+00 : f32
    %1 = vector.broadcast %cst : f32 to vector<32x96xf32>
    %c0_1 = arith.constant 0 : index
    %c0_2 = arith.constant 0 : index
    %c0_3 = arith.constant 0 : index
    %c0_4 = arith.constant 0 : index
    %2 = vector.load %arg2[%c0_1, %c0_2, %c0_3, %c0_4] : memref<1x3x20x20xf32, #tpu.memory_space<vmem>>, vector<1x1x20x20xf32>
    %3 = vector.shape_cast %2 : vector<1x1x20x20xf32> to vector<20x20xf32>
    %4 = arith.truncf %3 : vector<20x20xf32> to vector<20x20xbf16>
    %cst_5 = arith.constant dense<0.000000e+00> : vector<32x20xf32>
    %5 = tpu.matmul %0, %4, %cst_5 {dimension_numbers = #tpu.dot_dimension_numbers<[1], [0], [0], [1], [0, 0, 1, 1], [], []>} : vector<32x20xbf16>, vector<20x20xbf16>, vector<32x20xf32> -> vector<32x20xf32>
    %6 = arith.truncf %5 : vector<32x20xf32> to vector<32x20xbf16>
    %c0_6 = arith.constant 0 : index
    %c0_7 = arith.constant 0 : index
    %c0_8 = arith.constant 0 : index
    %7 = vector.load %arg4[%c0_6, %c0_7, %c0_8] : memref<3x20x96xbf16, #tpu.memory_space<vmem>>, vector<1x20x96xbf16>
    %8 = vector.shape_cast %7 : vector<1x20x96xbf16> to vector<20x96xbf16>
    %cst_9 = arith.constant dense<0.000000e+00> : vector<32x96xf32>
    %9 = tpu.matmul %6, %8, %cst_9 {dimension_numbers = #tpu.dot_dimension_numbers<[1], [0], [0], [1], [0, 0, 1, 1], [], []>} : vector<32x20xbf16>, vector<20x96xbf16>, vector<32x96xf32> -> vector<32x96xf32>
    %10 = arith.addf %1, %9 : vector<32x96xf32>
    %c0_10 = arith.constant 0 : index
    %c1 = arith.constant 1 : index
    %c0_11 = arith.constant 0 : index
    %c0_12 = arith.constant 0 : index
    %11 = vector.load %arg2[%c0_10, %c1, %c0_11, %c0_12] : memref<1x3x20x20xf32, #tpu.memory_space<vmem>>, vector<1x1x20x20xf32>
    %12 = vector.shape_cast %11 : vector<1x1x20x20xf32> to vector<20x20xf32>
    %13 = arith.truncf %12 : vector<20x20xf32> to vector<20x20xbf16>
    %cst_13 = arith.constant dense<0.000000e+00> : vector<32x20xf32>
    %14 = tpu.matmul %0, %13, %cst_13 {dimension_numbers = #tpu.dot_dimension_numbers<[1], [0], [0], [1], [0, 0, 1, 1], [], []>} : vector<32x20xbf16>, vector<20x20xbf16>, vector<32x20xf32> -> vector<32x20xf32>
    %15 = arith.truncf %14 : vector<32x20xf32> to vector<32x20xbf16>
    %c1_14 = arith.constant 1 : index
    %c0_15 = arith.constant 0 : index
    %c0_16 = arith.constant 0 : index
    %16 = vector.load %arg4[%c1_14, %c0_15, %c0_16] : memref<3x20x96xbf16, #tpu.memory_space<vmem>>, vector<1x20x96xbf16>
    %17 = vector.shape_cast %16 : vector<1x20x96xbf16> to vector<20x96xbf16>
    %cst_17 = arith.constant dense<0.000000e+00> : vector<32x96xf32>
    %18 = tpu.matmul %15, %17, %cst_17 {dimension_numbers = #tpu.dot_dimension_numbers<[1], [0], [0], [1], [0, 0, 1, 1], [], []>} : vector<32x20xbf16>, vector<20x96xbf16>, vector<32x96xf32> -> vector<32x96xf32>
    %19 = arith.addf %10, %18 : vector<32x96xf32>
    %c0_18 = arith.constant 0 : index
    %c2 = arith.constant 2 : index
    %c0_19 = arith.constant 0 : index
    %c0_20 = arith.constant 0 : index
    %20 = vector.load %arg2[%c0_18, %c2, %c0_19, %c0_20] : memref<1x3x20x20xf32, #tpu.memory_space<vmem>>, vector<1x1x20x20xf32>
    %21 = vector.shape_cast %20 : vector<1x1x20x20xf32> to vector<20x20xf32>
    %22 = arith.truncf %21 : vector<20x20xf32> to vector<20x20xbf16>
    %cst_21 = arith.constant dense<0.000000e+00> : vector<32x20xf32>
    %23 = tpu.matmul %0, %22, %cst_21 {dimension_numbers = #tpu.dot_dimension_numbers<[1], [0], [0], [1], [0, 0, 1, 1], [], []>} : vector<32x20xbf16>, vector<20x20xbf16>, vector<32x20xf32> -> vector<32x20xf32>
    %24 = arith.truncf %23 : vector<32x20xf32> to vector<32x20xbf16>
    %c2_22 = arith.constant 2 : index
    %c0_23 = arith.constant 0 : index
    %c0_24 = arith.constant 0 : index
    %25 = vector.load %arg4[%c2_22, %c0_23, %c0_24] : memref<3x20x96xbf16, #tpu.memory_space<vmem>>, vector<1x20x96xbf16>
    %26 = vector.shape_cast %25 : vector<1x20x96xbf16> to vector<20x96xbf16>
    %cst_25 = arith.constant dense<0.000000e+00> : vector<32x96xf32>
    %27 = tpu.matmul %24, %26, %cst_25 {dimension_numbers = #tpu.dot_dimension_numbers<[1], [0], [0], [1], [0, 0, 1, 1], [], []>} : vector<32x20xbf16>, vector<20x96xbf16>, vector<32x96xf32> -> vector<32x96xf32>
    %28 = arith.addf %19, %27 : vector<32x96xf32>
    %29 = tpu.iota {dimensions = array<i32: 1>} : vector<32x96xi32>
    %c32_i32 = arith.constant 32 : i32
    %30 = vector.broadcast %c32_i32 : i32 to vector<32x96xi32>
    %31 = arith.cmpi slt, %29, %30 : vector<32x96xi32>
    %c64_i32 = arith.constant 64 : i32
    %32 = vector.broadcast %c64_i32 : i32 to vector<32x96xi32>
    %33 = arith.cmpi slt, %29, %32 : vector<32x96xi32>
    %cst_26 = arith.constant 0.457827508 : f32
    %cst_27 = arith.constant 0.408210725 : f32
    %34 = vector.broadcast %cst_26 : f32 to vector<32x96xf32>
    %35 = vector.broadcast %cst_27 : f32 to vector<32x96xf32>
    %36 = arith.select %33, %34, %35 : vector<32x96xi1>, vector<32x96xf32>
    %cst_28 = arith.constant 0.48145467 : f32
    %37 = vector.broadcast %cst_28 : f32 to vector<32x96xf32>
    %38 = arith.select %31, %37, %36 : vector<32x96xi1>, vector<32x96xf32>
    %c32_i32_29 = arith.constant 32 : i32
    %39 = vector.broadcast %c32_i32_29 : i32 to vector<32x96xi32>
    %40 = arith.cmpi slt, %29, %39 : vector<32x96xi32>
    %c64_i32_30 = arith.constant 64 : i32
    %41 = vector.broadcast %c64_i32_30 : i32 to vector<32x96xi32>
    %42 = arith.cmpi slt, %29, %41 : vector<32x96xi32>
    %cst_31 = arith.constant 3.82698107 : f32
    %cst_32 = arith.constant 3.62611675 : f32
    %43 = vector.broadcast %cst_31 : f32 to vector<32x96xf32>
    %44 = vector.broadcast %cst_32 : f32 to vector<32x96xf32>
    %45 = arith.select %42, %43, %44 : vector<32x96xi1>, vector<32x96xf32>
    %cst_33 = arith.constant 3.72259879 : f32
    %46 = vector.broadcast %cst_33 : f32 to vector<32x96xf32>
    %47 = arith.select %40, %46, %45 : vector<32x96xi1>, vector<32x96xf32>
    %48 = arith.subf %28, %38 : vector<32x96xf32>
    %49 = arith.mulf %48, %47 : vector<32x96xf32>
    %cst_34 = arith.constant 0.000000e+00 : f32
    %50 = vector.broadcast %cst_34 : f32 to vector<4x512xf32>
    %51 = vector.extract_strided_slice %49 {offsets = [0, 0], sizes = [4, 96], strides = [1, 1]} : vector<32x96xf32> to vector<4x96xf32>
    %52 = arith.truncf %51 : vector<4x96xf32> to vector<4x96xbf16>
    %c0_35 = arith.constant 0 : index
    %c0_36 = arith.constant 0 : index
    %c0_37 = arith.constant 0 : index
    %53 = vector.load %arg5[%c0_35, %c0_36, %c0_37] : memref<8x96x512xbf16, #tpu.memory_space<vmem>>, vector<1x96x512xbf16>
    %54 = vector.shape_cast %53 : vector<1x96x512xbf16> to vector<96x512xbf16>
    %cst_38 = arith.constant dense<0.000000e+00> : vector<4x512xf32>
    %55 = tpu.matmul %52, %54, %cst_38 {dimension_numbers = #tpu.dot_dimension_numbers<[1], [0], [0], [1], [0, 0, 1, 1], [], []>} : vector<4x96xbf16>, vector<96x512xbf16>, vector<4x512xf32> -> vector<4x512xf32>
    %56 = arith.addf %50, %55 : vector<4x512xf32>
    %57 = vector.extract_strided_slice %49 {offsets = [4, 0], sizes = [4, 96], strides = [1, 1]} : vector<32x96xf32> to vector<4x96xf32>
    %58 = arith.truncf %57 : vector<4x96xf32> to vector<4x96xbf16>
    %c1_39 = arith.constant 1 : index
    %c0_40 = arith.constant 0 : index
    %c0_41 = arith.constant 0 : index
    %59 = vector.load %arg5[%c1_39, %c0_40, %c0_41] : memref<8x96x512xbf16, #tpu.memory_space<vmem>>, vector<1x96x512xbf16>
    %60 = vector.shape_cast %59 : vector<1x96x512xbf16> to vector<96x512xbf16>
    %cst_42 = arith.constant dense<0.000000e+00> : vector<4x512xf32>
    %61 = tpu.matmul %58, %60, %cst_42 {dimension_numbers = #tpu.dot_dimension_numbers<[1], [0], [0], [1], [0, 0, 1, 1], [], []>} : vector<4x96xbf16>, vector<96x512xbf16>, vector<4x512xf32> -> vector<4x512xf32>
    %62 = arith.addf %56, %61 : vector<4x512xf32>
    %63 = vector.extract_strided_slice %49 {offsets = [8, 0], sizes = [4, 96], strides = [1, 1]} : vector<32x96xf32> to vector<4x96xf32>
    %64 = arith.truncf %63 : vector<4x96xf32> to vector<4x96xbf16>
    %c2_43 = arith.constant 2 : index
    %c0_44 = arith.constant 0 : index
    %c0_45 = arith.constant 0 : index
    %65 = vector.load %arg5[%c2_43, %c0_44, %c0_45] : memref<8x96x512xbf16, #tpu.memory_space<vmem>>, vector<1x96x512xbf16>
    %66 = vector.shape_cast %65 : vector<1x96x512xbf16> to vector<96x512xbf16>
    %cst_46 = arith.constant dense<0.000000e+00> : vector<4x512xf32>
    %67 = tpu.matmul %64, %66, %cst_46 {dimension_numbers = #tpu.dot_dimension_numbers<[1], [0], [0], [1], [0, 0, 1, 1], [], []>} : vector<4x96xbf16>, vector<96x512xbf16>, vector<4x512xf32> -> vector<4x512xf32>
    %68 = arith.addf %62, %67 : vector<4x512xf32>
    %69 = vector.extract_strided_slice %49 {offsets = [12, 0], sizes = [4, 96], strides = [1, 1]} : vector<32x96xf32> to vector<4x96xf32>
    %70 = arith.truncf %69 : vector<4x96xf32> to vector<4x96xbf16>
    %c3 = arith.constant 3 : index
    %c0_47 = arith.constant 0 : index
    %c0_48 = arith.constant 0 : index
    %71 = vector.load %arg5[%c3, %c0_47, %c0_48] : memref<8x96x512xbf16, #tpu.memory_space<vmem>>, vector<1x96x512xbf16>
    %72 = vector.shape_cast %71 : vector<1x96x512xbf16> to vector<96x512xbf16>
    %cst_49 = arith.constant dense<0.000000e+00> : vector<4x512xf32>
    %73 = tpu.matmul %70, %72, %cst_49 {dimension_numbers = #tpu.dot_dimension_numbers<[1], [0], [0], [1], [0, 0, 1, 1], [], []>} : vector<4x96xbf16>, vector<96x512xbf16>, vector<4x512xf32> -> vector<4x512xf32>
    %74 = arith.addf %68, %73 : vector<4x512xf32>
    %75 = vector.extract_strided_slice %49 {offsets = [16, 0], sizes = [4, 96], strides = [1, 1]} : vector<32x96xf32> to vector<4x96xf32>
    %76 = arith.truncf %75 : vector<4x96xf32> to vector<4x96xbf16>
    %c4 = arith.constant 4 : index
    %c0_50 = arith.constant 0 : index
    %c0_51 = arith.constant 0 : index
    %77 = vector.load %arg5[%c4, %c0_50, %c0_51] : memref<8x96x512xbf16, #tpu.memory_space<vmem>>, vector<1x96x512xbf16>
    %78 = vector.shape_cast %77 : vector<1x96x512xbf16> to vector<96x512xbf16>
    %cst_52 = arith.constant dense<0.000000e+00> : vector<4x512xf32>
    %79 = tpu.matmul %76, %78, %cst_52 {dimension_numbers = #tpu.dot_dimension_numbers<[1], [0], [0], [1], [0, 0, 1, 1], [], []>} : vector<4x96xbf16>, vector<96x512xbf16>, vector<4x512xf32> -> vector<4x512xf32>
    %80 = arith.addf %74, %79 : vector<4x512xf32>
    %81 = vector.extract_strided_slice %49 {offsets = [20, 0], sizes = [4, 96], strides = [1, 1]} : vector<32x96xf32> to vector<4x96xf32>
    %82 = arith.truncf %81 : vector<4x96xf32> to vector<4x96xbf16>
    %c5 = arith.constant 5 : index
    %c0_53 = arith.constant 0 : index
    %c0_54 = arith.constant 0 : index
    %83 = vector.load %arg5[%c5, %c0_53, %c0_54] : memref<8x96x512xbf16, #tpu.memory_space<vmem>>, vector<1x96x512xbf16>
    %84 = vector.shape_cast %83 : vector<1x96x512xbf16> to vector<96x512xbf16>
    %cst_55 = arith.constant dense<0.000000e+00> : vector<4x512xf32>
    %85 = tpu.matmul %82, %84, %cst_55 {dimension_numbers = #tpu.dot_dimension_numbers<[1], [0], [0], [1], [0, 0, 1, 1], [], []>} : vector<4x96xbf16>, vector<96x512xbf16>, vector<4x512xf32> -> vector<4x512xf32>
    %86 = arith.addf %80, %85 : vector<4x512xf32>
    %87 = vector.extract_strided_slice %49 {offsets = [24, 0], sizes = [4, 96], strides = [1, 1]} : vector<32x96xf32> to vector<4x96xf32>
    %88 = arith.truncf %87 : vector<4x96xf32> to vector<4x96xbf16>
    %c6 = arith.constant 6 : index
    %c0_56 = arith.constant 0 : index
    %c0_57 = arith.constant 0 : index
    %89 = vector.load %arg5[%c6, %c0_56, %c0_57] : memref<8x96x512xbf16, #tpu.memory_space<vmem>>, vector<1x96x512xbf16>
    %90 = vector.shape_cast %89 : vector<1x96x512xbf16> to vector<96x512xbf16>
    %cst_58 = arith.constant dense<0.000000e+00> : vector<4x512xf32>
    %91 = tpu.matmul %88, %90, %cst_58 {dimension_numbers = #tpu.dot_dimension_numbers<[1], [0], [0], [1], [0, 0, 1, 1], [], []>} : vector<4x96xbf16>, vector<96x512xbf16>, vector<4x512xf32> -> vector<4x512xf32>
    %92 = arith.addf %86, %91 : vector<4x512xf32>
    %93 = vector.extract_strided_slice %49 {offsets = [28, 0], sizes = [4, 96], strides = [1, 1]} : vector<32x96xf32> to vector<4x96xf32>
    %94 = arith.truncf %93 : vector<4x96xf32> to vector<4x96xbf16>
    %c7 = arith.constant 7 : index
    %c0_59 = arith.constant 0 : index
    %c0_60 = arith.constant 0 : index
    %95 = vector.load %arg5[%c7, %c0_59, %c0_60] : memref<8x96x512xbf16, #tpu.memory_space<vmem>>, vector<1x96x512xbf16>
    %96 = vector.shape_cast %95 : vector<1x96x512xbf16> to vector<96x512xbf16>
    %cst_61 = arith.constant dense<0.000000e+00> : vector<4x512xf32>
    %97 = tpu.matmul %94, %96, %cst_61 {dimension_numbers = #tpu.dot_dimension_numbers<[1], [0], [0], [1], [0, 0, 1, 1], [], []>} : vector<4x96xbf16>, vector<96x512xbf16>, vector<4x512xf32> -> vector<4x512xf32>
    %98 = arith.addf %92, %97 : vector<4x512xf32>
    %99 = tpu.iota {dimensions = array<i32: 0>} : vector<16x4xi32>
    %100 = tpu.iota {dimensions = array<i32: 1>} : vector<16x4xi32>
    %cst_62 = arith.constant 0.000000e+00 : f32
    %101 = vector.broadcast %cst_62 : f32 to vector<16x128xf32>
    %102 = arith.subi %99, %100 : vector<16x4xi32>
    %c0_i32 = arith.constant 0 : i32
    %103 = vector.broadcast %c0_i32 : i32 to vector<16x4xi32>
    %104 = arith.cmpi eq, %102, %103 : vector<16x4xi32>
    %105 = arith.extui %104 : vector<16x4xi1> to vector<16x4xi32>
    %106 = arith.sitofp %105 : vector<16x4xi32> to vector<16x4xf32>
    %107 = vector.extract_strided_slice %98 {offsets = [0, 0], sizes = [4, 128], strides = [1, 1]} : vector<4x512xf32> to vector<4x128xf32>
    %cst_63 = arith.constant dense<0.000000e+00> : vector<16x128xf32>
    %108 = tpu.matmul %106, %107, %cst_63 {dimension_numbers = #tpu.dot_dimension_numbers<[1], [0], [0], [1], [0, 0, 1, 1], [], []>} : vector<16x4xf32>, vector<4x128xf32>, vector<16x128xf32> -> vector<16x128xf32>
    %109 = arith.addf %101, %108 : vector<16x128xf32>
    %110 = arith.subi %99, %100 : vector<16x4xi32>
    %c4_i32 = arith.constant 4 : i32
    %111 = vector.broadcast %c4_i32 : i32 to vector<16x4xi32>
    %112 = arith.cmpi eq, %110, %111 : vector<16x4xi32>
    %113 = arith.extui %112 : vector<16x4xi1> to vector<16x4xi32>
    %114 = arith.sitofp %113 : vector<16x4xi32> to vector<16x4xf32>
    %115 = vector.extract_strided_slice %98 {offsets = [0, 128], sizes = [4, 128], strides = [1, 1]} : vector<4x512xf32> to vector<4x128xf32>
    %cst_64 = arith.constant dense<0.000000e+00> : vector<16x128xf32>
    %116 = tpu.matmul %114, %115, %cst_64 {dimension_numbers = #tpu.dot_dimension_numbers<[1], [0], [0], [1], [0, 0, 1, 1], [], []>} : vector<16x4xf32>, vector<4x128xf32>, vector<16x128xf32> -> vector<16x128xf32>
    %117 = arith.addf %109, %116 : vector<16x128xf32>
    %118 = arith.subi %99, %100 : vector<16x4xi32>
    %c8_i32 = arith.constant 8 : i32
    %119 = vector.broadcast %c8_i32 : i32 to vector<16x4xi32>
    %120 = arith.cmpi eq, %118, %119 : vector<16x4xi32>
    %121 = arith.extui %120 : vector<16x4xi1> to vector<16x4xi32>
    %122 = arith.sitofp %121 : vector<16x4xi32> to vector<16x4xf32>
    %123 = vector.extract_strided_slice %98 {offsets = [0, 256], sizes = [4, 128], strides = [1, 1]} : vector<4x512xf32> to vector<4x128xf32>
    %cst_65 = arith.constant dense<0.000000e+00> : vector<16x128xf32>
    %124 = tpu.matmul %122, %123, %cst_65 {dimension_numbers = #tpu.dot_dimension_numbers<[1], [0], [0], [1], [0, 0, 1, 1], [], []>} : vector<16x4xf32>, vector<4x128xf32>, vector<16x128xf32> -> vector<16x128xf32>
    %125 = arith.addf %117, %124 : vector<16x128xf32>
    %126 = arith.subi %99, %100 : vector<16x4xi32>
    %c12_i32 = arith.constant 12 : i32
    %127 = vector.broadcast %c12_i32 : i32 to vector<16x4xi32>
    %128 = arith.cmpi eq, %126, %127 : vector<16x4xi32>
    %129 = arith.extui %128 : vector<16x4xi1> to vector<16x4xi32>
    %130 = arith.sitofp %129 : vector<16x4xi32> to vector<16x4xf32>
    %131 = vector.extract_strided_slice %98 {offsets = [0, 384], sizes = [4, 128], strides = [1, 1]} : vector<4x512xf32> to vector<4x128xf32>
    %cst_66 = arith.constant dense<0.000000e+00> : vector<16x128xf32>
    %132 = tpu.matmul %130, %131, %cst_66 {dimension_numbers = #tpu.dot_dimension_numbers<[1], [0], [0], [1], [0, 0, 1, 1], [], []>} : vector<16x4xf32>, vector<4x128xf32>, vector<16x128xf32> -> vector<16x128xf32>
    %133 = arith.addf %125, %132 : vector<16x128xf32>
    %134 = tpu.iota {dimensions = array<i32: 0>} : vector<24x24xi32>
    %135 = tpu.iota {dimensions = array<i32: 1>} : vector<24x24xi32>
    %c17_i32 = arith.constant 17 : i32
    %136 = vector.broadcast %c17_i32 : i32 to vector<24x24xi32>
    %137 = arith.cmpi sge, %135, %136 : vector<24x24xi32>
    %cst_67 = arith.constant -1.000000e+09 : f32
    %cst_68 = arith.constant 0.000000e+00 : f32
    %138 = vector.broadcast %cst_67 : f32 to vector<24x24xf32>
    %139 = vector.broadcast %cst_68 : f32 to vector<24x24xf32>
    %140 = arith.select %137, %138, %139 : vector<24x24xi1>, vector<24x24xf32>
    %141 = arith.cmpi sgt, %135, %134 : vector<24x24xi32>
    %cst_69 = arith.constant -1.000000e+09 : f32
    %cst_70 = arith.constant 0.000000e+00 : f32
    %142 = vector.broadcast %cst_69 : f32 to vector<24x24xf32>
    %143 = vector.broadcast %cst_70 : f32 to vector<24x24xf32>
    %144 = arith.select %141, %142, %143 : vector<24x24xi1>, vector<24x24xf32>
    %cst_71 = arith.constant 0.000000e+00 : f32
    %145 = vector.broadcast %cst_71 : f32 to vector<8x128xf32>
    %146 = tpu.concatenate %133, %145 in 0 : vector<16x128xf32>, vector<8x128xf32> -> vector<24x128xf32>
    %c0_72 = arith.constant 0 : index
    %c0_73 = arith.constant 0 : index
    %c0_74 = arith.constant 0 : index
    %147 = vector.load %arg6[%c0_72, %c0_73, %c0_74] : memref<2x24x128xf32, #tpu.memory_space<vmem>>, vector<1x24x128xf32>
    %148 = vector.shape_cast %147 : vector<1x24x128xf32> to vector<24x128xf32>
    %149 = arith.addf %146, %148 : vector<24x128xf32>
    %c0_75 = arith.constant 0 : index
    %c0_76 = arith.constant 0 : index
    %150 = vector.load %arg7[%c0_75, %c0_76] : memref<8x128xf32, #tpu.memory_space<vmem>>, vector<1x128xf32>
    %c1_77 = arith.constant 1 : index
    %c0_78 = arith.constant 0 : index
    %151 = vector.load %arg7[%c1_77, %c0_78] : memref<8x128xf32, #tpu.memory_space<vmem>>, vector<1x128xf32>
    %cst_79 = arith.constant dense<0.000000e+00> : vector<24xf32>
    %152 = vector.multi_reduction <add>, %149, %cst_79 [1] : vector<24x128xf32> to vector<24xf32>
    %153 = vector.shape_cast %152 : vector<24xf32> to vector<24x1xf32>
    %cst_80 = arith.constant 1.280000e+02 : f32
    %154 = vector.broadcast %cst_80 : f32 to vector<24x1xf32>
    %155 = arith.divf %153, %154 : vector<24x1xf32>
    %156 = vector.broadcast %155 : vector<24x1xf32> to vector<24x128xf32>
    %157 = arith.subf %149, %156 : vector<24x128xf32>
    %158 = arith.mulf %157, %157 : vector<24x128xf32>
    %cst_81 = arith.constant dense<0.000000e+00> : vector<24xf32>
    %159 = vector.multi_reduction <add>, %158, %cst_81 [1] : vector<24x128xf32> to vector<24xf32>
    %160 = vector.shape_cast %159 : vector<24xf32> to vector<24x1xf32>
    %cst_82 = arith.constant 1.280000e+02 : f32
    %161 = vector.broadcast %cst_82 : f32 to vector<24x1xf32>
    %162 = arith.divf %160, %161 : vector<24x1xf32>
    %163 = vector.broadcast %155 : vector<24x1xf32> to vector<24x128xf32>
    %164 = arith.subf %149, %163 : vector<24x128xf32>
    %cst_83 = arith.constant 9.99999974E-6 : f32
    %165 = vector.broadcast %cst_83 : f32 to vector<24x1xf32>
    %166 = arith.addf %162, %165 : vector<24x1xf32>
    %167 = math.rsqrt %166 : vector<24x1xf32>
    %168 = vector.broadcast %167 : vector<24x1xf32> to vector<24x128xf32>
    %169 = arith.mulf %164, %168 : vector<24x128xf32>
    %170 = vector.broadcast %150 : vector<1x128xf32> to vector<24x128xf32>
    %171 = arith.mulf %169, %170 : vector<24x128xf32>
    %172 = vector.broadcast %151 : vector<1x128xf32> to vector<24x128xf32>
    %173 = arith.addf %171, %172 : vector<24x128xf32>
    %c0_84 = arith.constant 0 : index
    %c0_85 = arith.constant 0 : index
    %c0_86 = arith.constant 0 : index
    %174 = vector.load %arg8[%c0_84, %c0_85, %c0_86] : memref<4x4x128xf32, #tpu.memory_space<vmem>>, vector<1x4x128xf32>
    %175 = vector.shape_cast %174 : vector<1x4x128xf32> to vector<4x128xf32>
    %176 = vector.extract_strided_slice %175 {offsets = [0, 0], sizes = [1, 128], strides = [1, 1]} : vector<4x128xf32> to vector<1x128xf32>
    %177 = vector.extract_strided_slice %175 {offsets = [1, 0], sizes = [1, 128], strides = [1, 1]} : vector<4x128xf32> to vector<1x128xf32>
    %cst_87 = arith.constant dense<0.000000e+00> : vector<24xf32>
    %178 = vector.multi_reduction <add>, %173, %cst_87 [1] : vector<24x128xf32> to vector<24xf32>
    %179 = vector.shape_cast %178 : vector<24xf32> to vector<24x1xf32>
    %cst_88 = arith.constant 1.280000e+02 : f32
    %180 = vector.broadcast %cst_88 : f32 to vector<24x1xf32>
    %181 = arith.divf %179, %180 : vector<24x1xf32>
    %182 = vector.broadcast %181 : vector<24x1xf32> to vector<24x128xf32>
    %183 = arith.subf %173, %182 : vector<24x128xf32>
    %184 = arith.mulf %183, %183 : vector<24x128xf32>
    %cst_89 = arith.constant dense<0.000000e+00> : vector<24xf32>
    %185 = vector.multi_reduction <add>, %184, %cst_89 [1] : vector<24x128xf32> to vector<24xf32>
    %186 = vector.shape_cast %185 : vector<24xf32> to vector<24x1xf32>
    %cst_90 = arith.constant 1.280000e+02 : f32
    %187 = vector.broadcast %cst_90 : f32 to vector<24x1xf32>
    %188 = arith.divf %186, %187 : vector<24x1xf32>
    %189 = vector.broadcast %181 : vector<24x1xf32> to vector<24x128xf32>
    %190 = arith.subf %173, %189 : vector<24x128xf32>
    %cst_91 = arith.constant 9.99999974E-6 : f32
    %191 = vector.broadcast %cst_91 : f32 to vector<24x1xf32>
    %192 = arith.addf %188, %191 : vector<24x1xf32>
    %193 = math.rsqrt %192 : vector<24x1xf32>
    %194 = vector.broadcast %193 : vector<24x1xf32> to vector<24x128xf32>
    %195 = arith.mulf %190, %194 : vector<24x128xf32>
    %196 = vector.broadcast %176 : vector<1x128xf32> to vector<24x128xf32>
    %197 = arith.mulf %195, %196 : vector<24x128xf32>
    %198 = vector.broadcast %177 : vector<1x128xf32> to vector<24x128xf32>
    %199 = arith.addf %197, %198 : vector<24x128xf32>
    %200 = arith.truncf %199 : vector<24x128xf32> to vector<24x128xbf16>
    %c0_92 = arith.constant 0 : index
    %c0_93 = arith.constant 0 : index
    %c0_94 = arith.constant 0 : index
    %c0_95 = arith.constant 0 : index
    %201 = vector.load %arg9[%c0_92, %c0_93, %c0_94, %c0_95] : memref<4x4x129x128xbf16, #tpu.memory_space<vmem>>, vector<1x1x128x128xbf16>
    %202 = vector.shape_cast %201 : vector<1x1x128x128xbf16> to vector<128x128xbf16>
    %c0_96 = arith.constant 0 : index
    %c0_97 = arith.constant 0 : index
    %c128 = arith.constant 128 : index
    %c0_98 = arith.constant 0 : index
    %203 = vector.load %arg9[%c0_96, %c0_97, %c128, %c0_98] : memref<4x4x129x128xbf16, #tpu.memory_space<vmem>>, vector<1x1x1x128xbf16>
    %204 = vector.shape_cast %203 : vector<1x1x1x128xbf16> to vector<1x128xbf16>
    %205 = arith.extf %204 : vector<1x128xbf16> to vector<1x128xf32>
    %cst_99 = arith.constant dense<0.000000e+00> : vector<24x128xf32>
    %206 = tpu.matmul %200, %202, %cst_99 {dimension_numbers = #tpu.dot_dimension_numbers<[1], [0], [0], [1], [0, 0, 1, 1], [], []>} : vector<24x128xbf16>, vector<128x128xbf16>, vector<24x128xf32> -> vector<24x128xf32>
    %207 = vector.broadcast %205 : vector<1x128xf32> to vector<24x128xf32>
    %208 = arith.addf %206, %207 : vector<24x128xf32>
    %c0_100 = arith.constant 0 : index
    %c1_101 = arith.constant 1 : index
    %c0_102 = arith.constant 0 : index
    %c0_103 = arith.constant 0 : index
    %209 = vector.load %arg9[%c0_100, %c1_101, %c0_102, %c0_103] : memref<4x4x129x128xbf16, #tpu.memory_space<vmem>>, vector<1x1x128x128xbf16>
    %210 = vector.shape_cast %209 : vector<1x1x128x128xbf16> to vector<128x128xbf16>
    %c0_104 = arith.constant 0 : index
    %c1_105 = arith.constant 1 : index
    %c128_106 = arith.constant 128 : index
    %c0_107 = arith.constant 0 : index
    %211 = vector.load %arg9[%c0_104, %c1_105, %c128_106, %c0_107] : memref<4x4x129x128xbf16, #tpu.memory_space<vmem>>, vector<1x1x1x128xbf16>
    %212 = vector.shape_cast %211 : vector<1x1x1x128xbf16> to vector<1x128xbf16>
    %213 = arith.extf %212 : vector<1x128xbf16> to vector<1x128xf32>
    %cst_108 = arith.constant dense<0.000000e+00> : vector<24x128xf32>
    %214 = tpu.matmul %200, %210, %cst_108 {dimension_numbers = #tpu.dot_dimension_numbers<[1], [0], [0], [1], [0, 0, 1, 1], [], []>} : vector<24x128xbf16>, vector<128x128xbf16>, vector<24x128xf32> -> vector<24x128xf32>
    %215 = vector.broadcast %213 : vector<1x128xf32> to vector<24x128xf32>
    %216 = arith.addf %214, %215 : vector<24x128xf32>
    %c0_109 = arith.constant 0 : index
    %c2_110 = arith.constant 2 : index
    %c0_111 = arith.constant 0 : index
    %c0_112 = arith.constant 0 : index
    %217 = vector.load %arg9[%c0_109, %c2_110, %c0_111, %c0_112] : memref<4x4x129x128xbf16, #tpu.memory_space<vmem>>, vector<1x1x128x128xbf16>
    %218 = vector.shape_cast %217 : vector<1x1x128x128xbf16> to vector<128x128xbf16>
    %c0_113 = arith.constant 0 : index
    %c2_114 = arith.constant 2 : index
    %c128_115 = arith.constant 128 : index
    %c0_116 = arith.constant 0 : index
    %219 = vector.load %arg9[%c0_113, %c2_114, %c128_115, %c0_116] : memref<4x4x129x128xbf16, #tpu.memory_space<vmem>>, vector<1x1x1x128xbf16>
    %220 = vector.shape_cast %219 : vector<1x1x1x128xbf16> to vector<1x128xbf16>
    %221 = arith.extf %220 : vector<1x128xbf16> to vector<1x128xf32>
    %cst_117 = arith.constant dense<0.000000e+00> : vector<24x128xf32>
    %222 = tpu.matmul %200, %218, %cst_117 {dimension_numbers = #tpu.dot_dimension_numbers<[1], [0], [0], [1], [0, 0, 1, 1], [], []>} : vector<24x128xbf16>, vector<128x128xbf16>, vector<24x128xf32> -> vector<24x128xf32>
    %223 = vector.broadcast %221 : vector<1x128xf32> to vector<24x128xf32>
    %224 = arith.addf %222, %223 : vector<24x128xf32>
    %c0_118 = arith.constant 0 : index
    %c3_119 = arith.constant 3 : index
    %c128_120 = arith.constant 128 : index
    %c0_121 = arith.constant 0 : index
    %225 = vector.load %arg9[%c0_118, %c3_119, %c128_120, %c0_121] : memref<4x4x129x128xbf16, #tpu.memory_space<vmem>>, vector<1x1x1x128xbf16>
    %226 = vector.shape_cast %225 : vector<1x1x1x128xbf16> to vector<1x128xbf16>
    %227 = arith.extf %226 : vector<1x128xbf16> to vector<1x128xf32>
    %228 = vector.extract_strided_slice %208 {offsets = [0, 0], sizes = [24, 32], strides = [1, 1]} : vector<24x128xf32> to vector<24x32xf32>
    %cst_122 = arith.constant 0.176776692 : f32
    %229 = vector.broadcast %cst_122 : f32 to vector<24x32xf32>
    %230 = arith.mulf %228, %229 : vector<24x32xf32>
    %231 = arith.truncf %230 : vector<24x32xf32> to vector<24x32xbf16>
    %232 = vector.extract_strided_slice %216 {offsets = [0, 0], sizes = [24, 32], strides = [1, 1]} : vector<24x128xf32> to vector<24x32xf32>
    %233 = arith.truncf %232 : vector<24x32xf32> to vector<24x32xbf16>
    %234 = vector.extract_strided_slice %224 {offsets = [0, 0], sizes = [24, 32], strides = [1, 1]} : vector<24x128xf32> to vector<24x32xf32>
    %235 = arith.truncf %234 : vector<24x32xf32> to vector<24x32xbf16>
    %cst_123 = arith.constant dense<0.000000e+00> : vector<24x24xf32>
    %236 = tpu.matmul %231, %233, %cst_123 {dimension_numbers = #tpu.dot_dimension_numbers<[1], [1], [0], [0], [0, 0, 1, 0], [], []>} : vector<24x32xbf16>, vector<24x32xbf16>, vector<24x24xf32> -> vector<24x24xf32>
    %237 = arith.addf %236, %140 : vector<24x24xf32>
    %cst_124 = arith.constant dense<0xFF800000> : vector<24xf32>
    %238 = vector.multi_reduction <maximumf>, %237, %cst_124 [1] : vector<24x24xf32> to vector<24xf32>
    %239 = vector.shape_cast %238 : vector<24xf32> to vector<24x1xf32>
    %240 = vector.broadcast %239 : vector<24x1xf32> to vector<24x24xf32>
    %241 = arith.subf %237, %240 : vector<24x24xf32>
    %242 = math.exp %241 : vector<24x24xf32>
    %cst_125 = arith.constant dense<0.000000e+00> : vector<24xf32>
    %243 = vector.multi_reduction <add>, %242, %cst_125 [1] : vector<24x24xf32> to vector<24xf32>
    %244 = vector.shape_cast %243 : vector<24xf32> to vector<24x1xf32>
    %245 = tpu.reciprocal %244 {approx = true} : vector<24x1xf32> -> vector<24x1xf32>
    %246 = vector.broadcast %245 : vector<24x1xf32> to vector<24x24xf32>
    %247 = arith.mulf %242, %246 : vector<24x24xf32>
    %248 = arith.truncf %247 : vector<24x24xf32> to vector<24x24xbf16>
    %cst_126 = arith.constant dense<0.000000e+00> : vector<24x32xf32>
    %249 = tpu.matmul %248, %235, %cst_126 {dimension_numbers = #tpu.dot_dimension_numbers<[1], [0], [0], [1], [0, 0, 1, 1], [], []>} : vector<24x24xbf16>, vector<24x32xbf16>, vector<24x32xf32> -> vector<24x32xf32>
    %250 = arith.truncf %249 : vector<24x32xf32> to vector<24x32xbf16>
    %c0_127 = arith.constant 0 : index
    %c3_128 = arith.constant 3 : index
    %c0_129 = arith.constant 0 : index
    %c0_130 = arith.constant 0 : index
    %251 = vector.load %arg9[%c0_127, %c3_128, %c0_129, %c0_130] : memref<4x4x129x128xbf16, #tpu.memory_space<vmem>>, vector<1x1x32x128xbf16>
    %252 = vector.shape_cast %251 : vector<1x1x32x128xbf16> to vector<32x128xbf16>
    %cst_131 = arith.constant dense<0.000000e+00> : vector<24x128xf32>
    %253 = tpu.matmul %250, %252, %cst_131 {dimension_numbers = #tpu.dot_dimension_numbers<[1], [0], [0], [1], [0, 0, 1, 1], [], []>} : vector<24x32xbf16>, vector<32x128xbf16>, vector<24x128xf32> -> vector<24x128xf32>
    %254 = vector.broadcast %227 : vector<1x128xf32> to vector<24x128xf32>
    %255 = arith.addf %254, %253 : vector<24x128xf32>
    %256 = vector.extract_strided_slice %208 {offsets = [0, 32], sizes = [24, 32], strides = [1, 1]} : vector<24x128xf32> to vector<24x32xf32>
    %cst_132 = arith.constant 0.176776692 : f32
    %257 = vector.broadcast %cst_132 : f32 to vector<24x32xf32>
    %258 = arith.mulf %256, %257 : vector<24x32xf32>
    %259 = arith.truncf %258 : vector<24x32xf32> to vector<24x32xbf16>
    %260 = vector.extract_strided_slice %216 {offsets = [0, 32], sizes = [24, 32], strides = [1, 1]} : vector<24x128xf32> to vector<24x32xf32>
    %261 = arith.truncf %260 : vector<24x32xf32> to vector<24x32xbf16>
    %262 = vector.extract_strided_slice %224 {offsets = [0, 32], sizes = [24, 32], strides = [1, 1]} : vector<24x128xf32> to vector<24x32xf32>
    %263 = arith.truncf %262 : vector<24x32xf32> to vector<24x32xbf16>
    %cst_133 = arith.constant dense<0.000000e+00> : vector<24x24xf32>
    %264 = tpu.matmul %259, %261, %cst_133 {dimension_numbers = #tpu.dot_dimension_numbers<[1], [1], [0], [0], [0, 0, 1, 0], [], []>} : vector<24x32xbf16>, vector<24x32xbf16>, vector<24x24xf32> -> vector<24x24xf32>
    %265 = arith.addf %264, %140 : vector<24x24xf32>
    %cst_134 = arith.constant dense<0xFF800000> : vector<24xf32>
    %266 = vector.multi_reduction <maximumf>, %265, %cst_134 [1] : vector<24x24xf32> to vector<24xf32>
    %267 = vector.shape_cast %266 : vector<24xf32> to vector<24x1xf32>
    %268 = vector.broadcast %267 : vector<24x1xf32> to vector<24x24xf32>
    %269 = arith.subf %265, %268 : vector<24x24xf32>
    %270 = math.exp %269 : vector<24x24xf32>
    %cst_135 = arith.constant dense<0.000000e+00> : vector<24xf32>
    %271 = vector.multi_reduction <add>, %270, %cst_135 [1] : vector<24x24xf32> to vector<24xf32>
    %272 = vector.shape_cast %271 : vector<24xf32> to vector<24x1xf32>
    %273 = tpu.reciprocal %272 {approx = true} : vector<24x1xf32> -> vector<24x1xf32>
    %274 = vector.broadcast %273 : vector<24x1xf32> to vector<24x24xf32>
    %275 = arith.mulf %270, %274 : vector<24x24xf32>
    %276 = arith.truncf %275 : vector<24x24xf32> to vector<24x24xbf16>
    %cst_136 = arith.constant dense<0.000000e+00> : vector<24x32xf32>
    %277 = tpu.matmul %276, %263, %cst_136 {dimension_numbers = #tpu.dot_dimension_numbers<[1], [0], [0], [1], [0, 0, 1, 1], [], []>} : vector<24x24xbf16>, vector<24x32xbf16>, vector<24x32xf32> -> vector<24x32xf32>
    %278 = arith.truncf %277 : vector<24x32xf32> to vector<24x32xbf16>
    %c0_137 = arith.constant 0 : index
    %c3_138 = arith.constant 3 : index
    %c32 = arith.constant 32 : index
    %c0_139 = arith.constant 0 : index
    %279 = vector.load %arg9[%c0_137, %c3_138, %c32, %c0_139] : memref<4x4x129x128xbf16, #tpu.memory_space<vmem>>, vector<1x1x32x128xbf16>
    %280 = vector.shape_cast %279 : vector<1x1x32x128xbf16> to vector<32x128xbf16>
    %cst_140 = arith.constant dense<0.000000e+00> : vector<24x128xf32>
    %281 = tpu.matmul %278, %280, %cst_140 {dimension_numbers = #tpu.dot_dimension_numbers<[1], [0], [0], [1], [0, 0, 1, 1], [], []>} : vector<24x32xbf16>, vector<32x128xbf16>, vector<24x128xf32> -> vector<24x128xf32>
    %282 = arith.addf %255, %281 : vector<24x128xf32>
    %283 = vector.extract_strided_slice %208 {offsets = [0, 64], sizes = [24, 32], strides = [1, 1]} : vector<24x128xf32> to vector<24x32xf32>
    %cst_141 = arith.constant 0.176776692 : f32
    %284 = vector.broadcast %cst_141 : f32 to vector<24x32xf32>
    %285 = arith.mulf %283, %284 : vector<24x32xf32>
    %286 = arith.truncf %285 : vector<24x32xf32> to vector<24x32xbf16>
    %287 = vector.extract_strided_slice %216 {offsets = [0, 64], sizes = [24, 32], strides = [1, 1]} : vector<24x128xf32> to vector<24x32xf32>
    %288 = arith.truncf %287 : vector<24x32xf32> to vector<24x32xbf16>
    %289 = vector.extract_strided_slice %224 {offsets = [0, 64], sizes = [24, 32], strides = [1, 1]} : vector<24x128xf32> to vector<24x32xf32>
    %290 = arith.truncf %289 : vector<24x32xf32> to vector<24x32xbf16>
    %cst_142 = arith.constant dense<0.000000e+00> : vector<24x24xf32>
    %291 = tpu.matmul %286, %288, %cst_142 {dimension_numbers = #tpu.dot_dimension_numbers<[1], [1], [0], [0], [0, 0, 1, 0], [], []>} : vector<24x32xbf16>, vector<24x32xbf16>, vector<24x24xf32> -> vector<24x24xf32>
    %292 = arith.addf %291, %140 : vector<24x24xf32>
    %cst_143 = arith.constant dense<0xFF800000> : vector<24xf32>
    %293 = vector.multi_reduction <maximumf>, %292, %cst_143 [1] : vector<24x24xf32> to vector<24xf32>
    %294 = vector.shape_cast %293 : vector<24xf32> to vector<24x1xf32>
    %295 = vector.broadcast %294 : vector<24x1xf32> to vector<24x24xf32>
    %296 = arith.subf %292, %295 : vector<24x24xf32>
    %297 = math.exp %296 : vector<24x24xf32>
    %cst_144 = arith.constant dense<0.000000e+00> : vector<24xf32>
    %298 = vector.multi_reduction <add>, %297, %cst_144 [1] : vector<24x24xf32> to vector<24xf32>
    %299 = vector.shape_cast %298 : vector<24xf32> to vector<24x1xf32>
    %300 = tpu.reciprocal %299 {approx = true} : vector<24x1xf32> -> vector<24x1xf32>
    %301 = vector.broadcast %300 : vector<24x1xf32> to vector<24x24xf32>
    %302 = arith.mulf %297, %301 : vector<24x24xf32>
    %303 = arith.truncf %302 : vector<24x24xf32> to vector<24x24xbf16>
    %cst_145 = arith.constant dense<0.000000e+00> : vector<24x32xf32>
    %304 = tpu.matmul %303, %290, %cst_145 {dimension_numbers = #tpu.dot_dimension_numbers<[1], [0], [0], [1], [0, 0, 1, 1], [], []>} : vector<24x24xbf16>, vector<24x32xbf16>, vector<24x32xf32> -> vector<24x32xf32>
    %305 = arith.truncf %304 : vector<24x32xf32> to vector<24x32xbf16>
    %c0_146 = arith.constant 0 : index
    %c3_147 = arith.constant 3 : index
    %c64 = arith.constant 64 : index
    %c0_148 = arith.constant 0 : index
    %306 = vector.load %arg9[%c0_146, %c3_147, %c64, %c0_148] : memref<4x4x129x128xbf16, #tpu.memory_space<vmem>>, vector<1x1x32x128xbf16>
    %307 = vector.shape_cast %306 : vector<1x1x32x128xbf16> to vector<32x128xbf16>
    %cst_149 = arith.constant dense<0.000000e+00> : vector<24x128xf32>
    %308 = tpu.matmul %305, %307, %cst_149 {dimension_numbers = #tpu.dot_dimension_numbers<[1], [0], [0], [1], [0, 0, 1, 1], [], []>} : vector<24x32xbf16>, vector<32x128xbf16>, vector<24x128xf32> -> vector<24x128xf32>
    %309 = arith.addf %282, %308 : vector<24x128xf32>
    %310 = vector.extract_strided_slice %208 {offsets = [0, 96], sizes = [24, 32], strides = [1, 1]} : vector<24x128xf32> to vector<24x32xf32>
    %cst_150 = arith.constant 0.176776692 : f32
    %311 = vector.broadcast %cst_150 : f32 to vector<24x32xf32>
    %312 = arith.mulf %310, %311 : vector<24x32xf32>
    %313 = arith.truncf %312 : vector<24x32xf32> to vector<24x32xbf16>
    %314 = vector.extract_strided_slice %216 {offsets = [0, 96], sizes = [24, 32], strides = [1, 1]} : vector<24x128xf32> to vector<24x32xf32>
    %315 = arith.truncf %314 : vector<24x32xf32> to vector<24x32xbf16>
    %316 = vector.extract_strided_slice %224 {offsets = [0, 96], sizes = [24, 32], strides = [1, 1]} : vector<24x128xf32> to vector<24x32xf32>
    %317 = arith.truncf %316 : vector<24x32xf32> to vector<24x32xbf16>
    %cst_151 = arith.constant dense<0.000000e+00> : vector<24x24xf32>
    %318 = tpu.matmul %313, %315, %cst_151 {dimension_numbers = #tpu.dot_dimension_numbers<[1], [1], [0], [0], [0, 0, 1, 0], [], []>} : vector<24x32xbf16>, vector<24x32xbf16>, vector<24x24xf32> -> vector<24x24xf32>
    %319 = arith.addf %318, %140 : vector<24x24xf32>
    %cst_152 = arith.constant dense<0xFF800000> : vector<24xf32>
    %320 = vector.multi_reduction <maximumf>, %319, %cst_152 [1] : vector<24x24xf32> to vector<24xf32>
    %321 = vector.shape_cast %320 : vector<24xf32> to vector<24x1xf32>
    %322 = vector.broadcast %321 : vector<24x1xf32> to vector<24x24xf32>
    %323 = arith.subf %319, %322 : vector<24x24xf32>
    %324 = math.exp %323 : vector<24x24xf32>
    %cst_153 = arith.constant dense<0.000000e+00> : vector<24xf32>
    %325 = vector.multi_reduction <add>, %324, %cst_153 [1] : vector<24x24xf32> to vector<24xf32>
    %326 = vector.shape_cast %325 : vector<24xf32> to vector<24x1xf32>
    %327 = tpu.reciprocal %326 {approx = true} : vector<24x1xf32> -> vector<24x1xf32>
    %328 = vector.broadcast %327 : vector<24x1xf32> to vector<24x24xf32>
    %329 = arith.mulf %324, %328 : vector<24x24xf32>
    %330 = arith.truncf %329 : vector<24x24xf32> to vector<24x24xbf16>
    %cst_154 = arith.constant dense<0.000000e+00> : vector<24x32xf32>
    %331 = tpu.matmul %330, %317, %cst_154 {dimension_numbers = #tpu.dot_dimension_numbers<[1], [0], [0], [1], [0, 0, 1, 1], [], []>} : vector<24x24xbf16>, vector<24x32xbf16>, vector<24x32xf32> -> vector<24x32xf32>
    %332 = arith.truncf %331 : vector<24x32xf32> to vector<24x32xbf16>
    %c0_155 = arith.constant 0 : index
    %c3_156 = arith.constant 3 : index
    %c96 = arith.constant 96 : index
    %c0_157 = arith.constant 0 : index
    %333 = vector.load %arg9[%c0_155, %c3_156, %c96, %c0_157] : memref<4x4x129x128xbf16, #tpu.memory_space<vmem>>, vector<1x1x32x128xbf16>
    %334 = vector.shape_cast %333 : vector<1x1x32x128xbf16> to vector<32x128xbf16>
    %cst_158 = arith.constant dense<0.000000e+00> : vector<24x128xf32>
    %335 = tpu.matmul %332, %334, %cst_158 {dimension_numbers = #tpu.dot_dimension_numbers<[1], [0], [0], [1], [0, 0, 1, 1], [], []>} : vector<24x32xbf16>, vector<32x128xbf16>, vector<24x128xf32> -> vector<24x128xf32>
    %336 = arith.addf %309, %335 : vector<24x128xf32>
    %337 = arith.addf %173, %336 : vector<24x128xf32>
    %338 = vector.extract_strided_slice %175 {offsets = [2, 0], sizes = [1, 128], strides = [1, 1]} : vector<4x128xf32> to vector<1x128xf32>
    %339 = vector.extract_strided_slice %175 {offsets = [3, 0], sizes = [1, 128], strides = [1, 1]} : vector<4x128xf32> to vector<1x128xf32>
    %cst_159 = arith.constant dense<0.000000e+00> : vector<24xf32>
    %340 = vector.multi_reduction <add>, %337, %cst_159 [1] : vector<24x128xf32> to vector<24xf32>
    %341 = vector.shape_cast %340 : vector<24xf32> to vector<24x1xf32>
    %cst_160 = arith.constant 1.280000e+02 : f32
    %342 = vector.broadcast %cst_160 : f32 to vector<24x1xf32>
    %343 = arith.divf %341, %342 : vector<24x1xf32>
    %344 = vector.broadcast %343 : vector<24x1xf32> to vector<24x128xf32>
    %345 = arith.subf %337, %344 : vector<24x128xf32>
    %346 = arith.mulf %345, %345 : vector<24x128xf32>
    %cst_161 = arith.constant dense<0.000000e+00> : vector<24xf32>
    %347 = vector.multi_reduction <add>, %346, %cst_161 [1] : vector<24x128xf32> to vector<24xf32>
    %348 = vector.shape_cast %347 : vector<24xf32> to vector<24x1xf32>
    %cst_162 = arith.constant 1.280000e+02 : f32
    %349 = vector.broadcast %cst_162 : f32 to vector<24x1xf32>
    %350 = arith.divf %348, %349 : vector<24x1xf32>
    %351 = vector.broadcast %343 : vector<24x1xf32> to vector<24x128xf32>
    %352 = arith.subf %337, %351 : vector<24x128xf32>
    %cst_163 = arith.constant 9.99999974E-6 : f32
    %353 = vector.broadcast %cst_163 : f32 to vector<24x1xf32>
    %354 = arith.addf %350, %353 : vector<24x1xf32>
    %355 = math.rsqrt %354 : vector<24x1xf32>
    %356 = vector.broadcast %355 : vector<24x1xf32> to vector<24x128xf32>
    %357 = arith.mulf %352, %356 : vector<24x128xf32>
    %358 = vector.broadcast %338 : vector<1x128xf32> to vector<24x128xf32>
    %359 = arith.mulf %357, %358 : vector<24x128xf32>
    %360 = vector.broadcast %339 : vector<1x128xf32> to vector<24x128xf32>
    %361 = arith.addf %359, %360 : vector<24x128xf32>
    %362 = arith.truncf %361 : vector<24x128xf32> to vector<24x128xbf16>
    %c0_164 = arith.constant 0 : index
    %c0_165 = arith.constant 0 : index
    %c0_166 = arith.constant 0 : index
    %363 = vector.load %arg10[%c0_164, %c0_165, %c0_166] : memref<4x129x512xbf16, #tpu.memory_space<vmem>>, vector<1x128x512xbf16>
    %364 = vector.shape_cast %363 : vector<1x128x512xbf16> to vector<128x512xbf16>
    %cst_167 = arith.constant dense<0.000000e+00> : vector<24x512xf32>
    %365 = tpu.matmul %362, %364, %cst_167 {dimension_numbers = #tpu.dot_dimension_numbers<[1], [0], [0], [1], [0, 0, 1, 1], [], []>} : vector<24x128xbf16>, vector<128x512xbf16>, vector<24x512xf32> -> vector<24x512xf32>
    %c0_168 = arith.constant 0 : index
    %c128_169 = arith.constant 128 : index
    %c0_170 = arith.constant 0 : index
    %366 = vector.load %arg10[%c0_168, %c128_169, %c0_170] : memref<4x129x512xbf16, #tpu.memory_space<vmem>>, vector<1x1x512xbf16>
    %367 = vector.shape_cast %366 : vector<1x1x512xbf16> to vector<1x512xbf16>
    %368 = arith.extf %367 : vector<1x512xbf16> to vector<1x512xf32>
    %369 = vector.broadcast %368 : vector<1x512xf32> to vector<24x512xf32>
    %370 = arith.addf %365, %369 : vector<24x512xf32>
    %cst_171 = arith.constant 5.000000e-01 : f32
    %371 = vector.broadcast %cst_171 : f32 to vector<24x512xf32>
    %372 = arith.mulf %371, %370 : vector<24x512xf32>
    %cst_172 = arith.constant 4.471500e-02 : f32
    %373 = vector.broadcast %cst_172 : f32 to vector<24x512xf32>
    %374 = arith.mulf %373, %370 : vector<24x512xf32>
    %375 = arith.mulf %374, %370 : vector<24x512xf32>
    %376 = arith.mulf %375, %370 : vector<24x512xf32>
    %377 = arith.addf %370, %376 : vector<24x512xf32>
    %cst_173 = arith.constant 0.797884583 : f32
    %378 = vector.broadcast %cst_173 : f32 to vector<24x512xf32>
    %379 = arith.mulf %378, %377 : vector<24x512xf32>
    %380 = math.tanh %379 : vector<24x512xf32>
    %cst_174 = arith.constant 1.000000e+00 : f32
    %381 = vector.broadcast %cst_174 : f32 to vector<24x512xf32>
    %382 = arith.addf %381, %380 : vector<24x512xf32>
    %383 = arith.mulf %372, %382 : vector<24x512xf32>
    %384 = arith.truncf %383 : vector<24x512xf32> to vector<24x512xbf16>
    %c0_175 = arith.constant 0 : index
    %c0_176 = arith.constant 0 : index
    %c0_177 = arith.constant 0 : index
    %385 = vector.load %arg11[%c0_175, %c0_176, %c0_177] : memref<4x513x128xbf16, #tpu.memory_space<vmem>>, vector<1x512x128xbf16>
    %386 = vector.shape_cast %385 : vector<1x512x128xbf16> to vector<512x128xbf16>
    %cst_178 = arith.constant dense<0.000000e+00> : vector<24x128xf32>
    %387 = tpu.matmul %384, %386, %cst_178 {dimension_numbers = #tpu.dot_dimension_numbers<[1], [0], [0], [1], [0, 0, 1, 1], [], []>} : vector<24x512xbf16>, vector<512x128xbf16>, vector<24x128xf32> -> vector<24x128xf32>
    %388 = arith.addf %337, %387 : vector<24x128xf32>
    %c0_179 = arith.constant 0 : index
    %c512 = arith.constant 512 : index
    %c0_180 = arith.constant 0 : index
    %389 = vector.load %arg11[%c0_179, %c512, %c0_180] : memref<4x513x128xbf16, #tpu.memory_space<vmem>>, vector<1x1x128xbf16>
    %390 = vector.shape_cast %389 : vector<1x1x128xbf16> to vector<1x128xbf16>
    %391 = arith.extf %390 : vector<1x128xbf16> to vector<1x128xf32>
    %392 = vector.broadcast %391 : vector<1x128xf32> to vector<24x128xf32>
    %393 = arith.addf %388, %392 : vector<24x128xf32>
    %c1_181 = arith.constant 1 : index
    %c0_182 = arith.constant 0 : index
    %c0_183 = arith.constant 0 : index
    %394 = vector.load %arg8[%c1_181, %c0_182, %c0_183] : memref<4x4x128xf32, #tpu.memory_space<vmem>>, vector<1x4x128xf32>
    %395 = vector.shape_cast %394 : vector<1x4x128xf32> to vector<4x128xf32>
    %396 = vector.extract_strided_slice %395 {offsets = [0, 0], sizes = [1, 128], strides = [1, 1]} : vector<4x128xf32> to vector<1x128xf32>
    %397 = vector.extract_strided_slice %395 {offsets = [1, 0], sizes = [1, 128], strides = [1, 1]} : vector<4x128xf32> to vector<1x128xf32>
    %cst_184 = arith.constant dense<0.000000e+00> : vector<24xf32>
    %398 = vector.multi_reduction <add>, %393, %cst_184 [1] : vector<24x128xf32> to vector<24xf32>
    %399 = vector.shape_cast %398 : vector<24xf32> to vector<24x1xf32>
    %cst_185 = arith.constant 1.280000e+02 : f32
    %400 = vector.broadcast %cst_185 : f32 to vector<24x1xf32>
    %401 = arith.divf %399, %400 : vector<24x1xf32>
    %402 = vector.broadcast %401 : vector<24x1xf32> to vector<24x128xf32>
    %403 = arith.subf %393, %402 : vector<24x128xf32>
    %404 = arith.mulf %403, %403 : vector<24x128xf32>
    %cst_186 = arith.constant dense<0.000000e+00> : vector<24xf32>
    %405 = vector.multi_reduction <add>, %404, %cst_186 [1] : vector<24x128xf32> to vector<24xf32>
    %406 = vector.shape_cast %405 : vector<24xf32> to vector<24x1xf32>
    %cst_187 = arith.constant 1.280000e+02 : f32
    %407 = vector.broadcast %cst_187 : f32 to vector<24x1xf32>
    %408 = arith.divf %406, %407 : vector<24x1xf32>
    %409 = vector.broadcast %401 : vector<24x1xf32> to vector<24x128xf32>
    %410 = arith.subf %393, %409 : vector<24x128xf32>
    %cst_188 = arith.constant 9.99999974E-6 : f32
    %411 = vector.broadcast %cst_188 : f32 to vector<24x1xf32>
    %412 = arith.addf %408, %411 : vector<24x1xf32>
    %413 = math.rsqrt %412 : vector<24x1xf32>
    %414 = vector.broadcast %413 : vector<24x1xf32> to vector<24x128xf32>
    %415 = arith.mulf %410, %414 : vector<24x128xf32>
    %416 = vector.broadcast %396 : vector<1x128xf32> to vector<24x128xf32>
    %417 = arith.mulf %415, %416 : vector<24x128xf32>
    %418 = vector.broadcast %397 : vector<1x128xf32> to vector<24x128xf32>
    %419 = arith.addf %417, %418 : vector<24x128xf32>
    %420 = arith.truncf %419 : vector<24x128xf32> to vector<24x128xbf16>
    %c1_189 = arith.constant 1 : index
    %c0_190 = arith.constant 0 : index
    %c0_191 = arith.constant 0 : index
    %c0_192 = arith.constant 0 : index
    %421 = vector.load %arg9[%c1_189, %c0_190, %c0_191, %c0_192] : memref<4x4x129x128xbf16, #tpu.memory_space<vmem>>, vector<1x1x128x128xbf16>
    %422 = vector.shape_cast %421 : vector<1x1x128x128xbf16> to vector<128x128xbf16>
    %c1_193 = arith.constant 1 : index
    %c0_194 = arith.constant 0 : index
    %c128_195 = arith.constant 128 : index
    %c0_196 = arith.constant 0 : index
    %423 = vector.load %arg9[%c1_193, %c0_194, %c128_195, %c0_196] : memref<4x4x129x128xbf16, #tpu.memory_space<vmem>>, vector<1x1x1x128xbf16>
    %424 = vector.shape_cast %423 : vector<1x1x1x128xbf16> to vector<1x128xbf16>
    %425 = arith.extf %424 : vector<1x128xbf16> to vector<1x128xf32>
    %cst_197 = arith.constant dense<0.000000e+00> : vector<24x128xf32>
    %426 = tpu.matmul %420, %422, %cst_197 {dimension_numbers = #tpu.dot_dimension_numbers<[1], [0], [0], [1], [0, 0, 1, 1], [], []>} : vector<24x128xbf16>, vector<128x128xbf16>, vector<24x128xf32> -> vector<24x128xf32>
    %427 = vector.broadcast %425 : vector<1x128xf32> to vector<24x128xf32>
    %428 = arith.addf %426, %427 : vector<24x128xf32>
    %c1_198 = arith.constant 1 : index
    %c1_199 = arith.constant 1 : index
    %c0_200 = arith.constant 0 : index
    %c0_201 = arith.constant 0 : index
    %429 = vector.load %arg9[%c1_198, %c1_199, %c0_200, %c0_201] : memref<4x4x129x128xbf16, #tpu.memory_space<vmem>>, vector<1x1x128x128xbf16>
    %430 = vector.shape_cast %429 : vector<1x1x128x128xbf16> to vector<128x128xbf16>
    %c1_202 = arith.constant 1 : index
    %c1_203 = arith.constant 1 : index
    %c128_204 = arith.constant 128 : index
    %c0_205 = arith.constant 0 : index
    %431 = vector.load %arg9[%c1_202, %c1_203, %c128_204, %c0_205] : memref<4x4x129x128xbf16, #tpu.memory_space<vmem>>, vector<1x1x1x128xbf16>
    %432 = vector.shape_cast %431 : vector<1x1x1x128xbf16> to vector<1x128xbf16>
    %433 = arith.extf %432 : vector<1x128xbf16> to vector<1x128xf32>
    %cst_206 = arith.constant dense<0.000000e+00> : vector<24x128xf32>
    %434 = tpu.matmul %420, %430, %cst_206 {dimension_numbers = #tpu.dot_dimension_numbers<[1], [0], [0], [1], [0, 0, 1, 1], [], []>} : vector<24x128xbf16>, vector<128x128xbf16>, vector<24x128xf32> -> vector<24x128xf32>
    %435 = vector.broadcast %433 : vector<1x128xf32> to vector<24x128xf32>
    %436 = arith.addf %434, %435 : vector<24x128xf32>
    %c1_207 = arith.constant 1 : index
    %c2_208 = arith.constant 2 : index
    %c0_209 = arith.constant 0 : index
    %c0_210 = arith.constant 0 : index
    %437 = vector.load %arg9[%c1_207, %c2_208, %c0_209, %c0_210] : memref<4x4x129x128xbf16, #tpu.memory_space<vmem>>, vector<1x1x128x128xbf16>
    %438 = vector.shape_cast %437 : vector<1x1x128x128xbf16> to vector<128x128xbf16>
    %c1_211 = arith.constant 1 : index
    %c2_212 = arith.constant 2 : index
    %c128_213 = arith.constant 128 : index
    %c0_214 = arith.constant 0 : index
    %439 = vector.load %arg9[%c1_211, %c2_212, %c128_213, %c0_214] : memref<4x4x129x128xbf16, #tpu.memory_space<vmem>>, vector<1x1x1x128xbf16>
    %440 = vector.shape_cast %439 : vector<1x1x1x128xbf16> to vector<1x128xbf16>
    %441 = arith.extf %440 : vector<1x128xbf16> to vector<1x128xf32>
    %cst_215 = arith.constant dense<0.000000e+00> : vector<24x128xf32>
    %442 = tpu.matmul %420, %438, %cst_215 {dimension_numbers = #tpu.dot_dimension_numbers<[1], [0], [0], [1], [0, 0, 1, 1], [], []>} : vector<24x128xbf16>, vector<128x128xbf16>, vector<24x128xf32> -> vector<24x128xf32>
    %443 = vector.broadcast %441 : vector<1x128xf32> to vector<24x128xf32>
    %444 = arith.addf %442, %443 : vector<24x128xf32>
    %c1_216 = arith.constant 1 : index
    %c3_217 = arith.constant 3 : index
    %c128_218 = arith.constant 128 : index
    %c0_219 = arith.constant 0 : index
    %445 = vector.load %arg9[%c1_216, %c3_217, %c128_218, %c0_219] : memref<4x4x129x128xbf16, #tpu.memory_space<vmem>>, vector<1x1x1x128xbf16>
    %446 = vector.shape_cast %445 : vector<1x1x1x128xbf16> to vector<1x128xbf16>
    %447 = arith.extf %446 : vector<1x128xbf16> to vector<1x128xf32>
    %448 = vector.extract_strided_slice %428 {offsets = [0, 0], sizes = [24, 32], strides = [1, 1]} : vector<24x128xf32> to vector<24x32xf32>
    %cst_220 = arith.constant 0.176776692 : f32
    %449 = vector.broadcast %cst_220 : f32 to vector<24x32xf32>
    %450 = arith.mulf %448, %449 : vector<24x32xf32>
    %451 = arith.truncf %450 : vector<24x32xf32> to vector<24x32xbf16>
    %452 = vector.extract_strided_slice %436 {offsets = [0, 0], sizes = [24, 32], strides = [1, 1]} : vector<24x128xf32> to vector<24x32xf32>
    %453 = arith.truncf %452 : vector<24x32xf32> to vector<24x32xbf16>
    %454 = vector.extract_strided_slice %444 {offsets = [0, 0], sizes = [24, 32], strides = [1, 1]} : vector<24x128xf32> to vector<24x32xf32>
    %455 = arith.truncf %454 : vector<24x32xf32> to vector<24x32xbf16>
    %cst_221 = arith.constant dense<0.000000e+00> : vector<24x24xf32>
    %456 = tpu.matmul %451, %453, %cst_221 {dimension_numbers = #tpu.dot_dimension_numbers<[1], [1], [0], [0], [0, 0, 1, 0], [], []>} : vector<24x32xbf16>, vector<24x32xbf16>, vector<24x24xf32> -> vector<24x24xf32>
    %457 = arith.addf %456, %140 : vector<24x24xf32>
    %cst_222 = arith.constant dense<0xFF800000> : vector<24xf32>
    %458 = vector.multi_reduction <maximumf>, %457, %cst_222 [1] : vector<24x24xf32> to vector<24xf32>
    %459 = vector.shape_cast %458 : vector<24xf32> to vector<24x1xf32>
    %460 = vector.broadcast %459 : vector<24x1xf32> to vector<24x24xf32>
    %461 = arith.subf %457, %460 : vector<24x24xf32>
    %462 = math.exp %461 : vector<24x24xf32>
    %cst_223 = arith.constant dense<0.000000e+00> : vector<24xf32>
    %463 = vector.multi_reduction <add>, %462, %cst_223 [1] : vector<24x24xf32> to vector<24xf32>
    %464 = vector.shape_cast %463 : vector<24xf32> to vector<24x1xf32>
    %465 = tpu.reciprocal %464 {approx = true} : vector<24x1xf32> -> vector<24x1xf32>
    %466 = vector.broadcast %465 : vector<24x1xf32> to vector<24x24xf32>
    %467 = arith.mulf %462, %466 : vector<24x24xf32>
    %468 = arith.truncf %467 : vector<24x24xf32> to vector<24x24xbf16>
    %cst_224 = arith.constant dense<0.000000e+00> : vector<24x32xf32>
    %469 = tpu.matmul %468, %455, %cst_224 {dimension_numbers = #tpu.dot_dimension_numbers<[1], [0], [0], [1], [0, 0, 1, 1], [], []>} : vector<24x24xbf16>, vector<24x32xbf16>, vector<24x32xf32> -> vector<24x32xf32>
    %470 = arith.truncf %469 : vector<24x32xf32> to vector<24x32xbf16>
    %c1_225 = arith.constant 1 : index
    %c3_226 = arith.constant 3 : index
    %c0_227 = arith.constant 0 : index
    %c0_228 = arith.constant 0 : index
    %471 = vector.load %arg9[%c1_225, %c3_226, %c0_227, %c0_228] : memref<4x4x129x128xbf16, #tpu.memory_space<vmem>>, vector<1x1x32x128xbf16>
    %472 = vector.shape_cast %471 : vector<1x1x32x128xbf16> to vector<32x128xbf16>
    %cst_229 = arith.constant dense<0.000000e+00> : vector<24x128xf32>
    %473 = tpu.matmul %470, %472, %cst_229 {dimension_numbers = #tpu.dot_dimension_numbers<[1], [0], [0], [1], [0, 0, 1, 1], [], []>} : vector<24x32xbf16>, vector<32x128xbf16>, vector<24x128xf32> -> vector<24x128xf32>
    %474 = vector.broadcast %447 : vector<1x128xf32> to vector<24x128xf32>
    %475 = arith.addf %474, %473 : vector<24x128xf32>
    %476 = vector.extract_strided_slice %428 {offsets = [0, 32], sizes = [24, 32], strides = [1, 1]} : vector<24x128xf32> to vector<24x32xf32>
    %cst_230 = arith.constant 0.176776692 : f32
    %477 = vector.broadcast %cst_230 : f32 to vector<24x32xf32>
    %478 = arith.mulf %476, %477 : vector<24x32xf32>
    %479 = arith.truncf %478 : vector<24x32xf32> to vector<24x32xbf16>
    %480 = vector.extract_strided_slice %436 {offsets = [0, 32], sizes = [24, 32], strides = [1, 1]} : vector<24x128xf32> to vector<24x32xf32>
    %481 = arith.truncf %480 : vector<24x32xf32> to vector<24x32xbf16>
    %482 = vector.extract_strided_slice %444 {offsets = [0, 32], sizes = [24, 32], strides = [1, 1]} : vector<24x128xf32> to vector<24x32xf32>
    %483 = arith.truncf %482 : vector<24x32xf32> to vector<24x32xbf16>
    %cst_231 = arith.constant dense<0.000000e+00> : vector<24x24xf32>
    %484 = tpu.matmul %479, %481, %cst_231 {dimension_numbers = #tpu.dot_dimension_numbers<[1], [1], [0], [0], [0, 0, 1, 0], [], []>} : vector<24x32xbf16>, vector<24x32xbf16>, vector<24x24xf32> -> vector<24x24xf32>
    %485 = arith.addf %484, %140 : vector<24x24xf32>
    %cst_232 = arith.constant dense<0xFF800000> : vector<24xf32>
    %486 = vector.multi_reduction <maximumf>, %485, %cst_232 [1] : vector<24x24xf32> to vector<24xf32>
    %487 = vector.shape_cast %486 : vector<24xf32> to vector<24x1xf32>
    %488 = vector.broadcast %487 : vector<24x1xf32> to vector<24x24xf32>
    %489 = arith.subf %485, %488 : vector<24x24xf32>
    %490 = math.exp %489 : vector<24x24xf32>
    %cst_233 = arith.constant dense<0.000000e+00> : vector<24xf32>
    %491 = vector.multi_reduction <add>, %490, %cst_233 [1] : vector<24x24xf32> to vector<24xf32>
    %492 = vector.shape_cast %491 : vector<24xf32> to vector<24x1xf32>
    %493 = tpu.reciprocal %492 {approx = true} : vector<24x1xf32> -> vector<24x1xf32>
    %494 = vector.broadcast %493 : vector<24x1xf32> to vector<24x24xf32>
    %495 = arith.mulf %490, %494 : vector<24x24xf32>
    %496 = arith.truncf %495 : vector<24x24xf32> to vector<24x24xbf16>
    %cst_234 = arith.constant dense<0.000000e+00> : vector<24x32xf32>
    %497 = tpu.matmul %496, %483, %cst_234 {dimension_numbers = #tpu.dot_dimension_numbers<[1], [0], [0], [1], [0, 0, 1, 1], [], []>} : vector<24x24xbf16>, vector<24x32xbf16>, vector<24x32xf32> -> vector<24x32xf32>
    %498 = arith.truncf %497 : vector<24x32xf32> to vector<24x32xbf16>
    %c1_235 = arith.constant 1 : index
    %c3_236 = arith.constant 3 : index
    %c32_237 = arith.constant 32 : index
    %c0_238 = arith.constant 0 : index
    %499 = vector.load %arg9[%c1_235, %c3_236, %c32_237, %c0_238] : memref<4x4x129x128xbf16, #tpu.memory_space<vmem>>, vector<1x1x32x128xbf16>
    %500 = vector.shape_cast %499 : vector<1x1x32x128xbf16> to vector<32x128xbf16>
    %cst_239 = arith.constant dense<0.000000e+00> : vector<24x128xf32>
    %501 = tpu.matmul %498, %500, %cst_239 {dimension_numbers = #tpu.dot_dimension_numbers<[1], [0], [0], [1], [0, 0, 1, 1], [], []>} : vector<24x32xbf16>, vector<32x128xbf16>, vector<24x128xf32> -> vector<24x128xf32>
    %502 = arith.addf %475, %501 : vector<24x128xf32>
    %503 = vector.extract_strided_slice %428 {offsets = [0, 64], sizes = [24, 32], strides = [1, 1]} : vector<24x128xf32> to vector<24x32xf32>
    %cst_240 = arith.constant 0.176776692 : f32
    %504 = vector.broadcast %cst_240 : f32 to vector<24x32xf32>
    %505 = arith.mulf %503, %504 : vector<24x32xf32>
    %506 = arith.truncf %505 : vector<24x32xf32> to vector<24x32xbf16>
    %507 = vector.extract_strided_slice %436 {offsets = [0, 64], sizes = [24, 32], strides = [1, 1]} : vector<24x128xf32> to vector<24x32xf32>
    %508 = arith.truncf %507 : vector<24x32xf32> to vector<24x32xbf16>
    %509 = vector.extract_strided_slice %444 {offsets = [0, 64], sizes = [24, 32], strides = [1, 1]} : vector<24x128xf32> to vector<24x32xf32>
    %510 = arith.truncf %509 : vector<24x32xf32> to vector<24x32xbf16>
    %cst_241 = arith.constant dense<0.000000e+00> : vector<24x24xf32>
    %511 = tpu.matmul %506, %508, %cst_241 {dimension_numbers = #tpu.dot_dimension_numbers<[1], [1], [0], [0], [0, 0, 1, 0], [], []>} : vector<24x32xbf16>, vector<24x32xbf16>, vector<24x24xf32> -> vector<24x24xf32>
    %512 = arith.addf %511, %140 : vector<24x24xf32>
    %cst_242 = arith.constant dense<0xFF800000> : vector<24xf32>
    %513 = vector.multi_reduction <maximumf>, %512, %cst_242 [1] : vector<24x24xf32> to vector<24xf32>
    %514 = vector.shape_cast %513 : vector<24xf32> to vector<24x1xf32>
    %515 = vector.broadcast %514 : vector<24x1xf32> to vector<24x24xf32>
    %516 = arith.subf %512, %515 : vector<24x24xf32>
    %517 = math.exp %516 : vector<24x24xf32>
    %cst_243 = arith.constant dense<0.000000e+00> : vector<24xf32>
    %518 = vector.multi_reduction <add>, %517, %cst_243 [1] : vector<24x24xf32> to vector<24xf32>
    %519 = vector.shape_cast %518 : vector<24xf32> to vector<24x1xf32>
    %520 = tpu.reciprocal %519 {approx = true} : vector<24x1xf32> -> vector<24x1xf32>
    %521 = vector.broadcast %520 : vector<24x1xf32> to vector<24x24xf32>
    %522 = arith.mulf %517, %521 : vector<24x24xf32>
    %523 = arith.truncf %522 : vector<24x24xf32> to vector<24x24xbf16>
    %cst_244 = arith.constant dense<0.000000e+00> : vector<24x32xf32>
    %524 = tpu.matmul %523, %510, %cst_244 {dimension_numbers = #tpu.dot_dimension_numbers<[1], [0], [0], [1], [0, 0, 1, 1], [], []>} : vector<24x24xbf16>, vector<24x32xbf16>, vector<24x32xf32> -> vector<24x32xf32>
    %525 = arith.truncf %524 : vector<24x32xf32> to vector<24x32xbf16>
    %c1_245 = arith.constant 1 : index
    %c3_246 = arith.constant 3 : index
    %c64_247 = arith.constant 64 : index
    %c0_248 = arith.constant 0 : index
    %526 = vector.load %arg9[%c1_245, %c3_246, %c64_247, %c0_248] : memref<4x4x129x128xbf16, #tpu.memory_space<vmem>>, vector<1x1x32x128xbf16>
    %527 = vector.shape_cast %526 : vector<1x1x32x128xbf16> to vector<32x128xbf16>
    %cst_249 = arith.constant dense<0.000000e+00> : vector<24x128xf32>
    %528 = tpu.matmul %525, %527, %cst_249 {dimension_numbers = #tpu.dot_dimension_numbers<[1], [0], [0], [1], [0, 0, 1, 1], [], []>} : vector<24x32xbf16>, vector<32x128xbf16>, vector<24x128xf32> -> vector<24x128xf32>
    %529 = arith.addf %502, %528 : vector<24x128xf32>
    %530 = vector.extract_strided_slice %428 {offsets = [0, 96], sizes = [24, 32], strides = [1, 1]} : vector<24x128xf32> to vector<24x32xf32>
    %cst_250 = arith.constant 0.176776692 : f32
    %531 = vector.broadcast %cst_250 : f32 to vector<24x32xf32>
    %532 = arith.mulf %530, %531 : vector<24x32xf32>
    %533 = arith.truncf %532 : vector<24x32xf32> to vector<24x32xbf16>
    %534 = vector.extract_strided_slice %436 {offsets = [0, 96], sizes = [24, 32], strides = [1, 1]} : vector<24x128xf32> to vector<24x32xf32>
    %535 = arith.truncf %534 : vector<24x32xf32> to vector<24x32xbf16>
    %536 = vector.extract_strided_slice %444 {offsets = [0, 96], sizes = [24, 32], strides = [1, 1]} : vector<24x128xf32> to vector<24x32xf32>
    %537 = arith.truncf %536 : vector<24x32xf32> to vector<24x32xbf16>
    %cst_251 = arith.constant dense<0.000000e+00> : vector<24x24xf32>
    %538 = tpu.matmul %533, %535, %cst_251 {dimension_numbers = #tpu.dot_dimension_numbers<[1], [1], [0], [0], [0, 0, 1, 0], [], []>} : vector<24x32xbf16>, vector<24x32xbf16>, vector<24x24xf32> -> vector<24x24xf32>
    %539 = arith.addf %538, %140 : vector<24x24xf32>
    %cst_252 = arith.constant dense<0xFF800000> : vector<24xf32>
    %540 = vector.multi_reduction <maximumf>, %539, %cst_252 [1] : vector<24x24xf32> to vector<24xf32>
    %541 = vector.shape_cast %540 : vector<24xf32> to vector<24x1xf32>
    %542 = vector.broadcast %541 : vector<24x1xf32> to vector<24x24xf32>
    %543 = arith.subf %539, %542 : vector<24x24xf32>
    %544 = math.exp %543 : vector<24x24xf32>
    %cst_253 = arith.constant dense<0.000000e+00> : vector<24xf32>
    %545 = vector.multi_reduction <add>, %544, %cst_253 [1] : vector<24x24xf32> to vector<24xf32>
    %546 = vector.shape_cast %545 : vector<24xf32> to vector<24x1xf32>
    %547 = tpu.reciprocal %546 {approx = true} : vector<24x1xf32> -> vector<24x1xf32>
    %548 = vector.broadcast %547 : vector<24x1xf32> to vector<24x24xf32>
    %549 = arith.mulf %544, %548 : vector<24x24xf32>
    %550 = arith.truncf %549 : vector<24x24xf32> to vector<24x24xbf16>
    %cst_254 = arith.constant dense<0.000000e+00> : vector<24x32xf32>
    %551 = tpu.matmul %550, %537, %cst_254 {dimension_numbers = #tpu.dot_dimension_numbers<[1], [0], [0], [1], [0, 0, 1, 1], [], []>} : vector<24x24xbf16>, vector<24x32xbf16>, vector<24x32xf32> -> vector<24x32xf32>
    %552 = arith.truncf %551 : vector<24x32xf32> to vector<24x32xbf16>
    %c1_255 = arith.constant 1 : index
    %c3_256 = arith.constant 3 : index
    %c96_257 = arith.constant 96 : index
    %c0_258 = arith.constant 0 : index
    %553 = vector.load %arg9[%c1_255, %c3_256, %c96_257, %c0_258] : memref<4x4x129x128xbf16, #tpu.memory_space<vmem>>, vector<1x1x32x128xbf16>
    %554 = vector.shape_cast %553 : vector<1x1x32x128xbf16> to vector<32x128xbf16>
    %cst_259 = arith.constant dense<0.000000e+00> : vector<24x128xf32>
    %555 = tpu.matmul %552, %554, %cst_259 {dimension_numbers = #tpu.dot_dimension_numbers<[1], [0], [0], [1], [0, 0, 1, 1], [], []>} : vector<24x32xbf16>, vector<32x128xbf16>, vector<24x128xf32> -> vector<24x128xf32>
    %556 = arith.addf %529, %555 : vector<24x128xf32>
    %557 = arith.addf %393, %556 : vector<24x128xf32>
    %558 = vector.extract_strided_slice %395 {offsets = [2, 0], sizes = [1, 128], strides = [1, 1]} : vector<4x128xf32> to vector<1x128xf32>
    %559 = vector.extract_strided_slice %395 {offsets = [3, 0], sizes = [1, 128], strides = [1, 1]} : vector<4x128xf32> to vector<1x128xf32>
    %cst_260 = arith.constant dense<0.000000e+00> : vector<24xf32>
    %560 = vector.multi_reduction <add>, %557, %cst_260 [1] : vector<24x128xf32> to vector<24xf32>
    %561 = vector.shape_cast %560 : vector<24xf32> to vector<24x1xf32>
    %cst_261 = arith.constant 1.280000e+02 : f32
    %562 = vector.broadcast %cst_261 : f32 to vector<24x1xf32>
    %563 = arith.divf %561, %562 : vector<24x1xf32>
    %564 = vector.broadcast %563 : vector<24x1xf32> to vector<24x128xf32>
    %565 = arith.subf %557, %564 : vector<24x128xf32>
    %566 = arith.mulf %565, %565 : vector<24x128xf32>
    %cst_262 = arith.constant dense<0.000000e+00> : vector<24xf32>
    %567 = vector.multi_reduction <add>, %566, %cst_262 [1] : vector<24x128xf32> to vector<24xf32>
    %568 = vector.shape_cast %567 : vector<24xf32> to vector<24x1xf32>
    %cst_263 = arith.constant 1.280000e+02 : f32
    %569 = vector.broadcast %cst_263 : f32 to vector<24x1xf32>
    %570 = arith.divf %568, %569 : vector<24x1xf32>
    %571 = vector.broadcast %563 : vector<24x1xf32> to vector<24x128xf32>
    %572 = arith.subf %557, %571 : vector<24x128xf32>
    %cst_264 = arith.constant 9.99999974E-6 : f32
    %573 = vector.broadcast %cst_264 : f32 to vector<24x1xf32>
    %574 = arith.addf %570, %573 : vector<24x1xf32>
    %575 = math.rsqrt %574 : vector<24x1xf32>
    %576 = vector.broadcast %575 : vector<24x1xf32> to vector<24x128xf32>
    %577 = arith.mulf %572, %576 : vector<24x128xf32>
    %578 = vector.broadcast %558 : vector<1x128xf32> to vector<24x128xf32>
    %579 = arith.mulf %577, %578 : vector<24x128xf32>
    %580 = vector.broadcast %559 : vector<1x128xf32> to vector<24x128xf32>
    %581 = arith.addf %579, %580 : vector<24x128xf32>
    %582 = arith.truncf %581 : vector<24x128xf32> to vector<24x128xbf16>
    %c1_265 = arith.constant 1 : index
    %c0_266 = arith.constant 0 : index
    %c0_267 = arith.constant 0 : index
    %583 = vector.load %arg10[%c1_265, %c0_266, %c0_267] : memref<4x129x512xbf16, #tpu.memory_space<vmem>>, vector<1x128x512xbf16>
    %584 = vector.shape_cast %583 : vector<1x128x512xbf16> to vector<128x512xbf16>
    %cst_268 = arith.constant dense<0.000000e+00> : vector<24x512xf32>
    %585 = tpu.matmul %582, %584, %cst_268 {dimension_numbers = #tpu.dot_dimension_numbers<[1], [0], [0], [1], [0, 0, 1, 1], [], []>} : vector<24x128xbf16>, vector<128x512xbf16>, vector<24x512xf32> -> vector<24x512xf32>
    %c1_269 = arith.constant 1 : index
    %c128_270 = arith.constant 128 : index
    %c0_271 = arith.constant 0 : index
    %586 = vector.load %arg10[%c1_269, %c128_270, %c0_271] : memref<4x129x512xbf16, #tpu.memory_space<vmem>>, vector<1x1x512xbf16>
    %587 = vector.shape_cast %586 : vector<1x1x512xbf16> to vector<1x512xbf16>
    %588 = arith.extf %587 : vector<1x512xbf16> to vector<1x512xf32>
    %589 = vector.broadcast %588 : vector<1x512xf32> to vector<24x512xf32>
    %590 = arith.addf %585, %589 : vector<24x512xf32>
    %cst_272 = arith.constant 5.000000e-01 : f32
    %591 = vector.broadcast %cst_272 : f32 to vector<24x512xf32>
    %592 = arith.mulf %591, %590 : vector<24x512xf32>
    %cst_273 = arith.constant 4.471500e-02 : f32
    %593 = vector.broadcast %cst_273 : f32 to vector<24x512xf32>
    %594 = arith.mulf %593, %590 : vector<24x512xf32>
    %595 = arith.mulf %594, %590 : vector<24x512xf32>
    %596 = arith.mulf %595, %590 : vector<24x512xf32>
    %597 = arith.addf %590, %596 : vector<24x512xf32>
    %cst_274 = arith.constant 0.797884583 : f32
    %598 = vector.broadcast %cst_274 : f32 to vector<24x512xf32>
    %599 = arith.mulf %598, %597 : vector<24x512xf32>
    %600 = math.tanh %599 : vector<24x512xf32>
    %cst_275 = arith.constant 1.000000e+00 : f32
    %601 = vector.broadcast %cst_275 : f32 to vector<24x512xf32>
    %602 = arith.addf %601, %600 : vector<24x512xf32>
    %603 = arith.mulf %592, %602 : vector<24x512xf32>
    %604 = arith.truncf %603 : vector<24x512xf32> to vector<24x512xbf16>
    %c1_276 = arith.constant 1 : index
    %c0_277 = arith.constant 0 : index
    %c0_278 = arith.constant 0 : index
    %605 = vector.load %arg11[%c1_276, %c0_277, %c0_278] : memref<4x513x128xbf16, #tpu.memory_space<vmem>>, vector<1x512x128xbf16>
    %606 = vector.shape_cast %605 : vector<1x512x128xbf16> to vector<512x128xbf16>
    %cst_279 = arith.constant dense<0.000000e+00> : vector<24x128xf32>
    %607 = tpu.matmul %604, %606, %cst_279 {dimension_numbers = #tpu.dot_dimension_numbers<[1], [0], [0], [1], [0, 0, 1, 1], [], []>} : vector<24x512xbf16>, vector<512x128xbf16>, vector<24x128xf32> -> vector<24x128xf32>
    %608 = arith.addf %557, %607 : vector<24x128xf32>
    %c1_280 = arith.constant 1 : index
    %c512_281 = arith.constant 512 : index
    %c0_282 = arith.constant 0 : index
    %609 = vector.load %arg11[%c1_280, %c512_281, %c0_282] : memref<4x513x128xbf16, #tpu.memory_space<vmem>>, vector<1x1x128xbf16>
    %610 = vector.shape_cast %609 : vector<1x1x128xbf16> to vector<1x128xbf16>
    %611 = arith.extf %610 : vector<1x128xbf16> to vector<1x128xf32>
    %612 = vector.broadcast %611 : vector<1x128xf32> to vector<24x128xf32>
    %613 = arith.addf %608, %612 : vector<24x128xf32>
    %c2_283 = arith.constant 2 : index
    %c0_284 = arith.constant 0 : index
    %614 = vector.load %arg7[%c2_283, %c0_284] : memref<8x128xf32, #tpu.memory_space<vmem>>, vector<1x128xf32>
    %c3_285 = arith.constant 3 : index
    %c0_286 = arith.constant 0 : index
    %615 = vector.load %arg7[%c3_285, %c0_286] : memref<8x128xf32, #tpu.memory_space<vmem>>, vector<1x128xf32>
    %cst_287 = arith.constant dense<0.000000e+00> : vector<24xf32>
    %616 = vector.multi_reduction <add>, %613, %cst_287 [1] : vector<24x128xf32> to vector<24xf32>
    %617 = vector.shape_cast %616 : vector<24xf32> to vector<24x1xf32>
    %cst_288 = arith.constant 1.280000e+02 : f32
    %618 = vector.broadcast %cst_288 : f32 to vector<24x1xf32>
    %619 = arith.divf %617, %618 : vector<24x1xf32>
    %620 = vector.broadcast %619 : vector<24x1xf32> to vector<24x128xf32>
    %621 = arith.subf %613, %620 : vector<24x128xf32>
    %622 = arith.mulf %621, %621 : vector<24x128xf32>
    %cst_289 = arith.constant dense<0.000000e+00> : vector<24xf32>
    %623 = vector.multi_reduction <add>, %622, %cst_289 [1] : vector<24x128xf32> to vector<24xf32>
    %624 = vector.shape_cast %623 : vector<24xf32> to vector<24x1xf32>
    %cst_290 = arith.constant 1.280000e+02 : f32
    %625 = vector.broadcast %cst_290 : f32 to vector<24x1xf32>
    %626 = arith.divf %624, %625 : vector<24x1xf32>
    %627 = vector.broadcast %619 : vector<24x1xf32> to vector<24x128xf32>
    %628 = arith.subf %613, %627 : vector<24x128xf32>
    %cst_291 = arith.constant 9.99999974E-6 : f32
    %629 = vector.broadcast %cst_291 : f32 to vector<24x1xf32>
    %630 = arith.addf %626, %629 : vector<24x1xf32>
    %631 = math.rsqrt %630 : vector<24x1xf32>
    %632 = vector.broadcast %631 : vector<24x1xf32> to vector<24x128xf32>
    %633 = arith.mulf %628, %632 : vector<24x128xf32>
    %634 = vector.broadcast %614 : vector<1x128xf32> to vector<24x128xf32>
    %635 = arith.mulf %633, %634 : vector<24x128xf32>
    %636 = vector.broadcast %615 : vector<1x128xf32> to vector<24x128xf32>
    %637 = arith.addf %635, %636 : vector<24x128xf32>
    %638 = vector.extract_strided_slice %637 {offsets = [0, 0], sizes = [16, 128], strides = [1, 1]} : vector<24x128xf32> to vector<16x128xf32>
    %639 = arith.truncf %638 : vector<16x128xf32> to vector<16x128xbf16>
    %c0_292 = arith.constant 0 : index
    %c0_293 = arith.constant 0 : index
    %640 = vector.load %arg12[%c0_292, %c0_293] : memref<129x128xbf16, #tpu.memory_space<vmem>>, vector<128x128xbf16>
    %cst_294 = arith.constant dense<0.000000e+00> : vector<16x128xf32>
    %641 = tpu.matmul %639, %640, %cst_294 {dimension_numbers = #tpu.dot_dimension_numbers<[1], [0], [0], [1], [0, 0, 1, 1], [], []>} : vector<16x128xbf16>, vector<128x128xbf16>, vector<16x128xf32> -> vector<16x128xf32>
    %c128_295 = arith.constant 128 : index
    %c0_296 = arith.constant 0 : index
    %642 = vector.load %arg12[%c128_295, %c0_296] : memref<129x128xbf16, #tpu.memory_space<vmem>>, vector<1x128xbf16>
    %643 = arith.extf %642 : vector<1x128xbf16> to vector<1x128xf32>
    %644 = vector.broadcast %643 : vector<1x128xf32> to vector<16x128xf32>
    %645 = arith.addf %641, %644 : vector<16x128xf32>
    %646 = tpu.iota {dimensions = array<i32: 0>} : vector<8x64xi32>
    %647 = tpu.iota {dimensions = array<i32: 1>} : vector<8x64xi32>
    %c0_i32_297 = arith.constant 0 : i32
    %648 = vector.broadcast %c0_i32_297 : i32 to vector<8x64xi32>
    %c0_i32_298 = arith.constant 0 : i32
    %649 = vector.broadcast %c0_i32_298 : i32 to vector<8x64xi32>
    %650 = arith.cmpi eq, %646, %649 : vector<8x64xi32>
    %651 = arith.index_cast %arg0 : i32 to index
    %c0_299 = arith.constant 0 : index
    %652 = memref.load %arg1[%651, %c0_299] : memref<2x8xi32, #tpu.memory_space<smem>>
    %653 = vector.broadcast %652 : i32 to vector<8x64xi32>
    %654 = arith.select %650, %653, %648 : vector<8x64xi1>, vector<8x64xi32>
    %c1_i32 = arith.constant 1 : i32
    %655 = vector.broadcast %c1_i32 : i32 to vector<8x64xi32>
    %656 = arith.cmpi eq, %646, %655 : vector<8x64xi32>
    %657 = arith.index_cast %arg0 : i32 to index
    %c1_300 = arith.constant 1 : index
    %658 = memref.load %arg1[%657, %c1_300] : memref<2x8xi32, #tpu.memory_space<smem>>
    %659 = vector.broadcast %658 : i32 to vector<8x64xi32>
    %660 = arith.select %656, %659, %654 : vector<8x64xi1>, vector<8x64xi32>
    %c2_i32 = arith.constant 2 : i32
    %661 = vector.broadcast %c2_i32 : i32 to vector<8x64xi32>
    %662 = arith.cmpi eq, %646, %661 : vector<8x64xi32>
    %663 = arith.index_cast %arg0 : i32 to index
    %c2_301 = arith.constant 2 : index
    %664 = memref.load %arg1[%663, %c2_301] : memref<2x8xi32, #tpu.memory_space<smem>>
    %665 = vector.broadcast %664 : i32 to vector<8x64xi32>
    %666 = arith.select %662, %665, %660 : vector<8x64xi1>, vector<8x64xi32>
    %c3_i32 = arith.constant 3 : i32
    %667 = vector.broadcast %c3_i32 : i32 to vector<8x64xi32>
    %668 = arith.cmpi eq, %646, %667 : vector<8x64xi32>
    %669 = arith.index_cast %arg0 : i32 to index
    %c3_302 = arith.constant 3 : index
    %670 = memref.load %arg1[%669, %c3_302] : memref<2x8xi32, #tpu.memory_space<smem>>
    %671 = vector.broadcast %670 : i32 to vector<8x64xi32>
    %672 = arith.select %668, %671, %666 : vector<8x64xi1>, vector<8x64xi32>
    %c4_i32_303 = arith.constant 4 : i32
    %673 = vector.broadcast %c4_i32_303 : i32 to vector<8x64xi32>
    %674 = arith.cmpi eq, %646, %673 : vector<8x64xi32>
    %675 = arith.index_cast %arg0 : i32 to index
    %c4_304 = arith.constant 4 : index
    %676 = memref.load %arg1[%675, %c4_304] : memref<2x8xi32, #tpu.memory_space<smem>>
    %677 = vector.broadcast %676 : i32 to vector<8x64xi32>
    %678 = arith.select %674, %677, %672 : vector<8x64xi1>, vector<8x64xi32>
    %c5_i32 = arith.constant 5 : i32
    %679 = vector.broadcast %c5_i32 : i32 to vector<8x64xi32>
    %680 = arith.cmpi eq, %646, %679 : vector<8x64xi32>
    %681 = arith.index_cast %arg0 : i32 to index
    %c5_305 = arith.constant 5 : index
    %682 = memref.load %arg1[%681, %c5_305] : memref<2x8xi32, #tpu.memory_space<smem>>
    %683 = vector.broadcast %682 : i32 to vector<8x64xi32>
    %684 = arith.select %680, %683, %678 : vector<8x64xi1>, vector<8x64xi32>
    %c6_i32 = arith.constant 6 : i32
    %685 = vector.broadcast %c6_i32 : i32 to vector<8x64xi32>
    %686 = arith.cmpi eq, %646, %685 : vector<8x64xi32>
    %687 = arith.index_cast %arg0 : i32 to index
    %c6_306 = arith.constant 6 : index
    %688 = memref.load %arg1[%687, %c6_306] : memref<2x8xi32, #tpu.memory_space<smem>>
    %689 = vector.broadcast %688 : i32 to vector<8x64xi32>
    %690 = arith.select %686, %689, %684 : vector<8x64xi1>, vector<8x64xi32>
    %c7_i32 = arith.constant 7 : i32
    %691 = vector.broadcast %c7_i32 : i32 to vector<8x64xi32>
    %692 = arith.cmpi eq, %646, %691 : vector<8x64xi32>
    %693 = arith.index_cast %arg0 : i32 to index
    %c7_307 = arith.constant 7 : index
    %694 = memref.load %arg1[%693, %c7_307] : memref<2x8xi32, #tpu.memory_space<smem>>
    %695 = vector.broadcast %694 : i32 to vector<8x64xi32>
    %696 = arith.select %692, %695, %690 : vector<8x64xi1>, vector<8x64xi32>
    %697 = arith.cmpi eq, %647, %696 : vector<8x64xi32>
    %698 = arith.extui %697 : vector<8x64xi1> to vector<8x64xi32>
    %699 = arith.sitofp %698 : vector<8x64xi32> to vector<8x64xf32>
    %700 = arith.truncf %699 : vector<8x64xf32> to vector<8x64xbf16>
    %c0_308 = arith.constant 0 : index
    %c0_309 = arith.constant 0 : index
    %701 = vector.load %arg13[%c0_308, %c0_309] : memref<64x128xbf16, #tpu.memory_space<vmem>>, vector<64x128xbf16>
    %cst_310 = arith.constant dense<0.000000e+00> : vector<8x128xf32>
    %702 = tpu.matmul %700, %701, %cst_310 {dimension_numbers = #tpu.dot_dimension_numbers<[1], [0], [0], [1], [0, 0, 1, 1], [], []>} : vector<8x64xbf16>, vector<64x128xbf16>, vector<8x128xf32> -> vector<8x128xf32>
    %703 = tpu.concatenate %645, %702 in 0 : vector<16x128xf32>, vector<8x128xf32> -> vector<24x128xf32>
    %c1_311 = arith.constant 1 : index
    %c0_312 = arith.constant 0 : index
    %c0_313 = arith.constant 0 : index
    %704 = vector.load %arg6[%c1_311, %c0_312, %c0_313] : memref<2x24x128xf32, #tpu.memory_space<vmem>>, vector<1x24x128xf32>
    %705 = vector.shape_cast %704 : vector<1x24x128xf32> to vector<24x128xf32>
    %706 = arith.addf %703, %705 : vector<24x128xf32>
    %c2_314 = arith.constant 2 : index
    %c0_315 = arith.constant 0 : index
    %c0_316 = arith.constant 0 : index
    %707 = vector.load %arg8[%c2_314, %c0_315, %c0_316] : memref<4x4x128xf32, #tpu.memory_space<vmem>>, vector<1x4x128xf32>
    %708 = vector.shape_cast %707 : vector<1x4x128xf32> to vector<4x128xf32>
    %709 = vector.extract_strided_slice %708 {offsets = [0, 0], sizes = [1, 128], strides = [1, 1]} : vector<4x128xf32> to vector<1x128xf32>
    %710 = vector.extract_strided_slice %708 {offsets = [1, 0], sizes = [1, 128], strides = [1, 1]} : vector<4x128xf32> to vector<1x128xf32>
    %cst_317 = arith.constant dense<0.000000e+00> : vector<24xf32>
    %711 = vector.multi_reduction <add>, %706, %cst_317 [1] : vector<24x128xf32> to vector<24xf32>
    %712 = vector.shape_cast %711 : vector<24xf32> to vector<24x1xf32>
    %cst_318 = arith.constant 1.280000e+02 : f32
    %713 = vector.broadcast %cst_318 : f32 to vector<24x1xf32>
    %714 = arith.divf %712, %713 : vector<24x1xf32>
    %715 = vector.broadcast %714 : vector<24x1xf32> to vector<24x128xf32>
    %716 = arith.subf %706, %715 : vector<24x128xf32>
    %717 = arith.mulf %716, %716 : vector<24x128xf32>
    %cst_319 = arith.constant dense<0.000000e+00> : vector<24xf32>
    %718 = vector.multi_reduction <add>, %717, %cst_319 [1] : vector<24x128xf32> to vector<24xf32>
    %719 = vector.shape_cast %718 : vector<24xf32> to vector<24x1xf32>
    %cst_320 = arith.constant 1.280000e+02 : f32
    %720 = vector.broadcast %cst_320 : f32 to vector<24x1xf32>
    %721 = arith.divf %719, %720 : vector<24x1xf32>
    %722 = vector.broadcast %714 : vector<24x1xf32> to vector<24x128xf32>
    %723 = arith.subf %706, %722 : vector<24x128xf32>
    %cst_321 = arith.constant 9.99999974E-6 : f32
    %724 = vector.broadcast %cst_321 : f32 to vector<24x1xf32>
    %725 = arith.addf %721, %724 : vector<24x1xf32>
    %726 = math.rsqrt %725 : vector<24x1xf32>
    %727 = vector.broadcast %726 : vector<24x1xf32> to vector<24x128xf32>
    %728 = arith.mulf %723, %727 : vector<24x128xf32>
    %729 = vector.broadcast %709 : vector<1x128xf32> to vector<24x128xf32>
    %730 = arith.mulf %728, %729 : vector<24x128xf32>
    %731 = vector.broadcast %710 : vector<1x128xf32> to vector<24x128xf32>
    %732 = arith.addf %730, %731 : vector<24x128xf32>
    %733 = arith.truncf %732 : vector<24x128xf32> to vector<24x128xbf16>
    %c2_322 = arith.constant 2 : index
    %c0_323 = arith.constant 0 : index
    %c0_324 = arith.constant 0 : index
    %c0_325 = arith.constant 0 : index
    %734 = vector.load %arg9[%c2_322, %c0_323, %c0_324, %c0_325] : memref<4x4x129x128xbf16, #tpu.memory_space<vmem>>, vector<1x1x128x128xbf16>
    %735 = vector.shape_cast %734 : vector<1x1x128x128xbf16> to vector<128x128xbf16>
    %c2_326 = arith.constant 2 : index
    %c0_327 = arith.constant 0 : index
    %c128_328 = arith.constant 128 : index
    %c0_329 = arith.constant 0 : index
    %736 = vector.load %arg9[%c2_326, %c0_327, %c128_328, %c0_329] : memref<4x4x129x128xbf16, #tpu.memory_space<vmem>>, vector<1x1x1x128xbf16>
    %737 = vector.shape_cast %736 : vector<1x1x1x128xbf16> to vector<1x128xbf16>
    %738 = arith.extf %737 : vector<1x128xbf16> to vector<1x128xf32>
    %cst_330 = arith.constant dense<0.000000e+00> : vector<24x128xf32>
    %739 = tpu.matmul %733, %735, %cst_330 {dimension_numbers = #tpu.dot_dimension_numbers<[1], [0], [0], [1], [0, 0, 1, 1], [], []>} : vector<24x128xbf16>, vector<128x128xbf16>, vector<24x128xf32> -> vector<24x128xf32>
    %740 = vector.broadcast %738 : vector<1x128xf32> to vector<24x128xf32>
    %741 = arith.addf %739, %740 : vector<24x128xf32>
    %c2_331 = arith.constant 2 : index
    %c1_332 = arith.constant 1 : index
    %c0_333 = arith.constant 0 : index
    %c0_334 = arith.constant 0 : index
    %742 = vector.load %arg9[%c2_331, %c1_332, %c0_333, %c0_334] : memref<4x4x129x128xbf16, #tpu.memory_space<vmem>>, vector<1x1x128x128xbf16>
    %743 = vector.shape_cast %742 : vector<1x1x128x128xbf16> to vector<128x128xbf16>
    %c2_335 = arith.constant 2 : index
    %c1_336 = arith.constant 1 : index
    %c128_337 = arith.constant 128 : index
    %c0_338 = arith.constant 0 : index
    %744 = vector.load %arg9[%c2_335, %c1_336, %c128_337, %c0_338] : memref<4x4x129x128xbf16, #tpu.memory_space<vmem>>, vector<1x1x1x128xbf16>
    %745 = vector.shape_cast %744 : vector<1x1x1x128xbf16> to vector<1x128xbf16>
    %746 = arith.extf %745 : vector<1x128xbf16> to vector<1x128xf32>
    %cst_339 = arith.constant dense<0.000000e+00> : vector<24x128xf32>
    %747 = tpu.matmul %733, %743, %cst_339 {dimension_numbers = #tpu.dot_dimension_numbers<[1], [0], [0], [1], [0, 0, 1, 1], [], []>} : vector<24x128xbf16>, vector<128x128xbf16>, vector<24x128xf32> -> vector<24x128xf32>
    %748 = vector.broadcast %746 : vector<1x128xf32> to vector<24x128xf32>
    %749 = arith.addf %747, %748 : vector<24x128xf32>
    %c2_340 = arith.constant 2 : index
    %c2_341 = arith.constant 2 : index
    %c0_342 = arith.constant 0 : index
    %c0_343 = arith.constant 0 : index
    %750 = vector.load %arg9[%c2_340, %c2_341, %c0_342, %c0_343] : memref<4x4x129x128xbf16, #tpu.memory_space<vmem>>, vector<1x1x128x128xbf16>
    %751 = vector.shape_cast %750 : vector<1x1x128x128xbf16> to vector<128x128xbf16>
    %c2_344 = arith.constant 2 : index
    %c2_345 = arith.constant 2 : index
    %c128_346 = arith.constant 128 : index
    %c0_347 = arith.constant 0 : index
    %752 = vector.load %arg9[%c2_344, %c2_345, %c128_346, %c0_347] : memref<4x4x129x128xbf16, #tpu.memory_space<vmem>>, vector<1x1x1x128xbf16>
    %753 = vector.shape_cast %752 : vector<1x1x1x128xbf16> to vector<1x128xbf16>
    %754 = arith.extf %753 : vector<1x128xbf16> to vector<1x128xf32>
    %cst_348 = arith.constant dense<0.000000e+00> : vector<24x128xf32>
    %755 = tpu.matmul %733, %751, %cst_348 {dimension_numbers = #tpu.dot_dimension_numbers<[1], [0], [0], [1], [0, 0, 1, 1], [], []>} : vector<24x128xbf16>, vector<128x128xbf16>, vector<24x128xf32> -> vector<24x128xf32>
    %756 = vector.broadcast %754 : vector<1x128xf32> to vector<24x128xf32>
    %757 = arith.addf %755, %756 : vector<24x128xf32>
    %c2_349 = arith.constant 2 : index
    %c3_350 = arith.constant 3 : index
    %c128_351 = arith.constant 128 : index
    %c0_352 = arith.constant 0 : index
    %758 = vector.load %arg9[%c2_349, %c3_350, %c128_351, %c0_352] : memref<4x4x129x128xbf16, #tpu.memory_space<vmem>>, vector<1x1x1x128xbf16>
    %759 = vector.shape_cast %758 : vector<1x1x1x128xbf16> to vector<1x128xbf16>
    %760 = arith.extf %759 : vector<1x128xbf16> to vector<1x128xf32>
    %761 = vector.extract_strided_slice %741 {offsets = [0, 0], sizes = [24, 32], strides = [1, 1]} : vector<24x128xf32> to vector<24x32xf32>
    %cst_353 = arith.constant 0.176776692 : f32
    %762 = vector.broadcast %cst_353 : f32 to vector<24x32xf32>
    %763 = arith.mulf %761, %762 : vector<24x32xf32>
    %764 = arith.truncf %763 : vector<24x32xf32> to vector<24x32xbf16>
    %765 = vector.extract_strided_slice %749 {offsets = [0, 0], sizes = [24, 32], strides = [1, 1]} : vector<24x128xf32> to vector<24x32xf32>
    %766 = arith.truncf %765 : vector<24x32xf32> to vector<24x32xbf16>
    %767 = vector.extract_strided_slice %757 {offsets = [0, 0], sizes = [24, 32], strides = [1, 1]} : vector<24x128xf32> to vector<24x32xf32>
    %768 = arith.truncf %767 : vector<24x32xf32> to vector<24x32xbf16>
    %cst_354 = arith.constant dense<0.000000e+00> : vector<24x24xf32>
    %769 = tpu.matmul %764, %766, %cst_354 {dimension_numbers = #tpu.dot_dimension_numbers<[1], [1], [0], [0], [0, 0, 1, 0], [], []>} : vector<24x32xbf16>, vector<24x32xbf16>, vector<24x24xf32> -> vector<24x24xf32>
    %770 = arith.addf %769, %144 : vector<24x24xf32>
    %cst_355 = arith.constant dense<0xFF800000> : vector<24xf32>
    %771 = vector.multi_reduction <maximumf>, %770, %cst_355 [1] : vector<24x24xf32> to vector<24xf32>
    %772 = vector.shape_cast %771 : vector<24xf32> to vector<24x1xf32>
    %773 = vector.broadcast %772 : vector<24x1xf32> to vector<24x24xf32>
    %774 = arith.subf %770, %773 : vector<24x24xf32>
    %775 = math.exp %774 : vector<24x24xf32>
    %cst_356 = arith.constant dense<0.000000e+00> : vector<24xf32>
    %776 = vector.multi_reduction <add>, %775, %cst_356 [1] : vector<24x24xf32> to vector<24xf32>
    %777 = vector.shape_cast %776 : vector<24xf32> to vector<24x1xf32>
    %778 = tpu.reciprocal %777 {approx = true} : vector<24x1xf32> -> vector<24x1xf32>
    %779 = vector.broadcast %778 : vector<24x1xf32> to vector<24x24xf32>
    %780 = arith.mulf %775, %779 : vector<24x24xf32>
    %781 = arith.truncf %780 : vector<24x24xf32> to vector<24x24xbf16>
    %cst_357 = arith.constant dense<0.000000e+00> : vector<24x32xf32>
    %782 = tpu.matmul %781, %768, %cst_357 {dimension_numbers = #tpu.dot_dimension_numbers<[1], [0], [0], [1], [0, 0, 1, 1], [], []>} : vector<24x24xbf16>, vector<24x32xbf16>, vector<24x32xf32> -> vector<24x32xf32>
    %783 = arith.truncf %782 : vector<24x32xf32> to vector<24x32xbf16>
    %c2_358 = arith.constant 2 : index
    %c3_359 = arith.constant 3 : index
    %c0_360 = arith.constant 0 : index
    %c0_361 = arith.constant 0 : index
    %784 = vector.load %arg9[%c2_358, %c3_359, %c0_360, %c0_361] : memref<4x4x129x128xbf16, #tpu.memory_space<vmem>>, vector<1x1x32x128xbf16>
    %785 = vector.shape_cast %784 : vector<1x1x32x128xbf16> to vector<32x128xbf16>
    %cst_362 = arith.constant dense<0.000000e+00> : vector<24x128xf32>
    %786 = tpu.matmul %783, %785, %cst_362 {dimension_numbers = #tpu.dot_dimension_numbers<[1], [0], [0], [1], [0, 0, 1, 1], [], []>} : vector<24x32xbf16>, vector<32x128xbf16>, vector<24x128xf32> -> vector<24x128xf32>
    %787 = vector.broadcast %760 : vector<1x128xf32> to vector<24x128xf32>
    %788 = arith.addf %787, %786 : vector<24x128xf32>
    %789 = vector.extract_strided_slice %741 {offsets = [0, 32], sizes = [24, 32], strides = [1, 1]} : vector<24x128xf32> to vector<24x32xf32>
    %cst_363 = arith.constant 0.176776692 : f32
    %790 = vector.broadcast %cst_363 : f32 to vector<24x32xf32>
    %791 = arith.mulf %789, %790 : vector<24x32xf32>
    %792 = arith.truncf %791 : vector<24x32xf32> to vector<24x32xbf16>
    %793 = vector.extract_strided_slice %749 {offsets = [0, 32], sizes = [24, 32], strides = [1, 1]} : vector<24x128xf32> to vector<24x32xf32>
    %794 = arith.truncf %793 : vector<24x32xf32> to vector<24x32xbf16>
    %795 = vector.extract_strided_slice %757 {offsets = [0, 32], sizes = [24, 32], strides = [1, 1]} : vector<24x128xf32> to vector<24x32xf32>
    %796 = arith.truncf %795 : vector<24x32xf32> to vector<24x32xbf16>
    %cst_364 = arith.constant dense<0.000000e+00> : vector<24x24xf32>
    %797 = tpu.matmul %792, %794, %cst_364 {dimension_numbers = #tpu.dot_dimension_numbers<[1], [1], [0], [0], [0, 0, 1, 0], [], []>} : vector<24x32xbf16>, vector<24x32xbf16>, vector<24x24xf32> -> vector<24x24xf32>
    %798 = arith.addf %797, %144 : vector<24x24xf32>
    %cst_365 = arith.constant dense<0xFF800000> : vector<24xf32>
    %799 = vector.multi_reduction <maximumf>, %798, %cst_365 [1] : vector<24x24xf32> to vector<24xf32>
    %800 = vector.shape_cast %799 : vector<24xf32> to vector<24x1xf32>
    %801 = vector.broadcast %800 : vector<24x1xf32> to vector<24x24xf32>
    %802 = arith.subf %798, %801 : vector<24x24xf32>
    %803 = math.exp %802 : vector<24x24xf32>
    %cst_366 = arith.constant dense<0.000000e+00> : vector<24xf32>
    %804 = vector.multi_reduction <add>, %803, %cst_366 [1] : vector<24x24xf32> to vector<24xf32>
    %805 = vector.shape_cast %804 : vector<24xf32> to vector<24x1xf32>
    %806 = tpu.reciprocal %805 {approx = true} : vector<24x1xf32> -> vector<24x1xf32>
    %807 = vector.broadcast %806 : vector<24x1xf32> to vector<24x24xf32>
    %808 = arith.mulf %803, %807 : vector<24x24xf32>
    %809 = arith.truncf %808 : vector<24x24xf32> to vector<24x24xbf16>
    %cst_367 = arith.constant dense<0.000000e+00> : vector<24x32xf32>
    %810 = tpu.matmul %809, %796, %cst_367 {dimension_numbers = #tpu.dot_dimension_numbers<[1], [0], [0], [1], [0, 0, 1, 1], [], []>} : vector<24x24xbf16>, vector<24x32xbf16>, vector<24x32xf32> -> vector<24x32xf32>
    %811 = arith.truncf %810 : vector<24x32xf32> to vector<24x32xbf16>
    %c2_368 = arith.constant 2 : index
    %c3_369 = arith.constant 3 : index
    %c32_370 = arith.constant 32 : index
    %c0_371 = arith.constant 0 : index
    %812 = vector.load %arg9[%c2_368, %c3_369, %c32_370, %c0_371] : memref<4x4x129x128xbf16, #tpu.memory_space<vmem>>, vector<1x1x32x128xbf16>
    %813 = vector.shape_cast %812 : vector<1x1x32x128xbf16> to vector<32x128xbf16>
    %cst_372 = arith.constant dense<0.000000e+00> : vector<24x128xf32>
    %814 = tpu.matmul %811, %813, %cst_372 {dimension_numbers = #tpu.dot_dimension_numbers<[1], [0], [0], [1], [0, 0, 1, 1], [], []>} : vector<24x32xbf16>, vector<32x128xbf16>, vector<24x128xf32> -> vector<24x128xf32>
    %815 = arith.addf %788, %814 : vector<24x128xf32>
    %816 = vector.extract_strided_slice %741 {offsets = [0, 64], sizes = [24, 32], strides = [1, 1]} : vector<24x128xf32> to vector<24x32xf32>
    %cst_373 = arith.constant 0.176776692 : f32
    %817 = vector.broadcast %cst_373 : f32 to vector<24x32xf32>
    %818 = arith.mulf %816, %817 : vector<24x32xf32>
    %819 = arith.truncf %818 : vector<24x32xf32> to vector<24x32xbf16>
    %820 = vector.extract_strided_slice %749 {offsets = [0, 64], sizes = [24, 32], strides = [1, 1]} : vector<24x128xf32> to vector<24x32xf32>
    %821 = arith.truncf %820 : vector<24x32xf32> to vector<24x32xbf16>
    %822 = vector.extract_strided_slice %757 {offsets = [0, 64], sizes = [24, 32], strides = [1, 1]} : vector<24x128xf32> to vector<24x32xf32>
    %823 = arith.truncf %822 : vector<24x32xf32> to vector<24x32xbf16>
    %cst_374 = arith.constant dense<0.000000e+00> : vector<24x24xf32>
    %824 = tpu.matmul %819, %821, %cst_374 {dimension_numbers = #tpu.dot_dimension_numbers<[1], [1], [0], [0], [0, 0, 1, 0], [], []>} : vector<24x32xbf16>, vector<24x32xbf16>, vector<24x24xf32> -> vector<24x24xf32>
    %825 = arith.addf %824, %144 : vector<24x24xf32>
    %cst_375 = arith.constant dense<0xFF800000> : vector<24xf32>
    %826 = vector.multi_reduction <maximumf>, %825, %cst_375 [1] : vector<24x24xf32> to vector<24xf32>
    %827 = vector.shape_cast %826 : vector<24xf32> to vector<24x1xf32>
    %828 = vector.broadcast %827 : vector<24x1xf32> to vector<24x24xf32>
    %829 = arith.subf %825, %828 : vector<24x24xf32>
    %830 = math.exp %829 : vector<24x24xf32>
    %cst_376 = arith.constant dense<0.000000e+00> : vector<24xf32>
    %831 = vector.multi_reduction <add>, %830, %cst_376 [1] : vector<24x24xf32> to vector<24xf32>
    %832 = vector.shape_cast %831 : vector<24xf32> to vector<24x1xf32>
    %833 = tpu.reciprocal %832 {approx = true} : vector<24x1xf32> -> vector<24x1xf32>
    %834 = vector.broadcast %833 : vector<24x1xf32> to vector<24x24xf32>
    %835 = arith.mulf %830, %834 : vector<24x24xf32>
    %836 = arith.truncf %835 : vector<24x24xf32> to vector<24x24xbf16>
    %cst_377 = arith.constant dense<0.000000e+00> : vector<24x32xf32>
    %837 = tpu.matmul %836, %823, %cst_377 {dimension_numbers = #tpu.dot_dimension_numbers<[1], [0], [0], [1], [0, 0, 1, 1], [], []>} : vector<24x24xbf16>, vector<24x32xbf16>, vector<24x32xf32> -> vector<24x32xf32>
    %838 = arith.truncf %837 : vector<24x32xf32> to vector<24x32xbf16>
    %c2_378 = arith.constant 2 : index
    %c3_379 = arith.constant 3 : index
    %c64_380 = arith.constant 64 : index
    %c0_381 = arith.constant 0 : index
    %839 = vector.load %arg9[%c2_378, %c3_379, %c64_380, %c0_381] : memref<4x4x129x128xbf16, #tpu.memory_space<vmem>>, vector<1x1x32x128xbf16>
    %840 = vector.shape_cast %839 : vector<1x1x32x128xbf16> to vector<32x128xbf16>
    %cst_382 = arith.constant dense<0.000000e+00> : vector<24x128xf32>
    %841 = tpu.matmul %838, %840, %cst_382 {dimension_numbers = #tpu.dot_dimension_numbers<[1], [0], [0], [1], [0, 0, 1, 1], [], []>} : vector<24x32xbf16>, vector<32x128xbf16>, vector<24x128xf32> -> vector<24x128xf32>
    %842 = arith.addf %815, %841 : vector<24x128xf32>
    %843 = vector.extract_strided_slice %741 {offsets = [0, 96], sizes = [24, 32], strides = [1, 1]} : vector<24x128xf32> to vector<24x32xf32>
    %cst_383 = arith.constant 0.176776692 : f32
    %844 = vector.broadcast %cst_383 : f32 to vector<24x32xf32>
    %845 = arith.mulf %843, %844 : vector<24x32xf32>
    %846 = arith.truncf %845 : vector<24x32xf32> to vector<24x32xbf16>
    %847 = vector.extract_strided_slice %749 {offsets = [0, 96], sizes = [24, 32], strides = [1, 1]} : vector<24x128xf32> to vector<24x32xf32>
    %848 = arith.truncf %847 : vector<24x32xf32> to vector<24x32xbf16>
    %849 = vector.extract_strided_slice %757 {offsets = [0, 96], sizes = [24, 32], strides = [1, 1]} : vector<24x128xf32> to vector<24x32xf32>
    %850 = arith.truncf %849 : vector<24x32xf32> to vector<24x32xbf16>
    %cst_384 = arith.constant dense<0.000000e+00> : vector<24x24xf32>
    %851 = tpu.matmul %846, %848, %cst_384 {dimension_numbers = #tpu.dot_dimension_numbers<[1], [1], [0], [0], [0, 0, 1, 0], [], []>} : vector<24x32xbf16>, vector<24x32xbf16>, vector<24x24xf32> -> vector<24x24xf32>
    %852 = arith.addf %851, %144 : vector<24x24xf32>
    %cst_385 = arith.constant dense<0xFF800000> : vector<24xf32>
    %853 = vector.multi_reduction <maximumf>, %852, %cst_385 [1] : vector<24x24xf32> to vector<24xf32>
    %854 = vector.shape_cast %853 : vector<24xf32> to vector<24x1xf32>
    %855 = vector.broadcast %854 : vector<24x1xf32> to vector<24x24xf32>
    %856 = arith.subf %852, %855 : vector<24x24xf32>
    %857 = math.exp %856 : vector<24x24xf32>
    %cst_386 = arith.constant dense<0.000000e+00> : vector<24xf32>
    %858 = vector.multi_reduction <add>, %857, %cst_386 [1] : vector<24x24xf32> to vector<24xf32>
    %859 = vector.shape_cast %858 : vector<24xf32> to vector<24x1xf32>
    %860 = tpu.reciprocal %859 {approx = true} : vector<24x1xf32> -> vector<24x1xf32>
    %861 = vector.broadcast %860 : vector<24x1xf32> to vector<24x24xf32>
    %862 = arith.mulf %857, %861 : vector<24x24xf32>
    %863 = arith.truncf %862 : vector<24x24xf32> to vector<24x24xbf16>
    %cst_387 = arith.constant dense<0.000000e+00> : vector<24x32xf32>
    %864 = tpu.matmul %863, %850, %cst_387 {dimension_numbers = #tpu.dot_dimension_numbers<[1], [0], [0], [1], [0, 0, 1, 1], [], []>} : vector<24x24xbf16>, vector<24x32xbf16>, vector<24x32xf32> -> vector<24x32xf32>
    %865 = arith.truncf %864 : vector<24x32xf32> to vector<24x32xbf16>
    %c2_388 = arith.constant 2 : index
    %c3_389 = arith.constant 3 : index
    %c96_390 = arith.constant 96 : index
    %c0_391 = arith.constant 0 : index
    %866 = vector.load %arg9[%c2_388, %c3_389, %c96_390, %c0_391] : memref<4x4x129x128xbf16, #tpu.memory_space<vmem>>, vector<1x1x32x128xbf16>
    %867 = vector.shape_cast %866 : vector<1x1x32x128xbf16> to vector<32x128xbf16>
    %cst_392 = arith.constant dense<0.000000e+00> : vector<24x128xf32>
    %868 = tpu.matmul %865, %867, %cst_392 {dimension_numbers = #tpu.dot_dimension_numbers<[1], [0], [0], [1], [0, 0, 1, 1], [], []>} : vector<24x32xbf16>, vector<32x128xbf16>, vector<24x128xf32> -> vector<24x128xf32>
    %869 = arith.addf %842, %868 : vector<24x128xf32>
    %870 = arith.addf %706, %869 : vector<24x128xf32>
    %871 = vector.extract_strided_slice %708 {offsets = [2, 0], sizes = [1, 128], strides = [1, 1]} : vector<4x128xf32> to vector<1x128xf32>
    %872 = vector.extract_strided_slice %708 {offsets = [3, 0], sizes = [1, 128], strides = [1, 1]} : vector<4x128xf32> to vector<1x128xf32>
    %cst_393 = arith.constant dense<0.000000e+00> : vector<24xf32>
    %873 = vector.multi_reduction <add>, %870, %cst_393 [1] : vector<24x128xf32> to vector<24xf32>
    %874 = vector.shape_cast %873 : vector<24xf32> to vector<24x1xf32>
    %cst_394 = arith.constant 1.280000e+02 : f32
    %875 = vector.broadcast %cst_394 : f32 to vector<24x1xf32>
    %876 = arith.divf %874, %875 : vector<24x1xf32>
    %877 = vector.broadcast %876 : vector<24x1xf32> to vector<24x128xf32>
    %878 = arith.subf %870, %877 : vector<24x128xf32>
    %879 = arith.mulf %878, %878 : vector<24x128xf32>
    %cst_395 = arith.constant dense<0.000000e+00> : vector<24xf32>
    %880 = vector.multi_reduction <add>, %879, %cst_395 [1] : vector<24x128xf32> to vector<24xf32>
    %881 = vector.shape_cast %880 : vector<24xf32> to vector<24x1xf32>
    %cst_396 = arith.constant 1.280000e+02 : f32
    %882 = vector.broadcast %cst_396 : f32 to vector<24x1xf32>
    %883 = arith.divf %881, %882 : vector<24x1xf32>
    %884 = vector.broadcast %876 : vector<24x1xf32> to vector<24x128xf32>
    %885 = arith.subf %870, %884 : vector<24x128xf32>
    %cst_397 = arith.constant 9.99999974E-6 : f32
    %886 = vector.broadcast %cst_397 : f32 to vector<24x1xf32>
    %887 = arith.addf %883, %886 : vector<24x1xf32>
    %888 = math.rsqrt %887 : vector<24x1xf32>
    %889 = vector.broadcast %888 : vector<24x1xf32> to vector<24x128xf32>
    %890 = arith.mulf %885, %889 : vector<24x128xf32>
    %891 = vector.broadcast %871 : vector<1x128xf32> to vector<24x128xf32>
    %892 = arith.mulf %890, %891 : vector<24x128xf32>
    %893 = vector.broadcast %872 : vector<1x128xf32> to vector<24x128xf32>
    %894 = arith.addf %892, %893 : vector<24x128xf32>
    %895 = arith.truncf %894 : vector<24x128xf32> to vector<24x128xbf16>
    %c2_398 = arith.constant 2 : index
    %c0_399 = arith.constant 0 : index
    %c0_400 = arith.constant 0 : index
    %896 = vector.load %arg10[%c2_398, %c0_399, %c0_400] : memref<4x129x512xbf16, #tpu.memory_space<vmem>>, vector<1x128x512xbf16>
    %897 = vector.shape_cast %896 : vector<1x128x512xbf16> to vector<128x512xbf16>
    %cst_401 = arith.constant dense<0.000000e+00> : vector<24x512xf32>
    %898 = tpu.matmul %895, %897, %cst_401 {dimension_numbers = #tpu.dot_dimension_numbers<[1], [0], [0], [1], [0, 0, 1, 1], [], []>} : vector<24x128xbf16>, vector<128x512xbf16>, vector<24x512xf32> -> vector<24x512xf32>
    %c2_402 = arith.constant 2 : index
    %c128_403 = arith.constant 128 : index
    %c0_404 = arith.constant 0 : index
    %899 = vector.load %arg10[%c2_402, %c128_403, %c0_404] : memref<4x129x512xbf16, #tpu.memory_space<vmem>>, vector<1x1x512xbf16>
    %900 = vector.shape_cast %899 : vector<1x1x512xbf16> to vector<1x512xbf16>
    %901 = arith.extf %900 : vector<1x512xbf16> to vector<1x512xf32>
    %902 = vector.broadcast %901 : vector<1x512xf32> to vector<24x512xf32>
    %903 = arith.addf %898, %902 : vector<24x512xf32>
    %cst_405 = arith.constant 5.000000e-01 : f32
    %904 = vector.broadcast %cst_405 : f32 to vector<24x512xf32>
    %905 = arith.mulf %904, %903 : vector<24x512xf32>
    %cst_406 = arith.constant 4.471500e-02 : f32
    %906 = vector.broadcast %cst_406 : f32 to vector<24x512xf32>
    %907 = arith.mulf %906, %903 : vector<24x512xf32>
    %908 = arith.mulf %907, %903 : vector<24x512xf32>
    %909 = arith.mulf %908, %903 : vector<24x512xf32>
    %910 = arith.addf %903, %909 : vector<24x512xf32>
    %cst_407 = arith.constant 0.797884583 : f32
    %911 = vector.broadcast %cst_407 : f32 to vector<24x512xf32>
    %912 = arith.mulf %911, %910 : vector<24x512xf32>
    %913 = math.tanh %912 : vector<24x512xf32>
    %cst_408 = arith.constant 1.000000e+00 : f32
    %914 = vector.broadcast %cst_408 : f32 to vector<24x512xf32>
    %915 = arith.addf %914, %913 : vector<24x512xf32>
    %916 = arith.mulf %905, %915 : vector<24x512xf32>
    %917 = arith.truncf %916 : vector<24x512xf32> to vector<24x512xbf16>
    %c2_409 = arith.constant 2 : index
    %c0_410 = arith.constant 0 : index
    %c0_411 = arith.constant 0 : index
    %918 = vector.load %arg11[%c2_409, %c0_410, %c0_411] : memref<4x513x128xbf16, #tpu.memory_space<vmem>>, vector<1x512x128xbf16>
    %919 = vector.shape_cast %918 : vector<1x512x128xbf16> to vector<512x128xbf16>
    %cst_412 = arith.constant dense<0.000000e+00> : vector<24x128xf32>
    %920 = tpu.matmul %917, %919, %cst_412 {dimension_numbers = #tpu.dot_dimension_numbers<[1], [0], [0], [1], [0, 0, 1, 1], [], []>} : vector<24x512xbf16>, vector<512x128xbf16>, vector<24x128xf32> -> vector<24x128xf32>
    %921 = arith.addf %870, %920 : vector<24x128xf32>
    %c2_413 = arith.constant 2 : index
    %c512_414 = arith.constant 512 : index
    %c0_415 = arith.constant 0 : index
    %922 = vector.load %arg11[%c2_413, %c512_414, %c0_415] : memref<4x513x128xbf16, #tpu.memory_space<vmem>>, vector<1x1x128xbf16>
    %923 = vector.shape_cast %922 : vector<1x1x128xbf16> to vector<1x128xbf16>
    %924 = arith.extf %923 : vector<1x128xbf16> to vector<1x128xf32>
    %925 = vector.broadcast %924 : vector<1x128xf32> to vector<24x128xf32>
    %926 = arith.addf %921, %925 : vector<24x128xf32>
    %c3_416 = arith.constant 3 : index
    %c0_417 = arith.constant 0 : index
    %c0_418 = arith.constant 0 : index
    %927 = vector.load %arg8[%c3_416, %c0_417, %c0_418] : memref<4x4x128xf32, #tpu.memory_space<vmem>>, vector<1x4x128xf32>
    %928 = vector.shape_cast %927 : vector<1x4x128xf32> to vector<4x128xf32>
    %929 = vector.extract_strided_slice %928 {offsets = [0, 0], sizes = [1, 128], strides = [1, 1]} : vector<4x128xf32> to vector<1x128xf32>
    %930 = vector.extract_strided_slice %928 {offsets = [1, 0], sizes = [1, 128], strides = [1, 1]} : vector<4x128xf32> to vector<1x128xf32>
    %cst_419 = arith.constant dense<0.000000e+00> : vector<24xf32>
    %931 = vector.multi_reduction <add>, %926, %cst_419 [1] : vector<24x128xf32> to vector<24xf32>
    %932 = vector.shape_cast %931 : vector<24xf32> to vector<24x1xf32>
    %cst_420 = arith.constant 1.280000e+02 : f32
    %933 = vector.broadcast %cst_420 : f32 to vector<24x1xf32>
    %934 = arith.divf %932, %933 : vector<24x1xf32>
    %935 = vector.broadcast %934 : vector<24x1xf32> to vector<24x128xf32>
    %936 = arith.subf %926, %935 : vector<24x128xf32>
    %937 = arith.mulf %936, %936 : vector<24x128xf32>
    %cst_421 = arith.constant dense<0.000000e+00> : vector<24xf32>
    %938 = vector.multi_reduction <add>, %937, %cst_421 [1] : vector<24x128xf32> to vector<24xf32>
    %939 = vector.shape_cast %938 : vector<24xf32> to vector<24x1xf32>
    %cst_422 = arith.constant 1.280000e+02 : f32
    %940 = vector.broadcast %cst_422 : f32 to vector<24x1xf32>
    %941 = arith.divf %939, %940 : vector<24x1xf32>
    %942 = vector.broadcast %934 : vector<24x1xf32> to vector<24x128xf32>
    %943 = arith.subf %926, %942 : vector<24x128xf32>
    %cst_423 = arith.constant 9.99999974E-6 : f32
    %944 = vector.broadcast %cst_423 : f32 to vector<24x1xf32>
    %945 = arith.addf %941, %944 : vector<24x1xf32>
    %946 = math.rsqrt %945 : vector<24x1xf32>
    %947 = vector.broadcast %946 : vector<24x1xf32> to vector<24x128xf32>
    %948 = arith.mulf %943, %947 : vector<24x128xf32>
    %949 = vector.broadcast %929 : vector<1x128xf32> to vector<24x128xf32>
    %950 = arith.mulf %948, %949 : vector<24x128xf32>
    %951 = vector.broadcast %930 : vector<1x128xf32> to vector<24x128xf32>
    %952 = arith.addf %950, %951 : vector<24x128xf32>
    %953 = arith.truncf %952 : vector<24x128xf32> to vector<24x128xbf16>
    %c3_424 = arith.constant 3 : index
    %c0_425 = arith.constant 0 : index
    %c0_426 = arith.constant 0 : index
    %c0_427 = arith.constant 0 : index
    %954 = vector.load %arg9[%c3_424, %c0_425, %c0_426, %c0_427] : memref<4x4x129x128xbf16, #tpu.memory_space<vmem>>, vector<1x1x128x128xbf16>
    %955 = vector.shape_cast %954 : vector<1x1x128x128xbf16> to vector<128x128xbf16>
    %c3_428 = arith.constant 3 : index
    %c0_429 = arith.constant 0 : index
    %c128_430 = arith.constant 128 : index
    %c0_431 = arith.constant 0 : index
    %956 = vector.load %arg9[%c3_428, %c0_429, %c128_430, %c0_431] : memref<4x4x129x128xbf16, #tpu.memory_space<vmem>>, vector<1x1x1x128xbf16>
    %957 = vector.shape_cast %956 : vector<1x1x1x128xbf16> to vector<1x128xbf16>
    %958 = arith.extf %957 : vector<1x128xbf16> to vector<1x128xf32>
    %cst_432 = arith.constant dense<0.000000e+00> : vector<24x128xf32>
    %959 = tpu.matmul %953, %955, %cst_432 {dimension_numbers = #tpu.dot_dimension_numbers<[1], [0], [0], [1], [0, 0, 1, 1], [], []>} : vector<24x128xbf16>, vector<128x128xbf16>, vector<24x128xf32> -> vector<24x128xf32>
    %960 = vector.broadcast %958 : vector<1x128xf32> to vector<24x128xf32>
    %961 = arith.addf %959, %960 : vector<24x128xf32>
    %c3_433 = arith.constant 3 : index
    %c1_434 = arith.constant 1 : index
    %c0_435 = arith.constant 0 : index
    %c0_436 = arith.constant 0 : index
    %962 = vector.load %arg9[%c3_433, %c1_434, %c0_435, %c0_436] : memref<4x4x129x128xbf16, #tpu.memory_space<vmem>>, vector<1x1x128x128xbf16>
    %963 = vector.shape_cast %962 : vector<1x1x128x128xbf16> to vector<128x128xbf16>
    %c3_437 = arith.constant 3 : index
    %c1_438 = arith.constant 1 : index
    %c128_439 = arith.constant 128 : index
    %c0_440 = arith.constant 0 : index
    %964 = vector.load %arg9[%c3_437, %c1_438, %c128_439, %c0_440] : memref<4x4x129x128xbf16, #tpu.memory_space<vmem>>, vector<1x1x1x128xbf16>
    %965 = vector.shape_cast %964 : vector<1x1x1x128xbf16> to vector<1x128xbf16>
    %966 = arith.extf %965 : vector<1x128xbf16> to vector<1x128xf32>
    %cst_441 = arith.constant dense<0.000000e+00> : vector<24x128xf32>
    %967 = tpu.matmul %953, %963, %cst_441 {dimension_numbers = #tpu.dot_dimension_numbers<[1], [0], [0], [1], [0, 0, 1, 1], [], []>} : vector<24x128xbf16>, vector<128x128xbf16>, vector<24x128xf32> -> vector<24x128xf32>
    %968 = vector.broadcast %966 : vector<1x128xf32> to vector<24x128xf32>
    %969 = arith.addf %967, %968 : vector<24x128xf32>
    %c3_442 = arith.constant 3 : index
    %c2_443 = arith.constant 2 : index
    %c0_444 = arith.constant 0 : index
    %c0_445 = arith.constant 0 : index
    %970 = vector.load %arg9[%c3_442, %c2_443, %c0_444, %c0_445] : memref<4x4x129x128xbf16, #tpu.memory_space<vmem>>, vector<1x1x128x128xbf16>
    %971 = vector.shape_cast %970 : vector<1x1x128x128xbf16> to vector<128x128xbf16>
    %c3_446 = arith.constant 3 : index
    %c2_447 = arith.constant 2 : index
    %c128_448 = arith.constant 128 : index
    %c0_449 = arith.constant 0 : index
    %972 = vector.load %arg9[%c3_446, %c2_447, %c128_448, %c0_449] : memref<4x4x129x128xbf16, #tpu.memory_space<vmem>>, vector<1x1x1x128xbf16>
    %973 = vector.shape_cast %972 : vector<1x1x1x128xbf16> to vector<1x128xbf16>
    %974 = arith.extf %973 : vector<1x128xbf16> to vector<1x128xf32>
    %cst_450 = arith.constant dense<0.000000e+00> : vector<24x128xf32>
    %975 = tpu.matmul %953, %971, %cst_450 {dimension_numbers = #tpu.dot_dimension_numbers<[1], [0], [0], [1], [0, 0, 1, 1], [], []>} : vector<24x128xbf16>, vector<128x128xbf16>, vector<24x128xf32> -> vector<24x128xf32>
    %976 = vector.broadcast %974 : vector<1x128xf32> to vector<24x128xf32>
    %977 = arith.addf %975, %976 : vector<24x128xf32>
    %c3_451 = arith.constant 3 : index
    %c3_452 = arith.constant 3 : index
    %c128_453 = arith.constant 128 : index
    %c0_454 = arith.constant 0 : index
    %978 = vector.load %arg9[%c3_451, %c3_452, %c128_453, %c0_454] : memref<4x4x129x128xbf16, #tpu.memory_space<vmem>>, vector<1x1x1x128xbf16>
    %979 = vector.shape_cast %978 : vector<1x1x1x128xbf16> to vector<1x128xbf16>
    %980 = arith.extf %979 : vector<1x128xbf16> to vector<1x128xf32>
    %981 = vector.extract_strided_slice %961 {offsets = [0, 0], sizes = [24, 32], strides = [1, 1]} : vector<24x128xf32> to vector<24x32xf32>
    %cst_455 = arith.constant 0.176776692 : f32
    %982 = vector.broadcast %cst_455 : f32 to vector<24x32xf32>
    %983 = arith.mulf %981, %982 : vector<24x32xf32>
    %984 = arith.truncf %983 : vector<24x32xf32> to vector<24x32xbf16>
    %985 = vector.extract_strided_slice %969 {offsets = [0, 0], sizes = [24, 32], strides = [1, 1]} : vector<24x128xf32> to vector<24x32xf32>
    %986 = arith.truncf %985 : vector<24x32xf32> to vector<24x32xbf16>
    %987 = vector.extract_strided_slice %977 {offsets = [0, 0], sizes = [24, 32], strides = [1, 1]} : vector<24x128xf32> to vector<24x32xf32>
    %988 = arith.truncf %987 : vector<24x32xf32> to vector<24x32xbf16>
    %cst_456 = arith.constant dense<0.000000e+00> : vector<24x24xf32>
    %989 = tpu.matmul %984, %986, %cst_456 {dimension_numbers = #tpu.dot_dimension_numbers<[1], [1], [0], [0], [0, 0, 1, 0], [], []>} : vector<24x32xbf16>, vector<24x32xbf16>, vector<24x24xf32> -> vector<24x24xf32>
    %990 = arith.addf %989, %144 : vector<24x24xf32>
    %cst_457 = arith.constant dense<0xFF800000> : vector<24xf32>
    %991 = vector.multi_reduction <maximumf>, %990, %cst_457 [1] : vector<24x24xf32> to vector<24xf32>
    %992 = vector.shape_cast %991 : vector<24xf32> to vector<24x1xf32>
    %993 = vector.broadcast %992 : vector<24x1xf32> to vector<24x24xf32>
    %994 = arith.subf %990, %993 : vector<24x24xf32>
    %995 = math.exp %994 : vector<24x24xf32>
    %cst_458 = arith.constant dense<0.000000e+00> : vector<24xf32>
    %996 = vector.multi_reduction <add>, %995, %cst_458 [1] : vector<24x24xf32> to vector<24xf32>
    %997 = vector.shape_cast %996 : vector<24xf32> to vector<24x1xf32>
    %998 = tpu.reciprocal %997 {approx = true} : vector<24x1xf32> -> vector<24x1xf32>
    %999 = vector.broadcast %998 : vector<24x1xf32> to vector<24x24xf32>
    %1000 = arith.mulf %995, %999 : vector<24x24xf32>
    %1001 = arith.truncf %1000 : vector<24x24xf32> to vector<24x24xbf16>
    %cst_459 = arith.constant dense<0.000000e+00> : vector<24x32xf32>
    %1002 = tpu.matmul %1001, %988, %cst_459 {dimension_numbers = #tpu.dot_dimension_numbers<[1], [0], [0], [1], [0, 0, 1, 1], [], []>} : vector<24x24xbf16>, vector<24x32xbf16>, vector<24x32xf32> -> vector<24x32xf32>
    %1003 = arith.truncf %1002 : vector<24x32xf32> to vector<24x32xbf16>
    %c3_460 = arith.constant 3 : index
    %c3_461 = arith.constant 3 : index
    %c0_462 = arith.constant 0 : index
    %c0_463 = arith.constant 0 : index
    %1004 = vector.load %arg9[%c3_460, %c3_461, %c0_462, %c0_463] : memref<4x4x129x128xbf16, #tpu.memory_space<vmem>>, vector<1x1x32x128xbf16>
    %1005 = vector.shape_cast %1004 : vector<1x1x32x128xbf16> to vector<32x128xbf16>
    %cst_464 = arith.constant dense<0.000000e+00> : vector<24x128xf32>
    %1006 = tpu.matmul %1003, %1005, %cst_464 {dimension_numbers = #tpu.dot_dimension_numbers<[1], [0], [0], [1], [0, 0, 1, 1], [], []>} : vector<24x32xbf16>, vector<32x128xbf16>, vector<24x128xf32> -> vector<24x128xf32>
    %1007 = vector.broadcast %980 : vector<1x128xf32> to vector<24x128xf32>
    %1008 = arith.addf %1007, %1006 : vector<24x128xf32>
    %1009 = vector.extract_strided_slice %961 {offsets = [0, 32], sizes = [24, 32], strides = [1, 1]} : vector<24x128xf32> to vector<24x32xf32>
    %cst_465 = arith.constant 0.176776692 : f32
    %1010 = vector.broadcast %cst_465 : f32 to vector<24x32xf32>
    %1011 = arith.mulf %1009, %1010 : vector<24x32xf32>
    %1012 = arith.truncf %1011 : vector<24x32xf32> to vector<24x32xbf16>
    %1013 = vector.extract_strided_slice %969 {offsets = [0, 32], sizes = [24, 32], strides = [1, 1]} : vector<24x128xf32> to vector<24x32xf32>
    %1014 = arith.truncf %1013 : vector<24x32xf32> to vector<24x32xbf16>
    %1015 = vector.extract_strided_slice %977 {offsets = [0, 32], sizes = [24, 32], strides = [1, 1]} : vector<24x128xf32> to vector<24x32xf32>
    %1016 = arith.truncf %1015 : vector<24x32xf32> to vector<24x32xbf16>
    %cst_466 = arith.constant dense<0.000000e+00> : vector<24x24xf32>
    %1017 = tpu.matmul %1012, %1014, %cst_466 {dimension_numbers = #tpu.dot_dimension_numbers<[1], [1], [0], [0], [0, 0, 1, 0], [], []>} : vector<24x32xbf16>, vector<24x32xbf16>, vector<24x24xf32> -> vector<24x24xf32>
    %1018 = arith.addf %1017, %144 : vector<24x24xf32>
    %cst_467 = arith.constant dense<0xFF800000> : vector<24xf32>
    %1019 = vector.multi_reduction <maximumf>, %1018, %cst_467 [1] : vector<24x24xf32> to vector<24xf32>
    %1020 = vector.shape_cast %1019 : vector<24xf32> to vector<24x1xf32>
    %1021 = vector.broadcast %1020 : vector<24x1xf32> to vector<24x24xf32>
    %1022 = arith.subf %1018, %1021 : vector<24x24xf32>
    %1023 = math.exp %1022 : vector<24x24xf32>
    %cst_468 = arith.constant dense<0.000000e+00> : vector<24xf32>
    %1024 = vector.multi_reduction <add>, %1023, %cst_468 [1] : vector<24x24xf32> to vector<24xf32>
    %1025 = vector.shape_cast %1024 : vector<24xf32> to vector<24x1xf32>
    %1026 = tpu.reciprocal %1025 {approx = true} : vector<24x1xf32> -> vector<24x1xf32>
    %1027 = vector.broadcast %1026 : vector<24x1xf32> to vector<24x24xf32>
    %1028 = arith.mulf %1023, %1027 : vector<24x24xf32>
    %1029 = arith.truncf %1028 : vector<24x24xf32> to vector<24x24xbf16>
    %cst_469 = arith.constant dense<0.000000e+00> : vector<24x32xf32>
    %1030 = tpu.matmul %1029, %1016, %cst_469 {dimension_numbers = #tpu.dot_dimension_numbers<[1], [0], [0], [1], [0, 0, 1, 1], [], []>} : vector<24x24xbf16>, vector<24x32xbf16>, vector<24x32xf32> -> vector<24x32xf32>
    %1031 = arith.truncf %1030 : vector<24x32xf32> to vector<24x32xbf16>
    %c3_470 = arith.constant 3 : index
    %c3_471 = arith.constant 3 : index
    %c32_472 = arith.constant 32 : index
    %c0_473 = arith.constant 0 : index
    %1032 = vector.load %arg9[%c3_470, %c3_471, %c32_472, %c0_473] : memref<4x4x129x128xbf16, #tpu.memory_space<vmem>>, vector<1x1x32x128xbf16>
    %1033 = vector.shape_cast %1032 : vector<1x1x32x128xbf16> to vector<32x128xbf16>
    %cst_474 = arith.constant dense<0.000000e+00> : vector<24x128xf32>
    %1034 = tpu.matmul %1031, %1033, %cst_474 {dimension_numbers = #tpu.dot_dimension_numbers<[1], [0], [0], [1], [0, 0, 1, 1], [], []>} : vector<24x32xbf16>, vector<32x128xbf16>, vector<24x128xf32> -> vector<24x128xf32>
    %1035 = arith.addf %1008, %1034 : vector<24x128xf32>
    %1036 = vector.extract_strided_slice %961 {offsets = [0, 64], sizes = [24, 32], strides = [1, 1]} : vector<24x128xf32> to vector<24x32xf32>
    %cst_475 = arith.constant 0.176776692 : f32
    %1037 = vector.broadcast %cst_475 : f32 to vector<24x32xf32>
    %1038 = arith.mulf %1036, %1037 : vector<24x32xf32>
    %1039 = arith.truncf %1038 : vector<24x32xf32> to vector<24x32xbf16>
    %1040 = vector.extract_strided_slice %969 {offsets = [0, 64], sizes = [24, 32], strides = [1, 1]} : vector<24x128xf32> to vector<24x32xf32>
    %1041 = arith.truncf %1040 : vector<24x32xf32> to vector<24x32xbf16>
    %1042 = vector.extract_strided_slice %977 {offsets = [0, 64], sizes = [24, 32], strides = [1, 1]} : vector<24x128xf32> to vector<24x32xf32>
    %1043 = arith.truncf %1042 : vector<24x32xf32> to vector<24x32xbf16>
    %cst_476 = arith.constant dense<0.000000e+00> : vector<24x24xf32>
    %1044 = tpu.matmul %1039, %1041, %cst_476 {dimension_numbers = #tpu.dot_dimension_numbers<[1], [1], [0], [0], [0, 0, 1, 0], [], []>} : vector<24x32xbf16>, vector<24x32xbf16>, vector<24x24xf32> -> vector<24x24xf32>
    %1045 = arith.addf %1044, %144 : vector<24x24xf32>
    %cst_477 = arith.constant dense<0xFF800000> : vector<24xf32>
    %1046 = vector.multi_reduction <maximumf>, %1045, %cst_477 [1] : vector<24x24xf32> to vector<24xf32>
    %1047 = vector.shape_cast %1046 : vector<24xf32> to vector<24x1xf32>
    %1048 = vector.broadcast %1047 : vector<24x1xf32> to vector<24x24xf32>
    %1049 = arith.subf %1045, %1048 : vector<24x24xf32>
    %1050 = math.exp %1049 : vector<24x24xf32>
    %cst_478 = arith.constant dense<0.000000e+00> : vector<24xf32>
    %1051 = vector.multi_reduction <add>, %1050, %cst_478 [1] : vector<24x24xf32> to vector<24xf32>
    %1052 = vector.shape_cast %1051 : vector<24xf32> to vector<24x1xf32>
    %1053 = tpu.reciprocal %1052 {approx = true} : vector<24x1xf32> -> vector<24x1xf32>
    %1054 = vector.broadcast %1053 : vector<24x1xf32> to vector<24x24xf32>
    %1055 = arith.mulf %1050, %1054 : vector<24x24xf32>
    %1056 = arith.truncf %1055 : vector<24x24xf32> to vector<24x24xbf16>
    %cst_479 = arith.constant dense<0.000000e+00> : vector<24x32xf32>
    %1057 = tpu.matmul %1056, %1043, %cst_479 {dimension_numbers = #tpu.dot_dimension_numbers<[1], [0], [0], [1], [0, 0, 1, 1], [], []>} : vector<24x24xbf16>, vector<24x32xbf16>, vector<24x32xf32> -> vector<24x32xf32>
    %1058 = arith.truncf %1057 : vector<24x32xf32> to vector<24x32xbf16>
    %c3_480 = arith.constant 3 : index
    %c3_481 = arith.constant 3 : index
    %c64_482 = arith.constant 64 : index
    %c0_483 = arith.constant 0 : index
    %1059 = vector.load %arg9[%c3_480, %c3_481, %c64_482, %c0_483] : memref<4x4x129x128xbf16, #tpu.memory_space<vmem>>, vector<1x1x32x128xbf16>
    %1060 = vector.shape_cast %1059 : vector<1x1x32x128xbf16> to vector<32x128xbf16>
    %cst_484 = arith.constant dense<0.000000e+00> : vector<24x128xf32>
    %1061 = tpu.matmul %1058, %1060, %cst_484 {dimension_numbers = #tpu.dot_dimension_numbers<[1], [0], [0], [1], [0, 0, 1, 1], [], []>} : vector<24x32xbf16>, vector<32x128xbf16>, vector<24x128xf32> -> vector<24x128xf32>
    %1062 = arith.addf %1035, %1061 : vector<24x128xf32>
    %1063 = vector.extract_strided_slice %961 {offsets = [0, 96], sizes = [24, 32], strides = [1, 1]} : vector<24x128xf32> to vector<24x32xf32>
    %cst_485 = arith.constant 0.176776692 : f32
    %1064 = vector.broadcast %cst_485 : f32 to vector<24x32xf32>
    %1065 = arith.mulf %1063, %1064 : vector<24x32xf32>
    %1066 = arith.truncf %1065 : vector<24x32xf32> to vector<24x32xbf16>
    %1067 = vector.extract_strided_slice %969 {offsets = [0, 96], sizes = [24, 32], strides = [1, 1]} : vector<24x128xf32> to vector<24x32xf32>
    %1068 = arith.truncf %1067 : vector<24x32xf32> to vector<24x32xbf16>
    %1069 = vector.extract_strided_slice %977 {offsets = [0, 96], sizes = [24, 32], strides = [1, 1]} : vector<24x128xf32> to vector<24x32xf32>
    %1070 = arith.truncf %1069 : vector<24x32xf32> to vector<24x32xbf16>
    %cst_486 = arith.constant dense<0.000000e+00> : vector<24x24xf32>
    %1071 = tpu.matmul %1066, %1068, %cst_486 {dimension_numbers = #tpu.dot_dimension_numbers<[1], [1], [0], [0], [0, 0, 1, 0], [], []>} : vector<24x32xbf16>, vector<24x32xbf16>, vector<24x24xf32> -> vector<24x24xf32>
    %1072 = arith.addf %1071, %144 : vector<24x24xf32>
    %cst_487 = arith.constant dense<0xFF800000> : vector<24xf32>
    %1073 = vector.multi_reduction <maximumf>, %1072, %cst_487 [1] : vector<24x24xf32> to vector<24xf32>
    %1074 = vector.shape_cast %1073 : vector<24xf32> to vector<24x1xf32>
    %1075 = vector.broadcast %1074 : vector<24x1xf32> to vector<24x24xf32>
    %1076 = arith.subf %1072, %1075 : vector<24x24xf32>
    %1077 = math.exp %1076 : vector<24x24xf32>
    %cst_488 = arith.constant dense<0.000000e+00> : vector<24xf32>
    %1078 = vector.multi_reduction <add>, %1077, %cst_488 [1] : vector<24x24xf32> to vector<24xf32>
    %1079 = vector.shape_cast %1078 : vector<24xf32> to vector<24x1xf32>
    %1080 = tpu.reciprocal %1079 {approx = true} : vector<24x1xf32> -> vector<24x1xf32>
    %1081 = vector.broadcast %1080 : vector<24x1xf32> to vector<24x24xf32>
    %1082 = arith.mulf %1077, %1081 : vector<24x24xf32>
    %1083 = arith.truncf %1082 : vector<24x24xf32> to vector<24x24xbf16>
    %cst_489 = arith.constant dense<0.000000e+00> : vector<24x32xf32>
    %1084 = tpu.matmul %1083, %1070, %cst_489 {dimension_numbers = #tpu.dot_dimension_numbers<[1], [0], [0], [1], [0, 0, 1, 1], [], []>} : vector<24x24xbf16>, vector<24x32xbf16>, vector<24x32xf32> -> vector<24x32xf32>
    %1085 = arith.truncf %1084 : vector<24x32xf32> to vector<24x32xbf16>
    %c3_490 = arith.constant 3 : index
    %c3_491 = arith.constant 3 : index
    %c96_492 = arith.constant 96 : index
    %c0_493 = arith.constant 0 : index
    %1086 = vector.load %arg9[%c3_490, %c3_491, %c96_492, %c0_493] : memref<4x4x129x128xbf16, #tpu.memory_space<vmem>>, vector<1x1x32x128xbf16>
    %1087 = vector.shape_cast %1086 : vector<1x1x32x128xbf16> to vector<32x128xbf16>
    %cst_494 = arith.constant dense<0.000000e+00> : vector<24x128xf32>
    %1088 = tpu.matmul %1085, %1087, %cst_494 {dimension_numbers = #tpu.dot_dimension_numbers<[1], [0], [0], [1], [0, 0, 1, 1], [], []>} : vector<24x32xbf16>, vector<32x128xbf16>, vector<24x128xf32> -> vector<24x128xf32>
    %1089 = arith.addf %1062, %1088 : vector<24x128xf32>
    %1090 = arith.addf %926, %1089 : vector<24x128xf32>
    %1091 = vector.extract_strided_slice %928 {offsets = [2, 0], sizes = [1, 128], strides = [1, 1]} : vector<4x128xf32> to vector<1x128xf32>
    %1092 = vector.extract_strided_slice %928 {offsets = [3, 0], sizes = [1, 128], strides = [1, 1]} : vector<4x128xf32> to vector<1x128xf32>
    %cst_495 = arith.constant dense<0.000000e+00> : vector<24xf32>
    %1093 = vector.multi_reduction <add>, %1090, %cst_495 [1] : vector<24x128xf32> to vector<24xf32>
    %1094 = vector.shape_cast %1093 : vector<24xf32> to vector<24x1xf32>
    %cst_496 = arith.constant 1.280000e+02 : f32
    %1095 = vector.broadcast %cst_496 : f32 to vector<24x1xf32>
    %1096 = arith.divf %1094, %1095 : vector<24x1xf32>
    %1097 = vector.broadcast %1096 : vector<24x1xf32> to vector<24x128xf32>
    %1098 = arith.subf %1090, %1097 : vector<24x128xf32>
    %1099 = arith.mulf %1098, %1098 : vector<24x128xf32>
    %cst_497 = arith.constant dense<0.000000e+00> : vector<24xf32>
    %1100 = vector.multi_reduction <add>, %1099, %cst_497 [1] : vector<24x128xf32> to vector<24xf32>
    %1101 = vector.shape_cast %1100 : vector<24xf32> to vector<24x1xf32>
    %cst_498 = arith.constant 1.280000e+02 : f32
    %1102 = vector.broadcast %cst_498 : f32 to vector<24x1xf32>
    %1103 = arith.divf %1101, %1102 : vector<24x1xf32>
    %1104 = vector.broadcast %1096 : vector<24x1xf32> to vector<24x128xf32>
    %1105 = arith.subf %1090, %1104 : vector<24x128xf32>
    %cst_499 = arith.constant 9.99999974E-6 : f32
    %1106 = vector.broadcast %cst_499 : f32 to vector<24x1xf32>
    %1107 = arith.addf %1103, %1106 : vector<24x1xf32>
    %1108 = math.rsqrt %1107 : vector<24x1xf32>
    %1109 = vector.broadcast %1108 : vector<24x1xf32> to vector<24x128xf32>
    %1110 = arith.mulf %1105, %1109 : vector<24x128xf32>
    %1111 = vector.broadcast %1091 : vector<1x128xf32> to vector<24x128xf32>
    %1112 = arith.mulf %1110, %1111 : vector<24x128xf32>
    %1113 = vector.broadcast %1092 : vector<1x128xf32> to vector<24x128xf32>
    %1114 = arith.addf %1112, %1113 : vector<24x128xf32>
    %1115 = arith.truncf %1114 : vector<24x128xf32> to vector<24x128xbf16>
    %c3_500 = arith.constant 3 : index
    %c0_501 = arith.constant 0 : index
    %c0_502 = arith.constant 0 : index
    %1116 = vector.load %arg10[%c3_500, %c0_501, %c0_502] : memref<4x129x512xbf16, #tpu.memory_space<vmem>>, vector<1x128x512xbf16>
    %1117 = vector.shape_cast %1116 : vector<1x128x512xbf16> to vector<128x512xbf16>
    %cst_503 = arith.constant dense<0.000000e+00> : vector<24x512xf32>
    %1118 = tpu.matmul %1115, %1117, %cst_503 {dimension_numbers = #tpu.dot_dimension_numbers<[1], [0], [0], [1], [0, 0, 1, 1], [], []>} : vector<24x128xbf16>, vector<128x512xbf16>, vector<24x512xf32> -> vector<24x512xf32>
    %c3_504 = arith.constant 3 : index
    %c128_505 = arith.constant 128 : index
    %c0_506 = arith.constant 0 : index
    %1119 = vector.load %arg10[%c3_504, %c128_505, %c0_506] : memref<4x129x512xbf16, #tpu.memory_space<vmem>>, vector<1x1x512xbf16>
    %1120 = vector.shape_cast %1119 : vector<1x1x512xbf16> to vector<1x512xbf16>
    %1121 = arith.extf %1120 : vector<1x512xbf16> to vector<1x512xf32>
    %1122 = vector.broadcast %1121 : vector<1x512xf32> to vector<24x512xf32>
    %1123 = arith.addf %1118, %1122 : vector<24x512xf32>
    %cst_507 = arith.constant 5.000000e-01 : f32
    %1124 = vector.broadcast %cst_507 : f32 to vector<24x512xf32>
    %1125 = arith.mulf %1124, %1123 : vector<24x512xf32>
    %cst_508 = arith.constant 4.471500e-02 : f32
    %1126 = vector.broadcast %cst_508 : f32 to vector<24x512xf32>
    %1127 = arith.mulf %1126, %1123 : vector<24x512xf32>
    %1128 = arith.mulf %1127, %1123 : vector<24x512xf32>
    %1129 = arith.mulf %1128, %1123 : vector<24x512xf32>
    %1130 = arith.addf %1123, %1129 : vector<24x512xf32>
    %cst_509 = arith.constant 0.797884583 : f32
    %1131 = vector.broadcast %cst_509 : f32 to vector<24x512xf32>
    %1132 = arith.mulf %1131, %1130 : vector<24x512xf32>
    %1133 = math.tanh %1132 : vector<24x512xf32>
    %cst_510 = arith.constant 1.000000e+00 : f32
    %1134 = vector.broadcast %cst_510 : f32 to vector<24x512xf32>
    %1135 = arith.addf %1134, %1133 : vector<24x512xf32>
    %1136 = arith.mulf %1125, %1135 : vector<24x512xf32>
    %1137 = arith.truncf %1136 : vector<24x512xf32> to vector<24x512xbf16>
    %c3_511 = arith.constant 3 : index
    %c0_512 = arith.constant 0 : index
    %c0_513 = arith.constant 0 : index
    %1138 = vector.load %arg11[%c3_511, %c0_512, %c0_513] : memref<4x513x128xbf16, #tpu.memory_space<vmem>>, vector<1x512x128xbf16>
    %1139 = vector.shape_cast %1138 : vector<1x512x128xbf16> to vector<512x128xbf16>
    %cst_514 = arith.constant dense<0.000000e+00> : vector<24x128xf32>
    %1140 = tpu.matmul %1137, %1139, %cst_514 {dimension_numbers = #tpu.dot_dimension_numbers<[1], [0], [0], [1], [0, 0, 1, 1], [], []>} : vector<24x512xbf16>, vector<512x128xbf16>, vector<24x128xf32> -> vector<24x128xf32>
    %1141 = arith.addf %1090, %1140 : vector<24x128xf32>
    %c3_515 = arith.constant 3 : index
    %c512_516 = arith.constant 512 : index
    %c0_517 = arith.constant 0 : index
    %1142 = vector.load %arg11[%c3_515, %c512_516, %c0_517] : memref<4x513x128xbf16, #tpu.memory_space<vmem>>, vector<1x1x128xbf16>
    %1143 = vector.shape_cast %1142 : vector<1x1x128xbf16> to vector<1x128xbf16>
    %1144 = arith.extf %1143 : vector<1x128xbf16> to vector<1x128xf32>
    %1145 = vector.broadcast %1144 : vector<1x128xf32> to vector<24x128xf32>
    %1146 = arith.addf %1141, %1145 : vector<24x128xf32>
    %c4_518 = arith.constant 4 : index
    %c0_519 = arith.constant 0 : index
    %1147 = vector.load %arg7[%c4_518, %c0_519] : memref<8x128xf32, #tpu.memory_space<vmem>>, vector<1x128xf32>
    %c5_520 = arith.constant 5 : index
    %c0_521 = arith.constant 0 : index
    %1148 = vector.load %arg7[%c5_520, %c0_521] : memref<8x128xf32, #tpu.memory_space<vmem>>, vector<1x128xf32>
    %cst_522 = arith.constant dense<0.000000e+00> : vector<24xf32>
    %1149 = vector.multi_reduction <add>, %1146, %cst_522 [1] : vector<24x128xf32> to vector<24xf32>
    %1150 = vector.shape_cast %1149 : vector<24xf32> to vector<24x1xf32>
    %cst_523 = arith.constant 1.280000e+02 : f32
    %1151 = vector.broadcast %cst_523 : f32 to vector<24x1xf32>
    %1152 = arith.divf %1150, %1151 : vector<24x1xf32>
    %1153 = vector.broadcast %1152 : vector<24x1xf32> to vector<24x128xf32>
    %1154 = arith.subf %1146, %1153 : vector<24x128xf32>
    %1155 = arith.mulf %1154, %1154 : vector<24x128xf32>
    %cst_524 = arith.constant dense<0.000000e+00> : vector<24xf32>
    %1156 = vector.multi_reduction <add>, %1155, %cst_524 [1] : vector<24x128xf32> to vector<24xf32>
    %1157 = vector.shape_cast %1156 : vector<24xf32> to vector<24x1xf32>
    %cst_525 = arith.constant 1.280000e+02 : f32
    %1158 = vector.broadcast %cst_525 : f32 to vector<24x1xf32>
    %1159 = arith.divf %1157, %1158 : vector<24x1xf32>
    %1160 = vector.broadcast %1152 : vector<24x1xf32> to vector<24x128xf32>
    %1161 = arith.subf %1146, %1160 : vector<24x128xf32>
    %cst_526 = arith.constant 9.99999974E-6 : f32
    %1162 = vector.broadcast %cst_526 : f32 to vector<24x1xf32>
    %1163 = arith.addf %1159, %1162 : vector<24x1xf32>
    %1164 = math.rsqrt %1163 : vector<24x1xf32>
    %1165 = vector.broadcast %1164 : vector<24x1xf32> to vector<24x128xf32>
    %1166 = arith.mulf %1161, %1165 : vector<24x128xf32>
    %1167 = vector.broadcast %1147 : vector<1x128xf32> to vector<24x128xf32>
    %1168 = arith.mulf %1166, %1167 : vector<24x128xf32>
    %1169 = vector.broadcast %1148 : vector<1x128xf32> to vector<24x128xf32>
    %1170 = arith.addf %1168, %1169 : vector<24x128xf32>
    %1171 = vector.extract_strided_slice %1170 {offsets = [23, 0], sizes = [1, 128], strides = [1, 1]} : vector<24x128xf32> to vector<1x128xf32>
    %c6_527 = arith.constant 6 : index
    %c0_528 = arith.constant 0 : index
    %1172 = vector.load %arg7[%c6_527, %c0_528] : memref<8x128xf32, #tpu.memory_space<vmem>>, vector<1x128xf32>
    %1173 = arith.mulf %1171, %1172 : vector<1x128xf32>
    %cst_529 = arith.constant dense<0.000000e+00> : vector<1xf32>
    %1174 = vector.multi_reduction <add>, %1173, %cst_529 [1] : vector<1x128xf32> to vector<1xf32>
    %1175 = vector.shape_cast %1174 : vector<1xf32> to vector<1x1xf32>
    %c7_530 = arith.constant 7 : index
    %c0_531 = arith.constant 0 : index
    %1176 = vector.load %arg7[%c7_530, %c0_531] : memref<8x128xf32, #tpu.memory_space<vmem>>, vector<1x1xf32>
    %1177 = arith.addf %1175, %1176 : vector<1x1xf32>
    %1178 = vector.shape_cast %1177 : vector<1x1xf32> to vector<1x1xf32>
    %1179 = vector.broadcast %1178 : vector<1x1xf32> to vector<1x128xf32>
    %c0_532 = arith.constant 0 : index
    %c0_533 = arith.constant 0 : index
    %c0_534 = arith.constant 0 : index
    %1180 = vector.load %arg14[%c0_532, %c0_533, %c0_534] : memref<1x1x128xf32, #tpu.memory_space<vmem>>, vector<1x1x128xf32>
    %1181 = vector.shape_cast %1180 : vector<1x1x128xf32> to vector<1x128xf32>
    %1182 = vector.shape_cast %1179 : vector<1x128xf32> to vector<1x1x128xf32>
    tpu.vector_store %arg14[%c0_532, %c0_533, %c0_534], %1182 {strides = array<i32>} : memref<1x1x128xf32, #tpu.memory_space<vmem>>, vector<1x1x128xf32>,
    return
  }
  func.func @transform_0(%arg0: i32, %arg1: memref<2x8xi32, #tpu.memory_space<smem>>) -> (i32, i32, i32, i32) {
    %c0_i32 = arith.constant 0 : i32
    %c0_i32_0 = arith.constant 0 : i32
    %c0_i32_1 = arith.constant 0 : i32
    %c0_i32_2 = arith.constant 0 : i32
    return %arg0, %c0_i32, %c0_i32_0, %c0_i32_1 : i32, i32, i32, i32
  }
  func.func @transform_1(%arg0: i32, %arg1: memref<2x8xi32, #tpu.memory_space<smem>>) -> (i32, i32) {
    %c0_i32 = arith.constant 0 : i32
    %c0_i32_0 = arith.constant 0 : i32
    %c0_i32_1 = arith.constant 0 : i32
    return %c0_i32, %c0_i32_0 : i32, i32
  }
  func.func @transform_2(%arg0: i32, %arg1: memref<2x8xi32, #tpu.memory_space<smem>>) -> (i32, i32, i32) {
    %c0_i32 = arith.constant 0 : i32
    %c0_i32_0 = arith.constant 0 : i32
    %c0_i32_1 = arith.constant 0 : i32
    %c0_i32_2 = arith.constant 0 : i32
    return %c0_i32, %c0_i32_0, %c0_i32_1 : i32, i32, i32
  }
  func.func @transform_3(%arg0: i32, %arg1: memref<2x8xi32, #tpu.memory_space<smem>>) -> (i32, i32, i32) {
    %c0_i32 = arith.constant 0 : i32
    %c0_i32_0 = arith.constant 0 : i32
    %c0_i32_1 = arith.constant 0 : i32
    %c0_i32_2 = arith.constant 0 : i32
    return %c0_i32, %c0_i32_0, %c0_i32_1 : i32, i32, i32
  }
  func.func @transform_4(%arg0: i32, %arg1: memref<2x8xi32, #tpu.memory_space<smem>>) -> (i32, i32, i32) {
    %c0_i32 = arith.constant 0 : i32
    %c0_i32_0 = arith.constant 0 : i32
    %c0_i32_1 = arith.constant 0 : i32
    %c0_i32_2 = arith.constant 0 : i32
    return %c0_i32, %c0_i32_0, %c0_i32_1 : i32, i32, i32
  }
  func.func @transform_5(%arg0: i32, %arg1: memref<2x8xi32, #tpu.memory_space<smem>>) -> (i32, i32) {
    %c0_i32 = arith.constant 0 : i32
    %c0_i32_0 = arith.constant 0 : i32
    %c0_i32_1 = arith.constant 0 : i32
    return %c0_i32, %c0_i32_0 : i32, i32
  }
  func.func @transform_6(%arg0: i32, %arg1: memref<2x8xi32, #tpu.memory_space<smem>>) -> (i32, i32, i32) {
    %c0_i32 = arith.constant 0 : i32
    %c0_i32_0 = arith.constant 0 : i32
    %c0_i32_1 = arith.constant 0 : i32
    %c0_i32_2 = arith.constant 0 : i32
    return %c0_i32, %c0_i32_0, %c0_i32_1 : i32, i32, i32
  }
  func.func @transform_7(%arg0: i32, %arg1: memref<2x8xi32, #tpu.memory_space<smem>>) -> (i32, i32, i32, i32) {
    %c0_i32 = arith.constant 0 : i32
    %c0_i32_0 = arith.constant 0 : i32
    %c0_i32_1 = arith.constant 0 : i32
    %c0_i32_2 = arith.constant 0 : i32
    %c0_i32_3 = arith.constant 0 : i32
    return %c0_i32, %c0_i32_0, %c0_i32_1, %c0_i32_2 : i32, i32, i32, i32
  }
  func.func @transform_8(%arg0: i32, %arg1: memref<2x8xi32, #tpu.memory_space<smem>>) -> (i32, i32, i32) {
    %c0_i32 = arith.constant 0 : i32
    %c0_i32_0 = arith.constant 0 : i32
    %c0_i32_1 = arith.constant 0 : i32
    %c0_i32_2 = arith.constant 0 : i32
    return %c0_i32, %c0_i32_0, %c0_i32_1 : i32, i32, i32
  }
  func.func @transform_9(%arg0: i32, %arg1: memref<2x8xi32, #tpu.memory_space<smem>>) -> (i32, i32, i32) {
    %c0_i32 = arith.constant 0 : i32
    %c0_i32_0 = arith.constant 0 : i32
    %c0_i32_1 = arith.constant 0 : i32
    %c0_i32_2 = arith.constant 0 : i32
    return %c0_i32, %c0_i32_0, %c0_i32_1 : i32, i32, i32
  }
  func.func @transform_10(%arg0: i32, %arg1: memref<2x8xi32, #tpu.memory_space<smem>>) -> (i32, i32) {
    %c0_i32 = arith.constant 0 : i32
    %c0_i32_0 = arith.constant 0 : i32
    %c0_i32_1 = arith.constant 0 : i32
    return %c0_i32, %c0_i32_0 : i32, i32
  }
  func.func @transform_11(%arg0: i32, %arg1: memref<2x8xi32, #tpu.memory_space<smem>>) -> (i32, i32) {
    %c0_i32 = arith.constant 0 : i32
    %c0_i32_0 = arith.constant 0 : i32
    %c0_i32_1 = arith.constant 0 : i32
    return %c0_i32, %c0_i32_0 : i32, i32
  }
  func.func @transform_12(%arg0: i32, %arg1: memref<2x8xi32, #tpu.memory_space<smem>>) -> (i32, i32, i32) {
    %c0_i32 = arith.constant 0 : i32
    %c0_i32_0 = arith.constant 0 : i32
    %c0_i32_1 = arith.constant 0 : i32
    return %arg0, %c0_i32, %c0_i32_0 : i32, i32, i32
  }
}

</mosaic_0001>

<bundles_post_ra>
// kernel: vllava_reward_forward.1
= control target key start
LH: loop header
LB: loop body
LE: loop exit
PB: predicated region body
PF: predicated region fallthrough
CT: control target
= control target key end

     0   :  { %s19983_s0 = inlined_call_operand.vmem [shape: s32[2,8], index: 0, kind: input, shape index: {}]   ;;  %s19984_s1 = inlined_call_operand.vmem [shape: f32[2,3,20,20], index: 1, kind: input, shape index: {}]   ;;  %s19985_s2 = inlined_call_operand.vmem [shape: bf16[32,20], index: 2, kind: input, shape index: {}]   ;;  %s19986_s3 = inlined_call_operand.vmem [shape: bf16[3,20,96], index: 3, kind: input, shape index: {}]   ;;  %s19987_s4 = inlined_call_operand.vmem [shape: bf16[8,96,512], index: 4, kind: input, shape index: {}]   ;;  %s19988_s5 = inlined_call_operand.vmem [shape: f32[2,24,128], index: 5, kind: input, shape index: {}]   ;;  %s19989_s6 = inlined_call_operand.vmem [shape: f32[8,128], index: 6, kind: input, shape index: {}]   ;;  %s19990_s7 = inlined_call_operand.vmem [shape: f32[4,4,128], index: 7, kind: input, shape index: {}]   ;;  %s19991_s8 = inlined_call_operand.vmem [shape: bf16[4,4,129,128], index: 8, kind: input, shape index: {}]   ;;  %s19992_s9 = inlined_call_operand.vmem [shape: bf16[4,129,512], index: 9, kind: input, shape index: {}]   ;;  %s19993_s10 = inlined_call_operand.vmem [shape: bf16[4,513,128], index: 10, kind: input, shape index: {}]   ;;  %s19994_s11 = inlined_call_operand.vmem [shape: bf16[129,128], index: 11, kind: input, shape index: {}]   ;;  %s19995_s12 = inlined_call_operand.vmem [shape: bf16[64,128], index: 12, kind: input, shape index: {}]   ;;  %s19996_s13 = inlined_call_operand.vmem [shape: f32[2,1,128], index: 13, kind: output, shape index: {}]  }
   0x1   :  { %s18_s27 = sshll.u32 %s19983_s0, 4  ;;  %s19_s27 = int_to_ptr.vmem [resolvable:$true] %s18_s27 }
   0x2   :  { %s16407_s28 = scalar_lea.vmem %s19_s27, 32  ;;  %p16412_p1 = scmp.lt.s32.totalorder %s19_s27, %s19_s27 }
   0x3   :  { %p16408_p0 = scmp.ne.s32.totalorder %s19_s27, %s16407_s28  ;;  %p16413_p2 = scmp.lt.s32.totalorder %s16407_s28, %s16407_s28 }
   0x5   :  { %p16414_p3 = por %p16413_p2, %p16412_p1 }
   0x7   :  { %p16415_p4 = pnand %p16414_p3, %p16408_p0 }
   0x9   :  { %16418 = shalt.err (!%p16415_p4)  }
   0xa   :  { %s16429_s29 = smov [#allocation3]  }
   0xb   :  { %21 = dma.vmem_to_smem %s19_s27, 32, %s16429_s29, [#allocation2] }
   0xc   :  { %16423 = dma.done.wait [#allocation2], 32 }
   0xd   :  { %16424 = vsyncadd [#allocation2], 4294967264 }
   0xe   :  { %23 = sfence }
   0xf   :  { %s16511_s30 = smov 0  }
  0x10 LB: > { %s16517_s0 = sadd.s32 4294967295, %s16427_s30   ;;  %p12426_p5 = scmp.ge.s32.totalorder %s16427_s30, 1  ;;  %s16427_s30 = sphi %s16511_s30, %s29_s30  }
  0x11   : > { %p369_p6 = scmp.lt.s32.totalorder %s16427_s30, 3 }
  0x13   : > { %p370_p7 = pnand %p12426_p5, %p369_p6 }
  0x14   : > { %p409_p8 = scmp.lt.s32.totalorder (!%p370_p7), %s16517_s0, 1  ;;  %s16434_s22 = smov (!%p370_p7), 96  }
  0x15   : > { %373 = sbr.rel (%p370_p7) target bundleno = 14705 (0x3971), region = 68  ;;  %s19999_s25 = smov (!%p370_p7), 64  }
  0x16   : > { %s19997_s14 = smov (!%p370_p7), 32   ;;  %s18599_s26 = sshll.u32 (!%p370_p7), %s16517_s0, 7 }
  0x17   : > { %s7761_s27 = sld [smem:[#allocation3 + %s18599_s26]] (!%p370_p7)  ;;  %s7765_s28 = sadd.s32 (!%p370_p7), 1, %s18599_s26 }
  0x18   : > { %s7770_s18 = sadd.s32 (!%p370_p7), 2, %s18599_s26  ;;  %s7775_s21 = sadd.s32 (!%p370_p7), 3, %s18599_s26 }
  0x19   : > { %s18612_s23 = sld [smem:[#allocation3 + %s7775_s21]] (!%p370_p7)  ;;  %s7780_s24 = sadd.s32 (!%p370_p7), 4, %s18599_s26 }
  0x1a   : > { %v15297_v0 = vld [vmem:[%s19985_s2] sm:$0xff]   ;;  %vm437_vm0 = vcmask 162816   ;;  %s16526_s16 = scalar_select %p409_p8, %s16517_s0, 1  ;;  %vm444_vm1 = vcmask 1041408   ;;  %v15298_v13 = vld [vmem:[%s19985_s2 + $0x8] sm:$0xff]   ;;  %v15304_v42 = vld [vmem:[%s19986_s3 + $0x18] sm:$0xff]  }
  0x1b   : > { %14503 = vmatprep.mubr.msk.bf16.mxu0 %vm437_vm0, %v15297_v0  ;;  %14511 = vmatprep.mubr.msk.bf16.mxu1 %vm437_vm0, %v15297_v0  ;;  %v15299_v14 = vld [vmem:[%s19986_s3 + $0x14] ss:$0 sps:$4 sm:$0x33]   ;;  %v15300_v15 = vld [vmem:[%s19986_s3 + $0x8] ss:$0 sps:$4 sm:$0x33]  }
  0x1c   : > { %s15277_s17 = smul.u32 72, %s16526_s16  ;;  %v582_v16 = vsel %vm444_vm1, %v15299_v14, 0  ;;  %v649_v17 = vsel %vm444_vm1, %v15300_v15, 0  ;;  %v15301_v18 = vld [vmem:[%s19986_s3 + $0xc] sm:$0xff]   ;;  %v15302_v19 = vld [vmem:[%s19986_s3] sm:$0xff]   ;;  %vm1023_vm4 = vcmask 785408  }
  0x1d   : > { %v16401_v38 = vld [vmem:[%s19985_s2] sm:$0xff]   ;;  %v16402_v39 = vld [vmem:[%s19985_s2 + $0x8] sm:$0xff]   ;;  %vm2744_vm6 = vcmask 31744   ;;  %vm2751_vm8 = vcmask 1043456   ;;  %vm3581_vm13 = vcmask 261120   ;;  %vm3642_vm15 = vcmask 195584  }
  0x1e   : > { %s16534_s20 = scalar_lea.vmem %s19984_s1, %s15277_s17  ;;  %v15303_v40 = vld [vmem:[%s19986_s3 + $0x20] ss:$0 sps:$4 sm:$0x33]   ;;  %v15307_v44 = vld [vmem:[%s19987_s4 + $0x164] ss:$16 sps:$4 sm:$0xff]   ;;  %s7766_s17 = sld [smem:[#allocation3 + %s7765_s28]] }
  0x1f   : > { %v424_v1 = vld [vmem:[%s16534_s20 + $0x10] sm:$0xf]  ;;  %v12434_v2 = vld [vmem:[%s16534_s20 + $0x28] sm:$0xf]  ;;  %v422_v3 = vld [vmem:[%s16534_s20] sm:$0xff]  ;;  %v780_v41 = vsel %vm444_vm1, %v15303_v40, 0 }
  0x20   : > { %v426_v4 = vpack.c.bf16 %v424_v1, %v424_v1  ;;  %v507_v5 = vpack.c.bf16 %v12434_v2, %v12434_v2  ;;  %v423_v6 = vld [vmem:[%s16534_s20 + $0x8] sm:$0xff]  ;;  %v12432_v7 = vld [vmem:[%s16534_s20 + $0x18] sm:$0xff]  ;;  %v12433_v8 = vld [vmem:[%s16534_s20 + $0x20] sm:$0xff]  ;;  %s7785_s29 = sadd.s32 5, %s18599_s26 }
  0x21   : > { %v425_v9 = vpack.c.bf16 %v423_v6, %v422_v3  ;;  %v506_v10 = vpack.c.bf16 %v12433_v8, %v12432_v7  ;;  %v12450_v20 = vld [vmem:[%s16534_s20 + $0x40] sm:$0xf]  ;;  %v12448_v26 = vld [vmem:[%s16534_s20 + $0x30] sm:$0xff]  ;;  %v12449_v27 = vld [vmem:[%s16534_s20 + $0x38] sm:$0xff]  ;;  %s7771_s20 = sld [smem:[#allocation3 + %s7770_s18]]  ;;  %s7790_s18 = sadd.s32 6, %s18599_s26 }
  0x22   : > { %15223 = vmatprep.subr.msk.bf16.mxu0 %vm444_vm1, %v426_v4  ;;  %15224 = vmatprep.subr.msk.bf16.mxu1 %vm444_vm1, %v507_v5  ;;  %v446_v11 = vsel %vm444_vm1, %v426_v4, 0  ;;  %v509_v12 = vsel %vm444_vm1, %v507_v5, 0  ;;  %v705_v21 = vpack.c.bf16 %v12450_v20, %v12450_v20  ;;  %v704_v37 = vpack.c.bf16 %v12449_v27, %v12448_v26  ;;  %v15305_v43 = vld [vmem:[%s19987_s4 + $0x160] ss:$16 sps:$4 sm:$0xff]   ;;  %v15310_v45 = vld [vmem:[%s19987_s4 + $0x16c] ss:$16 sps:$4 sm:$0xff]  }
  0x23   : > { %14500 = vmatpush3.bf16.msra.mxu0 %v446_v11  ;;  %14508 = vmatpush3.bf16.msra.mxu1 %v509_v12  ;;  %v15313_v46 = vld [vmem:[%s19987_s4 + $0x144] ss:$16 sps:$4 sm:$0xff]   ;;  %v15311_v47 = vld [vmem:[%s19987_s4 + $0x140] ss:$16 sps:$4 sm:$0xff]   ;;  %v15308_v0 = vld [vmem:[%s19987_s4 + $0x168] ss:$16 sps:$4 sm:$0xff]  }
  0x24   : > { %14501 = vmatprep.subr.bf16.mxu0 %v425_v9  ;;  %14509 = vmatprep.subr.bf16.mxu1 %v506_v10  ;;  %v707_v36 = vsel %vm444_vm1, %v705_v21, 0  ;;  %v15319_v48 = vld [vmem:[%s19987_s4 + $0x124] ss:$16 sps:$4 sm:$0xff]   ;;  %v15317_v49 = vld [vmem:[%s19987_s4 + $0x120] ss:$16 sps:$4 sm:$0xff]   ;;  %v16430_v20 = vmov 0  }
  0x25   : > { %v15316_v2 = vld [vmem:[%s19987_s4 + $0x14c] ss:$16 sps:$4 sm:$0xff]   ;;  %v15314_v3 = vld [vmem:[%s19987_s4 + $0x148] ss:$16 sps:$4 sm:$0xff]   ;;  %v15325_v6 = vld [vmem:[%s19987_s4 + $0x104] ss:$16 sps:$4 sm:$0xff]   ;;  %15295 = vset.pattern.permute.xlu1 %v16430_v20  ;;  %15296 = vset.pattern.permute.xlu0 %v16430_v20 }
  0x26   : > { %v15322_v4 = vld [vmem:[%s19987_s4 + $0x12c] ss:$16 sps:$4 sm:$0xff]   ;;  %v15320_v5 = vld [vmem:[%s19987_s4 + $0x128] ss:$16 sps:$4 sm:$0xff]   ;;  %v15323_v8 = vld [vmem:[%s19987_s4 + $0x100] ss:$16 sps:$4 sm:$0xff]  }
  0x27   : > { %14502 = vmatpush3.bf16.msra.mxu0 %v425_v9  ;;  %14510 = vmatpush3.bf16.msra.mxu1 %v506_v10  ;;  %v15328_v7 = vld [vmem:[%s19987_s4 + $0x10c] ss:$16 sps:$4 sm:$0xff]   ;;  %v15326_v9 = vld [vmem:[%s19987_s4 + $0x108] ss:$16 sps:$4 sm:$0xff]   ;;  %v15331_v10 = vld [vmem:[%s19987_s4 + $0xe4] ss:$16 sps:$4 sm:$0xff]  }
  0x28   : > { %15225 = vmatprep.subr.msk.bf16.mxu0 %vm444_vm1, %v15299_v14  ;;  %15226 = vmatprep.subr.msk.bf16.mxu1 %vm444_vm1, %v15300_v15  ;;  %v15329_v11 = vld [vmem:[%s19987_s4 + $0xe0] ss:$16 sps:$4 sm:$0xff]   ;;  %v15332_v12 = vld [vmem:[%s19987_s4 + $0xe8] ss:$16 sps:$4 sm:$0xff]   ;;  %v15337_v14 = vld [vmem:[%s19987_s4 + $0xc4] ss:$16 sps:$4 sm:$0xff]  }
  0x29   : > { %v15340_v15 = vld [vmem:[%s19987_s4 + $0xcc] ss:$16 sps:$4 sm:$0xff]   ;;  %v16432_v26 = vmov 3.6261168   ;;  %s18623_s19 = sld [smem:[#allocation3 + %s7785_s29]] }
  0x2a   : > { %14504 = vmatmul.mubr.msk.bf16.vlgmr.msra.gmra.mxu0 %vm437_vm0, %v15298_v13  ;;  %14512 = vmatmul.mubr.msk.bf16.vlgmr.msra.gmra.mxu1 %vm437_vm0, %v15298_v13  ;;  %v15334_v13 = vld [vmem:[%s19987_s4 + $0xec] ss:$16 sps:$4 sm:$0xff]   ;;  %s18630_s21 = sld [smem:[#allocation3 + %s7790_s18]] }
  0x2b   : > { %14516 = vmatpush3.bf16.msra.mxu0 %v582_v16  ;;  %14524 = vmatpush3.bf16.msra.mxu1 %v649_v17  ;;  %v15335_v16 = vld [vmem:[%s19987_s4 + $0xc0] ss:$16 sps:$4 sm:$0xff]   ;;  %v15338_v17 = vld [vmem:[%s19987_s4 + $0xc8] ss:$16 sps:$4 sm:$0xff]  }
  0x2c   : > { %14517 = vmatprep.subr.bf16.mxu0 %v15301_v18  ;;  %14525 = vmatprep.subr.bf16.mxu1 %v15302_v19 }
  0x2f   : > { %14518 = vmatpush3.bf16.msra.mxu0 %v15301_v18  ;;  %14526 = vmatpush3.bf16.msra.mxu1 %v15302_v19  ;;  %v15343_v18 = vld [vmem:[%s19987_s4 + $0xa4] ss:$16 sps:$4 sm:$0xff]   ;;  %v15346_v19 = vld [vmem:[%s19987_s4 + $0xac] ss:$16 sps:$4 sm:$0xff]  }
  0x30   : > { %15227 = vmatprep.subr.msk.bf16.mxu0 %vm444_vm1, %v705_v21  ;;  %15228 = vmatprep.subr.msk.bf16.mxu1 %vm444_vm1, %v15303_v40  ;;  %v835_v21 = vlaneseq }
  0xea   : > { %v14505_v22 = vpop.f32.mrf.mxu0  ;;  %v14513_v23 = vpop.f32.mrf.mxu1 }
  0xec   : > { %v482_v24 = vpop.f32.mrf.mxu0  ;;  %v545_v25 = vpop.f32.mrf.mxu1 }
  0xee   : > { %v14506_v28 = vpop.f32.mrf.mxu0  ;;  %v14514_v29 = vpop.f32.mrf.mxu1 }
  0xef   : > { %v498_v30 = vpack.c.bf16 %v14506_v28, %v14505_v22  ;;  %v561_v35 = vpack.c.bf16 %v14514_v29, %v14513_v23  ;;  %v16687_v22 = vand.u32 127, %v835_v21  ;;  %v16431_v23 = vmov 0.40821072  }
  0xf0   : > { %v485_v31 = vpop.f32.mrf.mxu0  ;;  %v548_v32 = vpop.f32.mrf.mxu1 }
  0xf1   : > { %v497_v33 = vpack.c.bf16 %v485_v31, %v482_v24  ;;  %v560_v34 = vpack.c.bf16 %v548_v32, %v545_v25  ;;  %vm838_vm2 = vcmp.lt.s32.totalorder %v16687_v22, 64  ;;  %vm837_vm3 = vcmp.lt.s32.totalorder %v16687_v22, 32 }
  0xf2   : > { %v839_v24 = vsel %vm838_vm2, 0.4578275, %v16431_v23  ;;  %v841_v27 = vsel %vm838_vm2, 3.826981, %v16432_v26  ;;  %v15395_v23 = vld [vmem:[%s19987_s4 + $0x1c0] ss:$16 sps:$4 sm:$0xff]  }
  0xf3   : > { %14519 = vmatprep.mubr.msk.bf16.mxu0 %vm437_vm0, %v560_v34  ;;  %14527 = vmatprep.mubr.msk.bf16.mxu1 %vm437_vm0, %v497_v33  ;;  %v16693_v29 = vsel %vm837_vm3, 0.48145467, %v839_v24  ;;  %v16698_v32 = vsel %vm837_vm3, 3.7225988, %v841_v27  ;;  %v15398_v24 = vld [vmem:[%s19987_s4 + $0x1c8] ss:$16 sps:$4 sm:$0xff]  }
  0xf4   : > { %14520 = vmatmul.mubr.msk.bf16.vlgmr.msra.gmra.mxu0 %vm437_vm0, %v561_v35  ;;  %14528 = vmatmul.mubr.msk.bf16.vlgmr.msra.gmra.mxu1 %vm437_vm0, %v498_v30  ;;  %v15403_v27 = vld [vmem:[%s19987_s4 + $0x1a4] ss:$16 sps:$4 sm:$0xff]   ;;  %vm3099_vm14 = vcmp.ge.s32.totalorder %v16687_v22, 17 }
  0xf5   : > { %14532 = vmatpush3.bf16.msra.mxu0 %v707_v36  ;;  %14535 = vmatprep.mubr.msk.bf16.mxu0 %vm437_vm0, %v16401_v38 }
  0xf6   : > { %14533 = vmatprep.subr.bf16.mxu0 %v704_v37  ;;  %14540 = vmatpush3.bf16.msra.mxu1 %v780_v41 }
  0xf7   : > { %14541 = vmatprep.subr.bf16.mxu1 %v15304_v42 }
  0xf9   : > { %14534 = vmatpush3.bf16.msra.mxu0 %v704_v37 }
  0xfa   : > { %14542 = vmatpush3.bf16.msra.mxu1 %v15304_v42  ;;  %1031 = vmatprep.subr.bf16.mxu0 %v15307_v44  ;;  %v15341_v44 = vld [vmem:[%s19987_s4 + $0xa0] ss:$16 sps:$4 sm:$0xff]  }
  0xfb   : > { %1072 = vmatprep.subr.bf16.mxu1 %v15310_v45  ;;  %v15344_v45 = vld [vmem:[%s19987_s4 + $0xa8] ss:$16 sps:$4 sm:$0xff]  }
  0xfc   : > { %14536 = vmatmul.mubr.msk.bf16.vlgmr.msra.gmra.mxu0 %vm437_vm0, %v16402_v39 }
  0xfd   : > { %1032 = vmatpush1.bf16.msra.mxu0 %v15305_v43  ;;  %1059 = vmatprep.mubr.bf16.mxu0 %v16430_v20 }
  0xfe   : > { %1033 = vmatprep.subr.bf16.mxu0 %v15313_v46 }
 0x101   : > { %1034 = vmatpush1.bf16.msra.mxu0 %v15311_v47  ;;  %v15349_v47 = vld [vmem:[%s19987_s4 + $0x84] ss:$16 sps:$4 sm:$0xff]  }
 0x102   : > { %1035 = vmatprep.subr.bf16.mxu0 %v15319_v48  ;;  %v15352_v48 = vld [vmem:[%s19987_s4 + $0x8c] ss:$16 sps:$4 sm:$0xff]  }
 0x105   : > { %1036 = vmatpush1.bf16.msra.mxu0 %v15317_v49  ;;  %v15347_v49 = vld [vmem:[%s19987_s4 + $0x80] ss:$16 sps:$4 sm:$0xff]  }
 0x106   : > { %1037 = vmatprep.subr.bf16.mxu0 %v15325_v6  ;;  %v15377_v6 = vld [vmem:[%s19987_s4 + $0x220] ss:$16 sps:$4 sm:$0xff]  }
 0x109   : > { %1038 = vmatpush1.bf16.msra.mxu0 %v15323_v8  ;;  %v15385_v8 = vld [vmem:[%s19987_s4 + $0x204] ss:$16 sps:$4 sm:$0xff]  }
 0x10a   : > { %1039 = vmatprep.subr.bf16.mxu0 %v15331_v10  ;;  %v15383_v10 = vld [vmem:[%s19987_s4 + $0x200] ss:$16 sps:$4 sm:$0xff]  }
 0x10d   : > { %1040 = vmatpush1.bf16.msra.mxu0 %v15329_v11  ;;  %v15386_v11 = vld [vmem:[%s19987_s4 + $0x208] ss:$16 sps:$4 sm:$0xff]  }
 0x10e   : > { %1041 = vmatprep.subr.bf16.mxu0 %v15337_v14  ;;  %v15389_v14 = vld [vmem:[%s19987_s4 + $0x1e0] ss:$16 sps:$4 sm:$0xff]  }
 0x111   : > { %1042 = vmatpush1.bf16.msra.mxu0 %v15335_v16  ;;  %v15397_v16 = vld [vmem:[%s19987_s4 + $0x1c4] ss:$16 sps:$4 sm:$0xff]  }
 0x112   : > { %1236 = vmatprep.subr.bf16.mxu0 %v15343_v18 }
 0x1b4   : > { %v14521_v50 = vpop.f32.mrf.mxu0  ;;  %v14529_v51 = vpop.f32.mrf.mxu1 }
 0x1b5   : > { %v16613_v52 = vadd.f32 %v14529_v51, %v14521_v50  ;;  %v15350_v50 = vld [vmem:[%s19987_s4 + $0x88] ss:$16 sps:$4 sm:$0xff]   ;;  %v15355_v51 = vld [vmem:[%s19987_s4 + $0x64] ss:$16 sps:$4 sm:$0xff]  }
 0x1b6   : > { %v16615_v53 = vpop.f32.mrf.mxu0  ;;  %v16617_v54 = vpop.f32.mrf.mxu1 }
 0x1b7   : > { %v686_v30 = vadd.f32 %v16617_v54, %v16615_v53  ;;  %v15353_v53 = vld [vmem:[%s19987_s4 + $0x60] ss:$16 sps:$4 sm:$0xff]   ;;  %v15356_v54 = vld [vmem:[%s19987_s4 + $0x68] ss:$16 sps:$4 sm:$0xff]  }
 0x1b8   : > { %v14522_v55 = vpop.f32.mrf.mxu0  ;;  %v14530_v56 = vpop.f32.mrf.mxu1 }
 0x1b9   : > { %v16619_v57 = vadd.f32 %v14530_v56, %v14522_v55  ;;  %v15361_v55 = vld [vmem:[%s19987_s4 + $0x44] ss:$16 sps:$4 sm:$0xff]   ;;  %v15364_v56 = vld [vmem:[%s19987_s4 + $0x4c] ss:$16 sps:$4 sm:$0xff]  }
 0x1ba   : > { %v16621_v58 = vpop.f32.mrf.mxu0  ;;  %v16691_v25 = vpop.f32.mrf.mxu1 }
 0x1bc   : > { %v14537_v59 = vpop.f32.mrf.mxu0 }
 0x1be   : > { %v743_v60 = vpop.f32.mrf.mxu0 }
 0x1c0   : > { %v14538_v61 = vpop.f32.mrf.mxu0 }
 0x1c1   : > { %v759_v1 = vpack.c.bf16 %v14538_v61, %v14537_v59  ;;  %v15362_v59 = vld [vmem:[%s19987_s4 + $0x48] ss:$16 sps:$4 sm:$0xff]   ;;  %v15370_v61 = vld [vmem:[%s19987_s4 + $0x2c] ss:$16 sps:$4 sm:$0xff]  }
 0x1c2   : > { %v746_v62 = vpop.f32.mrf.mxu0 }
 0x1c3   : > { %v758_v63 = vpack.c.bf16 %v746_v62, %v743_v60  ;;  %v15367_v60 = vld [vmem:[%s19987_s4 + $0x24] ss:$16 sps:$4 sm:$0xff]   ;;  %v15365_v62 = vld [vmem:[%s19987_s4 + $0x20] ss:$16 sps:$4 sm:$0xff]  }
 0x1c5   : > { %14543 = vmatprep.mubr.msk.bf16.mxu1 %vm437_vm0, %v758_v63  ;;  %v15368_v63 = vld [vmem:[%s19987_s4 + $0x28] ss:$16 sps:$4 sm:$0xff]  }
 0x1c6   : > { %14544 = vmatmul.mubr.msk.bf16.vlgmr.msra.gmra.mxu1 %vm437_vm0, %v759_v1  ;;  %v15376_v1 = vld [vmem:[%s19987_s4 + $0xc] ss:$16 sps:$4 sm:$0xff]  }
 0x1c7   : > { %1073 = vmatpush1.bf16.msra.mxu1 %v15308_v0  ;;  %1100 = vmatprep.mubr.bf16.mxu1 %v16430_v20  ;;  %v15373_v0 = vld [vmem:[%s19987_s4 + $0x4] ss:$16 sps:$4 sm:$0xff]  }
 0x1c8   : > { %1074 = vmatprep.subr.bf16.mxu1 %v15316_v2  ;;  %v15371_v2 = vld [vmem:[%s19987_s4] ss:$16 sps:$4 sm:$0xff]  }
 0x1cb   : > { %1075 = vmatpush1.bf16.msra.mxu1 %v15314_v3  ;;  %v15374_v3 = vld [vmem:[%s19987_s4 + $0x8] ss:$16 sps:$4 sm:$0xff]  }
 0x1cc   : > { %1076 = vmatprep.subr.bf16.mxu1 %v15322_v4  ;;  %v15379_v4 = vld [vmem:[%s19987_s4 + $0x224] ss:$16 sps:$4 sm:$0xff]  }
 0x1cf   : > { %1077 = vmatpush1.bf16.msra.mxu1 %v15320_v5  ;;  %v15382_v5 = vld [vmem:[%s19987_s4 + $0x22c] ss:$16 sps:$4 sm:$0xff]  }
 0x1d0   : > { %1078 = vmatprep.subr.bf16.mxu1 %v15328_v7  ;;  %v15380_v7 = vld [vmem:[%s19987_s4 + $0x228] ss:$16 sps:$4 sm:$0xff]  }
 0x1d3   : > { %1079 = vmatpush1.bf16.msra.mxu1 %v15326_v9  ;;  %v15388_v9 = vld [vmem:[%s19987_s4 + $0x20c] ss:$16 sps:$4 sm:$0xff]  }
 0x1d4   : > { %1080 = vmatprep.subr.bf16.mxu1 %v15334_v13  ;;  %v15394_v13 = vld [vmem:[%s19987_s4 + $0x1ec] ss:$16 sps:$4 sm:$0xff]  }
 0x1d7   : > { %1081 = vmatpush1.bf16.msra.mxu1 %v15332_v12  ;;  %v15391_v12 = vld [vmem:[%s19987_s4 + $0x1e4] ss:$16 sps:$4 sm:$0xff]  }
 0x1d8   : > { %1082 = vmatprep.subr.bf16.mxu1 %v15340_v15  ;;  %v15392_v15 = vld [vmem:[%s19987_s4 + $0x1e8] ss:$16 sps:$4 sm:$0xff]  }
 0x1db   : > { %1083 = vmatpush1.bf16.msra.mxu1 %v15338_v17  ;;  %v15400_v17 = vld [vmem:[%s19987_s4 + $0x1cc] ss:$16 sps:$4 sm:$0xff]  }
 0x1dc   : > { %1277 = vmatprep.subr.bf16.mxu1 %v15346_v19  ;;  %v689_v19 = vadd.f32 %v16691_v25, %v16621_v58  ;;  %v15406_v58 = vld [vmem:[%s19987_s4 + $0x1ac] ss:$16 sps:$4 sm:$0xff]   ;;  %v15401_v25 = vld [vmem:[%s19987_s4 + $0x1a0] ss:$16 sps:$4 sm:$0xff]  }
 0x286   : > { %v14545_v28 = vpop.f32.mrf.mxu1 }
 0x287   : > { %v833_v31 = vadd.f32 %v14545_v28, %v16613_v52  ;;  %v15358_v52 = vld [vmem:[%s19987_s4 + $0x6c] ss:$16 sps:$4 sm:$0xff]   ;;  %v15404_v28 = vld [vmem:[%s19987_s4 + $0x1a8] ss:$16 sps:$4 sm:$0xff]  }
 0x288   : > { %v816_v33 = vpop.f32.mrf.mxu1 }
 0x289   : > { %v845_v34 = vsub.f32 %v833_v31, %v16693_v29  ;;  %v831_v35 = vadd.f32 %v816_v33, %v686_v30  ;;  %v15409_v31 = vld [vmem:[%s19987_s4 + $0x184] ss:$16 sps:$4 sm:$0xff]   ;;  %v15412_v33 = vld [vmem:[%s19987_s4 + $0x18c] ss:$16 sps:$4 sm:$0xff]  }
 0x28a   : > { %v14546_v36 = vpop.f32.mrf.mxu1 }
 0x28b   : > { %v16702_v37 = vmul.f32 %v845_v34, %v16698_v32  ;;  %v843_v38 = vsub.f32 %v831_v35, %v16693_v29  ;;  %v834_v39 = vadd.f32 %v14546_v36, %v16619_v57  ;;  %v15359_v57 = vld [vmem:[%s19987_s4 + $0x40] ss:$16 sps:$4 sm:$0xff]   ;;  %v15415_v36 = vld [vmem:[%s19987_s4 + $0x2e4] ss:$16 sps:$4 sm:$0xff]  }
 0x28c   : > { %v819_v18 = vpop.f32.mrf.mxu1  ;;  %v15407_v34 = vld [vmem:[%s19987_s4 + $0x180] ss:$16 sps:$4 sm:$0xff]  }
 0x28d   : > { %v847_v40 = vmul.f32 %v843_v38, %v16698_v32  ;;  %v846_v41 = vsub.f32 %v834_v39, %v16693_v29  ;;  %v832_v26 = vadd.f32 %v819_v18, %v689_v19  ;;  %v15418_v38 = vld [vmem:[%s19987_s4 + $0x2ec] ss:$16 sps:$4 sm:$0xff]   ;;  %v15413_v39 = vld [vmem:[%s19987_s4 + $0x2e0] ss:$16 sps:$4 sm:$0xff]   ;;  %v15476_v19 = vld [vmem:[%s19987_s4 + $0x328] ss:$16 sps:$4 sm:$0xff]  }
 0x28e   : > { %v15473_v18 = vld [vmem:[%s19987_s4 + $0x320] ss:$16 sps:$4 sm:$0xff]  }
 0x28f   : > { %v851_v42 = vpack.c.bf16 %v847_v40, %v847_v40  ;;  %v16709_v43 = vmul.f32 %v846_v41, %v16698_v32  ;;  %v844_v30 = vsub.f32 %v832_v26, %v16693_v29  ;;  %v15410_v29 = vld [vmem:[%s19987_s4 + $0x188] ss:$16 sps:$4 sm:$0xff]   ;;  %v15421_v41 = vld [vmem:[%s19987_s4 + $0x2c4] ss:$16 sps:$4 sm:$0xff]   ;;  %v15479_v26 = vld [vmem:[%s19987_s4 + $0x300] ss:$16 sps:$4 sm:$0xff]  }
 0x291   : > { %v902_v46 = vrot.slane %v851_v42, 2  ;;  %v848_v35 = vmul.f32 %v844_v30, %v16698_v32  ;;  %v15416_v32 = vld [vmem:[%s19987_s4 + $0x2e8] ss:$16 sps:$4 sm:$0xff]  }
 0x292   : > { %v15488_v30 = vld [vmem:[%s19987_s4 + $0x468] ss:$16 sps:$4 sm:$0xff]  }
 0x293   : > { %12508 = vmatmul.mubr.msk.bf16.vlgmr.msra.gmra.mxu0 %vm1023_vm4, %v902_v46  ;;  %12509 = vmatmul.mubr.msk.bf16.vlgmr.msra.gmra.mxu1 %vm1023_vm4, %v902_v46  ;;  %v1314_v40 = vpack.c.bf16 %v848_v35, %v848_v35  ;;  %v15427_v46 = vld [vmem:[%s19987_s4 + $0x2a4] ss:$16 sps:$4 sm:$0xff]  }
 0x294   : > { %1237 = vmatpush1.bf16.msra.mxu0 %v15341_v44  ;;  %1278 = vmatpush1.bf16.msra.mxu1 %v15344_v45  ;;  %v15419_v44 = vld [vmem:[%s19987_s4 + $0x2c0] ss:$16 sps:$4 sm:$0xff]   ;;  %v15422_v45 = vld [vmem:[%s19987_s4 + $0x2c8] ss:$16 sps:$4 sm:$0xff]   ;;  %v15499_v35 = vld [vmem:[%s19987_s4 + $0x424] ss:$16 sps:$4 sm:$0xff]  }
 0x295   : > { %1238 = vmatprep.subr.bf16.mxu0 %v15349_v47  ;;  %1279 = vmatprep.subr.bf16.mxu1 %v15352_v48  ;;  %v15430_v47 = vld [vmem:[%s19987_s4 + $0x2ac] ss:$16 sps:$4 sm:$0xff]   ;;  %v15425_v48 = vld [vmem:[%s19987_s4 + $0x2a0] ss:$16 sps:$4 sm:$0xff]  }
 0x296   : > { %1264 = vmatprep.mubr.bf16.mxu0 %v16430_v20  ;;  %1305 = vmatprep.mubr.bf16.mxu1 %v16430_v20 }
 0x298   : > { %1239 = vmatpush1.bf16.msra.mxu0 %v15347_v49  ;;  %1280 = vmatpush1.bf16.msra.mxu1 %v15350_v50  ;;  %v15428_v49 = vld [vmem:[%s19987_s4 + $0x2a8] ss:$16 sps:$4 sm:$0xff]   ;;  %v15433_v50 = vld [vmem:[%s19987_s4 + $0x284] ss:$16 sps:$4 sm:$0xff]  }
 0x299   : > { %1240 = vmatprep.subr.bf16.mxu0 %v15355_v51  ;;  %1281 = vmatprep.subr.bf16.mxu1 %v15358_v52  ;;  %v15436_v51 = vld [vmem:[%s19987_s4 + $0x28c] ss:$16 sps:$4 sm:$0xff]   ;;  %v15431_v52 = vld [vmem:[%s19987_s4 + $0x280] ss:$16 sps:$4 sm:$0xff]  }
 0x29c   : > { %1241 = vmatpush1.bf16.msra.mxu0 %v15353_v53  ;;  %1282 = vmatpush1.bf16.msra.mxu1 %v15356_v54  ;;  %v15434_v53 = vld [vmem:[%s19987_s4 + $0x288] ss:$16 sps:$4 sm:$0xff]   ;;  %v15439_v54 = vld [vmem:[%s19987_s4 + $0x264] ss:$16 sps:$4 sm:$0xff]  }
 0x29d   : > { %1242 = vmatprep.subr.bf16.mxu0 %v15361_v55  ;;  %1283 = vmatprep.subr.bf16.mxu1 %v15364_v56  ;;  %v15442_v55 = vld [vmem:[%s19987_s4 + $0x26c] ss:$16 sps:$4 sm:$0xff]   ;;  %v15437_v56 = vld [vmem:[%s19987_s4 + $0x260] ss:$16 sps:$4 sm:$0xff]  }
 0x2a0   : > { %1243 = vmatpush1.bf16.msra.mxu0 %v15359_v57  ;;  %1284 = vmatpush1.bf16.msra.mxu1 %v15362_v59  ;;  %v15440_v57 = vld [vmem:[%s19987_s4 + $0x268] ss:$16 sps:$4 sm:$0xff]   ;;  %v15445_v59 = vld [vmem:[%s19987_s4 + $0x244] ss:$16 sps:$4 sm:$0xff]  }
 0x2a1   : > { %1244 = vmatprep.subr.bf16.mxu0 %v15367_v60  ;;  %1285 = vmatprep.subr.bf16.mxu1 %v15370_v61  ;;  %v15448_v60 = vld [vmem:[%s19987_s4 + $0x24c] ss:$16 sps:$4 sm:$0xff]   ;;  %v15443_v61 = vld [vmem:[%s19987_s4 + $0x240] ss:$16 sps:$4 sm:$0xff]  }
 0x2a4   : > { %1245 = vmatpush1.bf16.msra.mxu0 %v15365_v62  ;;  %1286 = vmatpush1.bf16.msra.mxu1 %v15368_v63  ;;  %v15446_v62 = vld [vmem:[%s19987_s4 + $0x248] ss:$16 sps:$4 sm:$0xff]   ;;  %v15451_v63 = vld [vmem:[%s19987_s4 + $0x3a4] ss:$16 sps:$4 sm:$0xff]  }
 0x2a5   : > { %1246 = vmatprep.subr.bf16.mxu0 %v15373_v0  ;;  %1287 = vmatprep.subr.bf16.mxu1 %v15376_v1  ;;  %v15454_v0 = vld [vmem:[%s19987_s4 + $0x3ac] ss:$16 sps:$4 sm:$0xff]   ;;  %v15449_v1 = vld [vmem:[%s19987_s4 + $0x3a0] ss:$16 sps:$4 sm:$0xff]  }
 0x2a8   : > { %1247 = vmatpush1.bf16.msra.mxu0 %v15371_v2  ;;  %1288 = vmatpush1.bf16.msra.mxu1 %v15374_v3  ;;  %v15452_v2 = vld [vmem:[%s19987_s4 + $0x3a8] ss:$16 sps:$4 sm:$0xff]   ;;  %v1575_v3 = vrot.slane %v1314_v40, 2 }
 0x2a9   : > { %1467 = vmatprep.subr.bf16.mxu0 %v15379_v4  ;;  %1508 = vmatprep.subr.bf16.mxu1 %v15382_v5  ;;  %v15457_v4 = vld [vmem:[%s19987_s4 + $0x384] ss:$16 sps:$4 sm:$0xff]   ;;  %v15460_v5 = vld [vmem:[%s19987_s4 + $0x38c] ss:$16 sps:$4 sm:$0xff]  }
 0x2ab   : > { %12534 = vmatmul.mubr.msk.bf16.vlgmr.msra.gmra.mxu0 %vm1023_vm4, %v851_v42  ;;  %12535 = vmatmul.mubr.msk.bf16.vlgmr.msra.gmra.mxu1 %vm1023_vm4, %v851_v42  ;;  %v15424_v42 = vld [vmem:[%s19987_s4 + $0x2cc] ss:$16 sps:$4 sm:$0xff]  }
 0x2ac   : > { %1468 = vmatpush1.bf16.msra.mxu0 %v15377_v6  ;;  %1509 = vmatpush1.bf16.msra.mxu1 %v15380_v7  ;;  %v15455_v6 = vld [vmem:[%s19987_s4 + $0x380] ss:$16 sps:$4 sm:$0xff]   ;;  %v15458_v7 = vld [vmem:[%s19987_s4 + $0x388] ss:$16 sps:$4 sm:$0xff]  }
 0x2ad   : > { %1469 = vmatprep.subr.bf16.mxu0 %v15385_v8  ;;  %1510 = vmatprep.subr.bf16.mxu1 %v15388_v9  ;;  %v15463_v8 = vld [vmem:[%s19987_s4 + $0x364] ss:$16 sps:$4 sm:$0xff]   ;;  %v15466_v9 = vld [vmem:[%s19987_s4 + $0x36c] ss:$16 sps:$4 sm:$0xff]  }
 0x2ae   : > { %1495 = vmatprep.mubr.bf16.mxu0 %v16430_v20  ;;  %1536 = vmatprep.mubr.bf16.mxu1 %v16430_v20 }
 0x2b0   : > { %1470 = vmatpush1.bf16.msra.mxu0 %v15383_v10  ;;  %1511 = vmatpush1.bf16.msra.mxu1 %v15386_v11  ;;  %v15461_v10 = vld [vmem:[%s19987_s4 + $0x360] ss:$16 sps:$4 sm:$0xff]   ;;  %v15464_v11 = vld [vmem:[%s19987_s4 + $0x368] ss:$16 sps:$4 sm:$0xff]  }
 0x2b1   : > { %1471 = vmatprep.subr.bf16.mxu0 %v15391_v12  ;;  %1512 = vmatprep.subr.bf16.mxu1 %v15394_v13  ;;  %v15469_v12 = vld [vmem:[%s19987_s4 + $0x344] ss:$16 sps:$4 sm:$0xff]   ;;  %v15472_v13 = vld [vmem:[%s19987_s4 + $0x34c] ss:$16 sps:$4 sm:$0xff]  }
 0x2b4   : > { %1472 = vmatpush1.bf16.msra.mxu0 %v15389_v14  ;;  %1513 = vmatpush1.bf16.msra.mxu1 %v15392_v15  ;;  %v15467_v14 = vld [vmem:[%s19987_s4 + $0x340] ss:$16 sps:$4 sm:$0xff]   ;;  %v15470_v15 = vld [vmem:[%s19987_s4 + $0x348] ss:$16 sps:$4 sm:$0xff]  }
 0x2b5   : > { %1473 = vmatprep.subr.bf16.mxu0 %v15397_v16  ;;  %1514 = vmatprep.subr.bf16.mxu1 %v15400_v17  ;;  %v15475_v16 = vld [vmem:[%s19987_s4 + $0x324] ss:$16 sps:$4 sm:$0xff]   ;;  %v15478_v17 = vld [vmem:[%s19987_s4 + $0x32c] ss:$16 sps:$4 sm:$0xff]  }
 0x2b8   : > { %1474 = vmatpush1.bf16.msra.mxu0 %v15395_v23  ;;  %1515 = vmatpush1.bf16.msra.mxu1 %v15398_v24  ;;  %v15481_v23 = vld [vmem:[%s19987_s4 + $0x304] ss:$16 sps:$4 sm:$0xff]   ;;  %v15484_v24 = vld [vmem:[%s19987_s4 + $0x30c] ss:$16 sps:$4 sm:$0xff]  }
 0x2b9   : > { %1475 = vmatprep.subr.bf16.mxu0 %v15403_v27  ;;  %1516 = vmatprep.subr.bf16.mxu1 %v15406_v58  ;;  %v15482_v27 = vld [vmem:[%s19987_s4 + $0x308] ss:$16 sps:$4 sm:$0xff]   ;;  %v15487_v58 = vld [vmem:[%s19987_s4 + $0x464] ss:$16 sps:$4 sm:$0xff]  }
 0x2bc   : > { %1476 = vmatpush1.bf16.msra.mxu0 %v15401_v25  ;;  %1517 = vmatpush1.bf16.msra.mxu1 %v15404_v28  ;;  %v15490_v25 = vld [vmem:[%s19987_s4 + $0x46c] ss:$16 sps:$4 sm:$0xff]   ;;  %v15485_v28 = vld [vmem:[%s19987_s4 + $0x460] ss:$16 sps:$4 sm:$0xff]  }
 0x2bd   : > { %1477 = vmatprep.subr.bf16.mxu0 %v15409_v31  ;;  %1518 = vmatprep.subr.bf16.mxu1 %v15412_v33  ;;  %v1785_v31 = vpack.c.bf16 %v16702_v37, %v16702_v37  ;;  %v15493_v33 = vld [vmem:[%s19987_s4 + $0x444] ss:$16 sps:$4 sm:$0xff]   ;;  %v15491_v37 = vld [vmem:[%s19987_s4 + $0x440] ss:$16 sps:$4 sm:$0xff]  }
 0x2c0   : > { %1478 = vmatpush1.bf16.msra.mxu0 %v15407_v34  ;;  %1519 = vmatpush1.bf16.msra.mxu1 %v15410_v29  ;;  %v15496_v34 = vld [vmem:[%s19987_s4 + $0x44c] ss:$16 sps:$4 sm:$0xff]   ;;  %v15494_v29 = vld [vmem:[%s19987_s4 + $0x448] ss:$16 sps:$4 sm:$0xff]  }
 0x2c1   : > { %1703 = vmatprep.subr.bf16.mxu0 %v15415_v36  ;;  %1744 = vmatprep.subr.bf16.mxu1 %v15418_v38  ;;  %v15502_v36 = vld [vmem:[%s19987_s4 + $0x42c] ss:$16 sps:$4 sm:$0xff]   ;;  %v15497_v38 = vld [vmem:[%s19987_s4 + $0x420] ss:$16 sps:$4 sm:$0xff]  }
 0x2c3   : > { %12584 = vmatmul.mubr.msk.bf16.vlgmr.msra.gmra.mxu0 %vm1023_vm4, %v1314_v40  ;;  %12585 = vmatmul.mubr.msk.bf16.vlgmr.msra.gmra.mxu1 %vm1023_vm4, %v1314_v40  ;;  %v15508_v40 = vld [vmem:[%s19987_s4 + $0x40c] ss:$16 sps:$4 sm:$0xff]  }
 0x2c4   : > { %1704 = vmatpush1.bf16.msra.mxu0 %v15413_v39  ;;  %1745 = vmatpush1.bf16.msra.mxu1 %v15416_v32  ;;  %v15500_v39 = vld [vmem:[%s19987_s4 + $0x428] ss:$16 sps:$4 sm:$0xff]   ;;  %v15505_v32 = vld [vmem:[%s19987_s4 + $0x404] ss:$16 sps:$4 sm:$0xff]  }
 0x2c5   : > { %1705 = vmatprep.subr.bf16.mxu0 %v15421_v41  ;;  %1746 = vmatprep.subr.bf16.mxu1 %v15424_v42  ;;  %v15503_v41 = vld [vmem:[%s19987_s4 + $0x400] ss:$16 sps:$4 sm:$0xff]   ;;  %v15506_v42 = vld [vmem:[%s19987_s4 + $0x408] ss:$16 sps:$4 sm:$0xff]  }
 0x2c6   : > { %1731 = vmatprep.mubr.bf16.mxu0 %v16430_v20  ;;  %1772 = vmatprep.mubr.bf16.mxu1 %v16430_v20 }
 0x2c8   : > { %1706 = vmatpush1.bf16.msra.mxu0 %v15419_v44  ;;  %1747 = vmatpush1.bf16.msra.mxu1 %v15422_v45  ;;  %v15511_v44 = vld [vmem:[%s19987_s4 + $0x3e4] ss:$16 sps:$4 sm:$0xff]   ;;  %v15514_v45 = vld [vmem:[%s19987_s4 + $0x3ec] ss:$16 sps:$4 sm:$0xff]  }
 0x2c9   : > { %1707 = vmatprep.subr.bf16.mxu0 %v15427_v46  ;;  %1748 = vmatprep.subr.bf16.mxu1 %v15430_v47  ;;  %v15509_v46 = vld [vmem:[%s19987_s4 + $0x3e0] ss:$16 sps:$4 sm:$0xff]   ;;  %v15512_v47 = vld [vmem:[%s19987_s4 + $0x3e8] ss:$16 sps:$4 sm:$0xff]  }
 0x2cc   : > { %1708 = vmatpush1.bf16.msra.mxu0 %v15425_v48  ;;  %1749 = vmatpush1.bf16.msra.mxu1 %v15428_v49  ;;  %v15517_v48 = vld [vmem:[%s19987_s4 + $0x3c4] ss:$16 sps:$4 sm:$0xff]   ;;  %v15520_v49 = vld [vmem:[%s19987_s4 + $0x3cc] ss:$16 sps:$4 sm:$0xff]  }
 0x2cd   : > { %1709 = vmatprep.subr.bf16.mxu0 %v15433_v50  ;;  %1750 = vmatprep.subr.bf16.mxu1 %v15436_v51  ;;  %v15515_v50 = vld [vmem:[%s19987_s4 + $0x3c0] ss:$16 sps:$4 sm:$0xff]   ;;  %v15518_v51 = vld [vmem:[%s19987_s4 + $0x3c8] ss:$16 sps:$4 sm:$0xff]  }
 0x2d0   : > { %1710 = vmatpush1.bf16.msra.mxu0 %v15431_v52  ;;  %1751 = vmatpush1.bf16.msra.mxu1 %v15434_v53  ;;  %v15523_v52 = vld [vmem:[%s19987_s4 + $0x524] ss:$16 sps:$4 sm:$0xff]   ;;  %v15526_v53 = vld [vmem:[%s19987_s4 + $0x52c] ss:$16 sps:$4 sm:$0xff]  }
 0x2d1   : > { %1711 = vmatprep.subr.bf16.mxu0 %v15439_v54  ;;  %1752 = vmatprep.subr.bf16.mxu1 %v15442_v55  ;;  %v15521_v54 = vld [vmem:[%s19987_s4 + $0x520] ss:$16 sps:$4 sm:$0xff]   ;;  %v15524_v55 = vld [vmem:[%s19987_s4 + $0x528] ss:$16 sps:$4 sm:$0xff]  }
 0x2d4   : > { %1712 = vmatpush1.bf16.msra.mxu0 %v15437_v56  ;;  %1753 = vmatpush1.bf16.msra.mxu1 %v15440_v57  ;;  %v2046_v56 = vrot.slane %v1785_v31, 2  ;;  %v15529_v57 = vld [vmem:[%s19987_s4 + $0x504] ss:$16 sps:$4 sm:$0xff]  }
 0x2d5   : > { %1713 = vmatprep.subr.bf16.mxu0 %v15445_v59  ;;  %1754 = vmatprep.subr.bf16.mxu1 %v15448_v60  ;;  %v15532_v59 = vld [vmem:[%s19987_s4 + $0x50c] ss:$16 sps:$4 sm:$0xff]   ;;  %v15527_v60 = vld [vmem:[%s19987_s4 + $0x500] ss:$16 sps:$4 sm:$0xff]  }
 0x2d8   : > { %1714 = vmatpush1.bf16.msra.mxu0 %v15443_v61  ;;  %1755 = vmatpush1.bf16.msra.mxu1 %v15446_v62  ;;  %v15530_v61 = vld [vmem:[%s19987_s4 + $0x508] ss:$16 sps:$4 sm:$0xff]   ;;  %v15535_v62 = vld [vmem:[%s19987_s4 + $0x4e4] ss:$16 sps:$4 sm:$0xff]  }
 0x2d9   : > { %1938 = vmatprep.subr.bf16.mxu0 %v15451_v63  ;;  %1979 = vmatprep.subr.bf16.mxu1 %v15454_v0  ;;  %v15538_v63 = vld [vmem:[%s19987_s4 + $0x4ec] ss:$16 sps:$4 sm:$0xff]   ;;  %v15533_v0 = vld [vmem:[%s19987_s4 + $0x4e0] ss:$16 sps:$4 sm:$0xff]  }
 0x2db   : > { %12634 = vmatmul.mubr.msk.bf16.vlgmr.msra.gmra.mxu0 %vm1023_vm4, %v1575_v3  ;;  %12635 = vmatmul.mubr.msk.bf16.vlgmr.msra.gmra.mxu1 %vm1023_vm4, %v1575_v3  ;;  %v15544_v3 = vld [vmem:[%s19987_s4 + $0x4cc] ss:$16 sps:$4 sm:$0xff]  }
 0x2dc   : > { %1939 = vmatpush1.bf16.msra.mxu0 %v15449_v1  ;;  %1980 = vmatpush1.bf16.msra.mxu1 %v15452_v2  ;;  %v15536_v1 = vld [vmem:[%s19987_s4 + $0x4e8] ss:$16 sps:$4 sm:$0xff]   ;;  %v15541_v2 = vld [vmem:[%s19987_s4 + $0x4c4] ss:$16 sps:$4 sm:$0xff]  }
 0x2dd   : > { %1940 = vmatprep.subr.bf16.mxu0 %v15457_v4  ;;  %1981 = vmatprep.subr.bf16.mxu1 %v15460_v5  ;;  %v15539_v4 = vld [vmem:[%s19987_s4 + $0x4c0] ss:$16 sps:$4 sm:$0xff]   ;;  %v15542_v5 = vld [vmem:[%s19987_s4 + $0x4c8] ss:$16 sps:$4 sm:$0xff]  }
 0x2de   : > { %1966 = vmatprep.mubr.bf16.mxu0 %v16430_v20  ;;  %2007 = vmatprep.mubr.bf16.mxu1 %v16430_v20 }
 0x2e0   : > { %1941 = vmatpush1.bf16.msra.mxu0 %v15455_v6  ;;  %1982 = vmatpush1.bf16.msra.mxu1 %v15458_v7  ;;  %v15547_v6 = vld [vmem:[%s19987_s4 + $0x4a4] ss:$16 sps:$4 sm:$0xff]   ;;  %v15550_v7 = vld [vmem:[%s19987_s4 + $0x4ac] ss:$16 sps:$4 sm:$0xff]  }
 0x2e1   : > { %1942 = vmatprep.subr.bf16.mxu0 %v15463_v8  ;;  %1983 = vmatprep.subr.bf16.mxu1 %v15466_v9  ;;  %v15545_v8 = vld [vmem:[%s19987_s4 + $0x4a0] ss:$16 sps:$4 sm:$0xff]   ;;  %v15548_v9 = vld [vmem:[%s19987_s4 + $0x4a8] ss:$16 sps:$4 sm:$0xff]  }
 0x2e4   : > { %1943 = vmatpush1.bf16.msra.mxu0 %v15461_v10  ;;  %1984 = vmatpush1.bf16.msra.mxu1 %v15464_v11  ;;  %v15553_v10 = vld [vmem:[%s19987_s4 + $0x484] ss:$16 sps:$4 sm:$0xff]   ;;  %v15556_v11 = vld [vmem:[%s19987_s4 + $0x48c] ss:$16 sps:$4 sm:$0xff]  }
 0x2e5   : > { %1944 = vmatprep.subr.bf16.mxu0 %v15469_v12  ;;  %1985 = vmatprep.subr.bf16.mxu1 %v15472_v13  ;;  %v15551_v12 = vld [vmem:[%s19987_s4 + $0x480] ss:$16 sps:$4 sm:$0xff]   ;;  %v15554_v13 = vld [vmem:[%s19987_s4 + $0x488] ss:$16 sps:$4 sm:$0xff]  }
 0x2e8   : > { %1945 = vmatpush1.bf16.msra.mxu0 %v15467_v14  ;;  %1986 = vmatpush1.bf16.msra.mxu1 %v15470_v15  ;;  %v15559_v14 = vld [vmem:[%s19987_s4 + $0x5e4] ss:$16 sps:$4 sm:$0xff]   ;;  %v15562_v15 = vld [vmem:[%s19987_s4 + $0x5ec] ss:$16 sps:$4 sm:$0xff]  }
 0x2e9   : > { %1946 = vmatprep.subr.bf16.mxu0 %v15475_v16  ;;  %1987 = vmatprep.subr.bf16.mxu1 %v15478_v17  ;;  %v15557_v16 = vld [vmem:[%s19987_s4 + $0x5e0] ss:$16 sps:$4 sm:$0xff]   ;;  %v15560_v17 = vld [vmem:[%s19987_s4 + $0x5e8] ss:$16 sps:$4 sm:$0xff]  }
 0x2ec   : > { %1947 = vmatpush1.bf16.msra.mxu0 %v15473_v18  ;;  %1988 = vmatpush1.bf16.msra.mxu1 %v15476_v19  ;;  %v2256_v18 = vpack.c.bf16 %v16709_v43, %v16709_v43  ;;  %v15565_v19 = vld [vmem:[%s19987_s4 + $0x5c4] ss:$16 sps:$4 sm:$0xff]   ;;  %v15563_v43 = vld [vmem:[%s19987_s4 + $0x5c0] ss:$16 sps:$4 sm:$0xff]  }
 0x2ed   : > { %1948 = vmatprep.subr.bf16.mxu0 %v15481_v23  ;;  %1989 = vmatprep.subr.bf16.mxu1 %v15484_v24  ;;  %v15568_v23 = vld [vmem:[%s19987_s4 + $0x5cc] ss:$16 sps:$4 sm:$0xff]   ;;  %v15566_v24 = vld [vmem:[%s19987_s4 + $0x5c8] ss:$16 sps:$4 sm:$0xff]  }
 0x2f0   : > { %1949 = vmatpush1.bf16.msra.mxu0 %v15479_v26  ;;  %1990 = vmatpush1.bf16.msra.mxu1 %v15482_v27  ;;  %v15571_v26 = vld [vmem:[%s19987_s4 + $0x5a4] ss:$16 sps:$4 sm:$0xff]   ;;  %v15574_v27 = vld [vmem:[%s19987_s4 + $0x5ac] ss:$16 sps:$4 sm:$0xff]  }
 0x2f1   : > { %2174 = vmatprep.subr.bf16.mxu0 %v15487_v58  ;;  %2215 = vmatprep.subr.bf16.mxu1 %v15490_v25  ;;  %v15569_v58 = vld [vmem:[%s19987_s4 + $0x5a0] ss:$16 sps:$4 sm:$0xff]   ;;  %v15572_v25 = vld [vmem:[%s19987_s4 + $0x5a8] ss:$16 sps:$4 sm:$0xff]  }
 0x2f3   : > { %12684 = vmatmul.mubr.msk.bf16.vlgmr.msra.gmra.mxu0 %vm1023_vm4, %v1785_v31  ;;  %12685 = vmatmul.mubr.msk.bf16.vlgmr.msra.gmra.mxu1 %vm1023_vm4, %v1785_v31  ;;  %v15575_v31 = vld [vmem:[%s19987_s4 + $0x580] ss:$16 sps:$4 sm:$0xff]  }
 0x2f4   : > { %2175 = vmatpush1.bf16.msra.mxu0 %v15485_v28  ;;  %2216 = vmatpush1.bf16.msra.mxu1 %v15488_v30  ;;  %v15577_v28 = vld [vmem:[%s19987_s4 + $0x584] ss:$16 sps:$4 sm:$0xff]   ;;  %v15580_v30 = vld [vmem:[%s19987_s4 + $0x58c] ss:$16 sps:$4 sm:$0xff]  }
 0x2f5   : > { %2176 = vmatprep.subr.bf16.mxu0 %v15493_v33  ;;  %2217 = vmatprep.subr.bf16.mxu1 %v15496_v34  ;;  %v15578_v33 = vld [vmem:[%s19987_s4 + $0x588] ss:$16 sps:$4 sm:$0xff]   ;;  %v15583_v34 = vld [vmem:[%s19987_s4 + $0x564] ss:$16 sps:$4 sm:$0xff]  }
 0x2f6   : > { %2202 = vmatprep.mubr.bf16.mxu0 %v16430_v20  ;;  %2243 = vmatprep.mubr.bf16.mxu1 %v16430_v20 }
 0x2f8   : > { %2177 = vmatpush1.bf16.msra.mxu0 %v15491_v37  ;;  %2218 = vmatpush1.bf16.msra.mxu1 %v15494_v29  ;;  %v15586_v37 = vld [vmem:[%s19987_s4 + $0x56c] ss:$16 sps:$4 sm:$0xff]   ;;  %v15581_v29 = vld [vmem:[%s19987_s4 + $0x560] ss:$16 sps:$4 sm:$0xff]  }
 0x2f9   : > { %2178 = vmatprep.subr.bf16.mxu0 %v15499_v35  ;;  %2219 = vmatprep.subr.bf16.mxu1 %v15502_v36  ;;  %v15584_v35 = vld [vmem:[%s19987_s4 + $0x568] ss:$16 sps:$4 sm:$0xff]   ;;  %v15589_v36 = vld [vmem:[%s19987_s4 + $0x544] ss:$16 sps:$4 sm:$0xff]  }
 0x2fc   : > { %2179 = vmatpush1.bf16.msra.mxu0 %v15497_v38  ;;  %2220 = vmatpush1.bf16.msra.mxu1 %v15500_v39  ;;  %v15592_v38 = vld [vmem:[%s19987_s4 + $0x54c] ss:$16 sps:$4 sm:$0xff]   ;;  %v15587_v39 = vld [vmem:[%s19987_s4 + $0x540] ss:$16 sps:$4 sm:$0xff]  }
 0x2fd   : > { %2180 = vmatprep.subr.bf16.mxu0 %v15505_v32  ;;  %2221 = vmatprep.subr.bf16.mxu1 %v15508_v40  ;;  %v15590_v32 = vld [vmem:[%s19987_s4 + $0x548] ss:$16 sps:$4 sm:$0xff]   ;;  %v2517_v40 = vrot.slane %v2256_v18, 2 }
 0x300   : > { %2181 = vmatpush1.bf16.msra.mxu0 %v15503_v41  ;;  %2222 = vmatpush1.bf16.msra.mxu1 %v15506_v42 }
 0x301   : > { %2182 = vmatprep.subr.bf16.mxu0 %v15511_v44  ;;  %2223 = vmatprep.subr.bf16.mxu1 %v15514_v45 }
 0x304   : > { %2183 = vmatpush1.bf16.msra.mxu0 %v15509_v46  ;;  %2224 = vmatpush1.bf16.msra.mxu1 %v15512_v47 }
 0x305   : > { %2184 = vmatprep.subr.bf16.mxu0 %v15517_v48  ;;  %2225 = vmatprep.subr.bf16.mxu1 %v15520_v49 }
 0x308   : > { %2185 = vmatpush1.bf16.msra.mxu0 %v15515_v50  ;;  %2226 = vmatpush1.bf16.msra.mxu1 %v15518_v51 }
 0x309   : > { %2409 = vmatprep.subr.bf16.mxu0 %v15523_v52  ;;  %2450 = vmatprep.subr.bf16.mxu1 %v15526_v53 }
 0x30b   : > { %12734 = vmatmul.mubr.msk.bf16.vlgmr.msra.gmra.mxu0 %vm1023_vm4, %v2046_v56  ;;  %12735 = vmatmul.mubr.msk.bf16.vlgmr.msra.gmra.mxu1 %vm1023_vm4, %v2046_v56 }
 0x30c   : > { %2410 = vmatpush1.bf16.msra.mxu0 %v15521_v54  ;;  %2451 = vmatpush1.bf16.msra.mxu1 %v15524_v55 }
 0x30d   : > { %2411 = vmatprep.subr.bf16.mxu0 %v15529_v57  ;;  %2452 = vmatprep.subr.bf16.mxu1 %v15532_v59 }
 0x30e   : > { %2437 = vmatprep.mubr.bf16.mxu0 %v16430_v20  ;;  %2478 = vmatprep.mubr.bf16.mxu1 %v16430_v20 }
 0x310   : > { %2412 = vmatpush1.bf16.msra.mxu0 %v15527_v60  ;;  %2453 = vmatpush1.bf16.msra.mxu1 %v15530_v61 }
 0x311   : > { %2413 = vmatprep.subr.bf16.mxu0 %v15535_v62  ;;  %2454 = vmatprep.subr.bf16.mxu1 %v15538_v63  ;;  %v17248_v63 = vshrl.u32 %v835_v21, 7 }
 0x313   : > { %vm7759_vm0 = vcmp.eq.s32.totalorder %v17248_v63, 0  ;;  %vm7764_vm1 = vcmp.eq.s32.totalorder %v17248_v63, 1  ;;  %vm7769_vm2 = vcmp.eq.s32.totalorder %v17248_v63, 2  ;;  %vm7774_vm3 = vcmp.eq.s32.totalorder %v17248_v63, 3 }
 0x314   : > { %2414 = vmatpush1.bf16.msra.mxu0 %v15533_v0  ;;  %2455 = vmatpush1.bf16.msra.mxu1 %v15536_v1  ;;  %v2730_v0 = vsub.s32 %v17248_v63, %v16687_v22  ;;  %v16433_v1 = vmov 0.0  }
 0x315   : > { %2415 = vmatprep.subr.bf16.mxu0 %v15541_v2  ;;  %2456 = vmatprep.subr.bf16.mxu1 %v15544_v3 }
 0x316   : > { %vm2732_vm5 = vcmp.eq.s32.totalorder %v2730_v0, 0  ;;  %vm2738_vm7 = vcmp.eq.s32.totalorder %v2730_v0, 4 }
 0x317   : > { %v12836_v2 = vsel %vm2732_vm5, 1.0, %v16433_v1  ;;  %v12838_v3 = vsel %vm2738_vm7, 1.0, %v16433_v1  ;;  %vm16437_vm5 = vmmov 0   ;;  %vm7789_vm7 = vcmp.eq.s32.totalorder %v17248_v63, 6 }
 0x318   : > { %2416 = vmatpush1.bf16.msra.mxu0 %v15539_v4  ;;  %2457 = vmatpush1.bf16.msra.mxu1 %v15542_v5 }
 0x319   : > { %2417 = vmatprep.subr.bf16.mxu0 %v15547_v6  ;;  %2458 = vmatprep.subr.bf16.mxu1 %v15550_v7 }
 0x31c   : > { %2418 = vmatpush1.bf16.msra.mxu0 %v15545_v8  ;;  %2459 = vmatpush1.bf16.msra.mxu1 %v15548_v9 }
 0x31d   : > { %2419 = vmatprep.subr.bf16.mxu0 %v15553_v10  ;;  %2460 = vmatprep.subr.bf16.mxu1 %v15556_v11 }
 0x320   : > { %2420 = vmatpush1.bf16.msra.mxu0 %v15551_v12  ;;  %2461 = vmatpush1.bf16.msra.mxu1 %v15554_v13 }
 0x321   : > { %2645 = vmatprep.subr.bf16.mxu0 %v15559_v14  ;;  %2686 = vmatprep.subr.bf16.mxu1 %v15562_v15 }
 0x323   : > { %12784 = vmatmul.mubr.msk.bf16.vlgmr.msra.gmra.mxu0 %vm1023_vm4, %v2256_v18  ;;  %12785 = vmatmul.mubr.msk.bf16.vlgmr.msra.gmra.mxu1 %vm1023_vm4, %v2256_v18 }
 0x324   : > { %2646 = vmatpush1.bf16.msra.mxu0 %v15557_v16  ;;  %2687 = vmatpush1.bf16.msra.mxu1 %v15560_v17 }
 0x325   : > { %2647 = vmatprep.subr.bf16.mxu0 %v15565_v19  ;;  %2688 = vmatprep.subr.bf16.mxu1 %v15568_v23 }
 0x326   : > { %2673 = vmatprep.mubr.bf16.mxu0 %v16430_v20  ;;  %2714 = vmatprep.mubr.bf16.mxu1 %v16430_v20 }
 0x328   : > { %2648 = vmatpush1.bf16.msra.mxu0 %v15563_v43  ;;  %2689 = vmatpush1.bf16.msra.mxu1 %v15566_v24 }
 0x329   : > { %2649 = vmatprep.subr.bf16.mxu0 %v15571_v26  ;;  %2690 = vmatprep.subr.bf16.mxu1 %v15574_v27 }
 0x32c   : > { %2650 = vmatpush1.bf16.msra.mxu0 %v15569_v58  ;;  %2691 = vmatpush1.bf16.msra.mxu1 %v15572_v25 }
 0x32d   : > { %2651 = vmatprep.subr.bf16.mxu0 %v15577_v28  ;;  %2692 = vmatprep.subr.bf16.mxu1 %v15580_v30 }
 0x330   : > { %2652 = vmatpush1.bf16.msra.mxu0 %v15575_v31  ;;  %2693 = vmatpush1.bf16.msra.mxu1 %v15578_v33 }
 0x331   : > { %2653 = vmatprep.subr.bf16.mxu0 %v15583_v34  ;;  %2694 = vmatprep.subr.bf16.mxu1 %v15586_v37 }
 0x334   : > { %2654 = vmatpush1.bf16.msra.mxu0 %v15581_v29  ;;  %2695 = vmatpush1.bf16.msra.mxu1 %v15584_v35 }
 0x335   : > { %2655 = vmatprep.subr.bf16.mxu0 %v15589_v36  ;;  %2696 = vmatprep.subr.bf16.mxu1 %v15592_v38 }
 0x338   : > { %2656 = vmatpush1.bf16.msra.mxu0 %v15587_v39  ;;  %2697 = vmatpush1.bf16.msra.mxu1 %v15590_v32 }
 0x33b   : > { %12834 = vmatmul.mubr.msk.bf16.vlgmr.msra.gmra.mxu0 %vm1023_vm4, %v2517_v40  ;;  %12835 = vmatmul.mubr.msk.bf16.vlgmr.msra.gmra.mxu1 %vm1023_vm4, %v2517_v40  ;;  %vm7779_vm4 = vcmp.eq.s32.totalorder %v17248_v63, 4 }
 0x33c   : > { %14554 = vmatprep.mubr.msk.f32.mxu1 %vm2744_vm6, %v12836_v2  ;;  %14549 = vmatprep.mubr.msk.f32.mxu0 %vm2744_vm6, %v12838_v3 }
 0x353   : > { %v1061_v41 = vpop.f32.mrf.mxu0  ;;  %v1102_v42 = vpop.f32.mrf.mxu1 }
 0x355   : > { %v1063_v44 = vpop.f32.mrf.mxu0  ;;  %v1104_v45 = vpop.f32.mrf.mxu1 }
 0x357   : > { %v1065_v46 = vpop.f32.mrf.mxu0  ;;  %v1106_v47 = vpop.f32.mrf.mxu1 }
 0x359   : > { %v1066_v48 = vpop.f32.mrf.mxu0  ;;  %v1107_v49 = vpop.f32.mrf.mxu1 }
 0x36b   : > { %v1266_v50 = vpop.f32.mrf.mxu0  ;;  %v1307_v51 = vpop.f32.mrf.mxu1 }
 0x36c   : > { %v1267_v52 = vadd.f32 %v1266_v50, %v1061_v41  ;;  %v1308_v53 = vadd.f32 %v1307_v51, %v1102_v42 }
 0x36d   : > { %v1268_v54 = vpop.f32.mrf.mxu0  ;;  %v1309_v55 = vpop.f32.mrf.mxu1 }
 0x36e   : > { %v1269_v56 = vadd.f32 %v1268_v54, %v1063_v44  ;;  %v1310_v57 = vadd.f32 %v1309_v55, %v1104_v45 }
 0x36f   : > { %v1270_v59 = vpop.f32.mrf.mxu0  ;;  %v1311_v60 = vpop.f32.mrf.mxu1 }
 0x371   : > { %v1271_v61 = vpop.f32.mrf.mxu0  ;;  %v1312_v62 = vpop.f32.mrf.mxu1 }
 0x383   : > { %v1497_v4 = vpop.f32.mrf.mxu0  ;;  %v1538_v5 = vpop.f32.mrf.mxu1 }
 0x384   : > { %v1545_v6 = vadd.f32 %v1497_v4, %v1267_v52  ;;  %v1547_v21 = vadd.f32 %v1538_v5, %v1308_v53 }
 0x385   : > { %v1499_v7 = vpop.f32.mrf.mxu0  ;;  %v1540_v8 = vpop.f32.mrf.mxu1 }
 0x386   : > { %v1546_v9 = vadd.f32 %v1499_v7, %v1269_v56  ;;  %v1548_v10 = vadd.f32 %v1540_v8, %v1310_v57  ;;  %v17257_v57 = vadd.s32 8, %v17248_v63 }
 0x387   : > { %v1501_v11 = vpop.f32.mrf.mxu0  ;;  %v1542_v12 = vpop.f32.mrf.mxu1 }
 0x388   : > { %v2731_v59 = vsub.s32 %v17257_v57, %v16687_v22 }
 0x389   : > { %v1502_v13 = vpop.f32.mrf.mxu0  ;;  %v1543_v14 = vpop.f32.mrf.mxu1 }
 0x38a   : > { %vm2733_vm9 = vcmp.eq.s32.totalorder %v2731_v59, 0  ;;  %vm2739_vm10 = vcmp.eq.s32.totalorder %v2731_v59, 4  ;;  %vm3007_vm11 = vcmp.eq.s32.totalorder %v2731_v59, 12  ;;  %vm2915_vm12 = vcmp.eq.s32.totalorder %v2731_v59, 8 }
 0x38b   : > { %v12837_v11 = vsel %vm2733_vm9, 1.0, %v16433_v1  ;;  %vm7794_vm9 = vcmp.eq.s32.totalorder %v17248_v63, 7 }
 0x39b   : > { %v1733_v15 = vpop.f32.mrf.mxu0  ;;  %v1774_v16 = vpop.f32.mrf.mxu1 }
 0x39c   : > { %v1781_v17 = vadd.f32 %v1733_v15, %v1545_v6  ;;  %v1783_v18 = vadd.f32 %v1774_v16, %v1547_v21  ;;  %v12839_v15 = vsel %vm2739_vm10, 1.0, %v16433_v1 }
 0x39d   : > { %v1735_v19 = vpop.f32.mrf.mxu0  ;;  %v1776_v23 = vpop.f32.mrf.mxu1 }
 0x39e   : > { %v1782_v43 = vadd.f32 %v1735_v19, %v1546_v9  ;;  %v1784_v24 = vadd.f32 %v1776_v23, %v1548_v10  ;;  %v12849_v19 = vsel %vm3007_vm11, 1.0, %v16433_v1  ;;  %v12846_v23 = vsel %vm2915_vm12, 1.0, %v16433_v1 }
 0x39f   : > { %v1737_v26 = vpop.f32.mrf.mxu0  ;;  %v1778_v27 = vpop.f32.mrf.mxu1  ;;  %vm7835_vm11 = vcmask 523264   ;;  %vm3101_vm12 = vcmp.gt.s32.totalorder %v16687_v22, %v17248_v63 }
 0x3a1   : > { %v1738_v58 = vpop.f32.mrf.mxu0  ;;  %v1779_v25 = vpop.f32.mrf.mxu1 }
 0x3b3   : > { %v1968_v28 = vpop.f32.mrf.mxu0  ;;  %v2009_v30 = vpop.f32.mrf.mxu1 }
 0x3b4   : > { %v2016_v31 = vadd.f32 %v1968_v28, %v1781_v17  ;;  %v2018_v33 = vadd.f32 %v2009_v30, %v1783_v18 }
 0x3b5   : > { %v1970_v34 = vpop.f32.mrf.mxu0  ;;  %v2011_v37 = vpop.f32.mrf.mxu1 }
 0x3b6   : > { %v2017_v29 = vadd.f32 %v1970_v34, %v1782_v43  ;;  %v2019_v35 = vadd.f32 %v2011_v37, %v1784_v24  ;;  %v3109_v43 = vld [vmem:[%s19988_s5 + $0x10] sm:$0xff] }
 0x3b7   : > { %v1972_v36 = vpop.f32.mrf.mxu0  ;;  %v2013_v38 = vpop.f32.mrf.mxu1  ;;  %3119 = vadd.xlane.f32.xlu1 %v3109_v43 }
 0x3b9   : > { %v1973_v39 = vpop.f32.mrf.mxu0  ;;  %v2014_v32 = vpop.f32.mrf.mxu1 }
 0x3ba   : > { %v3108_v32 = vld [vmem:[%s19988_s5 + $0x8] sm:$0xff] }
 0x3cb   : > { %v2204_v40 = vpop.f32.mrf.mxu0  ;;  %v2245_v41 = vpop.f32.mrf.mxu1 }
 0x3cc   : > { %v2252_v60 = vadd.f32 %v2204_v40, %v2016_v31  ;;  %v2254_v21 = vadd.f32 %v2245_v41, %v2018_v33 }
 0x3cd   : > { %v2206_v42 = vpop.f32.mrf.mxu0  ;;  %v2247_v44 = vpop.f32.mrf.mxu1 }
 0x3ce   : > { %v2253_v61 = vadd.f32 %v2206_v42, %v2017_v29  ;;  %v2255_v62 = vadd.f32 %v2247_v44, %v2019_v35  ;;  %v3107_v35 = vld [vmem:[%s19988_s5] sm:$0xff] }
 0x3cf   : > { %v2208_v45 = vpop.f32.mrf.mxu0  ;;  %v2249_v46 = vpop.f32.mrf.mxu1 }
 0x3d1   : > { %v2209_v47 = vpop.f32.mrf.mxu0  ;;  %v2250_v48 = vpop.f32.mrf.mxu1 }
 0x3e3   : > { %v2439_v49 = vpop.f32.mrf.mxu0  ;;  %v2480_v50 = vpop.f32.mrf.mxu1 }
 0x3e4   : > { %v2487_v0 = vadd.f32 %v2439_v49, %v2252_v60  ;;  %v2489_v12 = vadd.f32 %v2480_v50, %v2254_v21 }
 0x3e5   : > { %v2441_v51 = vpop.f32.mrf.mxu0  ;;  %v2482_v52 = vpop.f32.mrf.mxu1 }
 0x3e6   : > { %v2488_v4 = vadd.f32 %v2441_v51, %v2253_v61  ;;  %v2490_v5 = vadd.f32 %v2482_v52, %v2255_v62 }
 0x3e7   : > { %v2443_v53 = vpop.f32.mrf.mxu0  ;;  %v2484_v54 = vpop.f32.mrf.mxu1 }
 0x3e9   : > { %v2444_v55 = vpop.f32.mrf.mxu0  ;;  %v2485_v56 = vpop.f32.mrf.mxu1 }
 0x3fb   : > { %v2675_v2 = vpop.f32.mrf.mxu0  ;;  %v2716_v3 = vpop.f32.mrf.mxu1 }
 0x3fc   : > { %v2723_v6 = vadd.f32 %v2675_v2, %v2487_v0  ;;  %v2725_v16 = vadd.f32 %v2716_v3, %v2489_v12 }
 0x3fd   : > { %v2677_v7 = vpop.f32.mrf.mxu0  ;;  %v2718_v8 = vpop.f32.mrf.mxu1 }
 0x3fe   : > { %v2724_v9 = vadd.f32 %v2677_v7, %v2488_v4  ;;  %v2726_v10 = vadd.f32 %v2718_v8, %v2490_v5  ;;  %14552 = vmatprep.subr.msk.mxu1 %vm2751_vm8, %v2723_v6  ;;  %v12852_v4 = vld [vmem:[%s19989_s6] ss:$0 sm:$0xff] }
 0x3ff   : > { %v2679_v13 = vpop.f32.mrf.mxu0  ;;  %v2720_v14 = vpop.f32.mrf.mxu1  ;;  %14553 = vmatpush3.msk.msra.mxu1 %vm2751_vm8, %v2723_v6  ;;  %v12853_v6 = vld [vmem:[%s19989_s6 + $0x1] ss:$0 sm:$0xff] }
 0x400   : > { %14547 = vmatprep.subr.msk.mxu0 %vm2751_vm8, %v2724_v9  ;;  %14562 = vmatprep.subr.msk.mxu1 %vm2751_vm8, %v2726_v10 }
 0x401   : > { %v2680_v17 = vpop.f32.mrf.mxu0  ;;  %v2721_v18 = vpop.f32.mrf.mxu1  ;;  %14548 = vmatpush3.msk.msra.mxu0 %vm2751_vm8, %v2724_v9  ;;  %14555 = vmatmul.mubr.msk.f32.vlgmr.msra.gmra.mxu1 %vm2744_vm6, %v12837_v11 }
 0x402   : > { %14563 = vmatpush3.msk.msra.mxu1 %vm2751_vm8, %v2726_v10  ;;  %14550 = vmatmul.mubr.msk.f32.vlgmr.msra.gmra.mxu0 %vm2744_vm6, %v12839_v15  ;;  %v15594_v17 = vld [vmem:[%s19991_s8 + $0x7c] sm:$0xff]  }
 0x403   : > { %14557 = vmatprep.subr.msk.mxu0 %vm2751_vm8, %v2725_v16  ;;  %14559 = vmatprep.mubr.f32.mxu0 %v16433_v1 }
 0x404   : > { %14558 = vmatpush3.msk.msra.mxu0 %vm2751_vm8, %v2725_v16  ;;  %14564 = vmatprep.mubr.f32.mxu1 %v16433_v1  ;;  %v15593_v16 = vld [vmem:[%s19991_s8 + $0x38] sm:$0xff]  }
 0x405   : > { %14565 = vmatmul.mubr.msk.f32.vlgmr.msra.gmra.mxu1 %vm2744_vm6, %v12849_v19  ;;  %14567 = vmatprep.subr.bf16.mxu0 %v15593_v16 }
 0x406   : > { %14560 = vmatmul.mubr.msk.f32.vlgmr.msra.gmra.mxu0 %vm2744_vm6, %v12846_v23  ;;  %14587 = vmatprep.subr.bf16.mxu1 %v15594_v17  ;;  %vm7784_vm6 = vcmp.eq.s32.totalorder %v17248_v63, 5 }
 0x407   : > { %14568 = vmatpush3.bf16.msra.mxu0 %v15593_v16  ;;  %14588 = vmatpush3.bf16.msra.mxu1 %v15594_v17  ;;  %v15610_v17 = vld [vmem:[%s19991_s8 + $0xb8] sm:$0xff]  }
 0x440   : > { %v3120_v41 = vpop.xlane.xlu1 %3119 }
 0x441   : > { %v3124_v42 = vmul.f32 0.0078125, %v3120_v41  ;;  %v15605_v41 = vld [vmem:[%s19991_s8 + $0x8] sm:$0xff]  }
 0x443   : > { %v3127_v47 = vsub.f32 %v3109_v43, %v3124_v42  ;;  %v15606_v42 = vld [vmem:[%s19991_s8 + $0x4c] sm:$0xff]  }
 0x445   : > { %v3130_v51 = vmul.f32 %v3127_v47, %v3127_v47 }
 0x4c1   : > { %v14556_v24 = vpop.f32.mrf.mxu1 }
 0x4c2   : > { %v14551_v26 = vpop.f32.mrf.mxu0 }
 0x4c3   : > { %v2905_v27 = vpop.f32.mrf.mxu1  ;;  %v2911_v30 = vadd.f32 %v14556_v24, %v14551_v26 }
 0x4c4   : > { %v2821_v58 = vpop.f32.mrf.mxu0 }
 0x4c5   : > { %v14566_v28 = vpop.f32.mrf.mxu1  ;;  %v2906_v31 = vadd.f32 %v2905_v27, %v2821_v58 }
 0x4c6   : > { %v14561_v25 = vpop.f32.mrf.mxu0 }
 0x4c7   : > { %v3005_v34 = vadd.f32 %v14561_v25, %v2911_v30  ;;  %v3087_v29 = vpop.f32.mrf.mxu1 }
 0x4c8   : > { %v2995_v33 = vpop.f32.mrf.mxu0 }
 0x4c9   : > { %v3004_v37 = vadd.f32 %v2995_v33, %v2906_v31  ;;  %v3097_v38 = vadd.f32 %v14566_v28, %v3005_v34  ;;  %v15595_v33 = vld [vmem:[%s19991_s8 + $0x30] sm:$0xff]  }
 0x4ca   : > { %v15596_v34 = vld [vmem:[%s19991_s8 + $0x74] sm:$0xff]   ;;  %14569 = vmatprep.subr.bf16.mxu0 %v15595_v33 }
 0x4cb   : > { %v3096_v36 = vadd.f32 %v3087_v29, %v3004_v37  ;;  %v3111_v40 = vadd.f32 %v3108_v32, %v3097_v38  ;;  %14570 = vmatpush3.bf16.msra.mxu0 %v15595_v33  ;;  %14589 = vmatprep.subr.bf16.mxu1 %v15596_v34  ;;  %v15597_v37 = vld [vmem:[%s19991_s8 + $0x28] sm:$0xff]   ;;  %v15601_v38 = vld [vmem:[%s19991_s8 + $0x18] sm:$0xff]   ;;  %v15603_v32 = vld [vmem:[%s19991_s8 + $0x10] sm:$0xff]  }
 0x4cc   : > { %14590 = vmatpush3.bf16.msra.mxu1 %v15596_v34  ;;  %v15598_v29 = vld [vmem:[%s19991_s8 + $0x6c] sm:$0xff]   ;;  %14571 = vmatprep.subr.bf16.mxu0 %v15597_v37 }
 0x4cd   : > { %v3110_v39 = vadd.f32 %v3107_v35, %v3096_v36  ;;  %14591 = vmatprep.subr.bf16.mxu1 %v15598_v29  ;;  %v15599_v35 = vld [vmem:[%s19991_s8 + $0x20] sm:$0xff]  }
 0x4ce   : > { %v15600_v36 = vld [vmem:[%s19991_s8 + $0x64] sm:$0xff]  }
 0x4cf   : > { %3115 = vadd.xlane.f32.xlu0 %v3110_v39  ;;  %14572 = vmatpush3.bf16.msra.mxu0 %v15597_v37 }
 0x4d0   : > { %14592 = vmatpush3.bf16.msra.mxu1 %v15598_v29  ;;  %14573 = vmatprep.subr.bf16.mxu0 %v15599_v35 }
 0x4d1   : > { %14593 = vmatprep.subr.bf16.mxu1 %v15600_v36 }
 0x4d3   : > { %3117 = vadd.xlane.f32.xlu0 %v3111_v40  ;;  %14574 = vmatpush3.bf16.msra.mxu0 %v15599_v35 }
 0x4d4   : > { %14594 = vmatpush3.bf16.msra.mxu1 %v15600_v36  ;;  %14575 = vmatprep.subr.bf16.mxu0 %v15601_v38 }
 0x4d7   : > { %14576 = vmatpush3.bf16.msra.mxu0 %v15601_v38 }
 0x4d8   : > { %14577 = vmatprep.subr.bf16.mxu0 %v15603_v32 }
 0x4db   : > { %14578 = vmatpush3.bf16.msra.mxu0 %v15603_v32 }
 0x4dc   : > { %14579 = vmatprep.subr.bf16.mxu0 %v15605_v41 }
 0x4df   : > { %14580 = vmatpush3.bf16.msra.mxu0 %v15605_v41 }
 0x558   : > { %v3116_v44 = vpop.xlane.xlu0 %3115 }
 0x559   : > { %v3122_v45 = vmul.f32 0.0078125, %v3116_v44  ;;  %v15607_v44 = vld [vmem:[%s19991_s8] sm:$0xff]  }
 0x55a   : > { %14581 = vmatprep.subr.bf16.mxu0 %v15607_v44 }
 0x55b   : > { %v3125_v46 = vsub.f32 %v3110_v39, %v3122_v45  ;;  %v15602_v39 = vld [vmem:[%s19991_s8 + $0x5c] sm:$0xff]   ;;  %v15608_v45 = vld [vmem:[%s19991_s8 + $0x44] sm:$0xff]   ;;  %14582 = vmatpush3.bf16.msra.mxu0 %v15607_v44 }
 0x55c   : > { %v3118_v48 = vpop.xlane.xlu0 %3117  ;;  %14595 = vmatprep.subr.bf16.mxu1 %v15602_v39 }
 0x55d   : > { %v3123_v49 = vmul.f32 0.0078125, %v3118_v48  ;;  %v3128_v50 = vmul.f32 %v3125_v46, %v3125_v46  ;;  %14596 = vmatpush3.bf16.msra.mxu1 %v15602_v39 }
 0x55f   : > { %3131 = vadd.xlane.f32.xlu1 %v3128_v50  ;;  %v3126_v52 = vsub.f32 %v3111_v40, %v3123_v49  ;;  %v15604_v40 = vld [vmem:[%s19991_s8 + $0x54] sm:$0xff]  }
 0x560   : > { %14597 = vmatprep.subr.bf16.mxu1 %v15604_v40 }
 0x561   : > { %v3129_v53 = vmul.f32 %v3126_v52, %v3126_v52  ;;  %14598 = vmatpush3.bf16.msra.mxu1 %v15604_v40 }
 0x562   : > { %14599 = vmatprep.subr.bf16.mxu1 %v15606_v42 }
 0x563   : > { %3135 = vadd.xlane.f32.xlu1 %v3130_v51  ;;  %3133 = vadd.xlane.f32.xlu0 %v3129_v53 }
 0x565   : > { %14600 = vmatpush3.bf16.msra.mxu1 %v15606_v42 }
 0x566   : > { %14601 = vmatprep.subr.bf16.mxu1 %v15608_v45 }
 0x569   : > { %14602 = vmatpush3.bf16.msra.mxu1 %v15608_v45 }
 0x5e8   : > { %v3132_v54 = vpop.xlane.xlu1 %3131 }
 0x5e9   : > { %v3137_v55 = vmul.f32 0.0078125, %v3132_v54 }
 0x5eb   : > { %v3140_v56 = vadd.f32 1e-05, %v3137_v55 }
 0x5ec   : > { %v3136_v59 = vpop.xlane.xlu1 %3135  ;;  %v3134_v60 = vpop.xlane.xlu0 %3133 }
 0x5ed   : > { %16053 = vrsqrt.f32 %v3140_v56  ;;  %v3139_v61 = vmul.f32 0.0078125, %v3136_v59  ;;  %v3138_v62 = vmul.f32 0.0078125, %v3134_v60  ;;  %v17370_v56 = vsub.s32 0, %v17248_v63  ;;  %v3163_v59 = vld [vmem:[%s19990_s7] sm:$0xf] }
 0x5ef   : > { %v3142_v0 = vadd.f32 1e-05, %v3139_v61  ;;  %v3141_v2 = vadd.f32 1e-05, %v3138_v62  ;;  %v3200_v62 = vrot.slane %v3163_v59, %v17370_v56 }
 0x5f1   : > { %16055 = vrsqrt.f32 %v3142_v0  ;;  %v17378_v0 = vsub.s32 1, %v17248_v63 }
 0x5f2   : > { %16057 = vrsqrt.f32 %v3141_v2 }
 0x5fa   : > { %v16054_v3 = vpop.eup %16053 }
 0x5fb   : > { %v3146_v5 = vmul.f32 %v16054_v3, %v3125_v46  ;;  %v15609_v46 = vld [vmem:[%s19991_s8 + $0xc0] sm:$0xff]  }
 0x5fc   : > { %14607 = vmatprep.subr.bf16.mxu0 %v15609_v46 }
 0x5fd   : > { %v3153_v21 = vmul.f32 %v12852_v4, %v3146_v5 }
 0x5fe   : > { %v16056_v7 = vpop.eup %16055 }
 0x5ff   : > { %v16058_v8 = vpop.eup %16057  ;;  %v17294_v9 = vadd.f32 %v12853_v6, %v3153_v21  ;;  %v3148_v10 = vmul.f32 %v16056_v7, %v3127_v47  ;;  %v3207_v21 = vrot.slane %v3163_v59, %v17378_v0 }
 0x600   : > { %v3147_v11 = vmul.f32 %v16058_v8, %v3126_v52 }
 0x601   : > { %3164 = vadd.xlane.f32.xlu0 %v17294_v9  ;;  %v3155_v12 = vmul.f32 %v12852_v4, %v3148_v10 }
 0x602   : > { %v3154_v13 = vmul.f32 %v12852_v4, %v3147_v11 }
 0x603   : > { %v17297_v14 = vadd.f32 %v12853_v6, %v3155_v12 }
 0x604   : > { %v17299_v15 = vadd.f32 %v12853_v6, %v3154_v13 }
 0x605   : > { %3168 = vadd.xlane.f32.xlu0 %v17297_v14 }
 0x606   : > { %3166 = vadd.xlane.f32.xlu1 %v17299_v15 }
 0x68a   : > { %v3165_v18 = vpop.xlane.xlu0 %3164 }
 0x68b   : > { %v3170_v19 = vmul.f32 0.0078125, %v3165_v18  ;;  %v15611_v18 = vld [vmem:[%s19991_s8 + $0xb0] sm:$0xff]  }
 0x68d   : > { %v17310_v23 = vsub.f32 %v17294_v9, %v3170_v19  ;;  %v15612_v19 = vld [vmem:[%s19991_s8 + $0xa8] sm:$0xff]  }
 0x68e   : > { %v3169_v43 = vpop.xlane.xlu0 %3168 }
 0x68f   : > { %v3167_v24 = vpop.xlane.xlu1 %3166  ;;  %v3172_v26 = vmul.f32 0.0078125, %v3169_v43  ;;  %v3176_v27 = vmul.f32 %v17310_v23, %v17310_v23  ;;  %v15614_v43 = vld [vmem:[%s19991_s8 + $0x98] sm:$0xff]  }
 0x690   : > { %v3171_v58 = vmul.f32 0.0078125, %v3167_v24  ;;  %v15615_v24 = vld [vmem:[%s19991_s8 + $0x90] sm:$0xff]  }
 0x691   : > { %3179 = vadd.xlane.f32.xlu1 %v3176_v27  ;;  %v17315_v25 = vsub.f32 %v17297_v14, %v3172_v26  ;;  %v15616_v26 = vld [vmem:[%s19991_s8 + $0x88] sm:$0xff]   ;;  %v12878_v27 = vld [vmem:[%s19991_s8 + $0x84] sm:$0x1] }
 0x692   : > { %v17318_v28 = vsub.f32 %v17299_v15, %v3171_v58  ;;  %v3349_v58 = vunpack.c.l.bf16 %v12878_v27 }
 0x693   : > { %v3178_v30 = vmul.f32 %v17315_v25, %v17315_v25 }
 0x694   : > { %v3177_v31 = vmul.f32 %v17318_v28, %v17318_v28 }
 0x695   : > { %3183 = vadd.xlane.f32.xlu1 %v3178_v30 }
 0x696   : > { %3181 = vadd.xlane.f32.xlu0 %v3177_v31 }
 0x71a   : > { %v3180_v47 = vpop.xlane.xlu1 %3179 }
 0x71b   : > { %v3185_v48 = vmul.f32 0.0078125, %v3180_v47 }
 0x71d   : > { %v3188_v49 = vadd.f32 1e-05, %v3185_v48 }
 0x71e   : > { %v3184_v50 = vpop.xlane.xlu1 %3183 }
 0x71f   : > { %16059 = vrsqrt.f32 %v3188_v49  ;;  %v3187_v51 = vmul.f32 0.0078125, %v3184_v50  ;;  %v3182_v52 = vpop.xlane.xlu0 %3181 }
 0x720   : > { %v3186_v53 = vmul.f32 0.0078125, %v3182_v52 }
 0x721   : > { %v3190_v54 = vadd.f32 1e-05, %v3187_v51 }
 0x722   : > { %v3189_v55 = vadd.f32 1e-05, %v3186_v53 }
 0x723   : > { %16061 = vrsqrt.f32 %v3190_v54 }
 0x724   : > { %16063 = vrsqrt.f32 %v3189_v55  ;;  %v12903_v55 = vld [vmem:[%s19991_s8 + $0xc8] sm:$0x1] }
 0x725   : > { %v3468_v59 = vunpack.c.l.bf16 %v12903_v55 }
 0x72c   : > { %v16060_v60 = vpop.eup %16059 }
 0x72d   : > { %v3194_v61 = vmul.f32 %v16060_v60, %v17310_v23  ;;  %v15613_v23 = vld [vmem:[%s19991_s8 + $0xa0] sm:$0xff]   ;;  %v3472_v60 = vrot.slane %v3468_v59, %v17370_v56 }
 0x72f   : > { %v3201_v6 = vmul.f32 %v3200_v62, %v3194_v61 }
 0x730   : > { %v16062_v2 = vpop.eup %16061 }
 0x731   : > { %v16064_v3 = vpop.eup %16063  ;;  %v3196_v4 = vmul.f32 %v16062_v2, %v17315_v25  ;;  %v3208_v11 = vadd.f32 %v3207_v21, %v3201_v6  ;;  %v3229_v25 = vld [vmem:[%s19991_s8 + $0x40] sm:$0x1] }
 0x732   : > { %v3195_v5 = vmul.f32 %v16064_v3, %v17318_v28  ;;  %v3353_v28 = vrot.slane %v3349_v58, %v17370_v56  ;;  %v3230_v30 = vunpack.c.l.bf16 %v3229_v25 }
 0x733   : > { %v3203_v7 = vmul.f32 %v3200_v62, %v3196_v4 }
 0x734   : > { %v3202_v8 = vmul.f32 %v3200_v62, %v3195_v5  ;;  %v3234_v35 = vrot.slane %v3230_v30, %v17370_v56 }
 0x735   : > { %v3210_v10 = vadd.f32 %v3207_v21, %v3203_v7 }
 0x736   : > { %v3209_v12 = vadd.f32 %v3207_v21, %v3202_v8 }
 0x737   : > { %v3212_v13 = vpack.c.bf16 %v3210_v10, %v3210_v10 }
 0x738   : > { %v3211_v16 = vpack.c.bf16 %v3209_v12, %v3208_v11 }
 0x73a   : > { %14583 = vmatprep.mubr.bf16.mxu0 %v3211_v16  ;;  %14603 = vmatprep.mubr.bf16.mxu1 %v3211_v16 }
 0x73b   : > { %14584 = vmatmul.mubr.bf16.vlgmr.msra.gmra.mxu0 %v3212_v13  ;;  %14604 = vmatmul.mubr.bf16.vlgmr.msra.gmra.mxu1 %v3212_v13 }
 0x73c   : > { %14608 = vmatpush3.bf16.msra.mxu0 %v15609_v46  ;;  %14623 = vmatprep.mubr.bf16.mxu0 %v3211_v16 }
 0x73d   : > { %14609 = vmatprep.subr.bf16.mxu0 %v15610_v17 }
 0x740   : > { %14610 = vmatpush3.bf16.msra.mxu0 %v15610_v17 }
 0x741   : > { %14611 = vmatprep.subr.bf16.mxu0 %v15611_v18 }
 0x744   : > { %14612 = vmatpush3.bf16.msra.mxu0 %v15611_v18 }
 0x745   : > { %14613 = vmatprep.subr.bf16.mxu0 %v15612_v19 }
 0x748   : > { %14614 = vmatpush3.bf16.msra.mxu0 %v15612_v19  ;;  %v17462_v19 = vsel %vm3099_vm14, -1e+09, %v16433_v1 }
 0x749   : > { %14615 = vmatprep.subr.bf16.mxu0 %v15613_v23 }
 0x74c   : > { %14616 = vmatpush3.bf16.msra.mxu0 %v15613_v23 }
 0x74d   : > { %14617 = vmatprep.subr.bf16.mxu0 %v15614_v43 }
 0x750   : > { %14618 = vmatpush3.bf16.msra.mxu0 %v15614_v43 }
 0x751   : > { %14619 = vmatprep.subr.bf16.mxu0 %v15615_v24 }
 0x754   : > { %14620 = vmatpush3.bf16.msra.mxu0 %v15615_v24 }
 0x755   : > { %14621 = vmatprep.subr.bf16.mxu0 %v15616_v26 }
 0x758   : > { %14622 = vmatpush3.bf16.msra.mxu0 %v15616_v26 }
 0x75b   : > { %14624 = vmatmul.mubr.bf16.vlgmr.msra.gmra.mxu0 %v3212_v13 }
 0x7fb   : > { %v14585_v31 = vpop.f32.mrf.mxu0  ;;  %v14605_v33 = vpop.f32.mrf.mxu1 }
 0x7fc   : > { %v3445_v34 = vadd.f32 %v14605_v33, %v3353_v28  ;;  %v3326_v47 = vadd.f32 %v14585_v31, %v3234_v35 }
 0x7fd   : > { %v3317_v37 = vpop.f32.mrf.mxu0  ;;  %v3436_v29 = vpop.f32.mrf.mxu1 }
 0x7fe   : > { %v17412_v36 = vpack.c.bf16 %v3445_v34, %v3445_v34  ;;  %v3318_v32 = vadd.f32 %v3317_v37, %v3234_v35  ;;  %v3437_v44 = vadd.f32 %v3436_v29, %v3353_v28  ;;  %v3574_v52 = vmul.f32 0.17677669, %v3326_v47 }
 0x7ff   : > { %v14586_v38 = vpop.f32.mrf.mxu0  ;;  %v14606_v39 = vpop.f32.mrf.mxu1 }
 0x800   : > { %3824 = vrot.lane.b32.xlu0 %v17412_v36, %s16434_s22  ;;  %15229 = vmatprep.subr.msk.bf16.mxu1 %vm3581_vm13, %v17412_v36  ;;  %v3592_v40 = vsel %vm3581_vm13, %v17412_v36, 0  ;;  %v3572_v48 = vmul.f32 0.17677669, %v3318_v32  ;;  %v17434_v54 = vpack.c.bf16 %v3574_v52, %v3574_v52 }
 0x801   : > { %v3320_v41 = vpop.f32.mrf.mxu0  ;;  %v3439_v42 = vpop.f32.mrf.mxu1  ;;  %14628 = vmatpush3.bf16.xpose.msra.mxu1 %v3592_v40 }
 0x802   : > { %v3321_v45 = vadd.f32 %v3320_v41, %v3234_v35  ;;  %v3440_v46 = vadd.f32 %v3439_v42, %v3353_v28 }
 0x804   : > { %v3573_v49 = vmul.f32 0.17677669, %v3321_v45  ;;  %v17420_v50 = vpack.c.bf16 %v3440_v46, %v3437_v44 }
 0x806   : > { %v17422_v51 = vpack.c.bf16 %v3573_v49, %v3572_v48  ;;  %3822 = vrot.lane.b32.xlu1 %v17420_v50, %s16434_s22  ;;  %15230 = vmatprep.subr.msk.bf16.mxu1 %vm3581_vm13, %v17420_v50  ;;  %v3589_v53 = vsel %vm3581_vm13, %v17420_v50, 0 }
 0x808   : > { %14631 = vmatprep.mubr.msk.bf16.mxu1 %vm3581_vm13, %v17422_v51 }
 0x809   : > { %14630 = vmatpush3.bf16.xpose.msra.mxu1 %v3589_v53 }
 0x80a   : > { %3816 = vrot.lane.b32.xlu1 %v17422_v51, %s16434_s22 }
 0x80e   : > { %3818 = vrot.lane.b32.xlu1 %v17434_v54, %s16434_s22 }
 0x810   : > { %14632 = vmatmul.mubr.msk.bf16.vlgmr.msra.gmra.mxu1 %vm3581_vm13, %v17434_v54 }
 0x81b   : > { %v14625_v61 = vpop.f32.mrf.mxu0 }
 0x81c   : > { %v3564_v62 = vadd.f32 %v14625_v61, %v3472_v60 }
 0x81d   : > { %v3555_v2 = vpop.f32.mrf.mxu0 }
 0x81e   : > { %v17444_v3 = vpack.c.bf16 %v3564_v62, %v3564_v62  ;;  %v3556_v21 = vadd.f32 %v3555_v2, %v3472_v60 }
 0x81f   : > { %v14626_v4 = vpop.f32.mrf.mxu0 }
 0x820   : > { %15231 = vmatprep.subr.msk.bf16.mxu1 %vm2751_vm8, %v17444_v3  ;;  %v3685_v5 = vsel %vm2751_vm8, %v17444_v3, 0 }
 0x821   : > { %v3558_v6 = vpop.f32.mrf.mxu0  ;;  %14636 = vmatpush3.bf16.msra.mxu1 %v3685_v5 }
 0x822   : > { %v3559_v7 = vadd.f32 %v3558_v6, %v3472_v60 }
 0x824   : > { %v17450_v8 = vpack.c.bf16 %v3559_v7, %v3556_v21 }
 0x826   : > { %14637 = vmatprep.subr.bf16.mxu1 %v17450_v8 }
 0x827   : > { %14638 = vmatpush3.bf16.msra.mxu1 %v17450_v8 }
 0x872   : > { %v3825_v10 = vpop.permute.xlu0 %3824 }
 0x873   : > { %15232 = vmatprep.subr.msk.bf16.mxu0 %vm3581_vm13, %v3825_v10  ;;  %v3836_v11 = vsel %vm3581_vm13, %v3825_v10, 0 }
 0x874   : > { %14652 = vmatpush3.bf16.xpose.msra.mxu0 %v3836_v11 }
 0x878   : > { %v3823_v12 = vpop.permute.xlu1 %3822 }
 0x879   : > { %15233 = vmatprep.subr.msk.bf16.mxu0 %vm3581_vm13, %v3823_v12  ;;  %v3833_v13 = vsel %vm3581_vm13, %v3823_v12, 0 }
 0x87c   : > { %14654 = vmatpush3.bf16.xpose.msra.mxu0 %v3833_v13  ;;  %v3817_v16 = vpop.permute.xlu1 %3816 }
 0x87d   : > { %14655 = vmatprep.mubr.msk.bf16.mxu0 %vm3581_vm13, %v3817_v16 }
 0x880   : > { %v3819_v17 = vpop.permute.xlu1 %3818 }
 0x883   : > { %14656 = vmatmul.mubr.msk.bf16.vlgmr.msra.gmra.mxu0 %vm3581_vm13, %v3819_v17 }
 0x8d0   : > { %v14633_v18 = vpop.f32.mrf.mxu1 }
 0x8d1   : > { %v3637_v26 = vadd.f32 %v14633_v18, %v17462_v19 }
 0x8d2   : > { %v3628_v23 = vpop.f32.mrf.mxu1 }
 0x8d3   : > { %v3629_v43 = vadd.f32 %v3628_v23, %v17462_v19  ;;  %v3649_v30 = vsel %vm3642_vm15, %v3637_v26, -inf }
 0x8d4   : > { %v14634_v24 = vpop.f32.mrf.mxu1 }
 0x8d5   : > { %v3643_v27 = vsel %vm3642_vm15, %v3629_v43, -inf }
 0x8d6   : > { %v3631_v58 = vpop.f32.mrf.mxu1  ;;  %3644 = vmax.xlane.f32.xlu0 %v3643_v27 }
 0x8d7   : > { %v3632_v25 = vadd.f32 %v3631_v58, %v17462_v19 }
 0x8d9   : > { %v3646_v28 = vsel %vm3642_vm15, %v3632_v25, -inf }
 0x8da   : > { %3647 = vmax.xlane.f32.xlu1 %v3646_v28  ;;  %3650 = vmax.xlane.f32.xlu0 %v3649_v30 }
 0x943   : > { %v14657_v31 = vpop.f32.mrf.mxu0 }
 0x944   : > { %v3881_v53 = vadd.f32 %v14657_v31, %v17462_v19 }
 0x945   : > { %v3872_v33 = vpop.f32.mrf.mxu0 }
 0x946   : > { %v3873_v52 = vadd.f32 %v3872_v33, %v17462_v19  ;;  %v3892_v60 = vsel %vm3642_vm15, %v3881_v53, -inf }
 0x947   : > { %v14658_v34 = vpop.f32.mrf.mxu0 }
 0x948   : > { %v3886_v55 = vsel %vm3642_vm15, %v3873_v52, -inf }
 0x949   : > { %v3875_v59 = vpop.f32.mrf.mxu0 }
 0x94a   : > { %v3876_v61 = vadd.f32 %v3875_v59, %v17462_v19 }
 0x94c   : > { %v3889_v62 = vsel %vm3642_vm15, %v3876_v61, -inf }
 0x95f   : > { %v3645_v37 = vpop.xlane.xlu0 %3644 }
 0x960   : > { %v3652_v29 = vsub.f32 %v3629_v43, %v3645_v37 }
 0x962   : > { %v3655_v35 = vmul.f32 1.442695, %v3652_v29 }
 0x963   : > { %v3648_v38 = vpop.xlane.xlu1 %3647  ;;  %v3651_v39 = vpop.xlane.xlu0 %3650 }
 0x964   : > { %16065 = vpow2.f32 %v3655_v35  ;;  %v3653_v32 = vsub.f32 %v3632_v25, %v3648_v38  ;;  %v3654_v40 = vsub.f32 %v3637_v26, %v3651_v39 }
 0x966   : > { %v3657_v41 = vmul.f32 1.442695, %v3653_v32  ;;  %v3659_v42 = vmul.f32 1.442695, %v3654_v40 }
 0x968   : > { %16067 = vpow2.f32 %v3657_v41  ;;  %v15617_v41 = vld [vmem:[%s19991_s8 + $0xd4] sm:$0xff]  }
 0x969   : > { %16069 = vpow2.f32 %v3659_v42  ;;  %14643 = vmatprep.subr.bf16.mxu1 %v15617_v41  ;;  %v15618_v42 = vld [vmem:[%s19991_s8 + $0xcc] sm:$0xff]  }
 0x971   : > { %v16066_v44 = vpop.eup %16065 }
 0x972   : > { %v3661_v45 = vsel %vm3642_vm15, %v16066_v44, 0.0 }
 0x973   : > { %3662 = vadd.xlane.f32.xlu0 %v3661_v45 }
 0x975   : > { %v16068_v46 = vpop.eup %16067 }
 0x976   : > { %v16070_v47 = vpop.eup %16069  ;;  %v3664_v48 = vsel %vm3642_vm15, %v16068_v46, 0.0 }
 0x977   : > { %3665 = vadd.xlane.f32.xlu0 %v3664_v48  ;;  %v3667_v49 = vsel %vm3642_vm15, %v16070_v47, 0.0 }
 0x978   : > { %3668 = vadd.xlane.f32.xlu1 %v3667_v49 }
 0x989   : > { %4064 = vrot.lane.b32.xlu1 %v17420_v50, %s19999_s25 }
 0x98d   : > { %4060 = vrot.lane.b32.xlu1 %v17422_v51, %s19999_s25  ;;  %4066 = vrot.lane.b32.xlu0 %v17412_v36, %s19999_s25 }
 0x991   : > { %4062 = vrot.lane.b32.xlu1 %v17434_v54, %s19999_s25 }
 0x9ac   : > { %3887 = vmax.xlane.f32.xlu0 %v3886_v55 }
 0x9b0   : > { %3893 = vmax.xlane.f32.xlu0 %v3892_v60 }
 0x9b5   : > { %3890 = vmax.xlane.f32.xlu1 %v3889_v62 }
 0x9fc   : > { %v3663_v2 = vpop.xlane.xlu0 %3662 }
 0x9fd   : > { %16071 = vrcp.f32 %v3663_v2 }
 0xa00   : > { %v3666_v4 = vpop.xlane.xlu0 %3665 }
 0xa01   : > { %v3669_v5 = vpop.xlane.xlu1 %3668  ;;  %16073 = vrcp.f32 %v3666_v4 }
 0xa02   : > { %16075 = vrcp.f32 %v3669_v5 }
 0xa04   : > { %v4067_v6 = vpop.permute.xlu0 %4066 }
 0xa05   : > { %v4065_v21 = vpop.permute.xlu1 %4064  ;;  %15235 = vmatprep.subr.msk.bf16.mxu0 %vm3581_vm13, %v4067_v6  ;;  %v4078_v7 = vsel %vm3581_vm13, %v4067_v6, 0 }
 0xa06   : > { %14676 = vmatpush3.bf16.xpose.msra.mxu0 %v4078_v7  ;;  %v4075_v12 = vsel %vm3581_vm13, %v4065_v21, 0 }
 0xa07   : > { %15236 = vmatprep.subr.msk.bf16.mxu0 %vm3581_vm13, %v4065_v21 }
 0xa09   : > { %v4061_v10 = vpop.permute.xlu1 %4060 }
 0xa0a   : > { %14679 = vmatprep.mubr.msk.bf16.mxu0 %vm3581_vm13, %v4061_v10  ;;  %v16072_v11 = vpop.eup %16071 }
 0xa0b   : > { %v3673_v17 = vmul.f32 %v16072_v11, %v16066_v44 }
 0xa0d   : > { %v4063_v26 = vpop.permute.xlu1 %4062 }
 0xa0e   : > { %v16074_v13 = vpop.eup %16073  ;;  %14678 = vmatpush3.bf16.xpose.msra.mxu0 %v4075_v12 }
 0xa0f   : > { %v16076_v16 = vpop.eup %16075  ;;  %v3674_v18 = vmul.f32 %v16074_v13, %v16068_v46 }
 0xa10   : > { %v3675_v23 = vmul.f32 %v16076_v16, %v16070_v47 }
 0xa11   : > { %v3676_v43 = vpack.c.bf16 %v3674_v18, %v3673_v17 }
 0xa12   : > { %v3677_v24 = vpack.c.bf16 %v3675_v23, %v3675_v23 }
 0xa13   : > { %14639 = vmatprep.mubr.msk.bf16.mxu1 %vm3642_vm15, %v3676_v43 }
 0xa14   : > { %14640 = vmatmul.mubr.msk.bf16.vlgmr.msra.gmra.mxu1 %vm3642_vm15, %v3677_v24 }
 0xa15   : > { %14680 = vmatmul.mubr.msk.bf16.vlgmr.msra.gmra.mxu0 %vm3581_vm13, %v4063_v26  ;;  %14644 = vmatpush3.bf16.msra.mxu1 %v15617_v41 }
 0xa16   : > { %14645 = vmatprep.subr.bf16.mxu1 %v15618_v42 }
 0xa19   : > { %14646 = vmatpush3.bf16.msra.mxu1 %v15618_v42 }
 0xa35   : > { %v3888_v27 = vpop.xlane.xlu0 %3887 }
 0xa36   : > { %v3895_v58 = vsub.f32 %v3873_v52, %v3888_v27 }
 0xa38   : > { %v3898_v25 = vmul.f32 1.442695, %v3895_v58 }
 0xa39   : > { %v3894_v28 = vpop.xlane.xlu0 %3893 }
 0xa3a   : > { %16077 = vpow2.f32 %v3898_v25  ;;  %v3897_v30 = vsub.f32 %v3881_v53, %v3894_v28  ;;  %v15619_v25 = vld [vmem:[%s19991_s8 + $0xe4] sm:$0xff]   ;;  %v15620_v28 = vld [vmem:[%s19991_s8 + $0xdc] sm:$0xff]  }
 0xa3c   : > { %v3902_v31 = vmul.f32 1.442695, %v3897_v30 }
 0xa3e   : > { %16079 = vpow2.f32 %v3902_v31  ;;  %v3891_v33 = vpop.xlane.xlu1 %3890 }
 0xa3f   : > { %v3896_v34 = vsub.f32 %v3876_v61, %v3891_v33 }
 0xa41   : > { %v3900_v37 = vmul.f32 1.442695, %v3896_v34 }
 0xa43   : > { %16081 = vpow2.f32 %v3900_v37 }
 0xa47   : > { %v17495_v29 = vpop.eup %16077 }
 0xa48   : > { %v3904_v35 = vsel %vm3642_vm15, %v17495_v29, 0.0 }
 0xa49   : > { %3905 = vadd.xlane.f32.xlu0 %v3904_v35 }
 0xa4b   : > { %v17499_v38 = vpop.eup %16079 }
 0xa4c   : > { %v3910_v39 = vsel %vm3642_vm15, %v17499_v38, 0.0 }
 0xa4d   : > { %3911 = vadd.xlane.f32.xlu1 %v3910_v39 }
 0xa50   : > { %v17503_v32 = vpop.eup %16081 }
 0xa51   : > { %v3907_v40 = vsel %vm3642_vm15, %v17503_v32, 0.0 }
 0xa52   : > { %3908 = vadd.xlane.f32.xlu0 %v3907_v40 }
 0xa5e   : > { %3923 = vrot.lane.b32.xlu1 %v17450_v8, %s16434_s22 }
 0xa62   : > { %4306 = vrot.lane.b32.xlu1 %v17412_v36, %s19997_s14 }
 0xa66   : > { %4304 = vrot.lane.b32.xlu1 %v17420_v50, %s19997_s14 }
 0xa68   : > { %3925 = vrot.lane.b32.xlu0 %v17444_v3, %s16434_s22 }
 0xa6a   : > { %4302 = vrot.lane.b32.xlu1 %v17434_v54, %s19997_s14 }
 0xa6c   : > { %4300 = vrot.lane.b32.xlu0 %v17422_v51, %s19997_s14 }
 0xad2   : > { %v3906_v48 = vpop.xlane.xlu0 %3905 }
 0xad4   : > { %v14641_v44 = vpop.f32.mrf.mxu1 }
 0xad5   : > { %v14681_v45 = vpop.f32.mrf.mxu0  ;;  %v3736_v62 = vpack.c.bf16 %v14641_v44, %v14641_v44 }
 0xad6   : > { %v3721_v46 = vpop.f32.mrf.mxu1  ;;  %v3912_v47 = vpop.xlane.xlu1 %3911  ;;  %v4123_v53 = vadd.f32 %v14681_v45, %v17462_v19 }
 0xad7   : > { %v4114_v49 = vpop.f32.mrf.mxu0  ;;  %16083 = vrcp.f32 %v3912_v47 }
 0xad8   : > { %v4115_v36 = vadd.f32 %v4114_v49, %v17462_v19  ;;  %v14642_v52 = vpop.f32.mrf.mxu1  ;;  %16085 = vrcp.f32 %v3906_v48  ;;  %v4134_v5 = vsel %vm3642_vm15, %v4123_v53, -inf }
 0xad9   : > { %v14682_v50 = vpop.f32.mrf.mxu0 }
 0xada   : > { %v3724_v55 = vpop.f32.mrf.mxu1  ;;  %v3924_v59 = vpop.permute.xlu1 %3923  ;;  %v4128_v54 = vsel %vm3642_vm15, %v4115_v36, -inf }
 0xadb   : > { %v3735_v60 = vpack.c.bf16 %v3724_v55, %v3721_v46  ;;  %v3909_v51 = vpop.xlane.xlu0 %3908  ;;  %v4117_v61 = vpop.f32.mrf.mxu0  ;;  %4129 = vmax.xlane.f32.xlu0 %v4128_v54 }
 0xadc   : > { %16087 = vrcp.f32 %v3909_v51  ;;  %v4118_v2 = vadd.f32 %v4117_v61, %v17462_v19 }
 0xadd   : > { %14647 = vmatprep.mubr.msk.bf16.mxu1 %vm3581_vm13, %v3735_v60 }
 0xade   : > { %14648 = vmatmul.mubr.msk.bf16.vlgmr.msra.gmra.mxu1 %vm3581_vm13, %v3736_v62  ;;  %v4307_v4 = vpop.permute.xlu1 %4306  ;;  %v4131_v6 = vsel %vm3642_vm15, %v4118_v2, -inf }
 0xadf   : > { %v3926_v21 = vpop.permute.xlu0 %3925  ;;  %4135 = vmax.xlane.f32.xlu0 %v4134_v5  ;;  %4132 = vmax.xlane.f32.xlu1 %v4131_v6  ;;  %v4318_v7 = vsel %vm3581_vm13, %v4307_v4, 0 }
 0xae0   : > { %15234 = vmatprep.subr.msk.bf16.mxu1 %vm2751_vm8, %v3926_v21  ;;  %15238 = vmatprep.subr.msk.bf16.mxu0 %vm3581_vm13, %v4307_v4  ;;  %v3935_v10 = vsel %vm2751_vm8, %v3926_v21, 0 }
 0xae1   : > { %14660 = vmatpush3.bf16.msra.mxu1 %v3935_v10  ;;  %14700 = vmatpush3.bf16.xpose.msra.mxu0 %v4318_v7 }
 0xae2   : > { %14661 = vmatprep.subr.bf16.mxu1 %v3924_v59  ;;  %v4305_v11 = vpop.permute.xlu1 %4304 }
 0xae3   : > { %v4301_v12 = vpop.permute.xlu0 %4300  ;;  %15239 = vmatprep.subr.msk.bf16.mxu0 %vm3581_vm13, %v4305_v11  ;;  %v4315_v17 = vsel %vm3581_vm13, %v4305_v11, 0 }
 0xae4   : > { %14703 = vmatprep.mubr.msk.bf16.mxu0 %vm3581_vm13, %v4301_v12  ;;  %v16084_v13 = vpop.eup %16083 }
 0xae5   : > { %14662 = vmatpush3.bf16.msra.mxu1 %v3924_v59  ;;  %v16086_v16 = vpop.eup %16085  ;;  %v3918_v23 = vmul.f32 %v16084_v13, %v17499_v38 }
 0xae6   : > { %v3916_v43 = vmul.f32 %v16086_v16, %v17495_v29  ;;  %v4303_v58 = vpop.permute.xlu1 %4302  ;;  %14667 = vmatprep.subr.bf16.mxu1 %v15619_v25 }
 0xae7   : > { %v3920_v27 = vpack.c.bf16 %v3918_v23, %v3918_v23 }
 0xae9   : > { %v16088_v18 = vpop.eup %16087  ;;  %14702 = vmatpush3.bf16.xpose.msra.mxu0 %v4315_v17 }
 0xaea   : > { %v3917_v24 = vmul.f32 %v16088_v18, %v17503_v32 }
 0xaec   : > { %v3919_v26 = vpack.c.bf16 %v3917_v24, %v3916_v43 }
 0xaee   : > { %14663 = vmatprep.mubr.msk.bf16.mxu1 %vm3642_vm15, %v3919_v26 }
 0xaef   : > { %14664 = vmatmul.mubr.msk.bf16.vlgmr.msra.gmra.mxu1 %vm3642_vm15, %v3920_v27 }
 0xaf0   : > { %14704 = vmatmul.mubr.msk.bf16.vlgmr.msra.gmra.mxu0 %vm3581_vm13, %v4303_v58  ;;  %14668 = vmatpush3.bf16.msra.mxu1 %v15619_v25 }
 0xaf1   : > { %4838 = vmatprep.mubr.bf16.mxu0 %v16430_v20  ;;  %14669 = vmatprep.subr.bf16.mxu1 %v15620_v28 }
 0xaf4   : > { %14670 = vmatpush3.bf16.msra.mxu1 %v15620_v28 }
 0xb64   : > { %v4130_v30 = vpop.xlane.xlu0 %4129 }
 0xb65   : > { %v4137_v31 = vsub.f32 %v4115_v36, %v4130_v30 }
 0xb67   : > { %v4140_v33 = vmul.f32 1.442695, %v4137_v31 }
 0xb68   : > { %v4133_v34 = vpop.xlane.xlu1 %4132  ;;  %v4136_v37 = vpop.xlane.xlu0 %4135 }
 0xb69   : > { %16089 = vpow2.f32 %v4140_v33  ;;  %v4138_v29 = vsub.f32 %v4118_v2, %v4133_v34  ;;  %v4139_v35 = vsub.f32 %v4123_v53, %v4136_v37 }
 0xb6b   : > { %v4142_v38 = vmul.f32 1.442695, %v4138_v29  ;;  %v4144_v39 = vmul.f32 1.442695, %v4139_v35 }
 0xb6d   : > { %16091 = vpow2.f32 %v4142_v38 }
 0xb6e   : > { %16093 = vpow2.f32 %v4144_v39 }
 0xb76   : > { %v16090_v32 = vpop.eup %16089 }
 0xb77   : > { %v4146_v40 = vsel %vm3642_vm15, %v16090_v32, 0.0 }
 0xb78   : > { %4147 = vadd.xlane.f32.xlu0 %v4146_v40 }
 0xb7a   : > { %v16092_v41 = vpop.eup %16091 }
 0xb7b   : > { %v16094_v42 = vpop.eup %16093  ;;  %v4149_v44 = vsel %vm3642_vm15, %v16092_v41, 0.0 }
 0xb7c   : > { %4150 = vadd.xlane.f32.xlu0 %v4149_v44  ;;  %v4152_v45 = vsel %vm3642_vm15, %v16094_v42, 0.0 }
 0xb7d   : > { %4153 = vadd.xlane.f32.xlu1 %v4152_v45  ;;  %v15622_v45 = vld [vmem:[%s19991_s8 + $0xec] sm:$0xff]  }
 0xb8e   : > { %4163 = vrot.lane.b32.xlu1 %v17450_v8, %s19999_s25 }
 0xb92   : > { %4165 = vrot.lane.b32.xlu0 %v17444_v3, %s19999_s25 }
 0xb9e   : > { %v17560_v46 = vpop.f32.mrf.mxu1 }
 0xba0   : > { %v17562_v47 = vpop.f32.mrf.mxu1 }
 0xba2   : > { %v14650_v48 = vpop.f32.mrf.mxu1 }
 0xba3   : > { %v12912_v48 = vld [vmem:[%s19991_s8 + $0x10c] sm:$0x1] }
 0xba4   : > { %v17564_v49 = vpop.f32.mrf.mxu1 }
 0xbaf   : > { %v14665_v36 = vpop.f32.mrf.mxu1 }
 0xbb0   : > { %v14705_v52 = vpop.f32.mrf.mxu0  ;;  %v3986_v2 = vpack.c.bf16 %v14665_v36, %v14665_v36  ;;  %v3571_v36 = vunpack.c.l.bf16 %v12912_v48 }
 0xbb1   : > { %v3971_v50 = vpop.f32.mrf.mxu1  ;;  %v4363_v5 = vadd.f32 %v14705_v52, %v17462_v19 }
 0xbb2   : > { %v4354_v53 = vpop.f32.mrf.mxu0  ;;  %v3810_v52 = vrot.slane %v3571_v36, %v17370_v56 }
 0xbb3   : > { %v4355_v55 = vadd.f32 %v4354_v53, %v17462_v19  ;;  %v14666_v59 = vpop.f32.mrf.mxu1  ;;  %v4374_v21 = vsel %vm3642_vm15, %v4363_v5, -inf }
 0xbb4   : > { %v14706_v54 = vpop.f32.mrf.mxu0 }
 0xbb5   : > { %v3974_v60 = vpop.f32.mrf.mxu1  ;;  %v4368_v51 = vsel %vm3642_vm15, %v4355_v55, -inf }
 0xbb6   : > { %v3985_v61 = vpack.c.bf16 %v3974_v60, %v3971_v50  ;;  %v4357_v62 = vpop.f32.mrf.mxu0  ;;  %4369 = vmax.xlane.f32.xlu1 %v4368_v51  ;;  %v3813_v50 = vadd.f32 %v17560_v46, %v3810_v52 }
 0xbb7   : > { %v4358_v4 = vadd.f32 %v4357_v62, %v17462_v19 }
 0xbb8   : > { %14671 = vmatprep.mubr.msk.bf16.mxu1 %vm3581_vm13, %v3985_v61 }
 0xbb9   : > { %14672 = vmatmul.mubr.msk.bf16.vlgmr.msra.gmra.mxu1 %vm3581_vm13, %v3986_v2  ;;  %v4371_v6 = vsel %vm3642_vm15, %v4358_v4, -inf }
 0xbba   : > { %4372 = vmax.xlane.f32.xlu0 %v4371_v6 }
 0xbbe   : > { %4375 = vmax.xlane.f32.xlu0 %v4374_v21 }
 0xc01   : > { %v4148_v7 = vpop.xlane.xlu0 %4147 }
 0xc02   : > { %16095 = vrcp.f32 %v4148_v7 }
 0xc05   : > { %v4151_v10 = vpop.xlane.xlu0 %4150 }
 0xc06   : > { %v4154_v11 = vpop.xlane.xlu1 %4153  ;;  %16097 = vrcp.f32 %v4151_v10 }
 0xc07   : > { %16099 = vrcp.f32 %v4154_v11 }
 0xc09   : > { %v4166_v12 = vpop.permute.xlu0 %4165 }
 0xc0a   : > { %15237 = vmatprep.subr.msk.bf16.mxu1 %vm2751_vm8, %v4166_v12  ;;  %v4175_v13 = vsel %vm2751_vm8, %v4166_v12, 0  ;;  %v4164_v16 = vpop.permute.xlu1 %4163 }
 0xc0b   : > { %14684 = vmatpush3.bf16.msra.mxu1 %v4175_v13 }
 0xc0c   : > { %14685 = vmatprep.subr.bf16.mxu1 %v4164_v16 }
 0xc0f   : > { %14686 = vmatpush3.bf16.msra.mxu1 %v4164_v16  ;;  %v16096_v17 = vpop.eup %16095 }
 0xc10   : > { %v4158_v43 = vmul.f32 %v16096_v17, %v16090_v32 }
 0xc13   : > { %v16098_v18 = vpop.eup %16097 }
 0xc14   : > { %v16100_v23 = vpop.eup %16099  ;;  %v4159_v24 = vmul.f32 %v16098_v18, %v16092_v41  ;;  %v15621_v41 = vld [vmem:[%s19991_s8 + $0xf4] sm:$0xff]  }
 0xc15   : > { %v4160_v26 = vmul.f32 %v16100_v23, %v16094_v42  ;;  %14691 = vmatprep.subr.bf16.mxu1 %v15621_v41 }
 0xc16   : > { %v4161_v27 = vpack.c.bf16 %v4159_v24, %v4158_v43  ;;  %v15623_v24 = vld [vmem:[%s19991_s8 + $0x104] sm:$0xff]  }
 0xc17   : > { %v4162_v58 = vpack.c.bf16 %v4160_v26, %v4160_v26  ;;  %v15624_v26 = vld [vmem:[%s19991_s8 + $0xfc] sm:$0xff]  }
 0xc18   : > { %14687 = vmatprep.mubr.msk.bf16.mxu1 %vm3642_vm15, %v4161_v27 }
 0xc19   : > { %14688 = vmatmul.mubr.msk.bf16.vlgmr.msra.gmra.mxu1 %vm3642_vm15, %v4162_v58 }
 0xc1a   : > { %14692 = vmatpush3.bf16.msra.mxu1 %v15621_v41 }
 0xc1b   : > { %14693 = vmatprep.subr.bf16.mxu1 %v15622_v45 }
 0xc1e   : > { %14694 = vmatpush3.bf16.msra.mxu1 %v15622_v45 }
 0xc3f   : > { %v4370_v25 = vpop.xlane.xlu1 %4369 }
 0xc40   : > { %v4377_v31 = vsub.f32 %v4355_v55, %v4370_v25  ;;  %v3811_v55 = vadd.f32 %v3810_v52, %v17562_v47 }
 0xc42   : > { %v4380_v29 = vmul.f32 1.442695, %v4377_v31 }
 0xc43   : > { %v4373_v28 = vpop.xlane.xlu0 %4372 }
 0xc44   : > { %v4378_v30 = vsub.f32 %v4358_v4, %v4373_v28 }
 0xc46   : > { %v4382_v33 = vmul.f32 1.442695, %v4378_v30 }
 0xc47   : > { %v4376_v34 = vpop.xlane.xlu0 %4375 }
 0xc48   : > { %16101 = vpow2.f32 %v4382_v33  ;;  %v4379_v37 = vsub.f32 %v4363_v5, %v4376_v34 }
 0xc4a   : > { %v4384_v35 = vmul.f32 1.442695, %v4379_v37 }
 0xc4c   : > { %16103 = vpow2.f32 %v4384_v35 }
 0xc4d   : > { %16105 = vpow2.f32 %v4380_v29 }
 0xc55   : > { %v16102_v38 = vpop.eup %16101 }
 0xc56   : > { %v4389_v39 = vsel %vm3642_vm15, %v16102_v38, 0.0 }
 0xc57   : > { %4390 = vadd.xlane.f32.xlu0 %v4389_v39 }
 0xc59   : > { %v16104_v32 = vpop.eup %16103 }
 0xc5a   : > { %v4392_v40 = vsel %vm3642_vm15, %v16104_v32, 0.0  ;;  %v16106_v42 = vpop.eup %16105 }
 0xc5b   : > { %4393 = vadd.xlane.f32.xlu1 %v4392_v40  ;;  %v4386_v44 = vsel %vm3642_vm15, %v16106_v42, 0.0 }
 0xc5f   : > { %4387 = vadd.xlane.f32.xlu1 %v4386_v44 }
 0xc6d   : > { %4405 = vrot.lane.b32.xlu0 %v17444_v3, %s19997_s14 }
 0xc70   : > { %4403 = vrot.lane.b32.xlu1 %v17450_v8, %s19997_s14 }
 0xc79   : > { %v14673_v53 = vpop.f32.mrf.mxu1 }
 0xc7a   : > { %v4059_v59 = vadd.f32 %v14673_v53, %v3813_v50 }
 0xc7b   : > { %v4043_v54 = vpop.f32.mrf.mxu1 }
 0xc7c   : > { %v4057_v60 = vadd.f32 %v4043_v54, %v3811_v55 }
 0xc7d   : > { %v14674_v51 = vpop.f32.mrf.mxu1 }
 0xc7f   : > { %v4046_v61 = vpop.f32.mrf.mxu1 }
 0xcd9   : > { %v14689_v62 = vpop.f32.mrf.mxu1 }
 0xcda   : > { %v4226_v21 = vpack.c.bf16 %v14689_v62, %v14689_v62 }
 0xcdb   : > { %v4211_v2 = vpop.f32.mrf.mxu1 }
 0xcdd   : > { %v14690_v4 = vpop.f32.mrf.mxu1 }
 0xcdf   : > { %v4214_v3 = vpop.f32.mrf.mxu1 }
 0xce0   : > { %v4225_v5 = vpack.c.bf16 %v4214_v3, %v4211_v2  ;;  %v4391_v6 = vpop.xlane.xlu0 %4390 }
 0xce2   : > { %14695 = vmatprep.mubr.msk.bf16.mxu1 %vm3581_vm13, %v4225_v5 }
 0xce3   : > { %14696 = vmatmul.mubr.msk.bf16.vlgmr.msra.gmra.mxu1 %vm3581_vm13, %v4226_v21 }
 0xce4   : > { %v4394_v8 = vpop.xlane.xlu1 %4393  ;;  %v4406_v46 = vpop.permute.xlu0 %4405 }
 0xce5   : > { %15240 = vmatprep.subr.msk.bf16.mxu1 %vm2751_vm8, %v4406_v46  ;;  %v4415_v47 = vsel %vm2751_vm8, %v4406_v46, 0  ;;  %16107 = vrcp.f32 %v4394_v8  ;;  %v15633_v8 = vld [vmem:[%s19992_s9 + $0xc4] ss:$16 sps:$4 sm:$0xff]   ;;  %v15636_v46 = vld [vmem:[%s19992_s9 + $0xcc] ss:$16 sps:$4 sm:$0xff]  }
 0xce6   : > { %14708 = vmatpush3.bf16.msra.mxu1 %v4415_v47  ;;  %16109 = vrcp.f32 %v4391_v6  ;;  %v15631_v47 = vld [vmem:[%s19992_s9 + $0xc0] ss:$16 sps:$4 sm:$0xff]  }
 0xce8   : > { %v4388_v7 = vpop.xlane.xlu1 %4387 }
 0xce9   : > { %16111 = vrcp.f32 %v4388_v7  ;;  %v15634_v7 = vld [vmem:[%s19992_s9 + $0xc8] ss:$16 sps:$4 sm:$0xff]  }
 0xcec   : > { %v4404_v10 = vpop.permute.xlu1 %4403 }
 0xced   : > { %14709 = vmatprep.subr.bf16.mxu1 %v4404_v10 }
 0xcee   : > { %14710 = vmatpush3.bf16.msra.mxu1 %v4404_v10  ;;  %v15639_v10 = vld [vmem:[%s19992_s9 + $0xa4] ss:$16 sps:$4 sm:$0xff]  }
 0xcef   : > { %14715 = vmatprep.subr.bf16.mxu1 %v15623_v24 }
 0xcf2   : > { %v16108_v11 = vpop.eup %16107 }
 0xcf3   : > { %v16110_v12 = vpop.eup %16109  ;;  %v4400_v16 = vmul.f32 %v16108_v11, %v16104_v32  ;;  %v3812_v32 = vadd.f32 %v3810_v52, %v17564_v49  ;;  %v15627_v52 = vld [vmem:[%s19992_s9 + $0xe4] ss:$16 sps:$4 sm:$0xff]   ;;  %v15642_v11 = vld [vmem:[%s19992_s9 + $0xac] ss:$16 sps:$4 sm:$0xff]  }
 0xcf4   : > { %v4399_v18 = vmul.f32 %v16110_v12, %v16102_v38  ;;  %4806 = vmatprep.subr.bf16.mxu0 %v15627_v52  ;;  %v15637_v12 = vld [vmem:[%s19992_s9 + $0xa0] ss:$16 sps:$4 sm:$0xff]  }
 0xcf5   : > { %v4402_v43 = vpack.c.bf16 %v4400_v16, %v4400_v16  ;;  %v4058_v41 = vadd.f32 %v4046_v61, %v3812_v32  ;;  %v15645_v16 = vld [vmem:[%s19992_s9 + $0x84] ss:$16 sps:$4 sm:$0xff]  }
 0xcf6   : > { %v16112_v13 = vpop.eup %16111 }
 0xcf7   : > { %v4398_v17 = vmul.f32 %v16112_v13, %v16106_v42  ;;  %v15640_v13 = vld [vmem:[%s19992_s9 + $0xa8] ss:$16 sps:$4 sm:$0xff]  }
 0xcf9   : > { %v4401_v23 = vpack.c.bf16 %v4399_v18, %v4398_v17  ;;  %v15648_v17 = vld [vmem:[%s19992_s9 + $0x8c] ss:$16 sps:$4 sm:$0xff]   ;;  %v15643_v18 = vld [vmem:[%s19992_s9 + $0x80] ss:$16 sps:$4 sm:$0xff]  }
 0xcfb   : > { %14711 = vmatprep.mubr.msk.bf16.mxu1 %vm3642_vm15, %v4401_v23  ;;  %v15646_v23 = vld [vmem:[%s19992_s9 + $0x88] ss:$16 sps:$4 sm:$0xff]  }
 0xcfc   : > { %14712 = vmatmul.mubr.msk.bf16.vlgmr.msra.gmra.mxu1 %vm3642_vm15, %v4402_v43  ;;  %v15649_v43 = vld [vmem:[%s19992_s9 + $0x60] ss:$16 sps:$4 sm:$0xff]  }
 0xcfd   : > { %14716 = vmatpush3.bf16.msra.mxu1 %v15623_v24  ;;  %v15651_v24 = vld [vmem:[%s19992_s9 + $0x64] ss:$16 sps:$4 sm:$0xff]  }
 0xcfe   : > { %14717 = vmatprep.subr.bf16.mxu1 %v15624_v26 }
 0xd01   : > { %14718 = vmatpush3.bf16.msra.mxu1 %v15624_v26  ;;  %v15652_v26 = vld [vmem:[%s19992_s9 + $0x68] ss:$16 sps:$4 sm:$0xff]  }
 0xda3   : > { %v14697_v27 = vpop.f32.mrf.mxu1 }
 0xda4   : > { %v4299_v58 = vadd.f32 %v14697_v27, %v4059_v59  ;;  %v15630_v59 = vld [vmem:[%s19992_s9 + $0xec] ss:$16 sps:$4 sm:$0xff]  }
 0xda5   : > { %v4283_v25 = vpop.f32.mrf.mxu1  ;;  %4857 = vmatprep.subr.bf16.mxu1 %v15630_v59  ;;  %v15654_v27 = vld [vmem:[%s19992_s9 + $0x6c] ss:$16 sps:$4 sm:$0xff]   ;;  %v16403_v59 = vld [vmem:[%s19990_s7] sm:$0xf] }
 0xda6   : > { %v4297_v28 = vadd.f32 %v4283_v25, %v4057_v60  ;;  %v15660_v25 = vld [vmem:[%s19992_s9 + $0x4c] ss:$16 sps:$4 sm:$0xff]  }
 0xda7   : > { %v14698_v30 = vpop.f32.mrf.mxu1 }
 0xda8   : > { %v15658_v30 = vld [vmem:[%s19992_s9 + $0x48] ss:$16 sps:$4 sm:$0xff]  }
 0xda9   : > { %v4286_v31 = vpop.f32.mrf.mxu1 }
 0xdaa   : > { %v4298_v45 = vadd.f32 %v4286_v31, %v4058_v41  ;;  %v15663_v31 = vld [vmem:[%s19992_s9 + $0x24] ss:$16 sps:$4 sm:$0xff]  }
 0xdbc   : > { %v14713_v33 = vpop.f32.mrf.mxu1 }
 0xdbd   : > { %v4466_v38 = vpack.c.bf16 %v14713_v33, %v14713_v33  ;;  %v15666_v33 = vld [vmem:[%s19992_s9 + $0x2c] ss:$16 sps:$4 sm:$0xff]  }
 0xdbe   : > { %v4451_v34 = vpop.f32.mrf.mxu1 }
 0xdc0   : > { %v14714_v37 = vpop.f32.mrf.mxu1 }
 0xdc1   : > { %v15664_v37 = vld [vmem:[%s19992_s9 + $0x28] ss:$16 sps:$4 sm:$0xff]  }
 0xdc2   : > { %v4454_v29 = vpop.f32.mrf.mxu1 }
 0xdc3   : > { %v4465_v35 = vpack.c.bf16 %v4454_v29, %v4451_v34  ;;  %v15661_v34 = vld [vmem:[%s19992_s9 + $0x20] ss:$16 sps:$4 sm:$0xff]   ;;  %v15669_v29 = vld [vmem:[%s19992_s9 + $0x4] ss:$16 sps:$4 sm:$0xff]  }
 0xdc5   : > { %14719 = vmatprep.mubr.msk.bf16.mxu1 %vm3581_vm13, %v4465_v35  ;;  %v15672_v35 = vld [vmem:[%s19992_s9 + $0xc] ss:$16 sps:$4 sm:$0xff]  }
 0xdc6   : > { %14720 = vmatmul.mubr.msk.bf16.vlgmr.msra.gmra.mxu1 %vm3581_vm13, %v4466_v38  ;;  %v15667_v38 = vld [vmem:[%s19992_s9] ss:$16 sps:$4 sm:$0xff]  }
 0xdc7   : > { %4889 = vmatprep.mubr.bf16.mxu1 %v16430_v20 }
 0xe86   : > { %v14721_v39 = vpop.f32.mrf.mxu1 }
 0xe87   : > { %v4539_v53 = vadd.f32 %v14721_v39, %v4299_v58  ;;  %v15657_v58 = vld [vmem:[%s19992_s9 + $0x44] ss:$16 sps:$4 sm:$0xff]   ;;  %v15670_v39 = vld [vmem:[%s19992_s9 + $0x8] ss:$16 sps:$4 sm:$0xff]  }
 0xe88   : > { %v4523_v40 = vpop.f32.mrf.mxu1 }
 0xe89   : > { %v4537_v42 = vadd.f32 %v4523_v40, %v4297_v28  ;;  %v17622_v49 = vadd.f32 %v4539_v53, %v17297_v14  ;;  %v15655_v28 = vld [vmem:[%s19992_s9 + $0x40] ss:$16 sps:$4 sm:$0xff]  }
 0xe8a   : > { %v14722_v44 = vpop.f32.mrf.mxu1 }
 0xe8b   : > { %v17614_v48 = vadd.f32 %v4537_v42, %v17294_v9  ;;  %v15625_v9 = vld [vmem:[%s19992_s9 + $0xe0] ss:$16 sps:$4 sm:$0xff]  }
 0xe8c   : > { %v4526_v36 = vpop.f32.mrf.mxu1  ;;  %4807 = vmatpush1.bf16.msra.mxu0 %v15625_v9  ;;  %v17737_v9 = vsub.s32 2, %v17248_v63 }
 0xe8d   : > { %v4538_v50 = vadd.f32 %v4526_v36, %v4298_v45  ;;  %4543 = vadd.xlane.f32.xlu1 %v17614_v48  ;;  %4808 = vmatprep.subr.bf16.mxu0 %v15633_v8 }
 0xe8f   : > { %v17618_v55 = vadd.f32 %v4538_v50, %v17299_v15  ;;  %v15628_v15 = vld [vmem:[%s19992_s9 + $0xe8] ss:$16 sps:$4 sm:$0xff]  }
 0xe90   : > { %4858 = vmatpush1.bf16.msra.mxu1 %v15628_v15  ;;  %4809 = vmatpush1.bf16.msra.mxu0 %v15631_v47 }
 0xe91   : > { %4545 = vadd.xlane.f32.xlu0 %v17618_v55  ;;  %4859 = vmatprep.subr.bf16.mxu1 %v15636_v46 }
 0xe92   : > { %4810 = vmatprep.subr.bf16.mxu0 %v15639_v10 }
 0xe94   : > { %4860 = vmatpush1.bf16.msra.mxu1 %v15634_v7  ;;  %4811 = vmatpush1.bf16.msra.mxu0 %v15637_v12  ;;  %v15676_v12 = vld [vmem:[%s19993_s10 + $0xb8] sm:$0xff]  }
 0xe95   : > { %4547 = vadd.xlane.f32.xlu0 %v17622_v49  ;;  %4861 = vmatprep.subr.bf16.mxu1 %v15642_v11  ;;  %v15675_v11 = vld [vmem:[%s19993_s10 + $0x38] sm:$0xff]  }
 0xe96   : > { %4812 = vmatprep.subr.bf16.mxu0 %v15645_v16  ;;  %v15678_v16 = vld [vmem:[%s19993_s10 + $0xf0] sm:$0xff]  }
 0xe98   : > { %4862 = vmatpush1.bf16.msra.mxu1 %v15640_v13  ;;  %4813 = vmatpush1.bf16.msra.mxu0 %v15643_v18  ;;  %v15677_v13 = vld [vmem:[%s19993_s10 + $0x70] sm:$0xff]  }
 0xe99   : > { %4863 = vmatprep.subr.bf16.mxu1 %v15648_v17  ;;  %4814 = vmatprep.subr.bf16.mxu0 %v15651_v24  ;;  %v15679_v17 = vld [vmem:[%s19993_s10 + $0x30] sm:$0xff]   ;;  %v15683_v24 = vld [vmem:[%s19993_s10 + $0x28] sm:$0xff]  }
 0xe9a   : > { %v15680_v18 = vld [vmem:[%s19993_s10 + $0xb0] sm:$0xff]  }
 0xe9c   : > { %4864 = vmatpush1.bf16.msra.mxu1 %v15646_v23  ;;  %4815 = vmatpush1.bf16.msra.mxu0 %v15649_v43  ;;  %v15681_v23 = vld [vmem:[%s19993_s10 + $0x68] sm:$0xff]  }
 0xe9d   : > { %4865 = vmatprep.subr.bf16.mxu1 %v15654_v27  ;;  %4816 = vmatprep.subr.bf16.mxu0 %v15657_v58  ;;  %v15682_v43 = vld [vmem:[%s19993_s10 + $0xe8] sm:$0xff]   ;;  %v15685_v27 = vld [vmem:[%s19993_s10 + $0x60] sm:$0xff]  }
 0xe9e   : > { %v15686_v58 = vld [vmem:[%s19993_s10 + $0xe0] sm:$0xff]  }
 0xea0   : > { %4866 = vmatpush1.bf16.msra.mxu1 %v15652_v26  ;;  %4817 = vmatpush1.bf16.msra.mxu0 %v15655_v28  ;;  %v15684_v26 = vld [vmem:[%s19993_s10 + $0xa8] sm:$0xff]   ;;  %v15688_v28 = vld [vmem:[%s19993_s10 + $0xa0] sm:$0xff]  }
 0xea1   : > { %4867 = vmatprep.subr.bf16.mxu1 %v15660_v25  ;;  %4818 = vmatprep.subr.bf16.mxu0 %v15663_v31  ;;  %v15687_v25 = vld [vmem:[%s19993_s10 + $0x20] sm:$0xff]   ;;  %v15690_v31 = vld [vmem:[%s19993_s10 + $0xd8] sm:$0xff]  }
 0xea4   : > { %4868 = vmatpush1.bf16.msra.mxu1 %v15658_v30  ;;  %4819 = vmatpush1.bf16.msra.mxu0 %v15661_v34  ;;  %v15689_v30 = vld [vmem:[%s19993_s10 + $0x58] sm:$0xff]  }
 0xea5   : > { %4869 = vmatprep.subr.bf16.mxu1 %v15666_v33  ;;  %4820 = vmatprep.subr.bf16.mxu0 %v15669_v29  ;;  %v15691_v33 = vld [vmem:[%s19993_s10 + $0x18] sm:$0xff]   ;;  %v15694_v29 = vld [vmem:[%s19993_s10 + $0xd0] sm:$0xff]  }
 0xea6   : > { %v15692_v34 = vld [vmem:[%s19993_s10 + $0x98] sm:$0xff]  }
 0xea8   : > { %4870 = vmatpush1.bf16.msra.mxu1 %v15664_v37  ;;  %4821 = vmatpush1.bf16.msra.mxu0 %v15667_v38  ;;  %v15693_v37 = vld [vmem:[%s19993_s10 + $0x50] sm:$0xff]  }
 0xea9   : > { %4871 = vmatprep.subr.bf16.mxu1 %v15672_v35  ;;  %v15695_v35 = vld [vmem:[%s19993_s10 + $0x10] sm:$0xff]  }
 0xeaa   : > { %v15696_v38 = vld [vmem:[%s19993_s10 + $0x90] sm:$0xff]  }
 0xeac   : > { %4872 = vmatpush1.bf16.msra.mxu1 %v15670_v39  ;;  %v15697_v39 = vld [vmem:[%s19993_s10 + $0x48] sm:$0xff]  }
 0xf16   : > { %v4544_v14 = vpop.xlane.xlu1 %4543 }
 0xf17   : > { %v4549_v54 = vmul.f32 0.0078125, %v4544_v14  ;;  %v4579_v14 = vrot.slane %v16403_v59, %v17737_v9 }
 0xf19   : > { %v17638_v60 = vsub.f32 %v17614_v48, %v4549_v54  ;;  %v17745_v54 = vsub.s32 3, %v17248_v63 }
 0xf1a   : > { %v4546_v51 = vpop.xlane.xlu0 %4545 }
 0xf1b   : > { %v4550_v61 = vmul.f32 0.0078125, %v4546_v51  ;;  %v4555_v62 = vmul.f32 %v17638_v60, %v17638_v60 }
 0xf1d   : > { %4558 = vadd.xlane.f32.xlu1 %v4555_v62  ;;  %v17643_v2 = vsub.f32 %v17618_v55, %v4550_v61 }
 0xf1e   : > { %v4548_v4 = vpop.xlane.xlu0 %4547 }
 0xf1f   : > { %v4551_v3 = vmul.f32 0.0078125, %v4548_v4  ;;  %v4556_v5 = vmul.f32 %v17643_v2, %v17643_v2  ;;  %v4586_v4 = vrot.slane %v16403_v59, %v17745_v54 }
 0xf21   : > { %4560 = vadd.xlane.f32.xlu0 %v4556_v5  ;;  %v17648_v6 = vsub.f32 %v17622_v49, %v4551_v3 }
 0xf23   : > { %v4557_v21 = vmul.f32 %v17648_v6, %v17648_v6 }
 0xf25   : > { %4562 = vadd.xlane.f32.xlu1 %v4557_v21 }
 0xfa6   : > { %v4559_v32 = vpop.xlane.xlu1 %4558 }
 0xfa7   : > { %v4564_v40 = vmul.f32 0.0078125, %v4559_v32  ;;  %v15698_v32 = vld [vmem:[%s19993_s10 + $0xc8] sm:$0xff]  }
 0xfa9   : > { %v4567_v41 = vadd.f32 1e-05, %v4564_v40  ;;  %v15699_v40 = vld [vmem:[%s19993_s10 + $0x8] sm:$0xff]  }
 0xfaa   : > { %v4561_v42 = vpop.xlane.xlu0 %4560 }
 0xfab   : > { %16113 = vrsqrt.f32 %v4567_v41  ;;  %v4565_v44 = vmul.f32 0.0078125, %v4561_v42  ;;  %v15700_v41 = vld [vmem:[%s19993_s10 + $0x88] sm:$0xff]   ;;  %v15701_v42 = vld [vmem:[%s19993_s10 + $0x40] sm:$0xff]  }
 0xfad   : > { %v4568_v45 = vadd.f32 1e-05, %v4565_v44  ;;  %v15702_v44 = vld [vmem:[%s19993_s10 + $0xc0] sm:$0xff]  }
 0xfae   : > { %v4563_v36 = vpop.xlane.xlu1 %4562 }
 0xfaf   : > { %16115 = vrsqrt.f32 %v4568_v45  ;;  %v4566_v50 = vmul.f32 0.0078125, %v4563_v36  ;;  %v15703_v45 = vld [vmem:[%s19993_s10] sm:$0xff]  }
 0xfb0   : > { %v15704_v36 = vld [vmem:[%s19993_s10 + $0x80] sm:$0xff]  }
 0xfb1   : > { %v4569_v53 = vadd.f32 1e-05, %v4566_v50  ;;  %v4624_v50 = vld [vmem:[%s19992_s9 + $0x100] sm:$0x11] }
 0xfb2   : > { %v4627_v59 = vunpack.c.h.bf16 %v4624_v50 }
 0xfb3   : > { %16117 = vrsqrt.f32 %v4569_v53  ;;  %v4625_v53 = vld [vmem:[%s19992_s9 + $0x108] sm:$0x11] }
 0xfb8   : > { %v16114_v52 = vpop.eup %16113 }
 0xfb9   : > { %v4573_v15 = vmul.f32 %v16114_v52, %v17638_v60  ;;  %v4626_v52 = vunpack.c.l.bf16 %v4624_v50 }
 0xfbb   : > { %v4580_v62 = vmul.f32 %v4579_v14, %v4573_v15  ;;  %v4628_v15 = vunpack.c.l.bf16 %v4625_v53 }
 0xfbc   : > { %v16116_v51 = vpop.eup %16115 }
 0xfbd   : > { %v4574_v61 = vmul.f32 %v16116_v51, %v17643_v2  ;;  %v4587_v21 = vadd.f32 %v4586_v4, %v4580_v62  ;;  %v15673_v2 = vld [vmem:[%s19993_s10 + $0x78] sm:$0xff]   ;;  %v4633_v51 = vrot.slane %v4626_v52, %v17370_v56 }
 0xfbe   : > { %14027 = vmatprep.subr.bf16.mxu0 %v15673_v2 }
 0xfbf   : > { %v4581_v3 = vmul.f32 %v4579_v14, %v4574_v61  ;;  %v4641_v61 = vrot.slane %v4628_v15, %v17370_v56 }
 0xfc0   : > { %v16118_v5 = vpop.eup %16117 }
 0xfc1   : > { %v4588_v8 = vadd.f32 %v4586_v4, %v4581_v3  ;;  %v4575_v60 = vmul.f32 %v16118_v5, %v17648_v6  ;;  %v15674_v6 = vld [vmem:[%s19993_s10 + $0xf8] sm:$0xff]   ;;  %v4637_v3 = vrot.slane %v4627_v59, %v17370_v56 }
 0xfc2   : > { %14055 = vmatprep.subr.bf16.mxu1 %v15674_v6 }
 0xfc3   : > { %v4590_v46 = vpack.c.bf16 %v4588_v8, %v4587_v21  ;;  %v4582_v47 = vmul.f32 %v4579_v14, %v4575_v60  ;;  %v4629_v14 = vunpack.c.h.bf16 %v4625_v53 }
 0xfc5   : > { %4839 = vmatmul.mubr.bf16.vlgmr.msra.gmra.mxu0 %v4590_v46  ;;  %4890 = vmatmul.mubr.bf16.vlgmr.msra.gmra.mxu1 %v4590_v46  ;;  %v4589_v7 = vadd.f32 %v4586_v4, %v4582_v47  ;;  %v4645_v5 = vrot.slane %v4629_v14, %v17370_v56 }
 0xfc6   : > { %4848 = vmatprep.mubr.bf16.mxu0 %v16430_v20  ;;  %4899 = vmatprep.mubr.bf16.mxu1 %v16430_v20 }
 0xfc7   : > { %v4591_v10 = vpack.c.bf16 %v4589_v7, %v4589_v7  ;;  %14028 = vmatpush3.bf16.msra.mxu0 %v15675_v11  ;;  %14056 = vmatpush3.bf16.msra.mxu1 %v15676_v12 }
 0xfc8   : > { %14029 = vmatprep.subr.bf16.mxu0 %v15677_v13  ;;  %14057 = vmatprep.subr.bf16.mxu1 %v15678_v16 }
 0xfcb   : > { %14030 = vmatpush3.bf16.msra.mxu0 %v15679_v17  ;;  %14058 = vmatpush3.bf16.msra.mxu1 %v15680_v18 }
 0xfcc   : > { %14031 = vmatprep.subr.bf16.mxu0 %v15681_v23  ;;  %14059 = vmatprep.subr.bf16.mxu1 %v15682_v43 }
 0xfcd   : > { %4849 = vmatmul.mubr.bf16.gmra.mxu0 %v4591_v10  ;;  %4900 = vmatmul.mubr.bf16.gmra.mxu1 %v4591_v10 }
 0xfcf   : > { %14032 = vmatpush3.bf16.msra.mxu0 %v15683_v24  ;;  %14060 = vmatpush3.bf16.msra.mxu1 %v15684_v26 }
 0xfd0   : > { %14033 = vmatprep.subr.bf16.mxu0 %v15685_v27  ;;  %14061 = vmatprep.subr.bf16.mxu1 %v15686_v58 }
 0xfd3   : > { %14034 = vmatpush3.bf16.msra.mxu0 %v15687_v25  ;;  %14062 = vmatpush3.bf16.msra.mxu1 %v15688_v28 }
 0xfd4   : > { %14035 = vmatprep.subr.bf16.mxu0 %v15689_v30  ;;  %14063 = vmatprep.subr.bf16.mxu1 %v15690_v31 }
 0xfd7   : > { %14036 = vmatpush3.bf16.msra.mxu0 %v15691_v33  ;;  %14064 = vmatpush3.bf16.msra.mxu1 %v15692_v34 }
 0xfd8   : > { %14037 = vmatprep.subr.bf16.mxu0 %v15693_v37  ;;  %14065 = vmatprep.subr.bf16.mxu1 %v15694_v29 }
 0xfdb   : > { %14038 = vmatpush3.bf16.msra.mxu0 %v15695_v35  ;;  %14066 = vmatpush3.bf16.msra.mxu1 %v15696_v38 }
 0xfdc   : > { %14039 = vmatprep.subr.bf16.mxu0 %v15697_v39  ;;  %14067 = vmatprep.subr.bf16.mxu1 %v15698_v32 }
 0xfdf   : > { %14040 = vmatpush3.bf16.msra.mxu0 %v15699_v40  ;;  %14068 = vmatpush3.bf16.msra.mxu1 %v15700_v41 }
 0xfe0   : > { %14041 = vmatprep.subr.bf16.mxu0 %v15701_v42  ;;  %14069 = vmatprep.subr.bf16.mxu1 %v15702_v44 }
 0xfe3   : > { %14042 = vmatpush3.bf16.msra.mxu0 %v15703_v45  ;;  %14070 = vmatpush3.bf16.msra.mxu1 %v15704_v36 }
0x1085   : > { %v4840_v62 = vpop.f32.mrf.mxu0  ;;  %v4891_v4 = vpop.f32.mrf.mxu1 }
0x1086   : > { %v17858_v21 = vadd.f32 %v4840_v62, %v4633_v51  ;;  %v17860_v8 = vadd.f32 %v4891_v4, %v4641_v61 }
0x1087   : > { %v4842_v60 = vpop.f32.mrf.mxu0  ;;  %v4893_v46 = vpop.f32.mrf.mxu1 }
0x1088   : > { %v4920_v47 = vmul.f32 0.044715, %v17858_v21  ;;  %v4922_v7 = vmul.f32 0.044715, %v17860_v8  ;;  %v17864_v10 = vadd.f32 %v4842_v60, %v4637_v3  ;;  %v17866_v2 = vadd.f32 %v4893_v46, %v4645_v5 }
0x1089   : > { %v4844_v6 = vpop.f32.mrf.mxu0  ;;  %v4895_v11 = vpop.f32.mrf.mxu1 }
0x108a   : > { %v4932_v12 = vmul.f32 %v4920_v47, %v17858_v21  ;;  %v4934_v13 = vmul.f32 %v4922_v7, %v17860_v8  ;;  %v17870_v16 = vadd.f32 %v4844_v6, %v4633_v51  ;;  %v17872_v17 = vadd.f32 %v4895_v11, %v4641_v61 }
0x108b   : > { %v4921_v18 = vmul.f32 0.044715, %v17864_v10  ;;  %v4923_v23 = vmul.f32 0.044715, %v17866_v2  ;;  %v4846_v43 = vpop.f32.mrf.mxu0  ;;  %v4897_v24 = vpop.f32.mrf.mxu1 }
0x108c   : > { %v4944_v26 = vmul.f32 %v4932_v12, %v17858_v21  ;;  %v4946_v27 = vmul.f32 %v4934_v13, %v17860_v8  ;;  %v4924_v58 = vmul.f32 0.044715, %v17870_v16  ;;  %v4926_v28 = vmul.f32 0.044715, %v17872_v17 }
0x108d   : > { %v4933_v25 = vmul.f32 %v4921_v18, %v17864_v10  ;;  %v4850_v30 = vpop.f32.mrf.mxu0  ;;  %v4901_v31 = vpop.f32.mrf.mxu1  ;;  %v17883_v37 = vadd.f32 %v4846_v43, %v4637_v3  ;;  %v4935_v29 = vmul.f32 %v4923_v23, %v17866_v2  ;;  %v17887_v38 = vadd.f32 %v4897_v24, %v4645_v5 }
0x108e   : > { %v4956_v33 = vadd.f32 %v4944_v26, %v17858_v21  ;;  %v4936_v34 = vmul.f32 %v4924_v58, %v17870_v16  ;;  %v4938_v35 = vmul.f32 %v4926_v28, %v17872_v17  ;;  %v4958_v40 = vadd.f32 %v4946_v27, %v17860_v8 }
0x108f   : > { %v4852_v39 = vpop.f32.mrf.mxu0  ;;  %v4903_v32 = vpop.f32.mrf.mxu1  ;;  %v4945_v41 = vmul.f32 %v4933_v25, %v17864_v10  ;;  %v4925_v44 = vmul.f32 0.044715, %v17883_v37  ;;  %v4927_v36 = vmul.f32 0.044715, %v17887_v38  ;;  %v17895_v50 = vadd.f32 %v4850_v30, %v4633_v51 }
0x1090   : > { %v4948_v42 = vmul.f32 %v4936_v34, %v17870_v16  ;;  %v4950_v45 = vmul.f32 %v4938_v35, %v17872_v17  ;;  %v17897_v53 = vadd.f32 %v4901_v31, %v4641_v61  ;;  %v4968_v59 = vmul.f32 0.7978846, %v4956_v33 }
0x1091   : > { %v4854_v52 = vpop.f32.mrf.mxu0  ;;  %v4905_v15 = vpop.f32.mrf.mxu1  ;;  %v4937_v62 = vmul.f32 %v4925_v44, %v17883_v37  ;;  %v17901_v4 = vadd.f32 %v4852_v39, %v4637_v3  ;;  %v4947_v60 = vmul.f32 %v4935_v29, %v17866_v2  ;;  %v4939_v47 = vmul.f32 %v4927_v36, %v17887_v38 }
0x1092   : > { %v4960_v14 = vadd.f32 %v4948_v42, %v17870_v16  ;;  %v4962_v46 = vadd.f32 %v4950_v45, %v17872_v17  ;;  %v4928_v51 = vmul.f32 0.044715, %v17895_v50  ;;  %v4930_v12 = vmul.f32 0.044715, %v17897_v53 }
0x1093   : > { %v4855_v7 = vpop.f32.mrf.mxu0  ;;  %v4906_v61 = vpop.f32.mrf.mxu1  ;;  %v4949_v11 = vmul.f32 %v4937_v62, %v17883_v37  ;;  %v4929_v13 = vmul.f32 0.044715, %v17901_v4  ;;  %v4951_v3 = vmul.f32 %v4939_v47, %v17887_v38  ;;  %v17911_v23 = vadd.f32 %v4903_v32, %v4645_v5 }
0x1094   : > { %v4972_v6 = vmul.f32 0.7978846, %v4960_v14  ;;  %v4974_v18 = vmul.f32 0.7978846, %v4962_v46  ;;  %16119 = vtanh.f32 %v4968_v59  ;;  %v4970_v43 = vmul.f32 0.7978846, %v4958_v40 }
0x1095   : > { %v4940_v24 = vmul.f32 %v4928_v51, %v17895_v50  ;;  %v4941_v26 = vmul.f32 %v4929_v13, %v17901_v4  ;;  %v4931_v27 = vmul.f32 0.044715, %v17911_v23  ;;  %v4957_v58 = vadd.f32 %v4945_v41, %v17864_v10 }
0x1096   : > { %16121 = vtanh.f32 %v4972_v6  ;;  %v4961_v25 = vadd.f32 %v4949_v11, %v17883_v37  ;;  %v4942_v28 = vmul.f32 %v4930_v12, %v17897_v53  ;;  %v4959_v30 = vadd.f32 %v4947_v60, %v17866_v2 }
0x1097   : > { %16123 = vtanh.f32 %v4974_v18  ;;  %v4963_v5 = vadd.f32 %v4951_v3, %v17887_v38  ;;  %v4943_v31 = vmul.f32 %v4931_v27, %v17911_v23  ;;  %v4969_v33 = vmul.f32 0.7978846, %v4957_v58 }
0x1098   : > { %v4973_v34 = vmul.f32 0.7978846, %v4961_v25  ;;  %v4953_v29 = vmul.f32 %v4941_v26, %v17901_v4  ;;  %16125 = vtanh.f32 %v4970_v43  ;;  %v4971_v35 = vmul.f32 0.7978846, %v4959_v30 }
0x1099   : > { %v4975_v39 = vmul.f32 0.7978846, %v4963_v5  ;;  %16127 = vtanh.f32 %v4969_v33  ;;  %v4955_v40 = vmul.f32 %v4943_v31, %v17911_v23  ;;  %v4952_v41 = vmul.f32 %v4940_v24, %v17895_v50 }
0x109a   : > { %v4965_v32 = vadd.f32 %v4953_v29, %v17901_v4  ;;  %16129 = vtanh.f32 %v4973_v34  ;;  %v4954_v42 = vmul.f32 %v4942_v28, %v17897_v53  ;;  %v4908_v61 = vmul.f32 0.5, %v17858_v21 }
0x109b   : > { %16131 = vtanh.f32 %v4971_v35  ;;  %v4967_v45 = vadd.f32 %v4955_v40, %v17911_v23  ;;  %v4964_v36 = vadd.f32 %v4952_v41, %v17895_v50  ;;  %v4910_v6 = vmul.f32 0.5, %v17860_v8 }
0x109c   : > { %v4977_v44 = vmul.f32 0.7978846, %v4965_v32  ;;  %16133 = vtanh.f32 %v4975_v39  ;;  %v4966_v52 = vadd.f32 %v4954_v42, %v17897_v53  ;;  %v4912_v12 = vmul.f32 0.5, %v17870_v16 }
0x109d   : > { %v4979_v15 = vmul.f32 0.7978846, %v4967_v45  ;;  %v4976_v59 = vmul.f32 0.7978846, %v4964_v36  ;;  %v4909_v24 = vmul.f32 0.5, %v17864_v10  ;;  %v4913_v26 = vmul.f32 0.5, %v17883_v37 }
0x109e   : > { %16135 = vtanh.f32 %v4977_v44  ;;  %v4978_v14 = vmul.f32 0.7978846, %v4966_v52  ;;  %v4911_v58 = vmul.f32 0.5, %v17866_v2  ;;  %v4914_v28 = vmul.f32 0.5, %v17872_v17 }
0x109f   : > { %16137 = vtanh.f32 %v4979_v15  ;;  %v4915_v33 = vmul.f32 0.5, %v17887_v38  ;;  %v4917_v10 = vmul.f32 0.5, %v17901_v4  ;;  %v4919_v17 = vmul.f32 0.5, %v17911_v23 }
0x10a0   : > { %16139 = vtanh.f32 %v4976_v59  ;;  %v4916_v15 = vmul.f32 0.5, %v17895_v50 }
0x10a1   : > { %v16120_v62 = vpop.eup %16119  ;;  %16141 = vtanh.f32 %v4978_v14 }
0x10a2   : > { %v4992_v18 = vadd.f32 1.0, %v16120_v62 }
0x10a3   : > { %v16122_v60 = vpop.eup %16121 }
0x10a4   : > { %v16124_v46 = vpop.eup %16123  ;;  %v4996_v51 = vadd.f32 1.0, %v16122_v60  ;;  %v5004_v29 = vmul.f32 %v4992_v18, %v4908_v61 }
0x10a5   : > { %v16126_v47 = vpop.eup %16125  ;;  %v4998_v3 = vadd.f32 1.0, %v16124_v46 }
0x10a6   : > { %v16128_v7 = vpop.eup %16127  ;;  %v5008_v30 = vmul.f32 %v4996_v51, %v4912_v12  ;;  %v4994_v8 = vadd.f32 1.0, %v16126_v47  ;;  %v4918_v47 = vmul.f32 0.5, %v17897_v53 }
0x10a7   : > { %v16130_v11 = vpop.eup %16129  ;;  %v4993_v13 = vadd.f32 1.0, %v16128_v7  ;;  %v5010_v35 = vmul.f32 %v4998_v3, %v4914_v28 }
0x10a8   : > { %v16132_v43 = vpop.eup %16131  ;;  %v4997_v27 = vadd.f32 1.0, %v16130_v11  ;;  %v5016_v42 = vpack.c.bf16 %v5008_v30, %v5004_v29  ;;  %v5006_v44 = vmul.f32 %v4994_v8, %v4910_v6  ;;  %v5379_v6 = vld [vmem:[%s19993_s10 + $0x100] sm:$0x1] }
0x10a9   : > { %v16134_v25 = vpop.eup %16133  ;;  %v4995_v21 = vadd.f32 1.0, %v16132_v43  ;;  %v5005_v31 = vmul.f32 %v4993_v13, %v4909_v24  ;;  %v5380_v18 = vunpack.c.l.bf16 %v5379_v6  ;;  %v15714_v6 = vld [vmem:[%s19991_s8 + $0x16c] sm:$0xff]  }
0x10aa   : > { %v5009_v16 = vmul.f32 %v4997_v27, %v4913_v26  ;;  %v4999_v34 = vadd.f32 1.0, %v16134_v25  ;;  %v5018_v4 = vpack.c.bf16 %v5010_v35, %v5006_v44 }
0x10ab   : > { %v16136_v5 = vpop.eup %16135  ;;  %v5007_v2 = vmul.f32 %v4995_v21, %v4911_v58  ;;  %v5384_v25 = vrot.slane %v5380_v18, %v17370_v56  ;;  %v15718_v18 = vld [vmem:[%s19991_s8 + $0x15c] sm:$0xff]  }
0x10ac   : > { %v5001_v37 = vadd.f32 1.0, %v16136_v5  ;;  %v16138_v39 = vpop.eup %16137  ;;  %v5017_v32 = vpack.c.bf16 %v5009_v16, %v5005_v31  ;;  %v5011_v40 = vmul.f32 %v4999_v34, %v4915_v33 }
0x10ad   : > { %v16140_v41 = vpop.eup %16139  ;;  %v5003_v36 = vadd.f32 1.0, %v16138_v39 }
0x10ae   : > { %v5013_v45 = vmul.f32 %v5001_v37, %v4917_v10  ;;  %v16142_v52 = vpop.eup %16141  ;;  %5312 = vmatprep.mubr.bf16.mxu0 %v5017_v32  ;;  %v5019_v38 = vpack.c.bf16 %v5011_v40, %v5007_v2  ;;  %v5000_v59 = vadd.f32 1.0, %v16140_v41 }
0x10af   : > { %5313 = vmatmul.mubr.bf16.vlgmr.msra.gmra.mxu0 %v5016_v42  ;;  %v5015_v62 = vmul.f32 %v5003_v36, %v4919_v17  ;;  %v5002_v60 = vadd.f32 1.0, %v16142_v52 }
0x10b0   : > { %v5021_v14 = vpack.c.bf16 %v5013_v45, %v5013_v45  ;;  %5360 = vmatprep.mubr.bf16.mxu1 %v5019_v38  ;;  %v5012_v46 = vmul.f32 %v5000_v59, %v4916_v15 }
0x10b1   : > { %5361 = vmatmul.mubr.bf16.vlgmr.msra.gmra.mxu1 %v5018_v4  ;;  %v5023_v23 = vpack.c.bf16 %v5015_v62, %v5015_v62  ;;  %v5014_v51 = vmul.f32 %v5002_v60, %v4918_v47  ;;  %v15705_v62 = vld [vmem:[%s19991_s8 + $0x148] sm:$0xff]   ;;  %v15709_v47 = vld [vmem:[%s19991_s8 + $0x138] sm:$0xff]  }
0x10b2   : > { %5320 = vmatprep.mubr.bf16.mxu0 %v5021_v14  ;;  %v5020_v7 = vpack.c.bf16 %v5012_v46, %v5012_v46  ;;  %v15706_v60 = vld [vmem:[%s19991_s8 + $0x18c] sm:$0xff]   ;;  %14723 = vmatprep.subr.bf16.mxu0 %v15705_v62  ;;  %v15708_v46 = vld [vmem:[%s19991_s8 + $0x184] sm:$0xff]  }
0x10b3   : > { %5368 = vmatprep.mubr.bf16.mxu1 %v5023_v23  ;;  %v5022_v61 = vpack.c.bf16 %v5014_v51, %v5014_v51  ;;  %14743 = vmatprep.subr.bf16.mxu1 %v15706_v60  ;;  %v15707_v23 = vld [vmem:[%s19991_s8 + $0x140] sm:$0xff]  }
0x10b4   : > { %14724 = vmatpush3.bf16.msra.mxu0 %v15705_v62  ;;  %14744 = vmatpush3.bf16.msra.mxu1 %v15706_v60  ;;  %v15710_v51 = vld [vmem:[%s19991_s8 + $0x17c] sm:$0xff]   ;;  %v13042_v60 = vld [vmem:[%s19991_s8 + $0x150] sm:$0x1] }
0x10b5   : > { %14725 = vmatprep.subr.bf16.mxu0 %v15707_v23  ;;  %14745 = vmatprep.subr.bf16.mxu1 %v15708_v46 }
0x10b7   : > { %5321 = vmatmul.mubr.bf16.gmra.mxu0 %v5020_v7  ;;  %v15711_v7 = vld [vmem:[%s19991_s8 + $0x130] sm:$0xff]  }
0x10b8   : > { %14726 = vmatpush3.bf16.msra.mxu0 %v15707_v23  ;;  %14746 = vmatpush3.bf16.msra.mxu1 %v15708_v46  ;;  %v5457_v46 = vunpack.c.l.bf16 %v13042_v60 }
0x10b9   : > { %5369 = vmatmul.mubr.bf16.gmra.mxu1 %v5022_v61  ;;  %v15712_v61 = vld [vmem:[%s19991_s8 + $0x174] sm:$0xff]   ;;  %14727 = vmatprep.subr.bf16.mxu0 %v15709_v47 }
0x10ba   : > { %14747 = vmatprep.subr.bf16.mxu1 %v15710_v51 }
0x10bc   : > { %14728 = vmatpush3.bf16.msra.mxu0 %v15709_v47  ;;  %14748 = vmatpush3.bf16.msra.mxu1 %v15710_v51 }
0x10bd   : > { %14729 = vmatprep.subr.bf16.mxu0 %v15711_v7  ;;  %14749 = vmatprep.subr.bf16.mxu1 %v15712_v61 }
0x10c0   : > { %14730 = vmatpush3.bf16.msra.mxu0 %v15711_v7  ;;  %14750 = vmatpush3.bf16.msra.mxu1 %v15712_v61 }
0x10c1   : > { %14751 = vmatprep.subr.bf16.mxu1 %v15714_v6 }
0x10c4   : > { %14752 = vmatpush3.bf16.msra.mxu1 %v15714_v6  ;;  %v5461_v6 = vrot.slane %v5457_v46, %v17370_v56 }
0x116f   : > { %v14043_v50 = vpop.f32.mrf.mxu0 }
0x1171   : > { %v14071_v11 = vpop.f32.mrf.mxu1  ;;  %v14044_v12 = vpop.f32.mrf.mxu0 }
0x1172   : > { %v14045_v13 = vadd.f32 %v14044_v12, %v14043_v50  ;;  %v15713_v50 = vld [vmem:[%s19991_s8 + $0x128] sm:$0xff]  }
0x1173   : > { %v14072_v3 = vpop.f32.mrf.mxu1  ;;  %v14046_v43 = vpop.f32.mrf.mxu0  ;;  %14731 = vmatprep.subr.bf16.mxu0 %v15713_v50  ;;  %v15716_v12 = vld [vmem:[%s19991_s8 + $0x164] sm:$0xff]  }
0x1174   : > { %v14073_v24 = vadd.f32 %v14072_v3, %v14071_v11  ;;  %v15715_v11 = vld [vmem:[%s19991_s8 + $0x120] sm:$0xff]   ;;  %14732 = vmatpush3.bf16.msra.mxu0 %v15713_v50  ;;  %14753 = vmatprep.subr.bf16.mxu1 %v15716_v12  ;;  %v15719_v3 = vld [vmem:[%s19991_s8 + $0x110] sm:$0xff]  }
0x1175   : > { %v14074_v26 = vpop.f32.mrf.mxu1  ;;  %v14047_v53 = vpop.f32.mrf.mxu0  ;;  %14733 = vmatprep.subr.bf16.mxu0 %v15715_v11  ;;  %14754 = vmatpush3.bf16.msra.mxu1 %v15716_v12 }
0x1176   : > { %v5363_v27 = vadd.f32 %v14073_v24, %v14045_v13  ;;  %v14048_v58 = vadd.f32 %v14047_v53, %v14046_v43  ;;  %v15717_v13 = vld [vmem:[%s19991_s8 + $0x118] sm:$0xff]   ;;  %14755 = vmatprep.subr.bf16.mxu1 %v15718_v18  ;;  %v15721_v24 = vld [vmem:[%s19991_s8 + $0x1d0] sm:$0xff]  }
0x1177   : > { %v14075_v28 = vpop.f32.mrf.mxu1  ;;  %v14049_v21 = vpop.f32.mrf.mxu0  ;;  %v15720_v43 = vld [vmem:[%s19991_s8 + $0x154] sm:$0xff]  }
0x1178   : > { %v5376_v30 = vadd.f32 %v5363_v27, %v17614_v48  ;;  %v14076_v8 = vadd.f32 %v14075_v28, %v14074_v26  ;;  %14734 = vmatpush3.bf16.msra.mxu0 %v15715_v11 }
0x1179   : > { %v14077_v5 = vpop.f32.mrf.mxu1  ;;  %v14050_v31 = vpop.f32.mrf.mxu0  ;;  %14735 = vmatprep.subr.bf16.mxu0 %v15717_v13  ;;  %14756 = vmatpush3.bf16.msra.mxu1 %v15718_v18 }
0x117a   : > { %v5366_v16 = vadd.f32 %v14076_v8, %v14048_v58  ;;  %v14051_v33 = vadd.f32 %v14050_v31, %v14049_v21  ;;  %v17947_v34 = vadd.f32 %v5384_v25, %v5376_v30  ;;  %14757 = vmatprep.subr.bf16.mxu1 %v15720_v43 }
0x117b   : > { %v14078_v29 = vpop.f32.mrf.mxu1  ;;  %v14052_v35 = vpop.f32.mrf.mxu0 }
0x117c   : > { %v5377_v10 = vadd.f32 %v5366_v16, %v17618_v55  ;;  %v14079_v37 = vadd.f32 %v14078_v29, %v14077_v5  ;;  %5390 = vadd.xlane.f32.xlu0 %v17947_v34  ;;  %14736 = vmatpush3.bf16.msra.mxu0 %v15717_v13  ;;  %v13025_v5 = vld [vmem:[%s19990_s7 + $0x4] sm:$0xf] }
0x117d   : > { %v14080_v39 = vpop.f32.mrf.mxu1  ;;  %v14053_v32 = vpop.f32.mrf.mxu0  ;;  %14737 = vmatprep.subr.bf16.mxu0 %v15719_v3  ;;  %14758 = vmatpush3.bf16.msra.mxu1 %v15720_v43 }
0x117e   : > { %v5371_v2 = vadd.f32 %v14079_v37, %v14051_v33  ;;  %v17951_v40 = vadd.f32 %v5384_v25, %v5377_v10  ;;  %v5426_v33 = vrot.slane %v13025_v5, %v17370_v56  ;;  %v5433_v37 = vrot.slane %v13025_v5, %v17378_v0 }
0x117f   : > { %v14081_v48 = vpop.f32.mrf.mxu1 }
0x1180   : > { %v5378_v17 = vadd.f32 %v5371_v2, %v17622_v49  ;;  %5392 = vadd.xlane.f32.xlu1 %v17951_v40  ;;  %14738 = vmatpush3.bf16.msra.mxu0 %v15719_v3 }
0x1181   : > { %14763 = vmatprep.subr.bf16.mxu0 %v15721_v24 }
0x1182   : > { %v17955_v41 = vadd.f32 %v5384_v25, %v5378_v17 }
0x1184   : > { %5394 = vadd.xlane.f32.xlu0 %v17955_v41 }
0x1205   : > { %v5391_v42 = vpop.xlane.xlu0 %5390 }
0x1206   : > { %v5396_v44 = vmul.f32 0.0078125, %v5391_v42 }
0x1208   : > { %v17959_v55 = vsub.f32 %v17947_v34, %v5396_v44 }
0x1209   : > { %v5393_v45 = vpop.xlane.xlu1 %5392 }
0x120a   : > { %v5397_v36 = vmul.f32 0.0078125, %v5393_v45  ;;  %v5402_v52 = vmul.f32 %v17959_v55, %v17959_v55 }
0x120c   : > { %5405 = vadd.xlane.f32.xlu1 %v5402_v52  ;;  %v17964_v38 = vsub.f32 %v17951_v40, %v5397_v36  ;;  %v15722_v36 = vld [vmem:[%s19991_s8 + $0x1c8] sm:$0xff]   ;;  %v15723_v52 = vld [vmem:[%s19991_s8 + $0x1c0] sm:$0xff]  }
0x120d   : > { %v5395_v49 = vpop.xlane.xlu0 %5394 }
0x120e   : > { %v5398_v15 = vmul.f32 0.0078125, %v5395_v49  ;;  %v5403_v59 = vmul.f32 %v17964_v38, %v17964_v38  ;;  %v15725_v49 = vld [vmem:[%s19991_s8 + $0x1b0] sm:$0xff]  }
0x1210   : > { %5407 = vadd.xlane.f32.xlu0 %v5403_v59  ;;  %v17969_v4 = vsub.f32 %v17955_v41, %v5398_v15  ;;  %v15726_v15 = vld [vmem:[%s19991_s8 + $0x1a8] sm:$0xff]   ;;  %v15727_v59 = vld [vmem:[%s19991_s8 + $0x1a0] sm:$0xff]  }
0x1212   : > { %v5404_v14 = vmul.f32 %v17969_v4, %v17969_v4 }
0x1214   : > { %5409 = vadd.xlane.f32.xlu1 %v5404_v14  ;;  %v13067_v14 = vld [vmem:[%s19991_s8 + $0x194] sm:$0x1] }
0x1215   : > { %v5576_v62 = vunpack.c.l.bf16 %v13067_v14 }
0x1217   : > { %v5580_v23 = vrot.slane %v5576_v62, %v17370_v56 }
0x1295   : > { %v5406_v26 = vpop.xlane.xlu1 %5405 }
0x1296   : > { %v5411_v53 = vmul.f32 0.0078125, %v5406_v26 }
0x1298   : > { %v5414_v27 = vadd.f32 1e-05, %v5411_v53 }
0x1299   : > { %v5408_v58 = vpop.xlane.xlu0 %5407 }
0x129a   : > { %16143 = vrsqrt.f32 %v5414_v27  ;;  %v5412_v25 = vmul.f32 0.0078125, %v5408_v58 }
0x129c   : > { %v5415_v28 = vadd.f32 1e-05, %v5412_v25 }
0x129d   : > { %v5410_v21 = vpop.xlane.xlu1 %5409 }
0x129e   : > { %16145 = vrsqrt.f32 %v5415_v28  ;;  %v5413_v30 = vmul.f32 0.0078125, %v5410_v21 }
0x12a0   : > { %v5416_v8 = vadd.f32 1e-05, %v5413_v30 }
0x12a2   : > { %16147 = vrsqrt.f32 %v5416_v8 }
0x12a7   : > { %v16144_v31 = vpop.eup %16143 }
0x12a8   : > { %v5420_v16 = vmul.f32 %v16144_v31, %v17959_v55 }
0x12aa   : > { %v5427_v10 = vmul.f32 %v5426_v33, %v5420_v16  ;;  %v13092_v16 = vld [vmem:[%s19991_s8 + $0x1d8] sm:$0x1] }
0x12ab   : > { %v16146_v29 = vpop.eup %16145 }
0x12ac   : > { %v5421_v35 = vmul.f32 %v16146_v29, %v17964_v38  ;;  %v5434_v2 = vadd.f32 %v5433_v37, %v5427_v10  ;;  %v15724_v38 = vld [vmem:[%s19991_s8 + $0x1b8] sm:$0xff]  }
0x12ae   : > { %v5428_v39 = vmul.f32 %v5426_v33, %v5421_v35 }
0x12af   : > { %v16148_v32 = vpop.eup %16147 }
0x12b0   : > { %v5435_v48 = vadd.f32 %v5433_v37, %v5428_v39  ;;  %v5422_v17 = vmul.f32 %v16148_v32, %v17969_v4  ;;  %v15728_v4 = vld [vmem:[%s19991_s8 + $0x198] sm:$0xff]  }
0x12b2   : > { %v5437_v42 = vpack.c.bf16 %v5435_v48, %v5434_v2  ;;  %v5429_v44 = vmul.f32 %v5426_v33, %v5422_v17  ;;  %v5695_v33 = vunpack.c.l.bf16 %v13092_v16 }
0x12b4   : > { %14739 = vmatprep.mubr.bf16.mxu0 %v5437_v42  ;;  %14759 = vmatprep.mubr.bf16.mxu1 %v5437_v42  ;;  %v5436_v45 = vadd.f32 %v5433_v37, %v5429_v44  ;;  %v5699_v29 = vrot.slane %v5695_v33, %v17370_v56 }
0x12b6   : > { %v5438_v55 = vpack.c.bf16 %v5436_v45, %v5436_v45 }
0x12b8   : > { %14740 = vmatmul.mubr.bf16.vlgmr.msra.gmra.mxu0 %v5438_v55  ;;  %14760 = vmatmul.mubr.bf16.vlgmr.msra.gmra.mxu1 %v5438_v55 }
0x12b9   : > { %14764 = vmatpush3.bf16.msra.mxu0 %v15721_v24  ;;  %14779 = vmatprep.mubr.bf16.mxu0 %v5437_v42 }
0x12ba   : > { %14765 = vmatprep.subr.bf16.mxu0 %v15722_v36 }
0x12bd   : > { %14766 = vmatpush3.bf16.msra.mxu0 %v15722_v36 }
0x12be   : > { %14767 = vmatprep.subr.bf16.mxu0 %v15723_v52 }
0x12c1   : > { %14768 = vmatpush3.bf16.msra.mxu0 %v15723_v52 }
0x12c2   : > { %14769 = vmatprep.subr.bf16.mxu0 %v15724_v38 }
0x12c5   : > { %14770 = vmatpush3.bf16.msra.mxu0 %v15724_v38 }
0x12c6   : > { %14771 = vmatprep.subr.bf16.mxu0 %v15725_v49 }
0x12c9   : > { %14772 = vmatpush3.bf16.msra.mxu0 %v15725_v49 }
0x12ca   : > { %14773 = vmatprep.subr.bf16.mxu0 %v15726_v15 }
0x12cd   : > { %14774 = vmatpush3.bf16.msra.mxu0 %v15726_v15 }
0x12ce   : > { %14775 = vmatprep.subr.bf16.mxu0 %v15727_v59 }
0x12d1   : > { %14776 = vmatpush3.bf16.msra.mxu0 %v15727_v59 }
0x12d2   : > { %14777 = vmatprep.subr.bf16.mxu0 %v15728_v4 }
0x12d5   : > { %14778 = vmatpush3.bf16.msra.mxu0 %v15728_v4 }
0x12d8   : > { %14780 = vmatmul.mubr.bf16.vlgmr.msra.gmra.mxu0 %v5438_v55 }
0x1378   : > { %v14741_v47 = vpop.f32.mrf.mxu0  ;;  %v14761_v51 = vpop.f32.mrf.mxu1 }
0x1379   : > { %v5672_v7 = vadd.f32 %v14761_v51, %v5580_v23  ;;  %v5553_v58 = vadd.f32 %v14741_v47, %v5461_v6 }
0x137a   : > { %v5544_v61 = vpop.f32.mrf.mxu0  ;;  %v5663_v50 = vpop.f32.mrf.mxu1 }
0x137b   : > { %v18061_v11 = vpack.c.bf16 %v5672_v7, %v5672_v7  ;;  %v5545_v18 = vadd.f32 %v5544_v61, %v5461_v6  ;;  %v5664_v26 = vadd.f32 %v5663_v50, %v5580_v23  ;;  %v5801_v8 = vmul.f32 0.17677669, %v5553_v58 }
0x137c   : > { %v14742_v12 = vpop.f32.mrf.mxu0  ;;  %v14762_v13 = vpop.f32.mrf.mxu1 }
0x137d   : > { %6049 = vrot.lane.b32.xlu0 %v18061_v11, %s16434_s22  ;;  %15241 = vmatprep.subr.msk.bf16.mxu1 %vm3581_vm13, %v18061_v11  ;;  %v5818_v3 = vsel %vm3581_vm13, %v18061_v11, 0  ;;  %v5799_v25 = vmul.f32 0.17677669, %v5545_v18  ;;  %v18083_v31 = vpack.c.bf16 %v5801_v8, %v5801_v8 }
0x137e   : > { %v5547_v43 = vpop.f32.mrf.mxu0  ;;  %v5666_v24 = vpop.f32.mrf.mxu1  ;;  %14784 = vmatpush3.bf16.xpose.msra.mxu1 %v5818_v3 }
0x137f   : > { %v5548_v53 = vadd.f32 %v5547_v43, %v5461_v6  ;;  %v5667_v27 = vadd.f32 %v5666_v24, %v5580_v23 }
0x1381   : > { %v5800_v28 = vmul.f32 0.17677669, %v5548_v53  ;;  %v18069_v21 = vpack.c.bf16 %v5667_v27, %v5664_v26 }
0x1383   : > { %v18071_v30 = vpack.c.bf16 %v5800_v28, %v5799_v25  ;;  %6047 = vrot.lane.b32.xlu1 %v18069_v21, %s16434_s22  ;;  %15242 = vmatprep.subr.msk.bf16.mxu1 %vm3581_vm13, %v18069_v21  ;;  %v5815_v5 = vsel %vm3581_vm13, %v18069_v21, 0 }
0x1385   : > { %14787 = vmatprep.mubr.msk.bf16.mxu1 %vm3581_vm13, %v18071_v30 }
0x1386   : > { %14786 = vmatpush3.bf16.xpose.msra.mxu1 %v5815_v5 }
0x1387   : > { %6041 = vrot.lane.b32.xlu1 %v18071_v30, %s16434_s22 }
0x138b   : > { %6043 = vrot.lane.b32.xlu1 %v18083_v31, %s16434_s22 }
0x138d   : > { %14788 = vmatmul.mubr.msk.bf16.vlgmr.msra.gmra.mxu1 %vm3581_vm13, %v18083_v31 }
0x1398   : > { %v14781_v35 = vpop.f32.mrf.mxu0 }
0x1399   : > { %v5791_v10 = vadd.f32 %v14781_v35, %v5699_v29 }
0x139a   : > { %v5782_v37 = vpop.f32.mrf.mxu0 }
0x139b   : > { %v18093_v39 = vpack.c.bf16 %v5791_v10, %v5791_v10  ;;  %v5783_v17 = vadd.f32 %v5782_v37, %v5699_v29 }
0x139c   : > { %v14782_v32 = vpop.f32.mrf.mxu0 }
0x139d   : > { %15243 = vmatprep.subr.msk.bf16.mxu1 %vm2751_vm8, %v18093_v39  ;;  %v5910_v2 = vsel %vm2751_vm8, %v18093_v39, 0 }
0x139e   : > { %v5785_v48 = vpop.f32.mrf.mxu0  ;;  %14792 = vmatpush3.bf16.msra.mxu1 %v5910_v2 }
0x139f   : > { %v5786_v42 = vadd.f32 %v5785_v48, %v5699_v29 }
0x13a1   : > { %v18099_v44 = vpack.c.bf16 %v5786_v42, %v5783_v17 }
0x13a3   : > { %14793 = vmatprep.subr.bf16.mxu1 %v18099_v44 }
0x13a4   : > { %14794 = vmatpush3.bf16.msra.mxu1 %v18099_v44 }
0x13ef   : > { %v6050_v45 = vpop.permute.xlu0 %6049 }
0x13f0   : > { %15244 = vmatprep.subr.msk.bf16.mxu0 %vm3581_vm13, %v6050_v45  ;;  %v6061_v55 = vsel %vm3581_vm13, %v6050_v45, 0 }
0x13f1   : > { %14808 = vmatpush3.bf16.xpose.msra.mxu0 %v6061_v55 }
0x13f5   : > { %v6048_v36 = vpop.permute.xlu1 %6047 }
0x13f6   : > { %15245 = vmatprep.subr.msk.bf16.mxu0 %vm3581_vm13, %v6048_v36  ;;  %v6058_v52 = vsel %vm3581_vm13, %v6048_v36, 0 }
0x13f9   : > { %14810 = vmatpush3.bf16.xpose.msra.mxu0 %v6058_v52  ;;  %v6042_v38 = vpop.permute.xlu1 %6041 }
0x13fa   : > { %14811 = vmatprep.mubr.msk.bf16.mxu0 %vm3581_vm13, %v6042_v38 }
0x13fd   : > { %v6044_v49 = vpop.permute.xlu1 %6043 }
0x1400   : > { %14812 = vmatmul.mubr.msk.bf16.vlgmr.msra.gmra.mxu0 %vm3581_vm13, %v6044_v49 }
0x144d   : > { %v14789_v15 = vpop.f32.mrf.mxu1 }
0x144e   : > { %v5863_v62 = vadd.f32 %v14789_v15, %v17462_v19 }
0x144f   : > { %v5854_v59 = vpop.f32.mrf.mxu1 }
0x1450   : > { %v5855_v4 = vadd.f32 %v5854_v59, %v17462_v19  ;;  %v5874_v51 = vsel %vm3642_vm15, %v5863_v62, -inf }
0x1451   : > { %v14790_v14 = vpop.f32.mrf.mxu1 }
0x1452   : > { %v5868_v60 = vsel %vm3642_vm15, %v5855_v4, -inf }
0x1453   : > { %v5857_v23 = vpop.f32.mrf.mxu1  ;;  %5869 = vmax.xlane.f32.xlu0 %v5868_v60 }
0x1454   : > { %v5858_v46 = vadd.f32 %v5857_v23, %v17462_v19 }
0x1456   : > { %v5871_v47 = vsel %vm3642_vm15, %v5858_v46, -inf }
0x1457   : > { %5872 = vmax.xlane.f32.xlu1 %v5871_v47  ;;  %5875 = vmax.xlane.f32.xlu0 %v5874_v51 }
0x14c0   : > { %v14813_v7 = vpop.f32.mrf.mxu0 }
0x14c1   : > { %v6106_v33 = vadd.f32 %v14813_v7, %v17462_v19 }
0x14c2   : > { %v6097_v61 = vpop.f32.mrf.mxu0 }
0x14c3   : > { %v6098_v16 = vadd.f32 %v6097_v61, %v17462_v19  ;;  %v6117_v10 = vsel %vm3642_vm15, %v6106_v33, -inf }
0x14c4   : > { %v14814_v50 = vpop.f32.mrf.mxu0 }
0x14c5   : > { %v6111_v29 = vsel %vm3642_vm15, %v6098_v16, -inf }
0x14c6   : > { %v6100_v35 = vpop.f32.mrf.mxu0 }
0x14c7   : > { %v6101_v37 = vadd.f32 %v6100_v35, %v17462_v19 }
0x14c9   : > { %v6114_v32 = vsel %vm3642_vm15, %v6101_v37, -inf }
0x14dc   : > { %v5870_v6 = vpop.xlane.xlu0 %5869 }
0x14dd   : > { %v5877_v12 = vsub.f32 %v5855_v4, %v5870_v6 }
0x14df   : > { %v5880_v13 = vmul.f32 1.442695, %v5877_v12 }
0x14e0   : > { %v5873_v18 = vpop.xlane.xlu1 %5872  ;;  %v5876_v3 = vpop.xlane.xlu0 %5875 }
0x14e1   : > { %16149 = vpow2.f32 %v5880_v13  ;;  %v5878_v43 = vsub.f32 %v5858_v46, %v5873_v18  ;;  %v5879_v24 = vsub.f32 %v5863_v62, %v5876_v3 }
0x14e3   : > { %v5882_v26 = vmul.f32 1.442695, %v5878_v43  ;;  %v5884_v53 = vmul.f32 1.442695, %v5879_v24 }
0x14e5   : > { %16151 = vpow2.f32 %v5882_v26 }
0x14e6   : > { %16153 = vpow2.f32 %v5884_v53 }
0x14ee   : > { %v16150_v27 = vpop.eup %16149 }
0x14ef   : > { %v5886_v58 = vsel %vm3642_vm15, %v16150_v27, 0.0 }
0x14f0   : > { %5887 = vadd.xlane.f32.xlu0 %v5886_v58  ;;  %v15730_v58 = vld [vmem:[%s19991_s8 + $0x1dc] sm:$0xff]  }
0x14f2   : > { %v16152_v25 = vpop.eup %16151 }
0x14f3   : > { %v16154_v28 = vpop.eup %16153  ;;  %v5889_v8 = vsel %vm3642_vm15, %v16152_v25, 0.0 }
0x14f4   : > { %5890 = vadd.xlane.f32.xlu0 %v5889_v8  ;;  %v5892_v5 = vsel %vm3642_vm15, %v16154_v28, 0.0 }
0x14f5   : > { %5893 = vadd.xlane.f32.xlu1 %v5892_v5 }
0x1506   : > { %6289 = vrot.lane.b32.xlu1 %v18069_v21, %s19999_s25 }
0x150a   : > { %6285 = vrot.lane.b32.xlu1 %v18071_v30, %s19999_s25  ;;  %6291 = vrot.lane.b32.xlu0 %v18061_v11, %s19999_s25 }
0x150e   : > { %6287 = vrot.lane.b32.xlu1 %v18083_v31, %s19999_s25 }
0x1529   : > { %6112 = vmax.xlane.f32.xlu0 %v6111_v29 }
0x152d   : > { %6118 = vmax.xlane.f32.xlu0 %v6117_v10 }
0x1532   : > { %6115 = vmax.xlane.f32.xlu1 %v6114_v32 }
0x1579   : > { %v5888_v2 = vpop.xlane.xlu0 %5887 }
0x157a   : > { %16155 = vrcp.f32 %v5888_v2 }
0x157d   : > { %v5891_v48 = vpop.xlane.xlu0 %5890 }
0x157e   : > { %v5894_v17 = vpop.xlane.xlu1 %5893  ;;  %16157 = vrcp.f32 %v5891_v48 }
0x157f   : > { %16159 = vrcp.f32 %v5894_v17 }
0x1581   : > { %v6292_v42 = vpop.permute.xlu0 %6291 }
0x1582   : > { %v6290_v45 = vpop.permute.xlu1 %6289  ;;  %15247 = vmatprep.subr.msk.bf16.mxu0 %vm3581_vm13, %v6292_v42  ;;  %v6303_v55 = vsel %vm3581_vm13, %v6292_v42, 0 }
0x1583   : > { %14832 = vmatpush3.bf16.xpose.msra.mxu0 %v6303_v55  ;;  %v6300_v38 = vsel %vm3581_vm13, %v6290_v45, 0 }
0x1584   : > { %15248 = vmatprep.subr.msk.bf16.mxu0 %vm3581_vm13, %v6290_v45 }
0x1586   : > { %v6286_v36 = vpop.permute.xlu1 %6285 }
0x1587   : > { %14835 = vmatprep.mubr.msk.bf16.mxu0 %vm3581_vm13, %v6286_v36  ;;  %v16156_v52 = vpop.eup %16155 }
0x1588   : > { %v5898_v59 = vmul.f32 %v16156_v52, %v16150_v27  ;;  %v15729_v27 = vld [vmem:[%s19991_s8 + $0x1e4] sm:$0xff]  }
0x1589   : > { %14799 = vmatprep.subr.bf16.mxu1 %v15729_v27 }
0x158a   : > { %v6288_v23 = vpop.permute.xlu1 %6287 }
0x158b   : > { %v16158_v49 = vpop.eup %16157  ;;  %14834 = vmatpush3.bf16.xpose.msra.mxu0 %v6300_v38 }
0x158c   : > { %v16160_v15 = vpop.eup %16159  ;;  %v5899_v4 = vmul.f32 %v16158_v49, %v16152_v25 }
0x158d   : > { %v5900_v14 = vmul.f32 %v16160_v15, %v16154_v28 }
0x158e   : > { %v5901_v62 = vpack.c.bf16 %v5899_v4, %v5898_v59 }
0x158f   : > { %v5902_v60 = vpack.c.bf16 %v5900_v14, %v5900_v14 }
0x1590   : > { %14795 = vmatprep.mubr.msk.bf16.mxu1 %vm3642_vm15, %v5901_v62 }
0x1591   : > { %14796 = vmatmul.mubr.msk.bf16.vlgmr.msra.gmra.mxu1 %vm3642_vm15, %v5902_v60 }
0x1592   : > { %14836 = vmatmul.mubr.msk.bf16.vlgmr.msra.gmra.mxu0 %vm3581_vm13, %v6288_v23  ;;  %14800 = vmatpush3.bf16.msra.mxu1 %v15729_v27 }
0x1593   : > { %14801 = vmatprep.subr.bf16.mxu1 %v15730_v58 }
0x1596   : > { %14802 = vmatpush3.bf16.msra.mxu1 %v15730_v58 }
0x15b2   : > { %v6113_v46 = vpop.xlane.xlu0 %6112 }
0x15b3   : > { %v6120_v47 = vsub.f32 %v6098_v16, %v6113_v46 }
0x15b5   : > { %v6123_v51 = vmul.f32 1.442695, %v6120_v47 }
0x15b6   : > { %v6119_v7 = vpop.xlane.xlu0 %6118 }
0x15b7   : > { %16161 = vpow2.f32 %v6123_v51  ;;  %v6122_v61 = vsub.f32 %v6106_v33, %v6119_v7 }
0x15b9   : > { %v6127_v50 = vmul.f32 1.442695, %v6122_v61  ;;  %v15731_v61 = vld [vmem:[%s19991_s8 + $0x1f4] sm:$0xff]  }
0x15bb   : > { %16163 = vpow2.f32 %v6127_v50  ;;  %v6116_v6 = vpop.xlane.xlu1 %6115  ;;  %v15732_v50 = vld [vmem:[%s19991_s8 + $0x1ec] sm:$0xff]  }
0x15bc   : > { %v6121_v12 = vsub.f32 %v6101_v37, %v6116_v6 }
0x15be   : > { %v6125_v13 = vmul.f32 1.442695, %v6121_v12 }
0x15c0   : > { %16165 = vpow2.f32 %v6125_v13 }
0x15c4   : > { %v18140_v18 = vpop.eup %16161 }
0x15c5   : > { %v6129_v3 = vsel %vm3642_vm15, %v18140_v18, 0.0 }
0x15c6   : > { %6130 = vadd.xlane.f32.xlu0 %v6129_v3 }
0x15c8   : > { %v18144_v43 = vpop.eup %16163 }
0x15c9   : > { %v6135_v24 = vsel %vm3642_vm15, %v18144_v43, 0.0 }
0x15ca   : > { %6136 = vadd.xlane.f32.xlu1 %v6135_v24 }
0x15cd   : > { %v18148_v26 = vpop.eup %16165 }
0x15ce   : > { %v6132_v53 = vsel %vm3642_vm15, %v18148_v26, 0.0 }
0x15cf   : > { %6133 = vadd.xlane.f32.xlu0 %v6132_v53 }
0x15db   : > { %6148 = vrot.lane.b32.xlu1 %v18099_v44, %s16434_s22 }
0x15df   : > { %6531 = vrot.lane.b32.xlu1 %v18061_v11, %s19997_s14 }
0x15e3   : > { %6529 = vrot.lane.b32.xlu1 %v18069_v21, %s19997_s14 }
0x15e5   : > { %6150 = vrot.lane.b32.xlu0 %v18093_v39, %s16434_s22 }
0x15e7   : > { %6527 = vrot.lane.b32.xlu1 %v18083_v31, %s19997_s14 }
0x15e9   : > { %6525 = vrot.lane.b32.xlu0 %v18071_v30, %s19997_s14 }
0x164f   : > { %v6131_v16 = vpop.xlane.xlu0 %6130 }
0x1651   : > { %v14797_v25 = vpop.f32.mrf.mxu1 }
0x1652   : > { %v14837_v28 = vpop.f32.mrf.mxu0  ;;  %v5961_v48 = vpack.c.bf16 %v14797_v25, %v14797_v25 }
0x1653   : > { %v5946_v8 = vpop.f32.mrf.mxu1  ;;  %v6137_v5 = vpop.xlane.xlu1 %6136  ;;  %v6348_v35 = vadd.f32 %v14837_v28, %v17462_v19 }
0x1654   : > { %v6339_v33 = vpop.f32.mrf.mxu0  ;;  %16167 = vrcp.f32 %v6137_v5 }
0x1655   : > { %v6340_v11 = vadd.f32 %v6339_v33, %v17462_v19  ;;  %v14798_v29 = vpop.f32.mrf.mxu1  ;;  %16169 = vrcp.f32 %v6131_v16  ;;  %v6359_v45 = vsel %vm3642_vm15, %v6348_v35, -inf  ;;  %v13101_v16 = vld [vmem:[%s19991_s8 + $0x21c] sm:$0x1] }
0x1656   : > { %v14838_v21 = vpop.f32.mrf.mxu0  ;;  %v5798_v33 = vunpack.c.l.bf16 %v13101_v16 }
0x1657   : > { %v5949_v10 = vpop.f32.mrf.mxu1  ;;  %v6149_v37 = vpop.permute.xlu1 %6148  ;;  %v6353_v31 = vsel %vm3642_vm15, %v6340_v11, -inf }
0x1658   : > { %v5960_v32 = vpack.c.bf16 %v5949_v10, %v5946_v8  ;;  %v6134_v30 = vpop.xlane.xlu0 %6133  ;;  %v6342_v2 = vpop.f32.mrf.mxu0  ;;  %6354 = vmax.xlane.f32.xlu0 %v6353_v31 }
0x1659   : > { %16171 = vrcp.f32 %v6134_v30  ;;  %v6343_v17 = vadd.f32 %v6342_v2, %v17462_v19 }
0x165a   : > { %14803 = vmatprep.mubr.msk.bf16.mxu1 %vm3581_vm13, %v5960_v32 }
0x165b   : > { %14804 = vmatmul.mubr.msk.bf16.vlgmr.msra.gmra.mxu1 %vm3581_vm13, %v5961_v48  ;;  %v6532_v42 = vpop.permute.xlu1 %6531  ;;  %v6356_v55 = vsel %vm3642_vm15, %v6343_v17, -inf }
0x165c   : > { %v6151_v36 = vpop.permute.xlu0 %6150  ;;  %6360 = vmax.xlane.f32.xlu0 %v6359_v45  ;;  %6357 = vmax.xlane.f32.xlu1 %v6356_v55  ;;  %v6543_v52 = vsel %vm3581_vm13, %v6532_v42, 0 }
0x165d   : > { %15246 = vmatprep.subr.msk.bf16.mxu1 %vm2751_vm8, %v6151_v36  ;;  %15250 = vmatprep.subr.msk.bf16.mxu0 %vm3581_vm13, %v6532_v42  ;;  %v6160_v38 = vsel %vm2751_vm8, %v6151_v36, 0 }
0x165e   : > { %14816 = vmatpush3.bf16.msra.mxu1 %v6160_v38  ;;  %14856 = vmatpush3.bf16.xpose.msra.mxu0 %v6543_v52 }
0x165f   : > { %14817 = vmatprep.subr.bf16.mxu1 %v6149_v37  ;;  %v6530_v49 = vpop.permute.xlu1 %6529 }
0x1660   : > { %v6526_v15 = vpop.permute.xlu0 %6525  ;;  %15251 = vmatprep.subr.msk.bf16.mxu0 %vm3581_vm13, %v6530_v49  ;;  %v6540_v14 = vsel %vm3581_vm13, %v6530_v49, 0 }
0x1661   : > { %14859 = vmatprep.mubr.msk.bf16.mxu0 %vm3581_vm13, %v6526_v15  ;;  %v16168_v59 = vpop.eup %16167 }
0x1662   : > { %14818 = vmatpush3.bf16.msra.mxu1 %v6149_v37  ;;  %v16170_v4 = vpop.eup %16169  ;;  %v6143_v60 = vmul.f32 %v16168_v59, %v18144_v43 }
0x1663   : > { %v6141_v23 = vmul.f32 %v16170_v4, %v18140_v18  ;;  %v6528_v7 = vpop.permute.xlu1 %6527  ;;  %14823 = vmatprep.subr.bf16.mxu1 %v15731_v61 }
0x1664   : > { %v6145_v51 = vpack.c.bf16 %v6143_v60, %v6143_v60 }
0x1666   : > { %v16172_v62 = vpop.eup %16171  ;;  %14858 = vmatpush3.bf16.xpose.msra.mxu0 %v6540_v14 }
0x1667   : > { %v6142_v46 = vmul.f32 %v16172_v62, %v18148_v26 }
0x1669   : > { %v6144_v47 = vpack.c.bf16 %v6142_v46, %v6141_v23 }
0x166b   : > { %14819 = vmatprep.mubr.msk.bf16.mxu1 %vm3642_vm15, %v6144_v47 }
0x166c   : > { %14820 = vmatmul.mubr.msk.bf16.vlgmr.msra.gmra.mxu1 %vm3642_vm15, %v6145_v51 }
0x166d   : > { %14860 = vmatmul.mubr.msk.bf16.vlgmr.msra.gmra.mxu0 %vm3581_vm13, %v6528_v7  ;;  %14824 = vmatpush3.bf16.msra.mxu1 %v15731_v61 }
0x166e   : > { %7064 = vmatprep.mubr.bf16.mxu0 %v16430_v20  ;;  %14825 = vmatprep.subr.bf16.mxu1 %v15732_v50 }
0x1671   : > { %14826 = vmatpush3.bf16.msra.mxu1 %v15732_v50 }
0x16e1   : > { %v6355_v6 = vpop.xlane.xlu0 %6354 }
0x16e2   : > { %v6362_v12 = vsub.f32 %v6340_v11, %v6355_v6  ;;  %v18209_v11 = vrot.slane %v5798_v33, %v17370_v56 }
0x16e4   : > { %v6365_v13 = vmul.f32 1.442695, %v6362_v12 }
0x16e5   : > { %v6358_v18 = vpop.xlane.xlu1 %6357  ;;  %v6361_v3 = vpop.xlane.xlu0 %6360 }
0x16e6   : > { %16173 = vpow2.f32 %v6365_v13  ;;  %v6363_v43 = vsub.f32 %v6343_v17, %v6358_v18  ;;  %v6364_v24 = vsub.f32 %v6348_v35, %v6361_v3 }
0x16e8   : > { %v6367_v26 = vmul.f32 1.442695, %v6363_v43  ;;  %v6369_v53 = vmul.f32 1.442695, %v6364_v24 }
0x16ea   : > { %16175 = vpow2.f32 %v6367_v26 }
0x16eb   : > { %16177 = vpow2.f32 %v6369_v53 }
0x16f3   : > { %v16174_v27 = vpop.eup %16173 }
0x16f4   : > { %v6371_v58 = vsel %vm3642_vm15, %v16174_v27, 0.0 }
0x16f5   : > { %6372 = vadd.xlane.f32.xlu0 %v6371_v58 }
0x16f7   : > { %v16176_v25 = vpop.eup %16175 }
0x16f8   : > { %v16178_v28 = vpop.eup %16177  ;;  %v6374_v8 = vsel %vm3642_vm15, %v16176_v25, 0.0 }
0x16f9   : > { %6375 = vadd.xlane.f32.xlu0 %v6374_v8  ;;  %v6377_v5 = vsel %vm3642_vm15, %v16178_v28, 0.0 }
0x16fa   : > { %6378 = vadd.xlane.f32.xlu1 %v6377_v5 }
0x170b   : > { %6388 = vrot.lane.b32.xlu1 %v18099_v44, %s19999_s25 }
0x170f   : > { %6390 = vrot.lane.b32.xlu0 %v18093_v39, %s19999_s25 }
0x171b   : > { %v14805_v29 = vpop.f32.mrf.mxu1 }
0x171c   : > { %v18212_v21 = vadd.f32 %v14805_v29, %v18209_v11  ;;  %v15733_v29 = vld [vmem:[%s19991_s8 + $0x204] sm:$0xff]  }
0x171d   : > { %v18214_v35 = vpop.f32.mrf.mxu1 }
0x171f   : > { %v14806_v10 = vpop.f32.mrf.mxu1 }
0x1721   : > { %v18216_v37 = vpop.f32.mrf.mxu1 }
0x172c   : > { %v14821_v31 = vpop.f32.mrf.mxu1 }
0x172d   : > { %v14861_v32 = vpop.f32.mrf.mxu0  ;;  %v6211_v38 = vpack.c.bf16 %v14821_v31, %v14821_v31  ;;  %v15734_v31 = vld [vmem:[%s19991_s8 + $0x1fc] sm:$0xff]  }
0x172e   : > { %v6196_v30 = vpop.f32.mrf.mxu1  ;;  %v6588_v15 = vadd.f32 %v14861_v32, %v17462_v19 }
0x172f   : > { %v6579_v2 = vpop.f32.mrf.mxu0 }
0x1730   : > { %v6580_v48 = vadd.f32 %v6579_v2, %v17462_v19  ;;  %v14822_v17 = vpop.f32.mrf.mxu1  ;;  %v6599_v4 = vsel %vm3642_vm15, %v6588_v15, -inf }
0x1731   : > { %v14862_v42 = vpop.f32.mrf.mxu0 }
0x1732   : > { %v6199_v45 = vpop.f32.mrf.mxu1  ;;  %v6593_v55 = vsel %vm3642_vm15, %v6580_v48, -inf }
0x1733   : > { %v6210_v36 = vpack.c.bf16 %v6199_v45, %v6196_v30  ;;  %v6582_v52 = vpop.f32.mrf.mxu0  ;;  %6594 = vmax.xlane.f32.xlu1 %v6593_v55  ;;  %v6036_v30 = vadd.f32 %v18209_v11, %v18214_v35 }
0x1734   : > { %v6583_v49 = vadd.f32 %v6582_v52, %v17462_v19 }
0x1735   : > { %14827 = vmatprep.mubr.msk.bf16.mxu1 %vm3581_vm13, %v6210_v36 }
0x1736   : > { %14828 = vmatmul.mubr.msk.bf16.vlgmr.msra.gmra.mxu1 %vm3581_vm13, %v6211_v38  ;;  %v6596_v59 = vsel %vm3642_vm15, %v6583_v49, -inf }
0x1737   : > { %6597 = vmax.xlane.f32.xlu0 %v6596_v59 }
0x173b   : > { %6600 = vmax.xlane.f32.xlu0 %v6599_v4 }
0x177e   : > { %v6373_v14 = vpop.xlane.xlu0 %6372 }
0x177f   : > { %16179 = vrcp.f32 %v6373_v14 }
0x1782   : > { %v6376_v62 = vpop.xlane.xlu0 %6375 }
0x1783   : > { %v6379_v60 = vpop.xlane.xlu1 %6378  ;;  %16181 = vrcp.f32 %v6376_v62 }
0x1784   : > { %16183 = vrcp.f32 %v6379_v60 }
0x1786   : > { %v6391_v23 = vpop.permute.xlu0 %6390 }
0x1787   : > { %15249 = vmatprep.subr.msk.bf16.mxu1 %vm2751_vm8, %v6391_v23  ;;  %v6400_v46 = vsel %vm2751_vm8, %v6391_v23, 0  ;;  %v6389_v19 = vpop.permute.xlu1 %6388 }
0x1788   : > { %14840 = vmatpush3.bf16.msra.mxu1 %v6400_v46 }
0x1789   : > { %14841 = vmatprep.subr.bf16.mxu1 %v6389_v19 }
0x178c   : > { %14842 = vmatpush3.bf16.msra.mxu1 %v6389_v19  ;;  %v16180_v47 = vpop.eup %16179 }
0x178d   : > { %v6383_v61 = vmul.f32 %v16180_v47, %v16174_v27  ;;  %14847 = vmatprep.subr.bf16.mxu1 %v15733_v29 }
0x1790   : > { %v16182_v51 = vpop.eup %16181 }
0x1791   : > { %v16184_v7 = vpop.eup %16183  ;;  %v6384_v50 = vmul.f32 %v16182_v51, %v16176_v25 }
0x1792   : > { %v6385_v6 = vmul.f32 %v16184_v7, %v16178_v28  ;;  %v15735_v7 = vld [vmem:[%s19991_s8 + $0x214] sm:$0xff]  }
0x1793   : > { %v6386_v12 = vpack.c.bf16 %v6384_v50, %v6383_v61  ;;  %v15736_v61 = vld [vmem:[%s19991_s8 + $0x20c] sm:$0xff]  }
0x1794   : > { %v6387_v13 = vpack.c.bf16 %v6385_v6, %v6385_v6 }
0x1795   : > { %14843 = vmatprep.mubr.msk.bf16.mxu1 %vm3642_vm15, %v6386_v12 }
0x1796   : > { %14844 = vmatmul.mubr.msk.bf16.vlgmr.msra.gmra.mxu1 %vm3642_vm15, %v6387_v13 }
0x1797   : > { %14848 = vmatpush3.bf16.msra.mxu1 %v15733_v29 }
0x1798   : > { %14849 = vmatprep.subr.bf16.mxu1 %v15734_v31 }
0x179b   : > { %14850 = vmatpush3.bf16.msra.mxu1 %v15734_v31 }
0x17bc   : > { %v6595_v18 = vpop.xlane.xlu1 %6594 }
0x17bd   : > { %v6602_v24 = vsub.f32 %v6580_v48, %v6595_v18 }
0x17bf   : > { %v6605_v8 = vmul.f32 1.442695, %v6602_v24 }
0x17c0   : > { %v6598_v3 = vpop.xlane.xlu0 %6597 }
0x17c1   : > { %v6603_v43 = vsub.f32 %v6583_v49, %v6598_v3 }
0x17c3   : > { %v6607_v26 = vmul.f32 1.442695, %v6603_v43 }
0x17c4   : > { %v6601_v53 = vpop.xlane.xlu0 %6600 }
0x17c5   : > { %16185 = vpow2.f32 %v6607_v26  ;;  %v6604_v58 = vsub.f32 %v6588_v15, %v6601_v53 }
0x17c7   : > { %v6609_v5 = vmul.f32 1.442695, %v6604_v58 }
0x17c9   : > { %16187 = vpow2.f32 %v6609_v5 }
0x17ca   : > { %16189 = vpow2.f32 %v6605_v8 }
0x17d2   : > { %v16186_v27 = vpop.eup %16185 }
0x17d3   : > { %v6614_v25 = vsel %vm3642_vm15, %v16186_v27, 0.0 }
0x17d4   : > { %6615 = vadd.xlane.f32.xlu0 %v6614_v25 }
0x17d6   : > { %v16188_v28 = vpop.eup %16187 }
0x17d7   : > { %v6617_v16 = vsel %vm3642_vm15, %v16188_v28, 0.0  ;;  %v16190_v33 = vpop.eup %16189 }
0x17d8   : > { %6618 = vadd.xlane.f32.xlu1 %v6617_v16  ;;  %v6611_v10 = vsel %vm3642_vm15, %v16190_v33, 0.0 }
0x17dc   : > { %6612 = vadd.xlane.f32.xlu1 %v6611_v10 }
0x17ea   : > { %6630 = vrot.lane.b32.xlu0 %v18093_v39, %s19997_s14 }
0x17ed   : > { %6628 = vrot.lane.b32.xlu1 %v18099_v44, %s19997_s14  ;;  %s18616_s14 = sld [smem:[#allocation3 + %s7780_s24]]  ;;  %s7795_s24 = sadd.s32 7, %s18599_s26 }
0x17ee   : > { %s18634_s29 = sld [smem:[#allocation3 + %s7795_s24]] }
0x17f6   : > { %v14829_v32 = vpop.f32.mrf.mxu1 }
0x17f7   : > { %v6284_v2 = vadd.f32 %v14829_v32, %v18212_v21 }
0x17f8   : > { %v6268_v48 = vpop.f32.mrf.mxu1 }
0x17f9   : > { %v6282_v17 = vadd.f32 %v6268_v48, %v6036_v30  ;;  %v15742_v48 = vld [vmem:[%s19992_s9 + $0x1fc] ss:$16 sps:$4 sm:$0xff]  }
0x17fa   : > { %v14830_v42 = vpop.f32.mrf.mxu1 }
0x17fc   : > { %v6271_v45 = vpop.f32.mrf.mxu1 }
0x1856   : > { %v14845_v55 = vpop.f32.mrf.mxu1 }
0x1857   : > { %v6451_v39 = vpack.c.bf16 %v14845_v55, %v14845_v55 }
0x1858   : > { %v6436_v36 = vpop.f32.mrf.mxu1 }
0x185a   : > { %v14846_v52 = vpop.f32.mrf.mxu1 }
0x185c   : > { %v6439_v38 = vpop.f32.mrf.mxu1 }
0x185d   : > { %v6450_v49 = vpack.c.bf16 %v6439_v38, %v6436_v36  ;;  %v6616_v15 = vpop.xlane.xlu0 %6615 }
0x185f   : > { %14851 = vmatprep.mubr.msk.bf16.mxu1 %vm3581_vm13, %v6450_v49 }
0x1860   : > { %14852 = vmatmul.mubr.msk.bf16.vlgmr.msra.gmra.mxu1 %vm3581_vm13, %v6451_v39  ;;  %v15745_v39 = vld [vmem:[%s19992_s9 + $0x1d4] ss:$16 sps:$4 sm:$0xff]  }
0x1861   : > { %v6619_v44 = vpop.xlane.xlu1 %6618  ;;  %v6631_v59 = vpop.permute.xlu0 %6630 }
0x1862   : > { %15252 = vmatprep.subr.msk.bf16.mxu1 %vm2751_vm8, %v6631_v59  ;;  %v6640_v21 = vsel %vm2751_vm8, %v6631_v59, 0  ;;  %16191 = vrcp.f32 %v6619_v44  ;;  %v15746_v44 = vld [vmem:[%s19992_s9 + $0x1d8] ss:$16 sps:$4 sm:$0xff]   ;;  %v15749_v59 = vld [vmem:[%s19992_s9 + $0x1b0] ss:$16 sps:$4 sm:$0xff]  }
0x1863   : > { %14864 = vmatpush3.bf16.msra.mxu1 %v6640_v21  ;;  %16193 = vrcp.f32 %v6616_v15  ;;  %v15743_v15 = vld [vmem:[%s19992_s9 + $0x1d0] ss:$16 sps:$4 sm:$0xff]   ;;  %v15751_v21 = vld [vmem:[%s19992_s9 + $0x1b4] ss:$16 sps:$4 sm:$0xff]  }
0x1865   : > { %v6613_v35 = vpop.xlane.xlu1 %6612 }
0x1866   : > { %16195 = vrcp.f32 %v6613_v35  ;;  %v15752_v35 = vld [vmem:[%s19992_s9 + $0x1b8] ss:$16 sps:$4 sm:$0xff]  }
0x1869   : > { %v6629_v4 = vpop.permute.xlu1 %6628 }
0x186a   : > { %14865 = vmatprep.subr.bf16.mxu1 %v6629_v4 }
0x186b   : > { %14866 = vmatpush3.bf16.msra.mxu1 %v6629_v4  ;;  %v15754_v4 = vld [vmem:[%s19992_s9 + $0x1bc] ss:$16 sps:$4 sm:$0xff]  }
0x186c   : > { %14871 = vmatprep.subr.bf16.mxu1 %v15735_v7 }
0x186f   : > { %v16192_v14 = vpop.eup %16191 }
0x1870   : > { %v16194_v62 = vpop.eup %16193  ;;  %v6625_v23 = vmul.f32 %v16192_v14, %v16188_v28  ;;  %v15757_v14 = vld [vmem:[%s19992_s9 + $0x194] ss:$16 sps:$4 sm:$0xff]  }
0x1871   : > { %v6624_v19 = vmul.f32 %v16194_v62, %v16186_v27  ;;  %v6037_v27 = vadd.f32 %v18209_v11, %v18216_v37  ;;  %v15737_v11 = vld [vmem:[%s19992_s9 + $0x1f0] ss:$16 sps:$4 sm:$0xff]   ;;  %v15739_v37 = vld [vmem:[%s19992_s9 + $0x1f4] ss:$16 sps:$4 sm:$0xff]   ;;  %v15760_v62 = vld [vmem:[%s19992_s9 + $0x19c] ss:$16 sps:$4 sm:$0xff]  }
0x1872   : > { %v6627_v51 = vpack.c.bf16 %v6625_v23, %v6625_v23  ;;  %7032 = vmatprep.subr.bf16.mxu0 %v15739_v37  ;;  %v15758_v23 = vld [vmem:[%s19992_s9 + $0x198] ss:$16 sps:$4 sm:$0xff]  }
0x1873   : > { %v16196_v60 = vpop.eup %16195  ;;  %v6283_v16 = vadd.f32 %v6271_v45, %v6037_v27  ;;  %7033 = vmatpush1.bf16.msra.mxu0 %v15737_v11  ;;  %v16404_v11 = vld [vmem:[%s19990_s7 + $0x4] sm:$0xf] }
0x1874   : > { %v6623_v46 = vmul.f32 %v16196_v60, %v16190_v33  ;;  %7034 = vmatprep.subr.bf16.mxu0 %v15745_v39  ;;  %v15755_v60 = vld [vmem:[%s19992_s9 + $0x190] ss:$16 sps:$4 sm:$0xff]   ;;  %v18391_v37 = vrot.slane %v16404_v11, %v17737_v9  ;;  %v15789_v39 = vld [vmem:[%s19993_s10 + $0x174] sm:$0xff]  }
0x1876   : > { %v6626_v47 = vpack.c.bf16 %v6624_v19, %v6623_v46  ;;  %v15763_v46 = vld [vmem:[%s19992_s9 + $0x174] ss:$16 sps:$4 sm:$0xff]   ;;  %v15766_v19 = vld [vmem:[%s19992_s9 + $0x17c] ss:$16 sps:$4 sm:$0xff]  }
0x1877   : > { %7035 = vmatpush1.bf16.msra.mxu0 %v15743_v15  ;;  %v15788_v15 = vld [vmem:[%s19993_s10 + $0x1bc] sm:$0xff]  }
0x1878   : > { %14867 = vmatprep.mubr.msk.bf16.mxu1 %vm3642_vm15, %v6626_v47  ;;  %7036 = vmatprep.subr.bf16.mxu0 %v15751_v21  ;;  %v15761_v47 = vld [vmem:[%s19992_s9 + $0x170] ss:$16 sps:$4 sm:$0xff]  }
0x1879   : > { %14868 = vmatmul.mubr.msk.bf16.vlgmr.msra.gmra.mxu1 %vm3642_vm15, %v6627_v51  ;;  %v15764_v51 = vld [vmem:[%s19992_s9 + $0x178] ss:$16 sps:$4 sm:$0xff]   ;;  %v15793_v21 = vld [vmem:[%s19993_s10 + $0x16c] sm:$0xff]  }
0x187a   : > { %14872 = vmatpush3.bf16.msra.mxu1 %v15735_v7  ;;  %v15769_v7 = vld [vmem:[%s19992_s9 + $0x154] ss:$16 sps:$4 sm:$0xff]  }
0x187b   : > { %14873 = vmatprep.subr.bf16.mxu1 %v15736_v61  ;;  %7037 = vmatpush1.bf16.msra.mxu0 %v15749_v59  ;;  %v15792_v59 = vld [vmem:[%s19993_s10 + $0x1b4] sm:$0xff]  }
0x187c   : > { %7038 = vmatprep.subr.bf16.mxu0 %v15757_v14  ;;  %v15796_v14 = vld [vmem:[%s19993_s10 + $0x1ac] sm:$0xff]  }
0x187e   : > { %14874 = vmatpush3.bf16.msra.mxu1 %v15736_v61  ;;  %v15772_v61 = vld [vmem:[%s19992_s9 + $0x15c] ss:$16 sps:$4 sm:$0xff]  }
0x187f   : > { %7083 = vmatprep.subr.bf16.mxu1 %v15742_v48  ;;  %7039 = vmatpush1.bf16.msra.mxu0 %v15755_v60  ;;  %v15798_v60 = vld [vmem:[%s19993_s10 + $0x1e4] sm:$0xff]  }
0x1880   : > { %7040 = vmatprep.subr.bf16.mxu0 %v15763_v46  ;;  %v15800_v46 = vld [vmem:[%s19993_s10 + $0x1a4] sm:$0xff]  }
0x1883   : > { %7041 = vmatpush1.bf16.msra.mxu0 %v15761_v47  ;;  %v15802_v47 = vld [vmem:[%s19993_s10 + $0x1dc] sm:$0xff]  }
0x1884   : > { %7042 = vmatprep.subr.bf16.mxu0 %v15769_v7  ;;  %v15804_v7 = vld [vmem:[%s19993_s10 + $0x19c] sm:$0xff]  }
0x1920   : > { %v14853_v50 = vpop.f32.mrf.mxu1 }
0x1921   : > { %v6524_v6 = vadd.f32 %v14853_v50, %v6284_v2  ;;  %v15767_v50 = vld [vmem:[%s19992_s9 + $0x150] ss:$16 sps:$4 sm:$0xff]  }
0x1922   : > { %v6508_v12 = vpop.f32.mrf.mxu1  ;;  %7043 = vmatpush1.bf16.msra.mxu0 %v15767_v50  ;;  %v15806_v50 = vld [vmem:[%s19993_s10 + $0x1d4] sm:$0xff]  }
0x1923   : > { %v6522_v13 = vadd.f32 %v6508_v12, %v6282_v17  ;;  %v15775_v12 = vld [vmem:[%s19992_s9 + $0x134] ss:$16 sps:$4 sm:$0xff]  }
0x1924   : > { %v14854_v18 = vpop.f32.mrf.mxu1  ;;  %7044 = vmatprep.subr.bf16.mxu0 %v15775_v12  ;;  %v15808_v12 = vld [vmem:[%s19993_s10 + $0x194] sm:$0xff]  }
0x1925   : > { %v15773_v18 = vld [vmem:[%s19992_s9 + $0x130] ss:$16 sps:$4 sm:$0xff]  }
0x1926   : > { %v6511_v3 = vpop.f32.mrf.mxu1  ;;  %7045 = vmatpush1.bf16.msra.mxu0 %v15773_v18  ;;  %v15810_v18 = vld [vmem:[%s19993_s10 + $0x1cc] sm:$0xff]  }
0x1927   : > { %v6523_v10 = vadd.f32 %v6511_v3, %v6283_v16  ;;  %v15776_v3 = vld [vmem:[%s19992_s9 + $0x138] ss:$16 sps:$4 sm:$0xff]  }
0x1939   : > { %v14869_v43 = vpop.f32.mrf.mxu1 }
0x193a   : > { %v6691_v8 = vpack.c.bf16 %v14869_v43, %v14869_v43  ;;  %v15781_v43 = vld [vmem:[%s19992_s9 + $0x114] ss:$16 sps:$4 sm:$0xff]  }
0x193b   : > { %v6676_v24 = vpop.f32.mrf.mxu1  ;;  %7046 = vmatprep.subr.bf16.mxu0 %v15781_v43  ;;  %v15812_v43 = vld [vmem:[%s19993_s10 + $0x18c] sm:$0xff]  }
0x193d   : > { %v14870_v26 = vpop.f32.mrf.mxu1 }
0x193e   : > { %v15779_v26 = vld [vmem:[%s19992_s9 + $0x110] ss:$16 sps:$4 sm:$0xff]  }
0x193f   : > { %v6679_v53 = vpop.f32.mrf.mxu1  ;;  %7047 = vmatpush1.bf16.msra.mxu0 %v15779_v26  ;;  %v15814_v26 = vld [vmem:[%s19993_s10 + $0x1c4] sm:$0xff]  }
0x1940   : > { %v6690_v58 = vpack.c.bf16 %v6679_v53, %v6676_v24  ;;  %v15784_v24 = vld [vmem:[%s19992_s9 + $0x11c] ss:$16 sps:$4 sm:$0xff]   ;;  %v15782_v53 = vld [vmem:[%s19992_s9 + $0x118] ss:$16 sps:$4 sm:$0xff]  }
0x1942   : > { %14875 = vmatprep.mubr.msk.bf16.mxu1 %vm3581_vm13, %v6690_v58 }
0x1943   : > { %14876 = vmatmul.mubr.msk.bf16.vlgmr.msra.gmra.mxu1 %vm3581_vm13, %v6691_v8 }
0x1944   : > { %7115 = vmatprep.mubr.bf16.mxu1 %v16430_v20 }
0x1a03   : > { %v14877_v5 = vpop.f32.mrf.mxu1 }
0x1a04   : > { %v6764_v25 = vadd.f32 %v14877_v5, %v6524_v6  ;;  %v15770_v6 = vld [vmem:[%s19992_s9 + $0x158] ss:$16 sps:$4 sm:$0xff]  }
0x1a05   : > { %v6748_v28 = vpop.f32.mrf.mxu1 }
0x1a06   : > { %v6762_v33 = vadd.f32 %v6748_v28, %v6522_v13  ;;  %v18292_v38 = vadd.f32 %v6764_v25, %v17955_v41  ;;  %v15748_v41 = vld [vmem:[%s19992_s9 + $0x1dc] ss:$16 sps:$4 sm:$0xff]  }
0x1a07   : > { %v14878_v29 = vpop.f32.mrf.mxu1  ;;  %v15778_v13 = vld [vmem:[%s19992_s9 + $0x13c] ss:$16 sps:$4 sm:$0xff]  }
0x1a08   : > { %v18264_v31 = vadd.f32 %v6762_v33, %v17947_v34  ;;  %v15740_v34 = vld [vmem:[%s19992_s9 + $0x1f8] ss:$16 sps:$4 sm:$0xff]  }
0x1a09   : > { %v6751_v32 = vpop.f32.mrf.mxu1  ;;  %7084 = vmatpush1.bf16.msra.mxu1 %v15740_v34 }
0x1a0a   : > { %v6763_v30 = vadd.f32 %v6751_v32, %v6523_v10  ;;  %6768 = vadd.xlane.f32.xlu1 %v18264_v31  ;;  %7085 = vmatprep.subr.bf16.mxu1 %v15748_v41  ;;  %v15791_v41 = vld [vmem:[%s19993_s10 + $0x134] sm:$0xff]  }
0x1a0c   : > { %v18268_v2 = vadd.f32 %v6763_v30, %v17951_v40 }
0x1a0d   : > { %7086 = vmatpush1.bf16.msra.mxu1 %v15746_v44  ;;  %v15790_v44 = vld [vmem:[%s19993_s10 + $0x1f4] sm:$0xff]  }
0x1a0e   : > { %6770 = vadd.xlane.f32.xlu0 %v18268_v2  ;;  %7087 = vmatprep.subr.bf16.mxu1 %v15754_v4  ;;  %v15795_v4 = vld [vmem:[%s19993_s10 + $0x12c] sm:$0xff]  }
0x1a11   : > { %7088 = vmatpush1.bf16.msra.mxu1 %v15752_v35  ;;  %v15794_v35 = vld [vmem:[%s19993_s10 + $0x1ec] sm:$0xff]  }
0x1a12   : > { %7089 = vmatprep.subr.bf16.mxu1 %v15760_v62  ;;  %v15797_v62 = vld [vmem:[%s19993_s10 + $0x164] sm:$0xff]  }
0x1a15   : > { %7090 = vmatpush1.bf16.msra.mxu1 %v15758_v23  ;;  %v15799_v23 = vld [vmem:[%s19993_s10 + $0x124] sm:$0xff]  }
0x1a16   : > { %7091 = vmatprep.subr.bf16.mxu1 %v15766_v19  ;;  %v15801_v19 = vld [vmem:[%s19993_s10 + $0x15c] sm:$0xff]  }
0x1a19   : > { %7092 = vmatpush1.bf16.msra.mxu1 %v15764_v51  ;;  %v15803_v51 = vld [vmem:[%s19993_s10 + $0x11c] sm:$0xff]  }
0x1a1a   : > { %7093 = vmatprep.subr.bf16.mxu1 %v15772_v61  ;;  %v15805_v61 = vld [vmem:[%s19993_s10 + $0x154] sm:$0xff]  }
0x1a1d   : > { %7094 = vmatpush1.bf16.msra.mxu1 %v15770_v6  ;;  %v15807_v6 = vld [vmem:[%s19993_s10 + $0x114] sm:$0xff]  }
0x1a1e   : > { %7095 = vmatprep.subr.bf16.mxu1 %v15778_v13  ;;  %v15809_v13 = vld [vmem:[%s19993_s10 + $0x14c] sm:$0xff]  }
0x1a21   : > { %7096 = vmatpush1.bf16.msra.mxu1 %v15776_v3  ;;  %v15811_v3 = vld [vmem:[%s19993_s10 + $0x10c] sm:$0xff]  }
0x1a22   : > { %7097 = vmatprep.subr.bf16.mxu1 %v15784_v24  ;;  %v15813_v24 = vld [vmem:[%s19993_s10 + $0x144] sm:$0xff]  }
0x1a25   : > { %7098 = vmatpush1.bf16.msra.mxu1 %v15782_v53  ;;  %v15815_v53 = vld [vmem:[%s19993_s10 + $0x104] sm:$0xff]  }
0x1a93   : > { %v6769_v40 = vpop.xlane.xlu1 %6768 }
0x1a94   : > { %v6774_v17 = vmul.f32 0.0078125, %v6769_v40 }
0x1a96   : > { %v18284_v42 = vsub.f32 %v18264_v31, %v6774_v17  ;;  %v18396_v17 = vrot.slane %v16404_v11, %v17745_v54 }
0x1a97   : > { %v6771_v45 = vpop.xlane.xlu0 %6770 }
0x1a98   : > { %v6775_v55 = vmul.f32 0.0078125, %v6771_v45  ;;  %v6780_v36 = vmul.f32 %v18284_v42, %v18284_v42 }
0x1a9a   : > { %v18289_v52 = vsub.f32 %v18268_v2, %v6775_v55  ;;  %6783 = vadd.xlane.f32.xlu0 %v6780_v36 }
0x1a9c   : > { %v6781_v49 = vmul.f32 %v18289_v52, %v18289_v52 }
0x1a9e   : > { %6772 = vadd.xlane.f32.xlu0 %v18292_v38  ;;  %6785 = vadd.xlane.f32.xlu1 %v6781_v49  ;;  %v15787_v49 = vld [vmem:[%s19993_s10 + $0x13c] sm:$0xff]  }
0x1b23   : > { %v6784_v58 = vpop.xlane.xlu0 %6783 }
0x1b24   : > { %v6789_v8 = vmul.f32 0.0078125, %v6784_v58  ;;  %v15816_v58 = vld [vmem:[%s19993_s10 + $0x184] sm:$0xff]  }
0x1b26   : > { %v6792_v5 = vadd.f32 1e-05, %v6789_v8 }
0x1b27   : > { %v6786_v27 = vpop.xlane.xlu1 %6785  ;;  %v6773_v25 = vpop.xlane.xlu0 %6772 }
0x1b28   : > { %16197 = vrsqrt.f32 %v6792_v5  ;;  %v6790_v28 = vmul.f32 0.0078125, %v6786_v27  ;;  %v6776_v16 = vmul.f32 0.0078125, %v6773_v25 }
0x1b2a   : > { %v6793_v33 = vadd.f32 1e-05, %v6790_v28  ;;  %v18382_v29 = vsub.f32 %v18292_v38, %v6776_v16  ;;  %v15786_v38 = vld [vmem:[%s19993_s10 + $0x1fc] sm:$0xff]  }
0x1b2b   : > { %14189 = vmatprep.subr.bf16.mxu1 %v15786_v38 }
0x1b2c   : > { %16199 = vrsqrt.f32 %v6793_v33  ;;  %v6782_v10 = vmul.f32 %v18382_v29, %v18382_v29 }
0x1b2e   : > { %6787 = vadd.xlane.f32.xlu1 %v6782_v10 }
0x1b35   : > { %v16198_v32 = vpop.eup %16197 }
0x1b36   : > { %v6798_v30 = vmul.f32 %v16198_v32, %v18284_v42  ;;  %v13182_v32 = vld [vmem:[%s19992_s9 + $0x210] sm:$0x11] }
0x1b37   : > { %v6852_v11 = vunpack.c.l.bf16 %v13182_v32 }
0x1b38   : > { %v6805_v40 = vmul.f32 %v18391_v37, %v6798_v30  ;;  %v13183_v30 = vld [vmem:[%s19992_s9 + $0x218] sm:$0x11] }
0x1b39   : > { %v16200_v34 = vpop.eup %16199 }
0x1b3a   : > { %v6799_v48 = vmul.f32 %v16200_v34, %v18289_v52  ;;  %v6812_v55 = vadd.f32 %v18396_v17, %v6805_v40  ;;  %v15785_v52 = vld [vmem:[%s19993_s10 + $0x17c] sm:$0xff]   ;;  %v6854_v34 = vunpack.c.l.bf16 %v13183_v30  ;;  %v6855_v40 = vunpack.c.h.bf16 %v13183_v30 }
0x1b3b   : > { %14161 = vmatprep.subr.bf16.mxu0 %v15785_v52 }
0x1b3c   : > { %v6806_v45 = vmul.f32 %v18391_v37, %v6799_v48  ;;  %v6853_v48 = vunpack.c.h.bf16 %v13182_v32 }
0x1b3e   : > { %v6813_v42 = vadd.f32 %v18396_v17, %v6806_v45 }
0x1b40   : > { %v6815_v36 = vpack.c.bf16 %v6813_v42, %v6812_v55  ;;  %v18517_v55 = vrot.slane %v6853_v48, %v17370_v56  ;;  %v18520_v42 = vrot.slane %v6855_v40, %v17370_v56 }
0x1b42   : > { %7065 = vmatmul.mubr.bf16.vlgmr.msra.gmra.mxu0 %v6815_v36  ;;  %7116 = vmatmul.mubr.bf16.vlgmr.msra.gmra.mxu1 %v6815_v36 }
0x1b43   : > { %7074 = vmatprep.mubr.bf16.mxu0 %v16430_v20  ;;  %7125 = vmatprep.mubr.bf16.mxu1 %v16430_v20 }
0x1b44   : > { %14162 = vmatpush3.bf16.msra.mxu0 %v15787_v49  ;;  %14190 = vmatpush3.bf16.msra.mxu1 %v15788_v15 }
0x1b45   : > { %14163 = vmatprep.subr.bf16.mxu0 %v15789_v39  ;;  %14191 = vmatprep.subr.bf16.mxu1 %v15790_v44 }
0x1b48   : > { %14164 = vmatpush3.bf16.msra.mxu0 %v15791_v41  ;;  %14192 = vmatpush3.bf16.msra.mxu1 %v15792_v59 }
0x1b49   : > { %14165 = vmatprep.subr.bf16.mxu0 %v15793_v21  ;;  %14193 = vmatprep.subr.bf16.mxu1 %v15794_v35 }
0x1b4c   : > { %14166 = vmatpush3.bf16.msra.mxu0 %v15795_v4  ;;  %14194 = vmatpush3.bf16.msra.mxu1 %v15796_v14 }
0x1b4d   : > { %14167 = vmatprep.subr.bf16.mxu0 %v15797_v62  ;;  %14195 = vmatprep.subr.bf16.mxu1 %v15798_v60 }
0x1b50   : > { %14168 = vmatpush3.bf16.msra.mxu0 %v15799_v23  ;;  %14196 = vmatpush3.bf16.msra.mxu1 %v15800_v46 }
0x1b51   : > { %14169 = vmatprep.subr.bf16.mxu0 %v15801_v19  ;;  %14197 = vmatprep.subr.bf16.mxu1 %v15802_v47 }
0x1b54   : > { %14170 = vmatpush3.bf16.msra.mxu0 %v15803_v51  ;;  %14198 = vmatpush3.bf16.msra.mxu1 %v15804_v7 }
0x1b55   : > { %14171 = vmatprep.subr.bf16.mxu0 %v15805_v61  ;;  %14199 = vmatprep.subr.bf16.mxu1 %v15806_v50 }
0x1b58   : > { %14172 = vmatpush3.bf16.msra.mxu0 %v15807_v6  ;;  %14200 = vmatpush3.bf16.msra.mxu1 %v15808_v12 }
0x1b59   : > { %14173 = vmatprep.subr.bf16.mxu0 %v15809_v13  ;;  %14201 = vmatprep.subr.bf16.mxu1 %v15810_v18 }
0x1b5c   : > { %14174 = vmatpush3.bf16.msra.mxu0 %v15811_v3  ;;  %14202 = vmatpush3.bf16.msra.mxu1 %v15812_v43 }
0x1b5d   : > { %14175 = vmatprep.subr.bf16.mxu0 %v15813_v24  ;;  %14203 = vmatprep.subr.bf16.mxu1 %v15814_v26 }
0x1b60   : > { %14176 = vmatpush3.bf16.msra.mxu0 %v15815_v53  ;;  %14204 = vmatpush3.bf16.msra.mxu1 %v15816_v58 }
0x1b61   : > { %14879 = vmatprep.subr.bf16.mxu0 %v16433_v1  ;;  %14899 = vmatprep.subr.bf16.mxu1 %v16433_v1 }
0x1bb7   : > { %v6788_v8 = vpop.xlane.xlu1 %6787 }
0x1bb8   : > { %v6791_v5 = vmul.f32 0.0078125, %v6788_v8 }
0x1bba   : > { %v6794_v27 = vadd.f32 1e-05, %v6791_v5 }
0x1bbc   : > { %16201 = vrsqrt.f32 %v6794_v27 }
0x1bc9   : > { %v16202_v25 = vpop.eup %16201 }
0x1bca   : > { %v6800_v28 = vmul.f32 %v16202_v25, %v18382_v29  ;;  %v18511_v29 = vrot.slane %v6852_v11, %v17370_v56 }
0x1bcc   : > { %v6807_v16 = vmul.f32 %v18391_v37, %v6800_v28  ;;  %v18514_v37 = vrot.slane %v6854_v34, %v17370_v56 }
0x1bce   : > { %v6814_v33 = vadd.f32 %v18396_v17, %v6807_v16 }
0x1bd0   : > { %v6816_v10 = vpack.c.bf16 %v6814_v33, %v6814_v33 }
0x1bd2   : > { %7075 = vmatmul.mubr.bf16.gmra.mxu0 %v6816_v10  ;;  %7126 = vmatmul.mubr.bf16.gmra.mxu1 %v6816_v10 }
0x1c02   : > { %v7066_v17 = vpop.f32.mrf.mxu0  ;;  %v7117_v45 = vpop.f32.mrf.mxu1 }
0x1c03   : > { %v18523_v36 = vadd.f32 %v7066_v17, %v18511_v29  ;;  %v18526_v52 = vadd.f32 %v7117_v45, %v18514_v37 }
0x1c04   : > { %v7068_v38 = vpop.f32.mrf.mxu0  ;;  %v7119_v49 = vpop.f32.mrf.mxu1 }
0x1c05   : > { %v7146_v15 = vmul.f32 0.044715, %v18523_v36  ;;  %v7148_v39 = vmul.f32 0.044715, %v18526_v52  ;;  %v18531_v44 = vadd.f32 %v7068_v38, %v18517_v55  ;;  %v18534_v41 = vadd.f32 %v7119_v49, %v18520_v42 }
0x1c06   : > { %v7070_v59 = vpop.f32.mrf.mxu0  ;;  %v7121_v21 = vpop.f32.mrf.mxu1 }
0x1c07   : > { %v7158_v35 = vmul.f32 %v7146_v15, %v18523_v36  ;;  %v7160_v4 = vmul.f32 %v7148_v39, %v18526_v52  ;;  %v7071_v14 = vadd.f32 %v7070_v59, %v18511_v29  ;;  %v18540_v62 = vadd.f32 %v7121_v21, %v18514_v37 }
0x1c08   : > { %v7147_v60 = vmul.f32 0.044715, %v18531_v44  ;;  %v7149_v23 = vmul.f32 0.044715, %v18534_v41  ;;  %v7072_v46 = vpop.f32.mrf.mxu0  ;;  %v7123_v7 = vpop.f32.mrf.mxu1 }
0x1c09   : > { %v7170_v19 = vmul.f32 %v7158_v35, %v18523_v36  ;;  %v7172_v47 = vmul.f32 %v7160_v4, %v18526_v52  ;;  %v7150_v51 = vmul.f32 0.044715, %v7071_v14  ;;  %v7152_v6 = vmul.f32 0.044715, %v18540_v62 }
0x1c0a   : > { %v7159_v61 = vmul.f32 %v7147_v60, %v18531_v44  ;;  %v7161_v50 = vmul.f32 %v7149_v23, %v18534_v41  ;;  %v7073_v3 = vadd.f32 %v7072_v46, %v18517_v55  ;;  %v7124_v53 = vadd.f32 %v7123_v7, %v18520_v42 }
0x1c0b   : > { %v7182_v12 = vadd.f32 %v7170_v19, %v18523_v36  ;;  %v7184_v13 = vadd.f32 %v7172_v47, %v18526_v52  ;;  %v7162_v18 = vmul.f32 %v7150_v51, %v7071_v14  ;;  %v7164_v26 = vmul.f32 %v7152_v6, %v18540_v62 }
0x1c0c   : > { %v7171_v43 = vmul.f32 %v7159_v61, %v18531_v44  ;;  %v7173_v24 = vmul.f32 %v7161_v50, %v18534_v41  ;;  %v7151_v27 = vmul.f32 0.044715, %v7073_v3  ;;  %v7153_v28 = vmul.f32 0.044715, %v7124_v53 }
0x1c0d   : > { %v7194_v58 = vmul.f32 0.7978846, %v7182_v12  ;;  %v7196_v8 = vmul.f32 0.7978846, %v7184_v13  ;;  %v7174_v5 = vmul.f32 %v7162_v18, %v7071_v14  ;;  %v7176_v25 = vmul.f32 %v7164_v26, %v18540_v62 }
0x1c0e   : > { %v7183_v16 = vadd.f32 %v7171_v43, %v18531_v44  ;;  %v7163_v10 = vmul.f32 %v7151_v27, %v7073_v3  ;;  %v7165_v30 = vmul.f32 %v7153_v28, %v7124_v53  ;;  %v7185_v40 = vadd.f32 %v7173_v24, %v18534_v41 }
0x1c0f   : > { %v7186_v33 = vadd.f32 %v7174_v5, %v7071_v14  ;;  %16203 = vtanh.f32 %v7194_v58  ;;  %v7188_v32 = vadd.f32 %v7176_v25, %v18540_v62  ;;  %v7134_v47 = vmul.f32 0.5, %v18523_v36 }
0x1c10   : > { %v7195_v11 = vmul.f32 0.7978846, %v7183_v16  ;;  %16205 = vtanh.f32 %v7196_v8  ;;  %v7175_v48 = vmul.f32 %v7163_v10, %v7073_v3  ;;  %v7177_v45 = vmul.f32 %v7165_v30, %v7124_v53 }
0x1c11   : > { %v7198_v34 = vmul.f32 0.7978846, %v7186_v33  ;;  %v7200_v17 = vmul.f32 0.7978846, %v7188_v32  ;;  %v7197_v49 = vmul.f32 0.7978846, %v7185_v40 }
0x1c12   : > { %16207 = vtanh.f32 %v7195_v11  ;;  %v7187_v38 = vadd.f32 %v7175_v48, %v7073_v3  ;;  %v7189_v15 = vadd.f32 %v7177_v45, %v7124_v53  ;;  %v7138_v6 = vmul.f32 0.5, %v7071_v14 }
0x1c13   : > { %16209 = vtanh.f32 %v7198_v34  ;;  %v7135_v12 = vmul.f32 0.5, %v18531_v44  ;;  %v7140_v24 = vmul.f32 0.5, %v18540_v62  ;;  %v7139_v26 = vmul.f32 0.5, %v7073_v3 }
0x1c14   : > { %16211 = vtanh.f32 %v7200_v17  ;;  %v7199_v39 = vmul.f32 0.7978846, %v7187_v38  ;;  %v7201_v59 = vmul.f32 0.7978846, %v7189_v15  ;;  %v7137_v5 = vmul.f32 0.5, %v18534_v41 }
0x1c15   : > { %16213 = vtanh.f32 %v7197_v49  ;;  %v7141_v27 = vmul.f32 0.5, %v7124_v53  ;;  %v7136_v36 = vmul.f32 0.5, %v18526_v52 }
0x1c16   : > { %16215 = vtanh.f32 %v7199_v39 }
0x1c17   : > { %16217 = vtanh.f32 %v7201_v59 }
0x1c1c   : > { %v16204_v21 = vpop.eup %16203 }
0x1c1d   : > { %v16206_v35 = vpop.eup %16205  ;;  %v7218_v50 = vadd.f32 1.0, %v16204_v21 }
0x1c1e   : > { %v7220_v43 = vadd.f32 1.0, %v16206_v35 }
0x1c1f   : > { %v16208_v4 = vpop.eup %16207  ;;  %v7230_v14 = vmul.f32 %v7218_v50, %v7134_v47 }
0x1c20   : > { %v16210_v60 = vpop.eup %16209  ;;  %v7219_v7 = vadd.f32 1.0, %v16208_v4  ;;  %v7232_v32 = vmul.f32 %v7220_v43, %v7136_v36 }
0x1c21   : > { %v16212_v23 = vpop.eup %16211  ;;  %v7222_v19 = vadd.f32 1.0, %v16210_v60 }
0x1c22   : > { %v16214_v46 = vpop.eup %16213  ;;  %v7224_v51 = vadd.f32 1.0, %v16212_v23  ;;  %v7231_v16 = vmul.f32 %v7219_v7, %v7135_v12 }
0x1c23   : > { %v16216_v61 = vpop.eup %16215  ;;  %v7221_v13 = vadd.f32 1.0, %v16214_v46  ;;  %v7234_v8 = vmul.f32 %v7222_v19, %v7138_v6 }
0x1c24   : > { %v16218_v18 = vpop.eup %16217  ;;  %v7223_v58 = vadd.f32 1.0, %v16216_v61  ;;  %v7236_v28 = vmul.f32 %v7224_v51, %v7140_v24 }
0x1c25   : > { %v7225_v25 = vadd.f32 1.0, %v16218_v18  ;;  %v7233_v10 = vmul.f32 %v7221_v13, %v7137_v5  ;;  %v7242_v11 = vpack.c.bf16 %v7234_v8, %v7230_v14 }
0x1c26   : > { %v7235_v33 = vmul.f32 %v7223_v58, %v7139_v26  ;;  %v7244_v62 = vpack.c.bf16 %v7236_v28, %v7232_v32 }
0x1c27   : > { %v7237_v44 = vmul.f32 %v7225_v25, %v7141_v27 }
0x1c28   : > { %v7243_v30 = vpack.c.bf16 %v7235_v33, %v7231_v16 }
0x1c29   : > { %v7245_v34 = vpack.c.bf16 %v7237_v44, %v7233_v10 }
0x1c2a   : > { %7539 = vmatprep.mubr.bf16.mxu0 %v7243_v30 }
0x1c2b   : > { %7586 = vmatprep.mubr.bf16.mxu1 %v7245_v34  ;;  %7540 = vmatmul.mubr.bf16.vlgmr.msra.gmra.mxu0 %v7242_v11 }
0x1c2c   : > { %7587 = vmatmul.mubr.bf16.vlgmr.msra.gmra.mxu1 %v7244_v62  ;;  %v13312_v62 = vld [vmem:[%s19993_s10 + $0x204] sm:$0x1] }
0x1c92   : > { %v7076_v41 = vpop.f32.mrf.mxu0  ;;  %v7127_v3 = vpop.f32.mrf.mxu1 }
0x1c93   : > { %v7077_v53 = vadd.f32 %v7076_v41, %v18511_v29  ;;  %v7128_v52 = vadd.f32 %v7127_v3, %v18514_v37 }
0x1c94   : > { %v7078_v48 = vpop.f32.mrf.mxu0  ;;  %v7129_v40 = vpop.f32.mrf.mxu1 }
0x1c95   : > { %v7154_v17 = vmul.f32 0.044715, %v7077_v53  ;;  %v7156_v45 = vmul.f32 0.044715, %v7128_v52  ;;  %v7079_v38 = vadd.f32 %v7078_v48, %v18517_v55  ;;  %v7130_v49 = vadd.f32 %v7129_v40, %v18520_v42 }
0x1c96   : > { %v7080_v15 = vpop.f32.mrf.mxu0  ;;  %v7131_v39 = vpop.f32.mrf.mxu1  ;;  %v7142_v58 = vmul.f32 0.5, %v7077_v53  ;;  %v7144_v36 = vmul.f32 0.5, %v7128_v52 }
0x1c97   : > { %v7166_v59 = vmul.f32 %v7154_v17, %v7077_v53  ;;  %v7168_v21 = vmul.f32 %v7156_v45, %v7128_v52  ;;  %v7155_v35 = vmul.f32 0.044715, %v7079_v38  ;;  %v7157_v4 = vmul.f32 0.044715, %v7130_v49 }
0x1c98   : > { %v7081_v60 = vpop.f32.mrf.mxu0  ;;  %v7132_v23 = vpop.f32.mrf.mxu1  ;;  %v7143_v27 = vmul.f32 0.5, %v7079_v38  ;;  %v7145_v28 = vmul.f32 0.5, %v7130_v49 }
0x1c99   : > { %v7178_v46 = vmul.f32 %v7166_v59, %v7077_v53  ;;  %v7180_v29 = vmul.f32 %v7168_v21, %v7128_v52  ;;  %v7167_v19 = vmul.f32 %v7155_v35, %v7079_v38  ;;  %v7169_v37 = vmul.f32 %v7157_v4, %v7130_v49 }
0x1c9b   : > { %v7190_v47 = vadd.f32 %v7178_v46, %v7077_v53  ;;  %v7192_v51 = vadd.f32 %v7180_v29, %v7128_v52  ;;  %v7179_v7 = vmul.f32 %v7167_v19, %v7079_v38  ;;  %v7181_v61 = vmul.f32 %v7169_v37, %v7130_v49  ;;  %v15817_v19 = vld [vmem:[%s19994_s11 + $0x38] sm:$0xff]  }
0x1c9c   : > { %v7604_v52 = vunpack.c.l.bf16 %v13312_v62  ;;  %14880 = vmatpush3.bf16.msra.mxu0 %v15817_v19  ;;  %v7782_v62 = vstv %s18616_s14  ;;  %s20002_s14 = smov 32  }
0x1c9d   : > { %v7202_v50 = vmul.f32 0.7978846, %v7190_v47  ;;  %v7204_v55 = vmul.f32 0.7978846, %v7192_v51  ;;  %v7191_v6 = vadd.f32 %v7179_v7, %v7079_v38  ;;  %v7193_v42 = vadd.f32 %v7181_v61, %v7130_v49  ;;  %14881 = vmatprep.subr.bf16.mxu0 %v16433_v1 }
0x1c9e   : > { %v7608_v39 = vrot.slane %v7604_v52, %v17370_v56 }
0x1c9f   : > { %v7203_v12 = vmul.f32 0.7978846, %v7191_v6  ;;  %v7205_v13 = vmul.f32 0.7978846, %v7193_v42  ;;  %16219 = vtanh.f32 %v7202_v50 }
0x1ca0   : > { %16221 = vtanh.f32 %v7204_v55 }
0x1ca1   : > { %16223 = vtanh.f32 %v7203_v12 }
0x1ca2   : > { %16225 = vtanh.f32 %v7205_v13 }
0x1cac   : > { %v16220_v18 = vpop.eup %16219 }
0x1cad   : > { %v16222_v43 = vpop.eup %16221  ;;  %v7226_v24 = vadd.f32 1.0, %v16220_v18 }
0x1cae   : > { %v16224_v26 = vpop.eup %16223  ;;  %v7228_v8 = vadd.f32 1.0, %v16222_v43 }
0x1caf   : > { %v16226_v5 = vpop.eup %16225  ;;  %v7227_v25 = vadd.f32 1.0, %v16224_v26  ;;  %v7238_v33 = vmul.f32 %v7226_v24, %v7142_v58  ;;  %v15818_v26 = vld [vmem:[%s19994_s11 + $0x30] sm:$0xff]   ;;  %v15819_v58 = vld [vmem:[%s19994_s11 + $0x28] sm:$0xff]  }
0x1cb0   : > { %v7229_v16 = vadd.f32 1.0, %v16226_v5  ;;  %v7240_v10 = vmul.f32 %v7228_v8, %v7144_v36  ;;  %14882 = vmatpush3.bf16.msra.mxu0 %v15818_v26  ;;  %v15820_v8 = vld [vmem:[%s19994_s11 + $0x20] sm:$0xff]   ;;  %v15821_v5 = vld [vmem:[%s19994_s11 + $0x18] sm:$0xff]   ;;  %v15825_v36 = vld [vmem:[%s19995_s12 + $0x10] sm:$0xff]  }
0x1cb1   : > { %v7239_v14 = vmul.f32 %v7227_v25, %v7143_v27  ;;  %v7246_v11 = vpack.c.bf16 %v7238_v33, %v7238_v33  ;;  %14883 = vmatprep.subr.bf16.mxu0 %v16433_v1  ;;  %v15823_v27 = vld [vmem:[%s19995_s12 + $0x18] sm:$0xff]   ;;  %v15822_v25 = vld [vmem:[%s19994_s11 + $0x10] sm:$0xff]   ;;  %v7767_v33 = vstv %s7766_s17 }
0x1cb2   : > { %v7241_v44 = vmul.f32 %v7229_v16, %v7145_v28  ;;  %v7248_v34 = vpack.c.bf16 %v7240_v10, %v7240_v10  ;;  %14900 = vmatpush3.bf16.msra.mxu1 %v15823_v27  ;;  %v7762_v28 = vstv %s7761_s27  ;;  %v7772_v10 = vstv %s7771_s20  ;;  %s20001_s27 = smov 64  }
0x1cb3   : > { %v7247_v32 = vpack.c.bf16 %v7239_v14, %v7239_v14  ;;  %14901 = vmatprep.subr.bf16.mxu1 %v16433_v1  ;;  %v7763_v16 = vsel %vm7759_vm0, %v7762_v28, 0  ;;  %vm3102_vm0 = vcmp.gt.s32.totalorder %v16687_v22, %v17257_v57 }
0x1cb4   : > { %v7249_v30 = vpack.c.bf16 %v7241_v44, %v7241_v44  ;;  %14884 = vmatpush3.bf16.msra.mxu0 %v15819_v58  ;;  %v7768_v14 = vsel %vm7764_vm1, %v7767_v33, %v7763_v16  ;;  %v15824_v44 = vld [vmem:[%s19994_s11 + $0x8] sm:$0xff]  }
0x1cb5   : > { %7547 = vmatprep.mubr.bf16.mxu0 %v7247_v32  ;;  %14885 = vmatprep.subr.bf16.mxu0 %v16433_v1  ;;  %v7773_v32 = vsel %vm7769_vm2, %v7772_v10, %v7768_v14  ;;  %v15829_v14 = vld [vmem:[%s19991_s8 + $0x258] sm:$0xff]  }
0x1cb6   : > { %7594 = vmatprep.mubr.bf16.mxu1 %v7249_v30  ;;  %7548 = vmatmul.mubr.bf16.gmra.mxu0 %v7246_v11  ;;  %v7777_v30 = vstv %s18612_s23  ;;  %v15827_v11 = vld [vmem:[%s19995_s12 + $0x8] sm:$0xff]   ;;  %v15830_v10 = vld [vmem:[%s19991_s8 + $0x29c] sm:$0xff]  }
0x1cb7   : > { %7595 = vmatmul.mubr.bf16.gmra.mxu1 %v7248_v34  ;;  %v7778_v34 = vsel %vm7774_vm3, %v7777_v30, %v7773_v32  ;;  %14895 = vmatprep.mubr.msk.bf16.mxu0 %vm16437_vm5, %v16433_v1 }
0x1cb8   : > { %14886 = vmatpush3.bf16.msra.mxu0 %v15820_v8  ;;  %14902 = vmatpush3.bf16.msra.mxu1 %v15825_v36  ;;  %v13332_v8 = vld [vmem:[%s19988_s5 + $0x28] sm:$0xff] }
0x1cb9   : > { %14887 = vmatprep.subr.bf16.mxu0 %v16433_v1  ;;  %14903 = vmatprep.subr.bf16.mxu1 %v16433_v1 }
0x1cba   : > { %14907 = vmatprep.mubr.msk.bf16.mxu1 %vm16437_vm5, %v16433_v1 }
0x1cbc   : > { %14888 = vmatpush3.bf16.msra.mxu0 %v15821_v5  ;;  %14904 = vmatpush3.bf16.msra.mxu1 %v15827_v11 }
0x1cbd   : > { %14889 = vmatprep.subr.bf16.mxu0 %v16433_v1  ;;  %14905 = vmatprep.subr.bf16.mxu1 %v16433_v1 }
0x1cc0   : > { %14890 = vmatpush3.bf16.msra.mxu0 %v15822_v25  ;;  %v13331_v25 = vld [vmem:[%s19988_s5 + $0x20] sm:$0xff] }
0x1cc1   : > { %14891 = vmatprep.subr.bf16.mxu0 %v16433_v1 }
0x1cc4   : > { %14892 = vmatpush3.bf16.msra.mxu0 %v15824_v44 }
0x1cc5   : > { %14893 = vmatprep.subr.bf16.mxu0 %v16433_v1 }
0x1ceb   : > { %v14177_v41 = vpop.f32.mrf.mxu0 }
0x1cec   : > { %v14205_v3 = vpop.f32.mrf.mxu1 }
0x1ced   : > { %v14178_v53 = vpop.f32.mrf.mxu0 }
0x1cee   : > { %v14179_v48 = vadd.f32 %v14178_v53, %v14177_v41  ;;  %v14206_v40 = vpop.f32.mrf.mxu1  ;;  %v15826_v41 = vld [vmem:[%s19994_s11] sm:$0xff]   ;;  %v7787_v53 = vstv %s18623_s19 }
0x1cef   : > { %v14207_v17 = vadd.f32 %v14206_v40, %v14205_v3  ;;  %v14180_v45 = vpop.f32.mrf.mxu0  ;;  %v7783_v3 = vsel %vm7779_vm4, %v7782_v62, %v7778_v34  ;;  %14894 = vmatpush3.bf16.msra.mxu0 %v15826_v41 }
0x1cf0   : > { %v14208_v38 = vpop.f32.mrf.mxu1  ;;  %v7788_v52 = vsel %vm7784_vm6, %v7787_v53, %v7783_v3  ;;  %14931 = vmatprep.subr.bf16.mxu0 %v15830_v10 }
0x1cf1   : > { %v7589_v49 = vadd.f32 %v14207_v17, %v14179_v48  ;;  %v14181_v15 = vpop.f32.mrf.mxu0  ;;  %v7792_v48 = vstv %s18630_s21  ;;  %v7797_v17 = vstv %s18634_s29 }
0x1cf2   : > { %v14182_v59 = vadd.f32 %v14181_v15, %v14180_v45  ;;  %v14209_v21 = vpop.f32.mrf.mxu1  ;;  %v7793_v40 = vsel %vm7789_vm7, %v7792_v48, %v7788_v52  ;;  %v15828_v45 = vld [vmem:[%s19995_s12] sm:$0xff]  }
0x1cf3   : > { %v7601_v35 = vadd.f32 %v7589_v49, %v18264_v31  ;;  %v14210_v4 = vadd.f32 %v14209_v21, %v14208_v38  ;;  %v7798_v38 = vsel %vm7794_vm9, %v7797_v17, %v7793_v40  ;;  %14906 = vmatpush3.bf16.msra.mxu1 %v15828_v45  ;;  %v15831_v17 = vld [vmem:[%s19991_s8 + $0x250] sm:$0xff]  }
0x1cf4   : > { %vm7799_vm10 = vcmp.eq.s32.totalorder %v16687_v22, %v7798_v38  ;;  %14911 = vmatprep.subr.bf16.mxu1 %v15829_v14  ;;  %v15832_v45 = vld [vmem:[%s19991_s8 + $0x294] sm:$0xff]   ;;  %v15833_v38 = vld [vmem:[%s19991_s8 + $0x248] sm:$0xff]  }
0x1cf5   : > { %v7592_v60 = vadd.f32 %v14210_v4, %v14182_v59  ;;  %v7609_v23 = vadd.f32 %v7608_v39, %v7601_v35  ;;  %v13324_v49 = vsel %vm7799_vm10, 1.0, %v16433_v1 }
0x1cf6   : > { %v7802_v15 = vpack.c.bf16 %v13324_v49, %v13324_v49  ;;  %v15834_v49 = vld [vmem:[%s19991_s8 + $0x28c] sm:$0xff]  }
0x1cf7   : > { %v7602_v46 = vadd.f32 %v7592_v60, %v18268_v2  ;;  %7613 = vadd.xlane.f32.xlu0 %v7609_v23 }
0x1cf8   : > { %14908 = vmatmul.mubr.msk.bf16.vlgmr.msra.gmra.mxu1 %vm7835_vm11, %v7802_v15  ;;  %v15835_v15 = vld [vmem:[%s19991_s8 + $0x240] sm:$0xff]  }
0x1cf9   : > { %v7610_v29 = vadd.f32 %v7608_v39, %v7602_v46  ;;  %14912 = vmatpush3.bf16.msra.mxu1 %v15829_v14 }
0x1cfa   : > { %14913 = vmatprep.subr.bf16.mxu1 %v15831_v17 }
0x1cfb   : > { %7615 = vadd.xlane.f32.xlu1 %v7610_v29 }
0x1cfd   : > { %14914 = vmatpush3.bf16.msra.mxu1 %v15831_v17 }
0x1cfe   : > { %14915 = vmatprep.subr.bf16.mxu1 %v15833_v38 }
0x1d01   : > { %14916 = vmatpush3.bf16.msra.mxu1 %v15833_v38 }
0x1d02   : > { %14917 = vmatprep.subr.bf16.mxu1 %v15835_v15 }
0x1d05   : > { %14918 = vmatpush3.bf16.msra.mxu1 %v15835_v15 }
0x1d76   : > { %v14183_v37 = vpop.f32.mrf.mxu0 }
0x1d77   : > { %v14211_v47 = vpop.f32.mrf.mxu1 }
0x1d78   : > { %v14184_v51 = vpop.f32.mrf.mxu0 }
0x1d79   : > { %v14212_v7 = vpop.f32.mrf.mxu1  ;;  %v13314_v51 = vld [vmem:[%s19989_s6 + $0x3] ss:$0 sm:$0xff] }
0x1d7a   : > { %v14186_v31 = vpop.f32.mrf.mxu0 }
0x1d7b   : > { %v14214_v61 = vpop.f32.mrf.mxu1 }
0x1d7c   : > { %v14187_v50 = vpop.f32.mrf.mxu0 }
0x1d7d   : > { %v14215_v55 = vpop.f32.mrf.mxu1 }
0x1d80   : > { %v7614_v6 = vpop.xlane.xlu0 %7613 }
0x1d81   : > { %v7617_v2 = vmul.f32 0.0078125, %v7614_v6 }
0x1d83   : > { %v18579_v42 = vsub.f32 %v7609_v23, %v7617_v2 }
0x1d84   : > { %v7616_v12 = vpop.xlane.xlu1 %7615 }
0x1d85   : > { %v7618_v13 = vmul.f32 0.0078125, %v7616_v12  ;;  %v7621_v18 = vmul.f32 %v18579_v42, %v18579_v42  ;;  %v7664_v12 = vld [vmem:[%s19994_s11 + $0x40] sm:$0x1] }
0x1d87   : > { %v18583_v43 = vsub.f32 %v7610_v29, %v7618_v13  ;;  %7623 = vadd.xlane.f32.xlu0 %v7621_v18  ;;  %v13313_v29 = vld [vmem:[%s19989_s6 + $0x2] ss:$0 sm:$0xff]  ;;  %v7665_v13 = vunpack.c.l.bf16 %v7664_v12 }
0x1d89   : > { %v7622_v24 = vmul.f32 %v18583_v43, %v18583_v43  ;;  %v7669_v18 = vrot.slane %v7665_v13, %v17370_v56 }
0x1d8b   : > { %7625 = vadd.xlane.f32.xlu1 %v7622_v24  ;;  %v13330_v24 = vld [vmem:[%s19988_s5 + $0x18] sm:$0xff] }
0x1db8   : > { %v7873_v55 = vpop.f32.mrf.mxu1 }
0x1db9   : > { %v18691_v28 = vadd.f32 %v13332_v8, %v7873_v55 }
0x1dba   : > { %v14909_v6 = vpop.f32.mrf.mxu1 }
0x1dbc   : > { %v7876_v2 = vpop.f32.mrf.mxu1 }
0x1dbd   : > { %v13333_v2 = vld [vmem:[%s19990_s7 + $0x8] sm:$0xf] }
0x1dbe   : > { %v7924_v13 = vrot.slane %v13333_v2, %v17370_v56 }
0x1e10   : > { %v7624_v39 = vpop.xlane.xlu0 %7623 }
0x1e11   : > { %v7627_v59 = vmul.f32 0.0078125, %v7624_v39  ;;  %v15836_v39 = vld [vmem:[%s19991_s8 + $0x284] sm:$0xff]  }
0x1e13   : > { %v7629_v21 = vadd.f32 1e-05, %v7627_v59  ;;  %v15837_v59 = vld [vmem:[%s19991_s8 + $0x238] sm:$0xff]  }
0x1e14   : > { %v7626_v35 = vpop.xlane.xlu1 %7625  ;;  %14919 = vmatprep.subr.bf16.mxu1 %v15837_v59 }
0x1e15   : > { %16227 = vrsqrt.f32 %v7629_v21  ;;  %v7628_v4 = vmul.f32 0.0078125, %v7626_v35  ;;  %v15838_v21 = vld [vmem:[%s19991_s8 + $0x27c] sm:$0xff]   ;;  %v15839_v35 = vld [vmem:[%s19991_s8 + $0x230] sm:$0xff]   ;;  %14920 = vmatpush3.bf16.msra.mxu1 %v15837_v59 }
0x1e16   : > { %14921 = vmatprep.subr.bf16.mxu1 %v15839_v35 }
0x1e17   : > { %v7630_v60 = vadd.f32 1e-05, %v7628_v4  ;;  %v15840_v4 = vld [vmem:[%s19991_s8 + $0x274] sm:$0xff]  }
0x1e19   : > { %16229 = vrsqrt.f32 %v7630_v60  ;;  %v15841_v60 = vld [vmem:[%s19991_s8 + $0x228] sm:$0xff]   ;;  %14922 = vmatpush3.bf16.msra.mxu1 %v15839_v35 }
0x1e1a   : > { %14923 = vmatprep.subr.bf16.mxu1 %v15841_v60 }
0x1e1d   : > { %14924 = vmatpush3.bf16.msra.mxu1 %v15841_v60 }
0x1e22   : > { %v16228_v23 = vpop.eup %16227 }
0x1e23   : > { %v7633_v46 = vmul.f32 %v16228_v23, %v18579_v42  ;;  %v14910_v42 = vpop.f32.mrf.mxu1  ;;  %v15842_v23 = vld [vmem:[%s19991_s8 + $0x26c] sm:$0xff]  }
0x1e25   : > { %v7639_v37 = vmul.f32 %v13313_v29, %v7633_v46  ;;  %v15843_v46 = vld [vmem:[%s19991_s8 + $0x220] sm:$0xff]  }
0x1e26   : > { %v16230_v19 = vpop.eup %16229  ;;  %14925 = vmatprep.subr.bf16.mxu1 %v15843_v46 }
0x1e27   : > { %v7634_v47 = vmul.f32 %v16230_v19, %v18583_v43  ;;  %v7645_v31 = vadd.f32 %v13314_v51, %v7639_v37  ;;  %14926 = vmatpush3.bf16.msra.mxu1 %v15843_v46  ;;  %v15845_v19 = vld [vmem:[%s19991_s8 + $0x2e0] sm:$0xff]  }
0x1e28   : > { %14951 = vmatprep.subr.bf16.mxu1 %v15845_v19 }
0x1e29   : > { %v7640_v7 = vmul.f32 %v13313_v29, %v7634_v47  ;;  %v15844_v29 = vld [vmem:[%s19991_s8 + $0x264] sm:$0xff]  }
0x1e2b   : > { %v7646_v61 = vadd.f32 %v13314_v51, %v7640_v7 }
0x1e2d   : > { %v7647_v50 = vpack.c.bf16 %v7646_v61, %v7645_v31 }
0x1e2f   : > { %14896 = vmatmul.mubr.bf16.vlgmr.msra.gmra.mxu0 %v7647_v50 }
0x1e30   : > { %14932 = vmatpush3.bf16.msra.mxu0 %v15830_v10 }
0x1e31   : > { %14933 = vmatprep.subr.bf16.mxu0 %v15832_v45 }
0x1e34   : > { %14934 = vmatpush3.bf16.msra.mxu0 %v15832_v45 }
0x1e35   : > { %14935 = vmatprep.subr.bf16.mxu0 %v15834_v49 }
0x1e38   : > { %14936 = vmatpush3.bf16.msra.mxu0 %v15834_v49 }
0x1e39   : > { %14937 = vmatprep.subr.bf16.mxu0 %v15836_v39 }
0x1e3c   : > { %14938 = vmatpush3.bf16.msra.mxu0 %v15836_v39 }
0x1e3d   : > { %14939 = vmatprep.subr.bf16.mxu0 %v15838_v21 }
0x1e40   : > { %14940 = vmatpush3.bf16.msra.mxu0 %v15838_v21 }
0x1e41   : > { %14941 = vmatprep.subr.bf16.mxu0 %v15840_v4 }
0x1e44   : > { %14942 = vmatpush3.bf16.msra.mxu0 %v15840_v4 }
0x1e45   : > { %14943 = vmatprep.subr.bf16.mxu0 %v15842_v23 }
0x1e48   : > { %14944 = vmatpush3.bf16.msra.mxu0 %v15842_v23 }
0x1e49   : > { %14945 = vmatprep.subr.bf16.mxu0 %v15844_v29 }
0x1e4c   : > { %14946 = vmatpush3.bf16.msra.mxu0 %v15844_v29 }
0x1eef   : > { %v7752_v43 = vpop.f32.mrf.mxu0 }
0x1ef0   : > { %v7753_v26 = vadd.f32 %v7752_v43, %v7669_v18 }
0x1ef1   : > { %v14897_v58 = vpop.f32.mrf.mxu0 }
0x1ef2   : > { %v18685_v5 = vadd.f32 %v13330_v24, %v7753_v26  ;;  %v7931_v58 = vrot.slane %v13333_v2, %v17378_v0 }
0x1ef3   : > { %v7755_v27 = vpop.f32.mrf.mxu0 }
0x1ef4   : > { %v7756_v36 = vadd.f32 %v7755_v27, %v7669_v18  ;;  %7888 = vadd.xlane.f32.xlu0 %v18685_v5 }
0x1ef5   : > { %v14898_v16 = vpop.f32.mrf.mxu0 }
0x1ef6   : > { %v18693_v33 = vadd.f32 %v13331_v25, %v7756_v36 }
0x1ef8   : > { %7892 = vadd.xlane.f32.xlu0 %v18691_v28  ;;  %7890 = vadd.xlane.f32.xlu1 %v18693_v33 }
0x1f7d   : > { %v7889_v44 = vpop.xlane.xlu0 %7888 }
0x1f7e   : > { %v7894_v32 = vmul.f32 0.0078125, %v7889_v44 }
0x1f80   : > { %v18704_v30 = vsub.f32 %v18685_v5, %v7894_v32  ;;  %v15846_v32 = vld [vmem:[%s19991_s8 + $0x2d8] sm:$0xff]  }
0x1f81   : > { %v7893_v11 = vpop.xlane.xlu0 %7892  ;;  %v7891_v34 = vpop.xlane.xlu1 %7890 }
0x1f82   : > { %v7896_v62 = vmul.f32 0.0078125, %v7893_v11  ;;  %v7895_v41 = vmul.f32 0.0078125, %v7891_v34  ;;  %v7900_v3 = vmul.f32 %v18704_v30, %v18704_v30  ;;  %v15848_v11 = vld [vmem:[%s19991_s8 + $0x2c8] sm:$0xff]   ;;  %v15849_v34 = vld [vmem:[%s19991_s8 + $0x2c0] sm:$0xff]  }
0x1f84   : > { %v18709_v53 = vsub.f32 %v18691_v28, %v7896_v62  ;;  %v18712_v52 = vsub.f32 %v18693_v33, %v7895_v41  ;;  %7903 = vadd.xlane.f32.xlu1 %v7900_v3  ;;  %v15850_v62 = vld [vmem:[%s19991_s8 + $0x2b8] sm:$0xff]   ;;  %v15851_v41 = vld [vmem:[%s19991_s8 + $0x2b0] sm:$0xff]   ;;  %v15852_v3 = vld [vmem:[%s19991_s8 + $0x2a8] sm:$0xff]  }
0x1f86   : > { %v7902_v48 = vmul.f32 %v18709_v53, %v18709_v53  ;;  %v7901_v40 = vmul.f32 %v18712_v52, %v18712_v52 }
0x1f88   : > { %7907 = vadd.xlane.f32.xlu1 %v7902_v48  ;;  %7905 = vadd.xlane.f32.xlu0 %v7901_v40  ;;  %v13350_v48 = vld [vmem:[%s19991_s8 + $0x260] sm:$0x1] }
0x1f89   : > { %v7955_v17 = vunpack.c.l.bf16 %v13350_v48 }
0x1f8b   : > { %v7959_v59 = vrot.slane %v7955_v17, %v17370_v56 }
0x200d   : > { %v7904_v37 = vpop.xlane.xlu1 %7903 }
0x200e   : > { %v7909_v47 = vmul.f32 0.0078125, %v7904_v37 }
0x2010   : > { %v7912_v51 = vadd.f32 1e-05, %v7909_v47 }
0x2011   : > { %v7906_v7 = vpop.xlane.xlu0 %7905  ;;  %v7908_v31 = vpop.xlane.xlu1 %7907 }
0x2012   : > { %16231 = vrsqrt.f32 %v7912_v51  ;;  %v7910_v61 = vmul.f32 0.0078125, %v7906_v7  ;;  %v7911_v50 = vmul.f32 0.0078125, %v7908_v31 }
0x2014   : > { %v7913_v55 = vadd.f32 1e-05, %v7910_v61  ;;  %v7914_v6 = vadd.f32 1e-05, %v7911_v50 }
0x2016   : > { %16233 = vrsqrt.f32 %v7913_v55 }
0x2017   : > { %16235 = vrsqrt.f32 %v7914_v6 }
0x201f   : > { %v16232_v42 = vpop.eup %16231 }
0x2020   : > { %v7918_v12 = vmul.f32 %v16232_v42, %v18704_v30  ;;  %v15847_v30 = vld [vmem:[%s19991_s8 + $0x2d0] sm:$0xff]   ;;  %v13400_v42 = vld [vmem:[%s19991_s8 + $0x2e8] sm:$0x1] }
0x2022   : > { %v7925_v26 = vmul.f32 %v7924_v13, %v7918_v12  ;;  %v8193_v12 = vunpack.c.l.bf16 %v13400_v42 }
0x2023   : > { %v16234_v18 = vpop.eup %16233 }
0x2024   : > { %v16236_v43 = vpop.eup %16235  ;;  %v7919_v24 = vmul.f32 %v16234_v18, %v18712_v52  ;;  %v7932_v36 = vadd.f32 %v7931_v58, %v7925_v26 }
0x2025   : > { %v7920_v8 = vmul.f32 %v16236_v43, %v18709_v53  ;;  %v13375_v53 = vld [vmem:[%s19991_s8 + $0x2a4] sm:$0x1] }
0x2026   : > { %v7926_v27 = vmul.f32 %v7924_v13, %v7919_v24  ;;  %v8074_v52 = vunpack.c.l.bf16 %v13375_v53 }
0x2027   : > { %v7927_v25 = vmul.f32 %v7924_v13, %v7920_v8  ;;  %v8197_v13 = vrot.slane %v8193_v12, %v17370_v56 }
0x2028   : > { %v7933_v16 = vadd.f32 %v7931_v58, %v7926_v27  ;;  %v8078_v40 = vrot.slane %v8074_v52, %v17370_v56 }
0x2029   : > { %v7934_v14 = vadd.f32 %v7931_v58, %v7927_v25 }
0x202a   : > { %v7935_v10 = vpack.c.bf16 %v7933_v16, %v7932_v36 }
0x202b   : > { %v7936_v44 = vpack.c.bf16 %v7934_v14, %v7934_v14  ;;  %v3098_v14 = vadd.s32 16, %v17248_v63 }
0x202c   : > { %14927 = vmatprep.mubr.bf16.mxu1 %v7935_v10  ;;  %14947 = vmatprep.mubr.bf16.mxu0 %v7935_v10 }
0x202d   : > { %14928 = vmatmul.mubr.bf16.vlgmr.msra.gmra.mxu1 %v7936_v44  ;;  %14948 = vmatmul.mubr.bf16.vlgmr.msra.gmra.mxu0 %v7936_v44  ;;  %vm3103_vm14 = vcmp.gt.s32.totalorder %v16687_v22, %v3098_v14 }
0x202e   : > { %14952 = vmatpush3.bf16.msra.mxu1 %v15845_v19  ;;  %14967 = vmatprep.mubr.bf16.mxu1 %v7935_v10 }
0x202f   : > { %14953 = vmatprep.subr.bf16.mxu1 %v15846_v32 }
0x2032   : > { %14954 = vmatpush3.bf16.msra.mxu1 %v15846_v32  ;;  %v18844_v32 = vsel %vm3103_vm14, -1e+09, %v16433_v1 }
0x2033   : > { %14955 = vmatprep.subr.bf16.mxu1 %v15847_v30 }
0x2036   : > { %14956 = vmatpush3.bf16.msra.mxu1 %v15847_v30 }
0x2037   : > { %14957 = vmatprep.subr.bf16.mxu1 %v15848_v11 }
0x203a   : > { %14958 = vmatpush3.bf16.msra.mxu1 %v15848_v11 }
0x203b   : > { %14959 = vmatprep.subr.bf16.mxu1 %v15849_v34 }
0x203e   : > { %14960 = vmatpush3.bf16.msra.mxu1 %v15849_v34 }
0x203f   : > { %14961 = vmatprep.subr.bf16.mxu1 %v15850_v62 }
0x2042   : > { %14962 = vmatpush3.bf16.msra.mxu1 %v15850_v62  ;;  %v18848_v62 = vsel %vm3102_vm0, -1e+09, %v16433_v1 }
0x2043   : > { %14963 = vmatprep.subr.bf16.mxu1 %v15851_v41 }
0x2046   : > { %14964 = vmatpush3.bf16.msra.mxu1 %v15851_v41 }
0x2047   : > { %14965 = vmatprep.subr.bf16.mxu1 %v15852_v3 }
0x204a   : > { %14966 = vmatpush3.bf16.msra.mxu1 %v15852_v3 }
0x204d   : > { %14968 = vmatmul.mubr.bf16.vlgmr.msra.gmra.mxu1 %v7936_v44  ;;  %v18839_v44 = vsel %vm3101_vm12, -1e+09, %v16433_v1 }
0x20ed   : > { %v14929_v45 = vpop.f32.mrf.mxu1  ;;  %v14949_v38 = vpop.f32.mrf.mxu0 }
0x20ee   : > { %v8170_v49 = vadd.f32 %v14949_v38, %v8078_v40  ;;  %v8051_v61 = vadd.f32 %v14929_v45, %v7959_v59 }
0x20ef   : > { %v8042_v15 = vpop.f32.mrf.mxu1  ;;  %v8161_v39 = vpop.f32.mrf.mxu0 }
0x20f0   : > { %v18800_v21 = vpack.c.bf16 %v8170_v49, %v8170_v49  ;;  %v8043_v60 = vadd.f32 %v8042_v15, %v7959_v59  ;;  %v8162_v19 = vadd.f32 %v8161_v39, %v8078_v40  ;;  %v8299_v6 = vmul.f32 0.17677669, %v8051_v61 }
0x20f1   : > { %v14930_v35 = vpop.f32.mrf.mxu1  ;;  %v14950_v4 = vpop.f32.mrf.mxu0 }
0x20f2   : > { %15253 = vmatprep.subr.msk.bf16.mxu0 %vm3581_vm13, %v18800_v21  ;;  %v8316_v23 = vsel %vm3581_vm13, %v18800_v21, 0  ;;  %v8297_v51 = vmul.f32 0.17677669, %v8043_v60  ;;  %v18816_v2 = vpack.c.bf16 %v8299_v6, %v8299_v6 }
0x20f3   : > { %v8045_v46 = vpop.f32.mrf.mxu1  ;;  %v8164_v29 = vpop.f32.mrf.mxu0  ;;  %14972 = vmatpush3.bf16.xpose.msra.mxu0 %v8316_v23 }
0x20f4   : > { %v8046_v37 = vadd.f32 %v8045_v46, %v7959_v59  ;;  %v8165_v47 = vadd.f32 %v8164_v29, %v8078_v40 }
0x20f6   : > { %v8298_v7 = vmul.f32 0.17677669, %v8046_v37  ;;  %v18806_v31 = vpack.c.bf16 %v8165_v47, %v8162_v19 }
0x20f8   : > { %v18808_v50 = vpack.c.bf16 %v8298_v7, %v8297_v51  ;;  %15254 = vmatprep.subr.msk.bf16.mxu0 %vm3581_vm13, %v18806_v31  ;;  %v8313_v55 = vsel %vm3581_vm13, %v18806_v31, 0 }
0x20fa   : > { %14975 = vmatprep.mubr.msk.bf16.mxu0 %vm3581_vm13, %v18808_v50 }
0x20fb   : > { %14974 = vmatpush3.bf16.xpose.msra.mxu0 %v8313_v55 }
0x2102   : > { %14976 = vmatmul.mubr.msk.bf16.vlgmr.msra.gmra.mxu0 %vm3581_vm13, %v18816_v2 }
0x210d   : > { %v14969_v18 = vpop.f32.mrf.mxu1 }
0x210e   : > { %v8289_v43 = vadd.f32 %v14969_v18, %v8197_v13 }
0x210f   : > { %v8280_v24 = vpop.f32.mrf.mxu1 }
0x2110   : > { %v18824_v26 = vpack.c.bf16 %v8289_v43, %v8289_v43  ;;  %v8281_v25 = vadd.f32 %v8280_v24, %v8197_v13 }
0x2111   : > { %v14970_v58 = vpop.f32.mrf.mxu1 }
0x2112   : > { %15255 = vmatprep.subr.msk.bf16.mxu0 %vm2751_vm8, %v18824_v26  ;;  %v8408_v8 = vsel %vm2751_vm8, %v18824_v26, 0 }
0x2113   : > { %v8283_v27 = vpop.f32.mrf.mxu1  ;;  %14980 = vmatpush3.bf16.msra.mxu0 %v8408_v8 }
0x2114   : > { %v8284_v36 = vadd.f32 %v8283_v27, %v8197_v13 }
0x2116   : > { %v18830_v16 = vpack.c.bf16 %v8284_v36, %v8281_v25 }
0x2118   : > { %14981 = vmatprep.subr.bf16.mxu0 %v18830_v16 }
0x2119   : > { %14982 = vmatpush3.bf16.msra.mxu0 %v18830_v16 }
0x21c2   : > { %v14977_v10 = vpop.f32.mrf.mxu0 }
0x21c3   : > { %v8361_v63 = vadd.f32 %v14977_v10, %v18844_v32 }
0x21c4   : > { %v8352_v30 = vpop.f32.mrf.mxu0 }
0x21c5   : > { %v8353_v11 = vadd.f32 %v8352_v30, %v18839_v44  ;;  %v8372_v57 = vsel %vm3642_vm15, %v8361_v63, -inf  ;;  %v15853_v30 = vld [vmem:[%s19991_s8 + $0x2f4] sm:$0xff]  }
0x21c6   : > { %v14978_v34 = vpop.f32.mrf.mxu0  ;;  %14987 = vmatprep.subr.bf16.mxu1 %v15853_v30 }
0x21c7   : > { %v8366_v41 = vsel %vm3642_vm15, %v8353_v11, -inf  ;;  %14988 = vmatpush3.bf16.msra.mxu1 %v15853_v30 }
0x21c8   : > { %v8355_v3 = vpop.f32.mrf.mxu0  ;;  %8367 = vmax.xlane.f32.xlu0 %v8366_v41 }
0x21c9   : > { %v8356_v53 = vadd.f32 %v8355_v3, %v18848_v62 }
0x21cb   : > { %v8369_v22 = vsel %vm3642_vm15, %v8356_v53, -inf }
0x21cc   : > { %8370 = vmax.xlane.f32.xlu1 %v8369_v22  ;;  %8373 = vmax.xlane.f32.xlu0 %v8372_v57 }
0x2251   : > { %v8368_v52 = vpop.xlane.xlu0 %8367 }
0x2252   : > { %v8375_v48 = vsub.f32 %v8353_v11, %v8368_v52  ;;  %v15854_v11 = vld [vmem:[%s19991_s8 + $0x2ec] sm:$0xff]  }
0x2253   : > { %14989 = vmatprep.subr.bf16.mxu1 %v15854_v11 }
0x2254   : > { %v8378_v40 = vmul.f32 1.442695, %v8375_v48  ;;  %14990 = vmatpush3.bf16.msra.mxu1 %v15854_v11 }
0x2255   : > { %v8371_v17 = vpop.xlane.xlu1 %8370  ;;  %v8374_v1 = vpop.xlane.xlu0 %8373 }
0x2256   : > { %16237 = vpow2.f32 %v8378_v40  ;;  %v8376_v45 = vsub.f32 %v8356_v53, %v8371_v17  ;;  %v8377_v38 = vsub.f32 %v8361_v63, %v8374_v1 }
0x2258   : > { %v8380_v49 = vmul.f32 1.442695, %v8376_v45  ;;  %v8382_v15 = vmul.f32 1.442695, %v8377_v38 }
0x225a   : > { %16239 = vpow2.f32 %v8380_v49 }
0x225b   : > { %16241 = vpow2.f32 %v8382_v15 }
0x2263   : > { %v16238_v39 = vpop.eup %16237 }
0x2264   : > { %v8384_v59 = vsel %vm3642_vm15, %v16238_v39, 0.0 }
0x2265   : > { %8385 = vadd.xlane.f32.xlu1 %v8384_v59 }
0x2267   : > { %v16240_v35 = vpop.eup %16239 }
0x2268   : > { %v16242_v4 = vpop.eup %16241  ;;  %v8387_v60 = vsel %vm3642_vm15, %v16240_v35, 0.0 }
0x2269   : > { %8388 = vadd.xlane.f32.xlu0 %v8387_v60  ;;  %v8390_v23 = vsel %vm3642_vm15, %v16242_v4, 0.0 }
0x226a   : > { %8391 = vadd.xlane.f32.xlu1 %v8390_v23 }
0x227b   : > { %8545 = vrot.lane.b32.xlu1 %v18806_v31, %s16434_s22 }
0x227f   : > { %8539 = vrot.lane.b32.xlu1 %v18808_v50, %s16434_s22  ;;  %8547 = vrot.lane.b32.xlu0 %v18800_v21, %s16434_s22 }
0x2283   : > { %8541 = vrot.lane.b32.xlu1 %v18816_v2, %s16434_s22  ;;  %8789 = vrot.lane.b32.xlu0 %v18800_v21, %s20001_s27 }
0x2287   : > { %8787 = vrot.lane.b32.xlu1 %v18806_v31, %s20001_s27  ;;  %8783 = vrot.lane.b32.xlu0 %v18808_v50, %s20001_s27 }
0x228b   : > { %8785 = vrot.lane.b32.xlu1 %v18816_v2, %s20001_s27 }
0x22ee   : > { %v8386_v46 = vpop.xlane.xlu1 %8385 }
0x22ef   : > { %16243 = vrcp.f32 %v8386_v46 }
0x22f2   : > { %v8389_v29 = vpop.xlane.xlu0 %8388 }
0x22f3   : > { %v8392_v19 = vpop.xlane.xlu1 %8391  ;;  %16245 = vrcp.f32 %v8389_v29 }
0x22f4   : > { %16247 = vrcp.f32 %v8392_v19 }
0x22f6   : > { %v8548_v37 = vpop.permute.xlu0 %8547 }
0x22f7   : > { %15256 = vmatprep.subr.msk.bf16.mxu0 %vm3581_vm13, %v8548_v37  ;;  %v8546_v7 = vpop.permute.xlu1 %8545  ;;  %v8559_v43 = vsel %vm3581_vm13, %v8548_v37, 0 }
0x22f8   : > { %v8556_v24 = vsel %vm3581_vm13, %v8546_v7, 0 }
0x22fa   : > { %v8790_v58 = vpop.permute.xlu0 %8789 }
0x22fb   : > { %v8540_v18 = vpop.permute.xlu1 %8539  ;;  %v8801_v27 = vsel %vm3581_vm13, %v8790_v58, 0 }
0x22fc   : > { %v16244_v47 = vpop.eup %16243 }
0x22fd   : > { %v8396_v55 = vmul.f32 %v16244_v47, %v16238_v39 }
0x22fe   : > { %v8784_v25 = vpop.permute.xlu0 %8783 }
0x22ff   : > { %v8542_v8 = vpop.permute.xlu1 %8541 }
0x2300   : > { %v16246_v51 = vpop.eup %16245 }
0x2301   : > { %v16248_v61 = vpop.eup %16247  ;;  %v8397_v6 = vmul.f32 %v16246_v51, %v16240_v35 }
0x2302   : > { %v8398_v42 = vmul.f32 %v16248_v61, %v16242_v4 }
0x2303   : > { %v8399_v12 = vpack.c.bf16 %v8397_v6, %v8396_v55  ;;  %v8788_v36 = vpop.permute.xlu1 %8787 }
0x2304   : > { %v8400_v13 = vpack.c.bf16 %v8398_v42, %v8398_v42  ;;  %v8798_v14 = vsel %vm3581_vm13, %v8788_v36, 0 }
0x2305   : > { %14983 = vmatprep.mubr.msk.bf16.mxu0 %vm3642_vm15, %v8399_v12 }
0x2306   : > { %14984 = vmatmul.mubr.msk.bf16.vlgmr.msra.gmra.mxu0 %vm3642_vm15, %v8400_v13 }
0x2307   : > { %14996 = vmatpush3.bf16.xpose.msra.mxu0 %v8559_v43  ;;  %14999 = vmatprep.mubr.msk.bf16.mxu0 %vm3581_vm13, %v8540_v18  ;;  %v8786_v10 = vpop.permute.xlu1 %8785 }
0x2308   : > { %15257 = vmatprep.subr.msk.bf16.mxu0 %vm3581_vm13, %v8546_v7 }
0x230f   : > { %14998 = vmatpush3.bf16.xpose.msra.mxu0 %v8556_v24 }
0x2310   : > { %15259 = vmatprep.subr.msk.bf16.mxu0 %vm3581_vm13, %v8790_v58 }
0x2316   : > { %15000 = vmatmul.mubr.msk.bf16.vlgmr.msra.gmra.mxu0 %vm3581_vm13, %v8542_v8 }
0x2317   : > { %15020 = vmatpush3.bf16.xpose.msra.mxu0 %v8801_v27  ;;  %15023 = vmatprep.mubr.msk.bf16.mxu0 %vm3581_vm13, %v8784_v25 }
0x2318   : > { %15260 = vmatprep.subr.msk.bf16.mxu0 %vm3581_vm13, %v8788_v36 }
0x231f   : > { %15022 = vmatpush3.bf16.xpose.msra.mxu0 %v8798_v14 }
0x2326   : > { %15024 = vmatmul.mubr.msk.bf16.vlgmr.msra.gmra.mxu0 %vm3581_vm13, %v8786_v10 }
0x23c6   : > { %v14985_v34 = vpop.f32.mrf.mxu0 }
0x23c7   : > { %v8459_v22 = vpack.c.bf16 %v14985_v34, %v14985_v34 }
0x23c8   : > { %v8444_v63 = vpop.f32.mrf.mxu0 }
0x23ca   : > { %v14986_v41 = vpop.f32.mrf.mxu0 }
0x23cc   : > { %v8447_v3 = vpop.f32.mrf.mxu0 }
0x23cd   : > { %v8458_v53 = vpack.c.bf16 %v8447_v3, %v8444_v63 }
0x23cf   : > { %14991 = vmatprep.mubr.msk.bf16.mxu1 %vm3581_vm13, %v8458_v53 }
0x23d0   : > { %14992 = vmatmul.mubr.msk.bf16.vlgmr.msra.gmra.mxu1 %vm3581_vm13, %v8459_v22 }
0x23d6   : > { %v15001_v57 = vpop.f32.mrf.mxu0 }
0x23d7   : > { %v8604_v17 = vadd.f32 %v15001_v57, %v18844_v32 }
0x23d8   : > { %v8595_v52 = vpop.f32.mrf.mxu0 }
0x23d9   : > { %v8596_v48 = vadd.f32 %v8595_v52, %v18839_v44  ;;  %v8615_v15 = vsel %vm3642_vm15, %v8604_v17, -inf }
0x23da   : > { %v15002_v40 = vpop.f32.mrf.mxu0 }
0x23db   : > { %v8609_v1 = vsel %vm3642_vm15, %v8596_v48, -inf }
0x23dc   : > { %v8598_v45 = vpop.f32.mrf.mxu0  ;;  %8610 = vmax.xlane.f32.xlu0 %v8609_v1 }
0x23dd   : > { %v8599_v38 = vadd.f32 %v8598_v45, %v18848_v62 }
0x23df   : > { %v8612_v49 = vsel %vm3642_vm15, %v8599_v38, -inf }
0x23e0   : > { %8613 = vmax.xlane.f32.xlu1 %v8612_v49  ;;  %8616 = vmax.xlane.f32.xlu0 %v8615_v15 }
0x23e6   : > { %v15025_v39 = vpop.f32.mrf.mxu0 }
0x23e7   : > { %v8846_v58 = vadd.f32 %v15025_v39, %v18844_v32 }
0x23e8   : > { %v8837_v59 = vpop.f32.mrf.mxu0 }
0x23e9   : > { %v8838_v24 = vadd.f32 %v8837_v59, %v18839_v44  ;;  %v8857_v27 = vsel %vm3642_vm15, %v8846_v58, -inf }
0x23ea   : > { %v15026_v35 = vpop.f32.mrf.mxu0 }
0x23eb   : > { %v8851_v8 = vsel %vm3642_vm15, %v8838_v24, -inf }
0x2465   : > { %v8611_v4 = vpop.xlane.xlu0 %8610 }
0x2466   : > { %v8618_v60 = vsub.f32 %v8596_v48, %v8611_v4 }
0x2468   : > { %v8621_v23 = vmul.f32 1.442695, %v8618_v60 }
0x2469   : > { %v8614_v46 = vpop.xlane.xlu1 %8613  ;;  %v8617_v29 = vpop.xlane.xlu0 %8616 }
0x246a   : > { %16249 = vpow2.f32 %v8621_v23  ;;  %v8619_v19 = vsub.f32 %v8599_v38, %v8614_v46  ;;  %v8620_v37 = vsub.f32 %v8604_v17, %v8617_v29 }
0x246c   : > { %v8623_v47 = vmul.f32 1.442695, %v8619_v19  ;;  %v8625_v51 = vmul.f32 1.442695, %v8620_v37 }
0x246e   : > { %16251 = vpow2.f32 %v8623_v47 }
0x246f   : > { %16253 = vpow2.f32 %v8625_v51 }
0x2477   : > { %v16250_v7 = vpop.eup %16249 }
0x2478   : > { %v8627_v61 = vsel %vm3642_vm15, %v16250_v7, 0.0 }
0x2479   : > { %8628 = vadd.xlane.f32.xlu0 %v8627_v61  ;;  %v15856_v61 = vld [vmem:[%s19991_s8 + $0x2fc] sm:$0xff]  }
0x247b   : > { %v16252_v55 = vpop.eup %16251 }
0x247c   : > { %v16254_v6 = vpop.eup %16253  ;;  %v8630_v42 = vsel %vm3642_vm15, %v16252_v55, 0.0 }
0x247d   : > { %8631 = vadd.xlane.f32.xlu0 %v8630_v42  ;;  %v8633_v12 = vsel %vm3642_vm15, %v16254_v6, 0.0 }
0x247e   : > { %8634 = vadd.xlane.f32.xlu1 %v8633_v12 }
0x248f   : > { %8646 = vrot.lane.b32.xlu1 %v18830_v16, %s16434_s22 }
0x2490   : > { %v18907_v13 = vpop.f32.mrf.mxu1 }
0x2492   : > { %v18909_v18 = vpop.f32.mrf.mxu1 }
0x2493   : > { %9029 = vrot.lane.b32.xlu1 %v18800_v21, %s20002_s14  ;;  %8648 = vrot.lane.b32.xlu0 %v18824_v26, %s16434_s22  ;;  %v8840_v21 = vpop.f32.mrf.mxu0 }
0x2494   : > { %v14994_v43 = vpop.f32.mrf.mxu1  ;;  %v8841_v25 = vadd.f32 %v8840_v21, %v18848_v62 }
0x2497   : > { %9027 = vrot.lane.b32.xlu1 %v18806_v31, %s20002_s14  ;;  %9023 = vrot.lane.b32.xlu0 %v18808_v50, %s20002_s14  ;;  %v8854_v31 = vsel %vm3642_vm15, %v8841_v25, -inf }
0x249b   : > { %9025 = vrot.lane.b32.xlu1 %v18816_v2, %s20002_s14 }
0x24b6   : > { %8852 = vmax.xlane.f32.xlu0 %v8851_v8 }
0x24ba   : > { %8858 = vmax.xlane.f32.xlu0 %v8857_v27 }
0x24bf   : > { %8855 = vmax.xlane.f32.xlu1 %v8854_v31 }
0x2502   : > { %v8629_v50 = vpop.xlane.xlu0 %8628 }
0x2503   : > { %16255 = vrcp.f32 %v8629_v50 }
0x2506   : > { %v8632_v36 = vpop.xlane.xlu0 %8631 }
0x2507   : > { %v8635_v2 = vpop.xlane.xlu1 %8634  ;;  %16257 = vrcp.f32 %v8632_v36 }
0x2508   : > { %16259 = vrcp.f32 %v8635_v2 }
0x250a   : > { %v8649_v14 = vpop.permute.xlu0 %8648 }
0x250b   : > { %v8647_v10 = vpop.permute.xlu1 %8646  ;;  %v8658_v30 = vsel %vm2751_vm8, %v8649_v14, 0  ;;  %15258 = vmatprep.subr.msk.bf16.mxu1 %vm2751_vm8, %v8649_v14 }
0x250c   : > { %15004 = vmatpush3.bf16.msra.mxu1 %v8658_v30 }
0x250d   : > { %15005 = vmatprep.subr.bf16.mxu1 %v8647_v10 }
0x250e   : > { %v9024_v11 = vpop.permute.xlu0 %9023 }
0x250f   : > { %v9030_v34 = vpop.permute.xlu1 %9029  ;;  %15047 = vmatprep.mubr.msk.bf16.mxu0 %vm3581_vm13, %v9024_v11 }
0x2510   : > { %v9041_v63 = vsel %vm3581_vm13, %v9030_v34, 0  ;;  %15262 = vmatprep.subr.msk.bf16.mxu0 %vm3581_vm13, %v9030_v34  ;;  %15006 = vmatpush3.bf16.msra.mxu1 %v8647_v10  ;;  %v16256_v41 = vpop.eup %16255 }
0x2511   : > { %15044 = vmatpush3.bf16.xpose.msra.mxu0 %v9041_v63  ;;  %v8639_v57 = vmul.f32 %v16256_v41, %v16250_v7  ;;  %v15855_v7 = vld [vmem:[%s19991_s8 + $0x304] sm:$0xff]  }
0x2512   : > { %15011 = vmatprep.subr.bf16.mxu1 %v15855_v7 }
0x2513   : > { %v9028_v3 = vpop.permute.xlu1 %9027 }
0x2514   : > { %v16258_v53 = vpop.eup %16257  ;;  %15263 = vmatprep.subr.msk.bf16.mxu0 %vm3581_vm13, %v9028_v3  ;;  %v9038_v1 = vsel %vm3581_vm13, %v9028_v3, 0 }
0x2515   : > { %v16260_v22 = vpop.eup %16259  ;;  %v8640_v52 = vmul.f32 %v16258_v53, %v16252_v55  ;;  %v18951_v55 = vpop.f32.mrf.mxu1 }
0x2516   : > { %v8641_v48 = vmul.f32 %v16260_v22, %v16254_v6 }
0x2517   : > { %v8642_v40 = vpack.c.bf16 %v8640_v52, %v8639_v57  ;;  %v9026_v45 = vpop.permute.xlu1 %9025 }
0x2518   : > { %v8643_v17 = vpack.c.bf16 %v8641_v48, %v8641_v48 }
0x2519   : > { %15046 = vmatpush3.bf16.xpose.msra.mxu0 %v9038_v1  ;;  %15007 = vmatprep.mubr.msk.bf16.mxu1 %vm3642_vm15, %v8642_v40 }
0x251a   : > { %15008 = vmatmul.mubr.msk.bf16.vlgmr.msra.gmra.mxu1 %vm3642_vm15, %v8643_v17 }
0x251b   : > { %15012 = vmatpush3.bf16.msra.mxu1 %v15855_v7 }
0x251c   : > { %15013 = vmatprep.subr.bf16.mxu1 %v15856_v61 }
0x251f   : > { %15014 = vmatpush3.bf16.msra.mxu1 %v15856_v61  ;;  %v13409_v61 = vld [vmem:[%s19991_s8 + $0x32c] sm:$0x1] }
0x2520   : > { %15048 = vmatmul.mubr.msk.bf16.vlgmr.msra.gmra.mxu0 %vm3581_vm13, %v9026_v45  ;;  %v15857_v45 = vld [vmem:[%s19991_s8 + $0x314] sm:$0xff]  }
0x2521   : > { %9562 = vmatprep.mubr.bf16.mxu0 %v16430_v20 }
0x253f   : > { %v8853_v38 = vpop.xlane.xlu0 %8852 }
0x2540   : > { %v8860_v49 = vsub.f32 %v8838_v24, %v8853_v38  ;;  %v15858_v38 = vld [vmem:[%s19991_s8 + $0x30c] sm:$0xff]  }
0x2542   : > { %v8863_v15 = vmul.f32 1.442695, %v8860_v49 }
0x2543   : > { %v8859_v39 = vpop.xlane.xlu0 %8858 }
0x2544   : > { %16261 = vpow2.f32 %v8863_v15  ;;  %v8862_v59 = vsub.f32 %v8846_v58, %v8859_v39 }
0x2546   : > { %v8867_v35 = vmul.f32 1.442695, %v8862_v59 }
0x2548   : > { %16263 = vpow2.f32 %v8867_v35  ;;  %v8856_v4 = vpop.xlane.xlu1 %8855 }
0x2549   : > { %v8861_v60 = vsub.f32 %v8841_v25, %v8856_v4 }
0x254b   : > { %v8865_v23 = vmul.f32 1.442695, %v8861_v60 }
0x254d   : > { %16265 = vpow2.f32 %v8865_v23 }
0x2551   : > { %v16262_v46 = vpop.eup %16261 }
0x2552   : > { %v8869_v29 = vsel %vm3642_vm15, %v16262_v46, 0.0 }
0x2553   : > { %8870 = vadd.xlane.f32.xlu0 %v8869_v29 }
0x2555   : > { %v16264_v19 = vpop.eup %16263 }
0x2556   : > { %v8875_v37 = vsel %vm3642_vm15, %v16264_v19, 0.0 }
0x2557   : > { %8876 = vadd.xlane.f32.xlu1 %v8875_v37 }
0x255a   : > { %v16266_v47 = vpop.eup %16265 }
0x255b   : > { %v8872_v51 = vsel %vm3642_vm15, %v16266_v47, 0.0 }
0x255c   : > { %8873 = vadd.xlane.f32.xlu0 %v8872_v51 }
0x2568   : > { %8886 = vrot.lane.b32.xlu1 %v18830_v16, %s20001_s27 }
0x2572   : > { %8888 = vrot.lane.b32.xlu0 %v18824_v26, %s20001_s27 }
0x25da   : > { %v15009_v6 = vpop.f32.mrf.mxu1 }
0x25db   : > { %v8709_v27 = vpack.c.bf16 %v15009_v6, %v15009_v6  ;;  %v8296_v6 = vunpack.c.l.bf16 %v13409_v61 }
0x25dc   : > { %v8694_v42 = vpop.f32.mrf.mxu1  ;;  %v8871_v58 = vpop.xlane.xlu0 %8870 }
0x25de   : > { %v15010_v12 = vpop.f32.mrf.mxu1 }
0x25e0   : > { %v15049_v43 = vpop.f32.mrf.mxu0  ;;  %v8697_v24 = vpop.f32.mrf.mxu1 }
0x25e1   : > { %v8708_v8 = vpack.c.bf16 %v8697_v24, %v8694_v42  ;;  %v8877_v21 = vpop.xlane.xlu1 %8876  ;;  %v9086_v30 = vadd.f32 %v15049_v43, %v18844_v32  ;;  %v18980_v42 = vrot.slane %v8296_v6, %v17370_v56 }
0x25e2   : > { %v9077_v25 = vpop.f32.mrf.mxu0  ;;  %16267 = vrcp.f32 %v8877_v21 }
0x25e3   : > { %v9078_v31 = vadd.f32 %v9077_v25, %v18839_v44  ;;  %15015 = vmatprep.mubr.msk.bf16.mxu1 %vm3581_vm13, %v8708_v8  ;;  %16269 = vrcp.f32 %v8871_v58  ;;  %v9097_v3 = vsel %vm3642_vm15, %v9086_v30, -inf  ;;  %v8536_v12 = vadd.f32 %v18907_v13, %v18980_v42 }
0x25e4   : > { %v15050_v50 = vpop.f32.mrf.mxu0  ;;  %15016 = vmatmul.mubr.msk.bf16.vlgmr.msra.gmra.mxu1 %vm3581_vm13, %v8709_v27  ;;  %v8534_v24 = vadd.f32 %v18980_v42, %v18909_v18 }
0x25e5   : > { %v8874_v36 = vpop.xlane.xlu0 %8873  ;;  %v9091_v2 = vsel %vm3642_vm15, %v9078_v31, -inf  ;;  %v8887_v41 = vpop.permute.xlu1 %8886 }
0x25e6   : > { %16271 = vrcp.f32 %v8874_v36  ;;  %v9080_v14 = vpop.f32.mrf.mxu0  ;;  %9092 = vmax.xlane.f32.xlu1 %v9091_v2 }
0x25e7   : > { %v9081_v10 = vadd.f32 %v9080_v14, %v18848_v62 }
0x25e9   : > { %v8889_v11 = vpop.permute.xlu0 %8888  ;;  %v9094_v34 = vsel %vm3642_vm15, %v9081_v10, -inf }
0x25ea   : > { %v8898_v63 = vsel %vm2751_vm8, %v8889_v11, 0  ;;  %9095 = vmax.xlane.f32.xlu0 %v9094_v34  ;;  %15261 = vmatprep.subr.msk.bf16.mxu1 %vm2751_vm8, %v8889_v11 }
0x25eb   : > { %15028 = vmatpush3.bf16.msra.mxu1 %v8898_v63 }
0x25ec   : > { %15029 = vmatprep.subr.bf16.mxu1 %v8887_v41 }
0x25ee   : > { %9098 = vmax.xlane.f32.xlu0 %v9097_v3 }
0x25ef   : > { %15030 = vmatpush3.bf16.msra.mxu1 %v8887_v41  ;;  %v16268_v53 = vpop.eup %16267 }
0x25f0   : > { %v16270_v22 = vpop.eup %16269  ;;  %v8883_v52 = vmul.f32 %v16268_v53, %v16264_v19  ;;  %15035 = vmatprep.subr.bf16.mxu1 %v15857_v45 }
0x25f1   : > { %v8881_v48 = vmul.f32 %v16270_v22, %v16262_v46 }
0x25f2   : > { %v8885_v1 = vpack.c.bf16 %v8883_v52, %v8883_v52 }
0x25f3   : > { %v16272_v57 = vpop.eup %16271 }
0x25f4   : > { %v8882_v40 = vmul.f32 %v16272_v57, %v16266_v47 }
0x25f6   : > { %v8884_v17 = vpack.c.bf16 %v8882_v40, %v8881_v48  ;;  %v15859_v48 = vld [vmem:[%s19991_s8 + $0x324] sm:$0xff]   ;;  %v15860_v40 = vld [vmem:[%s19991_s8 + $0x31c] sm:$0xff]  }
0x25f8   : > { %15031 = vmatprep.mubr.msk.bf16.mxu1 %vm3642_vm15, %v8884_v17 }
0x25f9   : > { %15032 = vmatmul.mubr.msk.bf16.vlgmr.msra.gmra.mxu1 %vm3642_vm15, %v8885_v1 }
0x25fa   : > { %15036 = vmatpush3.bf16.msra.mxu1 %v15857_v45 }
0x25fb   : > { %15037 = vmatprep.subr.bf16.mxu1 %v15858_v38 }
0x25fe   : > { %15038 = vmatpush3.bf16.msra.mxu1 %v15858_v38 }
0x266f   : > { %v9093_v49 = vpop.xlane.xlu1 %9092 }
0x2670   : > { %v9100_v59 = vsub.f32 %v9078_v31, %v9093_v49 }
0x2672   : > { %v9103_v23 = vmul.f32 1.442695, %v9100_v59 }
0x2673   : > { %v9096_v15 = vpop.xlane.xlu0 %9095 }
0x2674   : > { %v9101_v39 = vsub.f32 %v9081_v10, %v9096_v15 }
0x2676   : > { %v9105_v35 = vmul.f32 1.442695, %v9101_v39 }
0x2677   : > { %v9099_v4 = vpop.xlane.xlu0 %9098 }
0x2678   : > { %16273 = vpow2.f32 %v9105_v35  ;;  %v9102_v60 = vsub.f32 %v9086_v30, %v9099_v4 }
0x267a   : > { %v9107_v46 = vmul.f32 1.442695, %v9102_v60 }
0x267c   : > { %16275 = vpow2.f32 %v9107_v46 }
0x267d   : > { %16277 = vpow2.f32 %v9103_v23 }
0x2685   : > { %v16274_v29 = vpop.eup %16273 }
0x2686   : > { %v9112_v19 = vsel %vm3642_vm15, %v16274_v29, 0.0 }
0x2687   : > { %9113 = vadd.xlane.f32.xlu0 %v9112_v19 }
0x2689   : > { %v16276_v37 = vpop.eup %16275 }
0x268a   : > { %v9115_v47 = vsel %vm3642_vm15, %v16276_v37, 0.0  ;;  %v16278_v51 = vpop.eup %16277 }
0x268b   : > { %9116 = vadd.xlane.f32.xlu1 %v9115_v47  ;;  %v9109_v7 = vsel %vm3642_vm15, %v16278_v51, 0.0 }
0x268f   : > { %9110 = vadd.xlane.f32.xlu1 %v9109_v7 }
0x269d   : > { %9128 = vrot.lane.b32.xlu0 %v18824_v26, %s20002_s14 }
0x26a0   : > { %9126 = vrot.lane.b32.xlu1 %v18830_v16, %s20002_s14 }
0x26a4   : > { %v15017_v43 = vpop.f32.mrf.mxu1 }
0x26a5   : > { %v8782_v58 = vadd.f32 %v15017_v43, %v8536_v12 }
0x26a6   : > { %v8766_v8 = vpop.f32.mrf.mxu1 }
0x26a7   : > { %v8780_v21 = vadd.f32 %v8766_v8, %v8534_v24 }
0x26a8   : > { %v15018_v27 = vpop.f32.mrf.mxu1 }
0x26aa   : > { %v8769_v25 = vpop.f32.mrf.mxu1 }
0x26b9   : > { %v15033_v31 = vpop.f32.mrf.mxu1 }
0x26ba   : > { %v8949_v14 = vpack.c.bf16 %v15033_v31, %v15033_v31 }
0x26bb   : > { %v8934_v26 = vpop.f32.mrf.mxu1 }
0x26bd   : > { %v15034_v50 = vpop.f32.mrf.mxu1 }
0x26bf   : > { %v8937_v36 = vpop.f32.mrf.mxu1 }
0x26c0   : > { %v8948_v2 = vpack.c.bf16 %v8937_v36, %v8934_v26 }
0x26c2   : > { %15039 = vmatprep.mubr.msk.bf16.mxu1 %vm3581_vm13, %v8948_v2 }
0x26c3   : > { %15040 = vmatmul.mubr.msk.bf16.vlgmr.msra.gmra.mxu1 %vm3581_vm13, %v8949_v14 }
0x2710   : > { %v9114_v16 = vpop.xlane.xlu0 %9113 }
0x2714   : > { %v9117_v13 = vpop.xlane.xlu1 %9116  ;;  %v9129_v10 = vpop.permute.xlu0 %9128 }
0x2715   : > { %v9138_v18 = vsel %vm2751_vm8, %v9129_v10, 0  ;;  %15264 = vmatprep.subr.msk.bf16.mxu1 %vm2751_vm8, %v9129_v10  ;;  %16279 = vrcp.f32 %v9117_v13  ;;  %v15869_v13 = vld [vmem:[%s19992_s9 + $0x2e4] ss:$16 sps:$4 sm:$0xff]   ;;  %v15872_v10 = vld [vmem:[%s19992_s9 + $0x2ec] ss:$16 sps:$4 sm:$0xff]  }
0x2716   : > { %15052 = vmatpush3.bf16.msra.mxu1 %v9138_v18  ;;  %16281 = vrcp.f32 %v9114_v16  ;;  %v15867_v18 = vld [vmem:[%s19992_s9 + $0x2e0] ss:$16 sps:$4 sm:$0xff]  }
0x2718   : > { %v9111_v30 = vpop.xlane.xlu1 %9110 }
0x2719   : > { %16283 = vrcp.f32 %v9111_v30  ;;  %v15870_v30 = vld [vmem:[%s19992_s9 + $0x2e8] ss:$16 sps:$4 sm:$0xff]  }
0x271c   : > { %v9127_v11 = vpop.permute.xlu1 %9126 }
0x271d   : > { %15053 = vmatprep.subr.bf16.mxu1 %v9127_v11 }
0x271e   : > { %15054 = vmatpush3.bf16.msra.mxu1 %v9127_v11  ;;  %v15875_v11 = vld [vmem:[%s19992_s9 + $0x2c4] ss:$16 sps:$4 sm:$0xff]  }
0x271f   : > { %15059 = vmatprep.subr.bf16.mxu1 %v15859_v48 }
0x2722   : > { %v16280_v34 = vpop.eup %16279 }
0x2723   : > { %v16282_v63 = vpop.eup %16281  ;;  %v9123_v3 = vmul.f32 %v16280_v34, %v16276_v37  ;;  %v15878_v34 = vld [vmem:[%s19992_s9 + $0x2cc] ss:$16 sps:$4 sm:$0xff]  }
0x2724   : > { %v9122_v22 = vmul.f32 %v16282_v63, %v16274_v29  ;;  %v8535_v29 = vadd.f32 %v18980_v42, %v18951_v55  ;;  %v15863_v42 = vld [vmem:[%s19992_s9 + $0x304] ss:$16 sps:$4 sm:$0xff]   ;;  %v15873_v63 = vld [vmem:[%s19992_s9 + $0x2c0] ss:$16 sps:$4 sm:$0xff]  }
0x2725   : > { %v9125_v52 = vpack.c.bf16 %v9123_v3, %v9123_v3  ;;  %9530 = vmatprep.subr.bf16.mxu0 %v15863_v42  ;;  %v15881_v3 = vld [vmem:[%s19992_s9 + $0x2a4] ss:$16 sps:$4 sm:$0xff]   ;;  %v16405_v42 = vld [vmem:[%s19990_s7 + $0x8] sm:$0xf] }
0x2726   : > { %v16284_v41 = vpop.eup %16283  ;;  %v8781_v37 = vadd.f32 %v8769_v25, %v8535_v29 }
0x2727   : > { %v9121_v53 = vmul.f32 %v16284_v41, %v16278_v51  ;;  %v15876_v41 = vld [vmem:[%s19992_s9 + $0x2c8] ss:$16 sps:$4 sm:$0xff]  }
0x2729   : > { %v9124_v57 = vpack.c.bf16 %v9122_v22, %v9121_v53  ;;  %v15884_v53 = vld [vmem:[%s19992_s9 + $0x2ac] ss:$16 sps:$4 sm:$0xff]   ;;  %v15879_v22 = vld [vmem:[%s19992_s9 + $0x2a0] ss:$16 sps:$4 sm:$0xff]  }
0x272b   : > { %15055 = vmatprep.mubr.msk.bf16.mxu1 %vm3642_vm15, %v9124_v57  ;;  %v15882_v57 = vld [vmem:[%s19992_s9 + $0x2a8] ss:$16 sps:$4 sm:$0xff]  }
0x272c   : > { %15056 = vmatmul.mubr.msk.bf16.vlgmr.msra.gmra.mxu1 %vm3642_vm15, %v9125_v52  ;;  %v15887_v52 = vld [vmem:[%s19992_s9 + $0x284] ss:$16 sps:$4 sm:$0xff]  }
0x272d   : > { %15060 = vmatpush3.bf16.msra.mxu1 %v15859_v48  ;;  %v15890_v48 = vld [vmem:[%s19992_s9 + $0x28c] ss:$16 sps:$4 sm:$0xff]  }
0x272e   : > { %15061 = vmatprep.subr.bf16.mxu1 %v15860_v40 }
0x2731   : > { %15062 = vmatpush3.bf16.msra.mxu1 %v15860_v40  ;;  %v15885_v40 = vld [vmem:[%s19992_s9 + $0x280] ss:$16 sps:$4 sm:$0xff]  }
0x2783   : > { %v15041_v17 = vpop.f32.mrf.mxu1 }
0x2784   : > { %v9022_v1 = vadd.f32 %v15041_v17, %v8782_v58  ;;  %v15866_v58 = vld [vmem:[%s19992_s9 + $0x30c] ss:$16 sps:$4 sm:$0xff]   ;;  %v15888_v17 = vld [vmem:[%s19992_s9 + $0x288] ss:$16 sps:$4 sm:$0xff]  }
0x2785   : > { %v9006_v45 = vpop.f32.mrf.mxu1  ;;  %9581 = vmatprep.subr.bf16.mxu1 %v15866_v58 }
0x2786   : > { %v9020_v38 = vadd.f32 %v9006_v45, %v8780_v21  ;;  %v15896_v45 = vld [vmem:[%s19992_s9 + $0x26c] ss:$16 sps:$4 sm:$0xff]  }
0x2787   : > { %v15042_v49 = vpop.f32.mrf.mxu1 }
0x2788   : > { %v15894_v49 = vld [vmem:[%s19992_s9 + $0x268] ss:$16 sps:$4 sm:$0xff]  }
0x2789   : > { %v9009_v15 = vpop.f32.mrf.mxu1 }
0x278a   : > { %v9021_v7 = vadd.f32 %v9009_v15, %v8781_v37  ;;  %v15899_v15 = vld [vmem:[%s19992_s9 + $0x244] ss:$16 sps:$4 sm:$0xff]  }
0x27ec   : > { %v15057_v39 = vpop.f32.mrf.mxu1 }
0x27ed   : > { %v9189_v23 = vpack.c.bf16 %v15057_v39, %v15057_v39  ;;  %v15902_v39 = vld [vmem:[%s19992_s9 + $0x24c] ss:$16 sps:$4 sm:$0xff]  }
0x27ee   : > { %v9174_v59 = vpop.f32.mrf.mxu1 }
0x27f0   : > { %v15058_v35 = vpop.f32.mrf.mxu1 }
0x27f1   : > { %v15900_v35 = vld [vmem:[%s19992_s9 + $0x248] ss:$16 sps:$4 sm:$0xff]  }
0x27f2   : > { %v9177_v4 = vpop.f32.mrf.mxu1 }
0x27f3   : > { %v9188_v60 = vpack.c.bf16 %v9177_v4, %v9174_v59  ;;  %v15897_v59 = vld [vmem:[%s19992_s9 + $0x240] ss:$16 sps:$4 sm:$0xff]   ;;  %v15905_v4 = vld [vmem:[%s19992_s9 + $0x224] ss:$16 sps:$4 sm:$0xff]  }
0x27f5   : > { %15063 = vmatprep.mubr.msk.bf16.mxu1 %vm3581_vm13, %v9188_v60  ;;  %v15903_v60 = vld [vmem:[%s19992_s9 + $0x220] ss:$16 sps:$4 sm:$0xff]  }
0x27f6   : > { %15064 = vmatmul.mubr.msk.bf16.vlgmr.msra.gmra.mxu1 %vm3581_vm13, %v9189_v23  ;;  %v15906_v23 = vld [vmem:[%s19992_s9 + $0x228] ss:$16 sps:$4 sm:$0xff]  }
0x27f7   : > { %9613 = vmatprep.mubr.bf16.mxu1 %v16430_v20 }
0x28b6   : > { %v15065_v46 = vpop.f32.mrf.mxu1 }
0x28b7   : > { %v9262_v43 = vadd.f32 %v15065_v46, %v9022_v1  ;;  %v15893_v1 = vld [vmem:[%s19992_s9 + $0x264] ss:$16 sps:$4 sm:$0xff]   ;;  %v15908_v46 = vld [vmem:[%s19992_s9 + $0x22c] ss:$16 sps:$4 sm:$0xff]  }
0x28b8   : > { %v9246_v19 = vpop.f32.mrf.mxu1 }
0x28b9   : > { %v9260_v47 = vadd.f32 %v9246_v19, %v9020_v38  ;;  %v19014_v55 = vadd.f32 %v9262_v43, %v18691_v28  ;;  %v15891_v38 = vld [vmem:[%s19992_s9 + $0x260] ss:$16 sps:$4 sm:$0xff]  }
0x28ba   : > { %v15066_v51 = vpop.f32.mrf.mxu1 }
0x28bb   : > { %v19006_v61 = vadd.f32 %v9260_v47, %v18685_v5  ;;  %v15861_v5 = vld [vmem:[%s19992_s9 + $0x300] ss:$16 sps:$4 sm:$0xff]  }
0x28bc   : > { %v9249_v6 = vpop.f32.mrf.mxu1  ;;  %9531 = vmatpush1.bf16.msra.mxu0 %v15861_v5 }
0x28bd   : > { %v9261_v12 = vadd.f32 %v9249_v6, %v9021_v7  ;;  %9266 = vadd.xlane.f32.xlu1 %v19006_v61  ;;  %9532 = vmatprep.subr.bf16.mxu0 %v15869_v13 }
0x28bf   : > { %v19010_v24 = vadd.f32 %v9261_v12, %v18693_v33  ;;  %v15864_v33 = vld [vmem:[%s19992_s9 + $0x308] ss:$16 sps:$4 sm:$0xff]  }
0x28c0   : > { %9582 = vmatpush1.bf16.msra.mxu1 %v15864_v33  ;;  %9533 = vmatpush1.bf16.msra.mxu0 %v15867_v18  ;;  %v9302_v33 = vrot.slane %v16405_v42, %v17737_v9 }
0x28c1   : > { %9268 = vadd.xlane.f32.xlu0 %v19010_v24  ;;  %9583 = vmatprep.subr.bf16.mxu1 %v15872_v10 }
0x28c2   : > { %9534 = vmatprep.subr.bf16.mxu0 %v15875_v11  ;;  %v15912_v11 = vld [vmem:[%s19993_s10 + $0x2c0] sm:$0xff]  }
0x28c4   : > { %9584 = vmatpush1.bf16.msra.mxu1 %v15870_v30  ;;  %9535 = vmatpush1.bf16.msra.mxu0 %v15873_v63  ;;  %v15911_v30 = vld [vmem:[%s19993_s10 + $0x240] sm:$0xff]   ;;  %v15914_v63 = vld [vmem:[%s19993_s10 + $0x2f8] sm:$0xff]  }
0x28c5   : > { %9270 = vadd.xlane.f32.xlu0 %v19014_v55  ;;  %9585 = vmatprep.subr.bf16.mxu1 %v15878_v34  ;;  %v15913_v34 = vld [vmem:[%s19993_s10 + $0x278] sm:$0xff]  }
0x28c6   : > { %9536 = vmatprep.subr.bf16.mxu0 %v15881_v3  ;;  %v15916_v3 = vld [vmem:[%s19993_s10 + $0x2b8] sm:$0xff]  }
0x28c8   : > { %9586 = vmatpush1.bf16.msra.mxu1 %v15876_v41  ;;  %9537 = vmatpush1.bf16.msra.mxu0 %v15879_v22  ;;  %v15915_v41 = vld [vmem:[%s19993_s10 + $0x238] sm:$0xff]   ;;  %v15918_v22 = vld [vmem:[%s19993_s10 + $0x2f0] sm:$0xff]  }
0x28c9   : > { %9587 = vmatprep.subr.bf16.mxu1 %v15884_v53  ;;  %9538 = vmatprep.subr.bf16.mxu0 %v15887_v52  ;;  %v15917_v53 = vld [vmem:[%s19993_s10 + $0x270] sm:$0xff]  }
0x28ca   : > { %v15920_v52 = vld [vmem:[%s19993_s10 + $0x2b0] sm:$0xff]  }
0x28cc   : > { %9588 = vmatpush1.bf16.msra.mxu1 %v15882_v57  ;;  %9539 = vmatpush1.bf16.msra.mxu0 %v15885_v40  ;;  %v15919_v57 = vld [vmem:[%s19993_s10 + $0x230] sm:$0xff]   ;;  %v15922_v40 = vld [vmem:[%s19993_s10 + $0x2e8] sm:$0xff]  }
0x28cd   : > { %9589 = vmatprep.subr.bf16.mxu1 %v15890_v48  ;;  %9540 = vmatprep.subr.bf16.mxu0 %v15893_v1  ;;  %v15921_v48 = vld [vmem:[%s19993_s10 + $0x268] sm:$0xff]  }
0x28ce   : > { %v15924_v1 = vld [vmem:[%s19993_s10 + $0x2a8] sm:$0xff]  }
0x28d0   : > { %9590 = vmatpush1.bf16.msra.mxu1 %v15888_v17  ;;  %9541 = vmatpush1.bf16.msra.mxu0 %v15891_v38  ;;  %v15923_v17 = vld [vmem:[%s19993_s10 + $0x228] sm:$0xff]   ;;  %v15926_v38 = vld [vmem:[%s19993_s10 + $0x2e0] sm:$0xff]  }
0x28d1   : > { %9591 = vmatprep.subr.bf16.mxu1 %v15896_v45  ;;  %9542 = vmatprep.subr.bf16.mxu0 %v15899_v15  ;;  %v15925_v45 = vld [vmem:[%s19993_s10 + $0x260] sm:$0xff]  }
0x28d2   : > { %v15928_v15 = vld [vmem:[%s19993_s10 + $0x2a0] sm:$0xff]  }
0x28d4   : > { %9592 = vmatpush1.bf16.msra.mxu1 %v15894_v49  ;;  %9543 = vmatpush1.bf16.msra.mxu0 %v15897_v59  ;;  %v15927_v49 = vld [vmem:[%s19993_s10 + $0x220] sm:$0xff]   ;;  %v15930_v59 = vld [vmem:[%s19993_s10 + $0x2d8] sm:$0xff]  }
0x28d5   : > { %9593 = vmatprep.subr.bf16.mxu1 %v15902_v39  ;;  %9544 = vmatprep.subr.bf16.mxu0 %v15905_v4  ;;  %v15929_v39 = vld [vmem:[%s19993_s10 + $0x258] sm:$0xff]  }
0x28d6   : > { %v15932_v4 = vld [vmem:[%s19993_s10 + $0x298] sm:$0xff]  }
0x28d8   : > { %9594 = vmatpush1.bf16.msra.mxu1 %v15900_v35  ;;  %9545 = vmatpush1.bf16.msra.mxu0 %v15903_v60  ;;  %v15931_v35 = vld [vmem:[%s19993_s10 + $0x218] sm:$0xff]   ;;  %v15933_v60 = vld [vmem:[%s19993_s10 + $0x250] sm:$0xff]  }
0x28d9   : > { %9595 = vmatprep.subr.bf16.mxu1 %v15908_v46  ;;  %v15935_v46 = vld [vmem:[%s19993_s10 + $0x210] sm:$0xff]  }
0x28dc   : > { %9596 = vmatpush1.bf16.msra.mxu1 %v15906_v23  ;;  %v15934_v23 = vld [vmem:[%s19993_s10 + $0x2d0] sm:$0xff]  }
0x2946   : > { %v9267_v28 = vpop.xlane.xlu1 %9266 }
0x2947   : > { %v9272_v8 = vmul.f32 0.0078125, %v9267_v28 }
0x2949   : > { %v19030_v21 = vsub.f32 %v19006_v61, %v9272_v8 }
0x294a   : > { %v9269_v27 = vpop.xlane.xlu0 %9268 }
0x294b   : > { %v9273_v25 = vmul.f32 0.0078125, %v9269_v27  ;;  %v9278_v31 = vmul.f32 %v19030_v21, %v19030_v21 }
0x294d   : > { %v19035_v26 = vsub.f32 %v19010_v24, %v9273_v25  ;;  %9281 = vadd.xlane.f32.xlu1 %v9278_v31  ;;  %v9309_v25 = vrot.slane %v16405_v42, %v17745_v54 }
0x294e   : > { %v9271_v50 = vpop.xlane.xlu0 %9270 }
0x294f   : > { %v9274_v36 = vmul.f32 0.0078125, %v9271_v50  ;;  %v9279_v2 = vmul.f32 %v19035_v26, %v19035_v26 }
0x2951   : > { %v19040_v14 = vsub.f32 %v19014_v55, %v9274_v36  ;;  %9283 = vadd.xlane.f32.xlu0 %v9279_v2 }
0x2953   : > { %v9280_v16 = vmul.f32 %v19040_v14, %v19040_v14 }
0x2955   : > { %9285 = vadd.xlane.f32.xlu1 %v9280_v16 }
0x29d6   : > { %v9282_v29 = vpop.xlane.xlu1 %9281 }
0x29d7   : > { %v9287_v19 = vmul.f32 0.0078125, %v9282_v29  ;;  %v15936_v29 = vld [vmem:[%s19993_s10 + $0x290] sm:$0xff]  }
0x29d9   : > { %v9290_v37 = vadd.f32 1e-05, %v9287_v19  ;;  %v15937_v19 = vld [vmem:[%s19993_s10 + $0x248] sm:$0xff]  }
0x29da   : > { %v9284_v47 = vpop.xlane.xlu0 %9283 }
0x29db   : > { %16285 = vrsqrt.f32 %v9290_v37  ;;  %v9288_v51 = vmul.f32 0.0078125, %v9284_v47  ;;  %v15938_v37 = vld [vmem:[%s19993_s10 + $0x2c8] sm:$0xff]  }
0x29dc   : > { %v15939_v47 = vld [vmem:[%s19993_s10 + $0x208] sm:$0xff]  }
0x29dd   : > { %v9291_v7 = vadd.f32 1e-05, %v9288_v51  ;;  %v15940_v51 = vld [vmem:[%s19993_s10 + $0x288] sm:$0xff]  }
0x29de   : > { %v9286_v6 = vpop.xlane.xlu1 %9285 }
0x29df   : > { %16287 = vrsqrt.f32 %v9291_v7  ;;  %v9289_v12 = vmul.f32 0.0078125, %v9286_v6  ;;  %v13490_v7 = vld [vmem:[%s19992_s9 + $0x320] sm:$0x11]  ;;  %v13491_v6 = vld [vmem:[%s19992_s9 + $0x328] sm:$0x11] }
0x29e0   : > { %v9353_v42 = vunpack.c.h.bf16 %v13491_v6 }
0x29e1   : > { %v9292_v43 = vadd.f32 1e-05, %v9289_v12  ;;  %v9350_v12 = vunpack.c.l.bf16 %v13490_v7 }
0x29e3   : > { %16289 = vrsqrt.f32 %v9292_v43  ;;  %v9352_v43 = vunpack.c.l.bf16 %v13491_v6 }
0x29e8   : > { %v16286_v5 = vpop.eup %16285 }
0x29e9   : > { %v9296_v58 = vmul.f32 %v16286_v5, %v19030_v21  ;;  %v9351_v5 = vunpack.c.h.bf16 %v13490_v7 }
0x29eb   : > { %v9303_v27 = vmul.f32 %v9302_v33, %v9296_v58  ;;  %v9365_v58 = vrot.slane %v9352_v43, %v17370_v56 }
0x29ec   : > { %v16288_v28 = vpop.eup %16287 }
0x29ed   : > { %v9297_v8 = vmul.f32 %v16288_v28, %v19035_v26  ;;  %v9310_v36 = vadd.f32 %v9309_v25, %v9303_v27  ;;  %v15909_v26 = vld [vmem:[%s19993_s10 + $0x280] sm:$0xff]   ;;  %v9361_v27 = vrot.slane %v9351_v5, %v17370_v56 }
0x29ee   : > { %14309 = vmatprep.subr.bf16.mxu0 %v15909_v26 }
0x29ef   : > { %v9304_v31 = vmul.f32 %v9302_v33, %v9297_v8 }
0x29f0   : > { %v16290_v50 = vpop.eup %16289 }
0x29f1   : > { %v9311_v2 = vadd.f32 %v9309_v25, %v9304_v31  ;;  %v9298_v16 = vmul.f32 %v16290_v50, %v19040_v14  ;;  %v15910_v14 = vld [vmem:[%s19993_s10 + $0x300] sm:$0xff]  }
0x29f2   : > { %14337 = vmatprep.subr.bf16.mxu1 %v15910_v14 }
0x29f3   : > { %v9313_v13 = vpack.c.bf16 %v9311_v2, %v9310_v36  ;;  %v9305_v10 = vmul.f32 %v9302_v33, %v9298_v16  ;;  %v9357_v33 = vrot.slane %v9350_v12, %v17370_v56 }
0x29f5   : > { %9563 = vmatmul.mubr.bf16.vlgmr.msra.gmra.mxu0 %v9313_v13  ;;  %9614 = vmatmul.mubr.bf16.vlgmr.msra.gmra.mxu1 %v9313_v13  ;;  %v9312_v21 = vadd.f32 %v9309_v25, %v9305_v10  ;;  %v9369_v25 = vrot.slane %v9353_v42, %v17370_v56 }
0x29f6   : > { %9572 = vmatprep.mubr.bf16.mxu0 %v16430_v20  ;;  %9623 = vmatprep.mubr.bf16.mxu1 %v16430_v20 }
0x29f7   : > { %v9314_v18 = vpack.c.bf16 %v9312_v21, %v9312_v21  ;;  %14310 = vmatpush3.bf16.msra.mxu0 %v15911_v30  ;;  %14338 = vmatpush3.bf16.msra.mxu1 %v15912_v11 }
0x29f8   : > { %14311 = vmatprep.subr.bf16.mxu0 %v15913_v34  ;;  %14339 = vmatprep.subr.bf16.mxu1 %v15914_v63 }
0x29fb   : > { %14312 = vmatpush3.bf16.msra.mxu0 %v15915_v41  ;;  %14340 = vmatpush3.bf16.msra.mxu1 %v15916_v3 }
0x29fc   : > { %14313 = vmatprep.subr.bf16.mxu0 %v15917_v53  ;;  %14341 = vmatprep.subr.bf16.mxu1 %v15918_v22 }
0x29fd   : > { %9573 = vmatmul.mubr.bf16.gmra.mxu0 %v9314_v18  ;;  %9624 = vmatmul.mubr.bf16.gmra.mxu1 %v9314_v18 }
0x29ff   : > { %14314 = vmatpush3.bf16.msra.mxu0 %v15919_v57  ;;  %14342 = vmatpush3.bf16.msra.mxu1 %v15920_v52 }
0x2a00   : > { %14315 = vmatprep.subr.bf16.mxu0 %v15921_v48  ;;  %14343 = vmatprep.subr.bf16.mxu1 %v15922_v40 }
0x2a03   : > { %14316 = vmatpush3.bf16.msra.mxu0 %v15923_v17  ;;  %14344 = vmatpush3.bf16.msra.mxu1 %v15924_v1 }
0x2a04   : > { %14317 = vmatprep.subr.bf16.mxu0 %v15925_v45  ;;  %14345 = vmatprep.subr.bf16.mxu1 %v15926_v38 }
0x2a07   : > { %14318 = vmatpush3.bf16.msra.mxu0 %v15927_v49  ;;  %14346 = vmatpush3.bf16.msra.mxu1 %v15928_v15 }
0x2a08   : > { %14319 = vmatprep.subr.bf16.mxu0 %v15929_v39  ;;  %14347 = vmatprep.subr.bf16.mxu1 %v15930_v59 }
0x2a0b   : > { %14320 = vmatpush3.bf16.msra.mxu0 %v15931_v35  ;;  %14348 = vmatpush3.bf16.msra.mxu1 %v15932_v4 }
0x2a0c   : > { %14321 = vmatprep.subr.bf16.mxu0 %v15933_v60  ;;  %14349 = vmatprep.subr.bf16.mxu1 %v15934_v23 }
0x2a0f   : > { %14322 = vmatpush3.bf16.msra.mxu0 %v15935_v46  ;;  %14350 = vmatpush3.bf16.msra.mxu1 %v15936_v29 }
0x2a10   : > { %14323 = vmatprep.subr.bf16.mxu0 %v15937_v19  ;;  %14351 = vmatprep.subr.bf16.mxu1 %v15938_v37 }
0x2a13   : > { %14324 = vmatpush3.bf16.msra.mxu0 %v15939_v47  ;;  %14352 = vmatpush3.bf16.msra.mxu1 %v15940_v51 }
0x2ab5   : > { %v9564_v28 = vpop.f32.mrf.mxu0  ;;  %v9615_v8 = vpop.f32.mrf.mxu1 }
0x2ab6   : > { %v19244_v31 = vadd.f32 %v9564_v28, %v9357_v33  ;;  %v19246_v50 = vadd.f32 %v9615_v8, %v9365_v58 }
0x2ab7   : > { %v9566_v36 = vpop.f32.mrf.mxu0  ;;  %v9617_v2 = vpop.f32.mrf.mxu1 }
0x2ab8   : > { %v9644_v16 = vmul.f32 0.044715, %v19244_v31  ;;  %v9646_v13 = vmul.f32 0.044715, %v19246_v50  ;;  %v19250_v10 = vadd.f32 %v9566_v36, %v9361_v27  ;;  %v19252_v21 = vadd.f32 %v9617_v2, %v9369_v25 }
0x2ab9   : > { %v9568_v18 = vpop.f32.mrf.mxu0  ;;  %v9619_v26 = vpop.f32.mrf.mxu1 }
0x2aba   : > { %v9656_v14 = vmul.f32 %v9644_v16, %v19244_v31  ;;  %v9658_v30 = vmul.f32 %v9646_v13, %v19246_v50  ;;  %v19256_v11 = vadd.f32 %v9568_v18, %v9357_v33  ;;  %v19258_v34 = vadd.f32 %v9619_v26, %v9365_v58 }
0x2abb   : > { %v9645_v63 = vmul.f32 0.044715, %v19250_v10  ;;  %v9647_v41 = vmul.f32 0.044715, %v19252_v21  ;;  %v9570_v3 = vpop.f32.mrf.mxu0  ;;  %v9621_v53 = vpop.f32.mrf.mxu1 }
0x2abc   : > { %v9668_v22 = vmul.f32 %v9656_v14, %v19244_v31  ;;  %v9670_v57 = vmul.f32 %v9658_v30, %v19246_v50  ;;  %v9648_v52 = vmul.f32 0.044715, %v19256_v11  ;;  %v9650_v40 = vmul.f32 0.044715, %v19258_v34 }
0x2abd   : > { %v9657_v48 = vmul.f32 %v9645_v63, %v19250_v10  ;;  %v9574_v17 = vpop.f32.mrf.mxu0  ;;  %v9625_v1 = vpop.f32.mrf.mxu1  ;;  %v9659_v38 = vmul.f32 %v9647_v41, %v19252_v21  ;;  %v19270_v15 = vadd.f32 %v9570_v3, %v9361_v27  ;;  %v19274_v35 = vadd.f32 %v9621_v53, %v9369_v25 }
0x2abe   : > { %v9680_v45 = vadd.f32 %v9668_v22, %v19244_v31  ;;  %v9660_v49 = vmul.f32 %v9648_v52, %v19256_v11  ;;  %v9682_v39 = vadd.f32 %v9670_v57, %v19246_v50  ;;  %v9662_v59 = vmul.f32 %v9650_v40, %v19258_v34 }
0x2abf   : > { %v9576_v4 = vpop.f32.mrf.mxu0  ;;  %v9627_v60 = vpop.f32.mrf.mxu1  ;;  %v9669_v46 = vmul.f32 %v9657_v48, %v19250_v10  ;;  %v9649_v19 = vmul.f32 0.044715, %v19270_v15  ;;  %v9651_v47 = vmul.f32 0.044715, %v19274_v35  ;;  %v19281_v51 = vadd.f32 %v9574_v17, %v9357_v33 }
0x2ac0   : > { %v9692_v23 = vmul.f32 0.7978846, %v9680_v45  ;;  %v9672_v29 = vmul.f32 %v9660_v49, %v19256_v11  ;;  %v9674_v37 = vmul.f32 %v9662_v59, %v19258_v34  ;;  %v19283_v7 = vadd.f32 %v9625_v1, %v9365_v58 }
0x2ac1   : > { %v9578_v6 = vpop.f32.mrf.mxu0  ;;  %v9629_v12 = vpop.f32.mrf.mxu1  ;;  %v9671_v43 = vmul.f32 %v9659_v38, %v19252_v21  ;;  %v9661_v42 = vmul.f32 %v9649_v19, %v19270_v15  ;;  %v19288_v28 = vadd.f32 %v9576_v4, %v9361_v27  ;;  %v9663_v36 = vmul.f32 %v9651_v47, %v19274_v35 }
0x2ac2   : > { %v9684_v5 = vadd.f32 %v9672_v29, %v19256_v11  ;;  %16291 = vtanh.f32 %v9692_v23  ;;  %v9686_v8 = vadd.f32 %v9674_v37, %v19258_v34  ;;  %v9652_v33 = vmul.f32 0.044715, %v19281_v51 }
0x2ac3   : > { %v9579_v2 = vpop.f32.mrf.mxu0  ;;  %v9630_v58 = vpop.f32.mrf.mxu1  ;;  %v9673_v13 = vmul.f32 %v9661_v42, %v19270_v15  ;;  %v9654_v18 = vmul.f32 0.044715, %v19283_v7  ;;  %v9653_v26 = vmul.f32 0.044715, %v19288_v28  ;;  %v9675_v27 = vmul.f32 %v9663_v36, %v19274_v35 }
0x2ac4   : > { %v9696_v16 = vmul.f32 0.7978846, %v9684_v5  ;;  %v9698_v14 = vmul.f32 0.7978846, %v9686_v8  ;;  %v9664_v30 = vmul.f32 %v9652_v33, %v19281_v51  ;;  %v19298_v63 = vadd.f32 %v9627_v60, %v9369_v25 }
0x2ac5   : > { %v9694_v41 = vmul.f32 0.7978846, %v9682_v39  ;;  %v9666_v3 = vmul.f32 %v9654_v18, %v19283_v7  ;;  %v9665_v22 = vmul.f32 %v9653_v26, %v19288_v28  ;;  %v9681_v52 = vadd.f32 %v9669_v46, %v19250_v10 }
0x2ac6   : > { %16293 = vtanh.f32 %v9696_v16  ;;  %v9676_v53 = vmul.f32 %v9664_v30, %v19281_v51  ;;  %v9655_v57 = vmul.f32 0.044715, %v19298_v63  ;;  %v9685_v40 = vadd.f32 %v9673_v13, %v19270_v15 }
0x2ac7   : > { %16295 = vtanh.f32 %v9698_v14  ;;  %v9678_v48 = vmul.f32 %v9666_v3, %v19283_v7  ;;  %v9683_v25 = vadd.f32 %v9671_v43, %v19252_v21  ;;  %v9693_v45 = vmul.f32 0.7978846, %v9681_v52 }
0x2ac8   : > { %v9688_v17 = vadd.f32 %v9676_v53, %v19281_v51  ;;  %v9667_v1 = vmul.f32 %v9655_v57, %v19298_v63  ;;  %v9687_v38 = vadd.f32 %v9675_v27, %v19274_v35  ;;  %16297 = vtanh.f32 %v9694_v41 }
0x2ac9   : > { %v9690_v49 = vadd.f32 %v9678_v48, %v19283_v7  ;;  %v9697_v39 = vmul.f32 0.7978846, %v9685_v40  ;;  %v9695_v59 = vmul.f32 0.7978846, %v9683_v25  ;;  %16299 = vtanh.f32 %v9693_v45 }
0x2aca   : > { %v9700_v4 = vmul.f32 0.7978846, %v9688_v17  ;;  %v9699_v60 = vmul.f32 0.7978846, %v9687_v38  ;;  %v9677_v23 = vmul.f32 %v9665_v22, %v19288_v28  ;;  %v9679_v29 = vmul.f32 %v9667_v1, %v19298_v63 }
0x2acb   : > { %v9702_v46 = vmul.f32 0.7978846, %v9690_v49  ;;  %16301 = vtanh.f32 %v9697_v39  ;;  %v9632_v33 = vmul.f32 0.5, %v19244_v31  ;;  %v9636_v16 = vmul.f32 0.5, %v19256_v11 }
0x2acc   : > { %16303 = vtanh.f32 %v9695_v59  ;;  %v9689_v19 = vadd.f32 %v9677_v23, %v19288_v28  ;;  %v9691_v37 = vadd.f32 %v9679_v29, %v19298_v63  ;;  %v9633_v14 = vmul.f32 0.5, %v19250_v10 }
0x2acd   : > { %16305 = vtanh.f32 %v9699_v60  ;;  %v9637_v27 = vmul.f32 0.5, %v19270_v15  ;;  %v9635_v41 = vmul.f32 0.5, %v19252_v21  ;;  %v9638_v57 = vmul.f32 0.5, %v19258_v34 }
0x2ace   : > { %v9701_v47 = vmul.f32 0.7978846, %v9689_v19  ;;  %16307 = vtanh.f32 %v9700_v4  ;;  %v9703_v12 = vmul.f32 0.7978846, %v9691_v37  ;;  %v9639_v11 = vmul.f32 0.5, %v19274_v35 }
0x2acf   : > { %v16292_v6 = vpop.eup %16291  ;;  %16309 = vtanh.f32 %v9702_v46  ;;  %v9634_v10 = vmul.f32 0.5, %v19246_v50  ;;  %v9641_v39 = vmul.f32 0.5, %v19288_v28  ;;  %v9643_v35 = vmul.f32 0.5, %v19298_v63 }
0x2ad0   : > { %16311 = vtanh.f32 %v9701_v47  ;;  %v9716_v58 = vadd.f32 1.0, %v16292_v6  ;;  %v9640_v37 = vmul.f32 0.5, %v19281_v51  ;;  %v13620_v51 = vld [vmem:[%s19993_s10 + $0x308] sm:$0x1] }
0x2ad1   : > { %16313 = vtanh.f32 %v9703_v12 }
0x2ad2   : > { %v9728_v1 = vmul.f32 %v9716_v58, %v9632_v33 }
0x2ad3   : > { %v16294_v43 = vpop.eup %16293 }
0x2ad4   : > { %v16296_v5 = vpop.eup %16295  ;;  %v9720_v8 = vadd.f32 1.0, %v16294_v43  ;;  %v9642_v43 = vmul.f32 0.5, %v19283_v7 }
0x2ad5   : > { %v16298_v42 = vpop.eup %16297  ;;  %v9722_v13 = vadd.f32 1.0, %v16296_v5 }
0x2ad6   : > { %v16300_v36 = vpop.eup %16299  ;;  %v9718_v53 = vadd.f32 1.0, %v16298_v42  ;;  %v9732_v22 = vmul.f32 %v9720_v8, %v9636_v16  ;;  %v10105_v16 = vunpack.c.l.bf16 %v13620_v51  ;;  %v15952_v51 = vld [vmem:[%s19991_s8 + $0x384] sm:$0xff]  }
0x2ad7   : > { %v9717_v18 = vadd.f32 1.0, %v16300_v36  ;;  %v9734_v15 = vmul.f32 %v9722_v13, %v9638_v57 }
0x2ad8   : > { %v16302_v2 = vpop.eup %16301  ;;  %v9730_v34 = vmul.f32 %v9718_v53, %v9634_v10  ;;  %v9740_v4 = vpack.c.bf16 %v9732_v22, %v9728_v1 }
0x2ad9   : > { %v16304_v26 = vpop.eup %16303  ;;  %v9721_v30 = vadd.f32 1.0, %v16302_v2  ;;  %v9729_v48 = vmul.f32 %v9717_v18, %v9633_v14 }
0x2ada   : > { %v16306_v3 = vpop.eup %16305  ;;  %v9719_v31 = vadd.f32 1.0, %v16304_v26  ;;  %v9742_v19 = vpack.c.bf16 %v9734_v15, %v9730_v34 }
0x2adb   : > { %v16308_v52 = vpop.eup %16307  ;;  %v9733_v40 = vmul.f32 %v9721_v30, %v9637_v27  ;;  %v9723_v25 = vadd.f32 1.0, %v16306_v3 }
0x2adc   : > { %v16310_v17 = vpop.eup %16309  ;;  %v9731_v21 = vmul.f32 %v9719_v31, %v9635_v41  ;;  %v9724_v23 = vadd.f32 1.0, %v16308_v52  ;;  %v10109_v41 = vrot.slane %v10105_v16, %v17370_v56  ;;  %v15956_v16 = vld [vmem:[%s19991_s8 + $0x374] sm:$0xff]  }
0x2add   : > { %v16312_v45 = vpop.eup %16311  ;;  %v9741_v38 = vpack.c.bf16 %v9733_v40, %v9729_v48  ;;  %v9735_v49 = vmul.f32 %v9723_v25, %v9639_v11  ;;  %v9726_v47 = vadd.f32 1.0, %v16310_v17 }
0x2ade   : > { %v16314_v59 = vpop.eup %16313  ;;  %v9725_v60 = vadd.f32 1.0, %v16312_v45  ;;  %v9736_v12 = vmul.f32 %v9724_v23, %v9640_v37  ;;  %v15941_v37 = vld [vmem:[%s19991_s8 + $0x368] sm:$0xff]  }
0x2adf   : > { %10037 = vmatprep.mubr.bf16.mxu0 %v9741_v38  ;;  %v9743_v46 = vpack.c.bf16 %v9735_v49, %v9731_v21  ;;  %v9727_v29 = vadd.f32 1.0, %v16314_v59  ;;  %v9738_v42 = vmul.f32 %v9726_v47, %v9642_v43  ;;  %v15942_v47 = vld [vmem:[%s19991_s8 + $0x3ac] sm:$0xff]   ;;  %15067 = vmatprep.subr.bf16.mxu0 %v15941_v37  ;;  %v15946_v43 = vld [vmem:[%s19991_s8 + $0x39c] sm:$0xff]  }
0x2ae0   : > { %10038 = vmatmul.mubr.bf16.vlgmr.msra.gmra.mxu0 %v9740_v4  ;;  %v9737_v50 = vmul.f32 %v9725_v60, %v9641_v39  ;;  %v9744_v8 = vpack.c.bf16 %v9736_v12, %v9736_v12  ;;  %15087 = vmatprep.subr.bf16.mxu1 %v15942_v47  ;;  %v15945_v12 = vld [vmem:[%s19991_s8 + $0x358] sm:$0xff]  }
0x2ae1   : > { %10085 = vmatprep.mubr.bf16.mxu1 %v9743_v46  ;;  %v9739_v6 = vmul.f32 %v9727_v29, %v9643_v35  ;;  %v9746_v63 = vpack.c.bf16 %v9738_v42, %v9738_v42  ;;  %15068 = vmatpush3.bf16.msra.mxu0 %v15941_v37  ;;  %v15948_v42 = vld [vmem:[%s19991_s8 + $0x394] sm:$0xff]  }
0x2ae2   : > { %10086 = vmatmul.mubr.bf16.vlgmr.msra.gmra.mxu1 %v9742_v19  ;;  %v9745_v28 = vpack.c.bf16 %v9737_v50, %v9737_v50 }
0x2ae3   : > { %v9747_v5 = vpack.c.bf16 %v9739_v6, %v9739_v6  ;;  %15088 = vmatpush3.bf16.msra.mxu1 %v15942_v47  ;;  %v15943_v6 = vld [vmem:[%s19991_s8 + $0x360] sm:$0xff]  }
0x2ae4   : > { %10045 = vmatprep.mubr.bf16.mxu0 %v9745_v28  ;;  %v15944_v28 = vld [vmem:[%s19991_s8 + $0x3a4] sm:$0xff]   ;;  %15069 = vmatprep.subr.bf16.mxu0 %v15943_v6 }
0x2ae5   : > { %10093 = vmatprep.mubr.bf16.mxu1 %v9747_v5  ;;  %15089 = vmatprep.subr.bf16.mxu1 %v15944_v28  ;;  %v15947_v5 = vld [vmem:[%s19991_s8 + $0x350] sm:$0xff]  }
0x2ae6   : > { %15070 = vmatpush3.bf16.msra.mxu0 %v15943_v6 }
0x2ae7   : > { %15090 = vmatpush3.bf16.msra.mxu1 %v15944_v28  ;;  %15071 = vmatprep.subr.bf16.mxu0 %v15945_v12 }
0x2ae8   : > { %10046 = vmatmul.mubr.bf16.gmra.mxu0 %v9744_v8  ;;  %15091 = vmatprep.subr.bf16.mxu1 %v15946_v43  ;;  %v15949_v8 = vld [vmem:[%s19991_s8 + $0x348] sm:$0xff]  }
0x2aea   : > { %10094 = vmatmul.mubr.bf16.gmra.mxu1 %v9746_v63  ;;  %15072 = vmatpush3.bf16.msra.mxu0 %v15945_v12  ;;  %v15950_v63 = vld [vmem:[%s19991_s8 + $0x38c] sm:$0xff]  }
0x2aeb   : > { %15092 = vmatpush3.bf16.msra.mxu1 %v15946_v43  ;;  %15073 = vmatprep.subr.bf16.mxu0 %v15947_v5 }
0x2aec   : > { %15093 = vmatprep.subr.bf16.mxu1 %v15948_v42 }
0x2aee   : > { %15074 = vmatpush3.bf16.msra.mxu0 %v15947_v5 }
0x2aef   : > { %15094 = vmatpush3.bf16.msra.mxu1 %v15948_v42  ;;  %15075 = vmatprep.subr.bf16.mxu0 %v15949_v8 }
0x2af0   : > { %15095 = vmatprep.subr.bf16.mxu1 %v15950_v63 }
0x2af2   : > { %15076 = vmatpush3.bf16.msra.mxu0 %v15949_v8 }
0x2af3   : > { %15096 = vmatpush3.bf16.msra.mxu1 %v15950_v63 }
0x2af4   : > { %15097 = vmatprep.subr.bf16.mxu1 %v15952_v51 }
0x2af7   : > { %15098 = vmatpush3.bf16.msra.mxu1 %v15952_v51 }
0x2ba0   : > { %v14325_v36 = vpop.f32.mrf.mxu0 }
0x2ba2   : > { %v14353_v33 = vpop.f32.mrf.mxu1  ;;  %v14326_v2 = vpop.f32.mrf.mxu0 }
0x2ba3   : > { %v14327_v58 = vadd.f32 %v14326_v2, %v14325_v36  ;;  %v15951_v36 = vld [vmem:[%s19991_s8 + $0x340] sm:$0xff]  }
0x2ba4   : > { %v14354_v13 = vpop.f32.mrf.mxu1  ;;  %v14328_v18 = vpop.f32.mrf.mxu0  ;;  %v15954_v2 = vld [vmem:[%s19991_s8 + $0x37c] sm:$0xff]   ;;  %15077 = vmatprep.subr.bf16.mxu0 %v15951_v36 }
0x2ba5   : > { %v14355_v7 = vadd.f32 %v14354_v13, %v14353_v33  ;;  %v15953_v33 = vld [vmem:[%s19991_s8 + $0x338] sm:$0xff]   ;;  %15078 = vmatpush3.bf16.msra.mxu0 %v15951_v36  ;;  %15099 = vmatprep.subr.bf16.mxu1 %v15954_v2  ;;  %v15957_v13 = vld [vmem:[%s19991_s8 + $0x3f0] sm:$0xff]  }
0x2ba6   : > { %v14356_v26 = vpop.f32.mrf.mxu1  ;;  %v14329_v14 = vpop.f32.mrf.mxu0  ;;  %15079 = vmatprep.subr.bf16.mxu0 %v15953_v33  ;;  %15100 = vmatpush3.bf16.msra.mxu1 %v15954_v2 }
0x2ba7   : > { %v10088_v27 = vadd.f32 %v14355_v7, %v14327_v58  ;;  %v14330_v30 = vadd.f32 %v14329_v14, %v14328_v18  ;;  %v15955_v58 = vld [vmem:[%s19991_s8 + $0x330] sm:$0xff]   ;;  %15101 = vmatprep.subr.bf16.mxu1 %v15956_v16 }
0x2ba8   : > { %v14357_v3 = vpop.f32.mrf.mxu1  ;;  %v14331_v53 = vpop.f32.mrf.mxu0 }
0x2ba9   : > { %v10101_v22 = vadd.f32 %v10088_v27, %v19006_v61  ;;  %v14358_v57 = vadd.f32 %v14357_v3, %v14356_v26  ;;  %15080 = vmatpush3.bf16.msra.mxu0 %v15953_v33 }
0x2baa   : > { %v14359_v31 = vpop.f32.mrf.mxu1  ;;  %v14332_v52 = vpop.f32.mrf.mxu0  ;;  %15081 = vmatprep.subr.bf16.mxu0 %v15955_v58  ;;  %15102 = vmatpush3.bf16.msra.mxu1 %v15956_v16 }
0x2bab   : > { %v10091_v48 = vadd.f32 %v14358_v57, %v14330_v30  ;;  %v14333_v40 = vadd.f32 %v14332_v52, %v14331_v53  ;;  %v19333_v11 = vadd.f32 %v10109_v41, %v10101_v22  ;;  %v13621_v22 = vld [vmem:[%s19990_s7 + $0xc] sm:$0xf] }
0x2bac   : > { %v14360_v25 = vpop.f32.mrf.mxu1  ;;  %v14334_v17 = vpop.f32.mrf.mxu0  ;;  %v10151_v52 = vrot.slane %v13621_v22, %v17370_v56 }
0x2bad   : > { %v10102_v1 = vadd.f32 %v10091_v48, %v19010_v24  ;;  %v14361_v10 = vadd.f32 %v14360_v25, %v14359_v31  ;;  %10115 = vadd.xlane.f32.xlu0 %v19333_v11  ;;  %15082 = vmatpush3.bf16.msra.mxu0 %v15955_v58  ;;  %v10158_v17 = vrot.slane %v13621_v22, %v17378_v0  ;;  %v15959_v0 = vld [vmem:[%s19991_s8 + $0x3e0] sm:$0xff]  }
0x2bae   : > { %v14362_v15 = vpop.f32.mrf.mxu1  ;;  %v14335_v45 = vpop.f32.mrf.mxu0  ;;  %15107 = vmatprep.subr.bf16.mxu0 %v15957_v13 }
0x2baf   : > { %v10096_v38 = vadd.f32 %v14361_v10, %v14333_v40  ;;  %v19337_v21 = vadd.f32 %v10109_v41, %v10102_v1 }
0x2bb0   : > { %v14363_v61 = vpop.f32.mrf.mxu1 }
0x2bb1   : > { %v10103_v49 = vadd.f32 %v10096_v38, %v19014_v55  ;;  %10117 = vadd.xlane.f32.xlu1 %v19337_v21 }
0x2bb3   : > { %v19341_v39 = vadd.f32 %v10109_v41, %v10103_v49 }
0x2bb5   : > { %10119 = vadd.xlane.f32.xlu0 %v19341_v39 }
0x2c36   : > { %v10116_v59 = vpop.xlane.xlu0 %10115 }
0x2c37   : > { %v10121_v34 = vmul.f32 0.0078125, %v10116_v59 }
0x2c39   : > { %v19345_v24 = vsub.f32 %v19333_v11, %v10121_v34 }
0x2c3a   : > { %v10118_v4 = vpop.xlane.xlu1 %10117 }
0x2c3b   : > { %v10122_v60 = vmul.f32 0.0078125, %v10118_v4  ;;  %v10127_v23 = vmul.f32 %v19345_v24, %v19345_v24  ;;  %v15960_v4 = vld [vmem:[%s19991_s8 + $0x3d8] sm:$0xff]  }
0x2c3d   : > { %v19350_v46 = vsub.f32 %v19337_v21, %v10122_v60  ;;  %10130 = vadd.xlane.f32.xlu1 %v10127_v23  ;;  %v15961_v60 = vld [vmem:[%s19991_s8 + $0x3d0] sm:$0xff]   ;;  %v15962_v23 = vld [vmem:[%s19991_s8 + $0x3c8] sm:$0xff]  }
0x2c3e   : > { %v10120_v55 = vpop.xlane.xlu0 %10119 }
0x2c3f   : > { %v10123_v35 = vmul.f32 0.0078125, %v10120_v55  ;;  %v10128_v29 = vmul.f32 %v19350_v46, %v19350_v46  ;;  %v15964_v55 = vld [vmem:[%s19991_s8 + $0x3b8] sm:$0xff]  }
0x2c41   : > { %v19355_v19 = vsub.f32 %v19341_v39, %v10123_v35  ;;  %10132 = vadd.xlane.f32.xlu0 %v10128_v29  ;;  %v13663_v35 = vld [vmem:[%s19991_s8 + $0x3b4] sm:$0x1] }
0x2c42   : > { %v10301_v29 = vunpack.c.l.bf16 %v13663_v35 }
0x2c43   : > { %v10129_v50 = vmul.f32 %v19355_v19, %v19355_v19 }
0x2c45   : > { %10134 = vadd.xlane.f32.xlu1 %v10129_v50  ;;  %v10305_v50 = vrot.slane %v10301_v29, %v17370_v56 }
0x2cc6   : > { %v10131_v18 = vpop.xlane.xlu1 %10130 }
0x2cc7   : > { %v10136_v7 = vmul.f32 0.0078125, %v10131_v18 }
0x2cc9   : > { %v10139_v26 = vadd.f32 1e-05, %v10136_v7 }
0x2cca   : > { %v10133_v14 = vpop.xlane.xlu0 %10132 }
0x2ccb   : > { %16315 = vrsqrt.f32 %v10139_v26  ;;  %v10137_v27 = vmul.f32 0.0078125, %v10133_v14 }
0x2ccd   : > { %v10140_v30 = vadd.f32 1e-05, %v10137_v27 }
0x2cce   : > { %v10135_v41 = vpop.xlane.xlu1 %10134 }
0x2ccf   : > { %16317 = vrsqrt.f32 %v10140_v30  ;;  %v10138_v3 = vmul.f32 0.0078125, %v10135_v41 }
0x2cd1   : > { %v10141_v53 = vadd.f32 1e-05, %v10138_v3 }
0x2cd3   : > { %16319 = vrsqrt.f32 %v10141_v53  ;;  %v13688_v53 = vld [vmem:[%s19991_s8 + $0x3f8] sm:$0x1] }
0x2cd4   : > { %v10420_v22 = vunpack.c.l.bf16 %v13688_v53 }
0x2cd8   : > { %v16316_v57 = vpop.eup %16315 }
0x2cd9   : > { %v10145_v31 = vmul.f32 %v16316_v57, %v19345_v24  ;;  %v15958_v24 = vld [vmem:[%s19991_s8 + $0x3e8] sm:$0xff]   ;;  %v10424_v57 = vrot.slane %v10420_v22, %v17370_v56 }
0x2cdb   : > { %v10152_v25 = vmul.f32 %v10151_v52, %v10145_v31 }
0x2cdc   : > { %v16318_v48 = vpop.eup %16317 }
0x2cdd   : > { %v10146_v40 = vmul.f32 %v16318_v48, %v19350_v46  ;;  %v10159_v45 = vadd.f32 %v10158_v17, %v10152_v25  ;;  %v15963_v46 = vld [vmem:[%s19991_s8 + $0x3c0] sm:$0xff]  }
0x2cdf   : > { %v10153_v1 = vmul.f32 %v10151_v52, %v10146_v40 }
0x2ce0   : > { %v16320_v10 = vpop.eup %16319 }
0x2ce1   : > { %v10147_v15 = vmul.f32 %v16320_v10, %v19355_v19  ;;  %v10160_v38 = vadd.f32 %v10158_v17, %v10153_v1  ;;  %v13638_v19 = vld [vmem:[%s19991_s8 + $0x370] sm:$0x1] }
0x2ce2   : > { %v10182_v37 = vunpack.c.l.bf16 %v13638_v19 }
0x2ce3   : > { %v10154_v61 = vmul.f32 %v10151_v52, %v10147_v15  ;;  %v10162_v49 = vpack.c.bf16 %v10160_v38, %v10159_v45 }
0x2ce4   : > { %v10186_v5 = vrot.slane %v10182_v37, %v17370_v56 }
0x2ce5   : > { %v10161_v59 = vadd.f32 %v10158_v17, %v10154_v61  ;;  %15083 = vmatprep.mubr.bf16.mxu0 %v10162_v49  ;;  %15103 = vmatprep.mubr.bf16.mxu1 %v10162_v49 }
0x2ce7   : > { %v10163_v34 = vpack.c.bf16 %v10161_v59, %v10161_v59 }
0x2ce9   : > { %15084 = vmatmul.mubr.bf16.vlgmr.msra.gmra.mxu0 %v10163_v34  ;;  %15104 = vmatmul.mubr.bf16.vlgmr.msra.gmra.mxu1 %v10163_v34 }
0x2cea   : > { %15108 = vmatpush3.bf16.msra.mxu0 %v15957_v13  ;;  %15123 = vmatprep.mubr.bf16.mxu0 %v10162_v49 }
0x2ceb   : > { %15109 = vmatprep.subr.bf16.mxu0 %v15958_v24 }
0x2cee   : > { %15110 = vmatpush3.bf16.msra.mxu0 %v15958_v24 }
0x2cef   : > { %15111 = vmatprep.subr.bf16.mxu0 %v15959_v0 }
0x2cf2   : > { %15112 = vmatpush3.bf16.msra.mxu0 %v15959_v0 }
0x2cf3   : > { %15113 = vmatprep.subr.bf16.mxu0 %v15960_v4 }
0x2cf6   : > { %15114 = vmatpush3.bf16.msra.mxu0 %v15960_v4 }
0x2cf7   : > { %15115 = vmatprep.subr.bf16.mxu0 %v15961_v60 }
0x2cfa   : > { %15116 = vmatpush3.bf16.msra.mxu0 %v15961_v60 }
0x2cfb   : > { %15117 = vmatprep.subr.bf16.mxu0 %v15962_v23 }
0x2cfe   : > { %15118 = vmatpush3.bf16.msra.mxu0 %v15962_v23 }
0x2cff   : > { %15119 = vmatprep.subr.bf16.mxu0 %v15963_v46 }
0x2d02   : > { %15120 = vmatpush3.bf16.msra.mxu0 %v15963_v46 }
0x2d03   : > { %15121 = vmatprep.subr.bf16.mxu0 %v15964_v55 }
0x2d06   : > { %15122 = vmatpush3.bf16.msra.mxu0 %v15964_v55 }
0x2d09   : > { %15124 = vmatmul.mubr.bf16.vlgmr.msra.gmra.mxu0 %v10163_v34 }
0x2da9   : > { %v15085_v47 = vpop.f32.mrf.mxu0  ;;  %v15105_v6 = vpop.f32.mrf.mxu1 }
0x2daa   : > { %v10397_v28 = vadd.f32 %v15105_v6, %v10305_v50  ;;  %v10278_v18 = vadd.f32 %v15085_v47, %v10186_v5 }
0x2dab   : > { %v10269_v12 = vpop.f32.mrf.mxu0  ;;  %v10388_v43 = vpop.f32.mrf.mxu1 }
0x2dac   : > { %v19447_v42 = vpack.c.bf16 %v10397_v28, %v10397_v28  ;;  %v10270_v36 = vadd.f32 %v10269_v12, %v10186_v5  ;;  %v10389_v58 = vadd.f32 %v10388_v43, %v10305_v50  ;;  %v10526_v30 = vmul.f32 0.17677669, %v10278_v18 }
0x2dad   : > { %v15086_v8 = vpop.f32.mrf.mxu0  ;;  %v15106_v63 = vpop.f32.mrf.mxu1 }
0x2dae   : > { %10774 = vrot.lane.b32.xlu0 %v19447_v42, %s16434_s22  ;;  %15265 = vmatprep.subr.msk.bf16.mxu1 %vm3581_vm13, %v19447_v42  ;;  %v10543_v51 = vsel %vm3581_vm13, %v19447_v42, 0  ;;  %v10524_v7 = vmul.f32 0.17677669, %v10270_v36  ;;  %v19469_v3 = vpack.c.bf16 %v10526_v30, %v10526_v30 }
0x2daf   : > { %v10272_v33 = vpop.f32.mrf.mxu0  ;;  %v10391_v2 = vpop.f32.mrf.mxu1  ;;  %15128 = vmatpush3.bf16.xpose.msra.mxu1 %v10543_v51 }
0x2db0   : > { %v10273_v16 = vadd.f32 %v10272_v33, %v10186_v5  ;;  %v10392_v13 = vadd.f32 %v10391_v2, %v10305_v50 }
0x2db2   : > { %v10525_v26 = vmul.f32 0.17677669, %v10273_v16  ;;  %v19455_v14 = vpack.c.bf16 %v10392_v13, %v10389_v58 }
0x2db4   : > { %v19457_v27 = vpack.c.bf16 %v10525_v26, %v10524_v7  ;;  %10772 = vrot.lane.b32.xlu1 %v19455_v14, %s16434_s22  ;;  %15266 = vmatprep.subr.msk.bf16.mxu1 %vm3581_vm13, %v19455_v14  ;;  %v10540_v41 = vsel %vm3581_vm13, %v19455_v14, 0 }
0x2db6   : > { %15131 = vmatprep.mubr.msk.bf16.mxu1 %vm3581_vm13, %v19457_v27 }
0x2db7   : > { %15130 = vmatpush3.bf16.xpose.msra.mxu1 %v10540_v41 }
0x2db8   : > { %10766 = vrot.lane.b32.xlu1 %v19457_v27, %s16434_s22 }
0x2dbc   : > { %10768 = vrot.lane.b32.xlu1 %v19469_v3, %s16434_s22 }
0x2dbe   : > { %15132 = vmatmul.mubr.msk.bf16.vlgmr.msra.gmra.mxu1 %vm3581_vm13, %v19469_v3 }
0x2dc9   : > { %v15125_v31 = vpop.f32.mrf.mxu0 }
0x2dca   : > { %v10516_v52 = vadd.f32 %v15125_v31, %v10424_v57 }
0x2dcb   : > { %v10507_v48 = vpop.f32.mrf.mxu0 }
0x2dcc   : > { %v19479_v40 = vpack.c.bf16 %v10516_v52, %v10516_v52  ;;  %v10508_v10 = vadd.f32 %v10507_v48, %v10424_v57 }
0x2dcd   : > { %v15126_v25 = vpop.f32.mrf.mxu0 }
0x2dce   : > { %15267 = vmatprep.subr.msk.bf16.mxu1 %vm2751_vm8, %v19479_v40  ;;  %v10635_v17 = vsel %vm2751_vm8, %v19479_v40, 0 }
0x2dcf   : > { %v10510_v1 = vpop.f32.mrf.mxu0  ;;  %15136 = vmatpush3.bf16.msra.mxu1 %v10635_v17 }
0x2dd0   : > { %v10511_v15 = vadd.f32 %v10510_v1, %v10424_v57 }
0x2dd2   : > { %v19485_v45 = vpack.c.bf16 %v10511_v15, %v10508_v10 }
0x2dd4   : > { %15137 = vmatprep.subr.bf16.mxu1 %v19485_v45 }
0x2dd5   : > { %15138 = vmatpush3.bf16.msra.mxu1 %v19485_v45 }
0x2e20   : > { %v10775_v38 = vpop.permute.xlu0 %10774 }
0x2e21   : > { %v10786_v61 = vsel %vm3581_vm13, %v10775_v38, 0  ;;  %15268 = vmatprep.subr.msk.bf16.mxu0 %vm3581_vm13, %v10775_v38 }
0x2e22   : > { %15152 = vmatpush3.bf16.xpose.msra.mxu0 %v10786_v61 }
0x2e26   : > { %v10773_v49 = vpop.permute.xlu1 %10772 }
0x2e27   : > { %15269 = vmatprep.subr.msk.bf16.mxu0 %vm3581_vm13, %v10773_v49  ;;  %v10783_v59 = vsel %vm3581_vm13, %v10773_v49, 0 }
0x2e2a   : > { %15154 = vmatpush3.bf16.xpose.msra.mxu0 %v10783_v59  ;;  %v10767_v34 = vpop.permute.xlu1 %10766 }
0x2e2b   : > { %15155 = vmatprep.mubr.msk.bf16.mxu0 %vm3581_vm13, %v10767_v34 }
0x2e2e   : > { %v10769_v24 = vpop.permute.xlu1 %10768 }
0x2e31   : > { %15156 = vmatmul.mubr.msk.bf16.vlgmr.msra.gmra.mxu0 %vm3581_vm13, %v10769_v24 }
0x2e7e   : > { %v15133_v0 = vpop.f32.mrf.mxu1 }
0x2e7f   : > { %v10588_v46 = vadd.f32 %v15133_v0, %v18844_v32 }
0x2e80   : > { %v10579_v4 = vpop.f32.mrf.mxu1 }
0x2e81   : > { %v10580_v60 = vadd.f32 %v10579_v4, %v18839_v44  ;;  %v10599_v50 = vsel %vm3642_vm15, %v10588_v46, -inf }
0x2e82   : > { %v15134_v23 = vpop.f32.mrf.mxu1 }
0x2e83   : > { %v10593_v55 = vsel %vm3642_vm15, %v10580_v60, -inf }
0x2e84   : > { %v10582_v35 = vpop.f32.mrf.mxu1  ;;  %10594 = vmax.xlane.f32.xlu0 %v10593_v55 }
0x2e85   : > { %v10583_v29 = vadd.f32 %v10582_v35, %v18848_v62 }
0x2e87   : > { %v10596_v19 = vsel %vm3642_vm15, %v10583_v29, -inf }
0x2e88   : > { %10597 = vmax.xlane.f32.xlu1 %v10596_v19  ;;  %10600 = vmax.xlane.f32.xlu0 %v10599_v50 }
0x2ef1   : > { %v15157_v37 = vpop.f32.mrf.mxu0 }
0x2ef2   : > { %v10831_v30 = vadd.f32 %v15157_v37, %v18844_v32 }
0x2ef3   : > { %v10822_v47 = vpop.f32.mrf.mxu0 }
0x2ef4   : > { %v10823_v26 = vadd.f32 %v10822_v47, %v18839_v44  ;;  %v10842_v22 = vsel %vm3642_vm15, %v10831_v30, -inf }
0x2ef5   : > { %v15158_v6 = vpop.f32.mrf.mxu0 }
0x2ef6   : > { %v10836_v41 = vsel %vm3642_vm15, %v10823_v26, -inf }
0x2ef7   : > { %v10825_v53 = vpop.f32.mrf.mxu0 }
0x2ef8   : > { %v10826_v57 = vadd.f32 %v10825_v53, %v18848_v62 }
0x2efa   : > { %v10839_v31 = vsel %vm3642_vm15, %v10826_v57, -inf }
0x2f0d   : > { %v10595_v28 = vpop.xlane.xlu0 %10594 }
0x2f0e   : > { %v10602_v12 = vsub.f32 %v10580_v60, %v10595_v28 }
0x2f10   : > { %v10605_v43 = vmul.f32 1.442695, %v10602_v12 }
0x2f11   : > { %v10598_v5 = vpop.xlane.xlu1 %10597  ;;  %v10601_v8 = vpop.xlane.xlu0 %10600 }
0x2f12   : > { %16321 = vpow2.f32 %v10605_v43  ;;  %v10603_v63 = vsub.f32 %v10583_v29, %v10598_v5  ;;  %v10604_v36 = vsub.f32 %v10588_v46, %v10601_v8 }
0x2f14   : > { %v10607_v51 = vmul.f32 1.442695, %v10603_v63  ;;  %v10609_v33 = vmul.f32 1.442695, %v10604_v36  ;;  %v15965_v36 = vld [vmem:[%s19991_s8 + $0x404] sm:$0xff]  }
0x2f15   : > { %15143 = vmatprep.subr.bf16.mxu1 %v15965_v36 }
0x2f16   : > { %16323 = vpow2.f32 %v10607_v51  ;;  %v15966_v51 = vld [vmem:[%s19991_s8 + $0x3fc] sm:$0xff]  }
0x2f17   : > { %16325 = vpow2.f32 %v10609_v33 }
0x2f1f   : > { %v16322_v2 = vpop.eup %16321 }
0x2f20   : > { %v10611_v58 = vsel %vm3642_vm15, %v16322_v2, 0.0 }
0x2f21   : > { %10612 = vadd.xlane.f32.xlu0 %v10611_v58 }
0x2f23   : > { %v16324_v16 = vpop.eup %16323 }
0x2f24   : > { %v16326_v13 = vpop.eup %16325  ;;  %v10614_v18 = vsel %vm3642_vm15, %v16324_v16, 0.0 }
0x2f25   : > { %10615 = vadd.xlane.f32.xlu0 %v10614_v18  ;;  %v10617_v7 = vsel %vm3642_vm15, %v16326_v13, 0.0 }
0x2f26   : > { %10618 = vadd.xlane.f32.xlu1 %v10617_v7 }
0x2f37   : > { %11014 = vrot.lane.b32.xlu1 %v19455_v14, %s20001_s27 }
0x2f3b   : > { %11010 = vrot.lane.b32.xlu1 %v19457_v27, %s20001_s27  ;;  %11016 = vrot.lane.b32.xlu0 %v19447_v42, %s20001_s27 }
0x2f3f   : > { %11012 = vrot.lane.b32.xlu1 %v19469_v3, %s20001_s27 }
0x2f5a   : > { %10837 = vmax.xlane.f32.xlu0 %v10836_v41 }
0x2f5e   : > { %10843 = vmax.xlane.f32.xlu0 %v10842_v22 }
0x2f63   : > { %10840 = vmax.xlane.f32.xlu1 %v10839_v31 }
0x2faa   : > { %v10613_v52 = vpop.xlane.xlu0 %10612 }
0x2fab   : > { %16327 = vrcp.f32 %v10613_v52 }
0x2fae   : > { %v10616_v48 = vpop.xlane.xlu0 %10615 }
0x2faf   : > { %v10619_v25 = vpop.xlane.xlu1 %10618  ;;  %16329 = vrcp.f32 %v10616_v48 }
0x2fb0   : > { %16331 = vrcp.f32 %v10619_v25 }
0x2fb2   : > { %v11017_v17 = vpop.permute.xlu0 %11016 }
0x2fb3   : > { %v11015_v1 = vpop.permute.xlu1 %11014  ;;  %v11028_v10 = vsel %vm3581_vm13, %v11017_v17, 0  ;;  %15271 = vmatprep.subr.msk.bf16.mxu0 %vm3581_vm13, %v11017_v17 }
0x2fb4   : > { %15176 = vmatpush3.bf16.xpose.msra.mxu0 %v11028_v10  ;;  %v11025_v61 = vsel %vm3581_vm13, %v11015_v1, 0 }
0x2fb5   : > { %15272 = vmatprep.subr.msk.bf16.mxu0 %vm3581_vm13, %v11015_v1 }
0x2fb7   : > { %v11011_v15 = vpop.permute.xlu1 %11010 }
0x2fb8   : > { %15179 = vmatprep.mubr.msk.bf16.mxu0 %vm3581_vm13, %v11011_v15  ;;  %v16328_v38 = vpop.eup %16327 }
0x2fb9   : > { %v10623_v34 = vmul.f32 %v16328_v38, %v16322_v2 }
0x2fbb   : > { %v11013_v23 = vpop.permute.xlu1 %11012 }
0x2fbc   : > { %v16330_v49 = vpop.eup %16329  ;;  %15178 = vmatpush3.bf16.xpose.msra.mxu0 %v11025_v61 }
0x2fbd   : > { %v16332_v59 = vpop.eup %16331  ;;  %v10624_v24 = vmul.f32 %v16330_v49, %v16324_v16 }
0x2fbe   : > { %v10625_v0 = vmul.f32 %v16332_v59, %v16326_v13 }
0x2fbf   : > { %v10626_v4 = vpack.c.bf16 %v10624_v24, %v10623_v34 }
0x2fc0   : > { %v10627_v60 = vpack.c.bf16 %v10625_v0, %v10625_v0 }
0x2fc1   : > { %15139 = vmatprep.mubr.msk.bf16.mxu1 %vm3642_vm15, %v10626_v4 }
0x2fc2   : > { %15140 = vmatmul.mubr.msk.bf16.vlgmr.msra.gmra.mxu1 %vm3642_vm15, %v10627_v60 }
0x2fc3   : > { %15180 = vmatmul.mubr.msk.bf16.vlgmr.msra.gmra.mxu0 %vm3581_vm13, %v11013_v23  ;;  %15144 = vmatpush3.bf16.msra.mxu1 %v15965_v36 }
0x2fc4   : > { %15145 = vmatprep.subr.bf16.mxu1 %v15966_v51 }
0x2fc7   : > { %15146 = vmatpush3.bf16.msra.mxu1 %v15966_v51 }
0x2fe3   : > { %v10838_v46 = vpop.xlane.xlu0 %10837 }
0x2fe4   : > { %v10845_v55 = vsub.f32 %v10823_v26, %v10838_v46 }
0x2fe6   : > { %v10848_v35 = vmul.f32 1.442695, %v10845_v55  ;;  %v15967_v55 = vld [vmem:[%s19991_s8 + $0x414] sm:$0xff]  }
0x2fe7   : > { %v10844_v29 = vpop.xlane.xlu0 %10843 }
0x2fe8   : > { %16333 = vpow2.f32 %v10848_v35  ;;  %v10847_v19 = vsub.f32 %v10831_v30, %v10844_v29  ;;  %v15968_v35 = vld [vmem:[%s19991_s8 + $0x40c] sm:$0xff]  }
0x2fea   : > { %v10852_v50 = vmul.f32 1.442695, %v10847_v19 }
0x2fec   : > { %16335 = vpow2.f32 %v10852_v50  ;;  %v10841_v37 = vpop.xlane.xlu1 %10840 }
0x2fed   : > { %v10846_v47 = vsub.f32 %v10826_v57, %v10841_v37 }
0x2fef   : > { %v10850_v6 = vmul.f32 1.442695, %v10846_v47 }
0x2ff1   : > { %16337 = vpow2.f32 %v10850_v6 }
0x2ff5   : > { %v19526_v28 = vpop.eup %16333 }
0x2ff6   : > { %v10854_v12 = vsel %vm3642_vm15, %v19526_v28, 0.0 }
0x2ff7   : > { %10855 = vadd.xlane.f32.xlu0 %v10854_v12 }
0x2ff9   : > { %v19530_v43 = vpop.eup %16335 }
0x2ffa   : > { %v10860_v5 = vsel %vm3642_vm15, %v19530_v43, 0.0 }
0x2ffb   : > { %10861 = vadd.xlane.f32.xlu1 %v10860_v5 }
0x2ffe   : > { %v19534_v8 = vpop.eup %16337 }
0x2fff   : > { %v10857_v63 = vsel %vm3642_vm15, %v19534_v8, 0.0 }
0x3000   : > { %10858 = vadd.xlane.f32.xlu0 %v10857_v63 }
0x300c   : > { %10873 = vrot.lane.b32.xlu1 %v19485_v45, %s16434_s22 }
0x3010   : > { %11256 = vrot.lane.b32.xlu1 %v19447_v42, %s20002_s14 }
0x3014   : > { %11254 = vrot.lane.b32.xlu1 %v19455_v14, %s20002_s14 }
0x3016   : > { %10875 = vrot.lane.b32.xlu0 %v19479_v40, %s16434_s22  ;;  %s416_s22 = scalar_lea.vmem %s19996_s13, %s16526_s16 }
0x3018   : > { %11252 = vrot.lane.b32.xlu1 %v19469_v3, %s20002_s14 }
0x301a   : > { %11250 = vrot.lane.b32.xlu0 %v19457_v27, %s20002_s14 }
0x3080   : > { %v10856_v13 = vpop.xlane.xlu0 %10855 }
0x3082   : > { %v15141_v33 = vpop.f32.mrf.mxu1 }
0x3083   : > { %v15181_v2 = vpop.f32.mrf.mxu0  ;;  %v10686_v57 = vpack.c.bf16 %v15141_v33, %v15141_v33 }
0x3084   : > { %v10671_v58 = vpop.f32.mrf.mxu1  ;;  %v10862_v16 = vpop.xlane.xlu1 %10861  ;;  %v11073_v26 = vadd.f32 %v15181_v2, %v18844_v32 }
0x3085   : > { %v11064_v18 = vpop.f32.mrf.mxu0  ;;  %16339 = vrcp.f32 %v10862_v16 }
0x3086   : > { %v11065_v42 = vadd.f32 %v11064_v18, %v18839_v44  ;;  %v15142_v7 = vpop.f32.mrf.mxu1  ;;  %16341 = vrcp.f32 %v10856_v13  ;;  %v11084_v48 = vsel %vm3642_vm15, %v11073_v26, -inf }
0x3087   : > { %v15182_v14 = vpop.f32.mrf.mxu0 }
0x3088   : > { %v10674_v30 = vpop.f32.mrf.mxu1  ;;  %v10874_v41 = vpop.permute.xlu1 %10873  ;;  %v11078_v3 = vsel %vm3642_vm15, %v11065_v42, -inf }
0x3089   : > { %v10685_v53 = vpack.c.bf16 %v10674_v30, %v10671_v58  ;;  %v10859_v27 = vpop.xlane.xlu0 %10858  ;;  %v11067_v22 = vpop.f32.mrf.mxu0  ;;  %11079 = vmax.xlane.f32.xlu0 %v11078_v3 }
0x308a   : > { %16343 = vrcp.f32 %v10859_v27  ;;  %v11068_v31 = vadd.f32 %v11067_v22, %v18848_v62 }
0x308b   : > { %15147 = vmatprep.mubr.msk.bf16.mxu1 %vm3581_vm13, %v10685_v53 }
0x308c   : > { %15148 = vmatmul.mubr.msk.bf16.vlgmr.msra.gmra.mxu1 %vm3581_vm13, %v10686_v57  ;;  %v11257_v52 = vpop.permute.xlu1 %11256  ;;  %v11081_v25 = vsel %vm3642_vm15, %v11068_v31, -inf }
0x308d   : > { %v11268_v17 = vsel %vm3581_vm13, %v11257_v52, 0  ;;  %v10876_v1 = vpop.permute.xlu0 %10875  ;;  %11085 = vmax.xlane.f32.xlu0 %v11084_v48  ;;  %11082 = vmax.xlane.f32.xlu1 %v11081_v25 }
0x308e   : > { %v10885_v10 = vsel %vm2751_vm8, %v10876_v1, 0  ;;  %15270 = vmatprep.subr.msk.bf16.mxu1 %vm2751_vm8, %v10876_v1  ;;  %15274 = vmatprep.subr.msk.bf16.mxu0 %vm3581_vm13, %v11257_v52 }
0x308f   : > { %15160 = vmatpush3.bf16.msra.mxu1 %v10885_v10  ;;  %15200 = vmatpush3.bf16.xpose.msra.mxu0 %v11268_v17 }
0x3090   : > { %15161 = vmatprep.subr.bf16.mxu1 %v10874_v41  ;;  %v11255_v15 = vpop.permute.xlu1 %11254 }
0x3091   : > { %v11251_v38 = vpop.permute.xlu0 %11250  ;;  %15275 = vmatprep.subr.msk.bf16.mxu0 %vm3581_vm13, %v11255_v15  ;;  %v11265_v59 = vsel %vm3581_vm13, %v11255_v15, 0 }
0x3092   : > { %15203 = vmatprep.mubr.msk.bf16.mxu0 %vm3581_vm13, %v11251_v38  ;;  %v16340_v61 = vpop.eup %16339 }
0x3093   : > { %15162 = vmatpush3.bf16.msra.mxu1 %v10874_v41  ;;  %v16342_v49 = vpop.eup %16341  ;;  %v10868_v24 = vmul.f32 %v16340_v61, %v19530_v43 }
0x3094   : > { %v10866_v0 = vmul.f32 %v16342_v49, %v19526_v28  ;;  %v11253_v46 = vpop.permute.xlu1 %11252  ;;  %15167 = vmatprep.subr.bf16.mxu1 %v15967_v55 }
0x3095   : > { %v10870_v23 = vpack.c.bf16 %v10868_v24, %v10868_v24 }
0x3097   : > { %v16344_v34 = vpop.eup %16343  ;;  %15202 = vmatpush3.bf16.xpose.msra.mxu0 %v11265_v59 }
0x3098   : > { %v10867_v4 = vmul.f32 %v16344_v34, %v19534_v8 }
0x309a   : > { %v10869_v60 = vpack.c.bf16 %v10867_v4, %v10866_v0 }
0x309c   : > { %15163 = vmatprep.mubr.msk.bf16.mxu1 %vm3642_vm15, %v10869_v60 }
0x309d   : > { %15164 = vmatmul.mubr.msk.bf16.vlgmr.msra.gmra.mxu1 %vm3642_vm15, %v10870_v23 }
0x309e   : > { %15204 = vmatmul.mubr.msk.bf16.vlgmr.msra.gmra.mxu0 %vm3581_vm13, %v11253_v46  ;;  %15168 = vmatpush3.bf16.msra.mxu1 %v15967_v55 }
0x309f   : > { %11789 = vmatprep.mubr.bf16.mxu0 %v16430_v20  ;;  %15169 = vmatprep.subr.bf16.mxu1 %v15968_v35 }
0x30a2   : > { %15170 = vmatpush3.bf16.msra.mxu1 %v15968_v35 }
0x3112   : > { %v11080_v29 = vpop.xlane.xlu0 %11079 }
0x3113   : > { %v11087_v19 = vsub.f32 %v11065_v42, %v11080_v29 }
0x3115   : > { %v11090_v50 = vmul.f32 1.442695, %v11087_v19 }
0x3116   : > { %v11083_v37 = vpop.xlane.xlu1 %11082  ;;  %v11086_v47 = vpop.xlane.xlu0 %11085 }
0x3117   : > { %16345 = vpow2.f32 %v11090_v50  ;;  %v11088_v6 = vsub.f32 %v11068_v31, %v11083_v37  ;;  %v11089_v28 = vsub.f32 %v11073_v26, %v11086_v47 }
0x3119   : > { %v11092_v12 = vmul.f32 1.442695, %v11088_v6  ;;  %v11094_v43 = vmul.f32 1.442695, %v11089_v28 }
0x311b   : > { %16347 = vpow2.f32 %v11092_v12 }
0x311c   : > { %16349 = vpow2.f32 %v11094_v43  ;;  %v15969_v43 = vld [vmem:[%s19991_s8 + $0x424] sm:$0xff]  }
0x3124   : > { %v16346_v5 = vpop.eup %16345 }
0x3125   : > { %v11096_v8 = vsel %vm3642_vm15, %v16346_v5, 0.0 }
0x3126   : > { %11097 = vadd.xlane.f32.xlu0 %v11096_v8  ;;  %v15970_v8 = vld [vmem:[%s19991_s8 + $0x41c] sm:$0xff]  }
0x3128   : > { %v16348_v63 = vpop.eup %16347 }
0x3129   : > { %v16350_v36 = vpop.eup %16349  ;;  %v11099_v51 = vsel %vm3642_vm15, %v16348_v63, 0.0 }
0x312a   : > { %11100 = vadd.xlane.f32.xlu0 %v11099_v51  ;;  %v11102_v33 = vsel %vm3642_vm15, %v16350_v36, 0.0 }
0x312b   : > { %11103 = vadd.xlane.f32.xlu1 %v11102_v33 }
0x313c   : > { %11113 = vrot.lane.b32.xlu1 %v19485_v45, %s20001_s27 }
0x3140   : > { %11115 = vrot.lane.b32.xlu0 %v19479_v40, %s20001_s27 }
0x314c   : > { %v19591_v2 = vpop.f32.mrf.mxu1 }
0x314e   : > { %v19593_v58 = vpop.f32.mrf.mxu1 }
0x3150   : > { %v15150_v16 = vpop.f32.mrf.mxu1 }
0x3152   : > { %v19595_v13 = vpop.f32.mrf.mxu1 }
0x315d   : > { %v15165_v18 = vpop.f32.mrf.mxu1 }
0x315e   : > { %v15205_v42 = vpop.f32.mrf.mxu0  ;;  %v10936_v57 = vpack.c.bf16 %v15165_v18, %v15165_v18 }
0x315f   : > { %v10921_v7 = vpop.f32.mrf.mxu1  ;;  %v11313_v52 = vadd.f32 %v15205_v42, %v18844_v32 }
0x3160   : > { %v11304_v14 = vpop.f32.mrf.mxu0 }
0x3161   : > { %v11305_v26 = vadd.f32 %v11304_v14, %v18839_v44  ;;  %v15166_v30 = vpop.f32.mrf.mxu1  ;;  %v11324_v44 = vsel %vm3642_vm15, %v11313_v52, -inf }
0x3162   : > { %v15206_v41 = vpop.f32.mrf.mxu0 }
0x3163   : > { %v10924_v3 = vpop.f32.mrf.mxu1  ;;  %v11318_v53 = vsel %vm3642_vm15, %v11305_v26, -inf }
0x3164   : > { %v10935_v27 = vpack.c.bf16 %v10924_v3, %v10921_v7  ;;  %v11307_v22 = vpop.f32.mrf.mxu0  ;;  %11319 = vmax.xlane.f32.xlu1 %v11318_v53 }
0x3165   : > { %v11308_v31 = vadd.f32 %v11307_v22, %v18848_v62 }
0x3166   : > { %15171 = vmatprep.mubr.msk.bf16.mxu1 %vm3581_vm13, %v10935_v27 }
0x3167   : > { %15172 = vmatmul.mubr.msk.bf16.vlgmr.msra.gmra.mxu1 %vm3581_vm13, %v10936_v57  ;;  %v11321_v48 = vsel %vm3642_vm15, %v11308_v31, -inf }
0x3168   : > { %11322 = vmax.xlane.f32.xlu0 %v11321_v48 }
0x316c   : > { %11325 = vmax.xlane.f32.xlu0 %v11324_v44 }
0x31af   : > { %v11098_v25 = vpop.xlane.xlu0 %11097 }
0x31b0   : > { %16351 = vrcp.f32 %v11098_v25 }
0x31b3   : > { %v11101_v17 = vpop.xlane.xlu0 %11100 }
0x31b4   : > { %v11104_v1 = vpop.xlane.xlu1 %11103  ;;  %16353 = vrcp.f32 %v11101_v17 }
0x31b5   : > { %16355 = vrcp.f32 %v11104_v1 }
0x31b7   : > { %v11116_v10 = vpop.permute.xlu0 %11115 }
0x31b8   : > { %v11125_v62 = vsel %vm2751_vm8, %v11116_v10, 0  ;;  %15273 = vmatprep.subr.msk.bf16.mxu1 %vm2751_vm8, %v11116_v10  ;;  %v11114_v32 = vpop.permute.xlu1 %11113 }
0x31b9   : > { %15184 = vmatpush3.bf16.msra.mxu1 %v11125_v62 }
0x31ba   : > { %15185 = vmatprep.subr.bf16.mxu1 %v11114_v32 }
0x31bd   : > { %15186 = vmatpush3.bf16.msra.mxu1 %v11114_v32  ;;  %v16352_v15 = vpop.eup %16351 }
0x31be   : > { %v11108_v49 = vmul.f32 %v16352_v15, %v16346_v5  ;;  %15191 = vmatprep.subr.bf16.mxu1 %v15969_v43  ;;  %v15971_v15 = vld [vmem:[%s19991_s8 + $0x434] sm:$0xff]  }
0x31c1   : > { %v16354_v38 = vpop.eup %16353 }
0x31c2   : > { %v16356_v61 = vpop.eup %16355  ;;  %v11109_v59 = vmul.f32 %v16354_v38, %v16348_v63  ;;  %v13697_v63 = vld [vmem:[%s19991_s8 + $0x43c] sm:$0x1]  ;;  %v15972_v38 = vld [vmem:[%s19991_s8 + $0x42c] sm:$0xff]  }
0x31c3   : > { %v11110_v34 = vmul.f32 %v16356_v61, %v16350_v36  ;;  %v10523_v36 = vunpack.c.l.bf16 %v13697_v63 }
0x31c4   : > { %v11111_v24 = vpack.c.bf16 %v11109_v59, %v11108_v49 }
0x31c5   : > { %v11112_v0 = vpack.c.bf16 %v11110_v34, %v11110_v34  ;;  %v10760_v51 = vrot.slane %v10523_v36, %v17370_v56  ;;  %v15973_v36 = vld [vmem:[%s19992_s9 + $0x410] ss:$16 sps:$4 sm:$0xff]  }
0x31c6   : > { %15187 = vmatprep.mubr.msk.bf16.mxu1 %vm3642_vm15, %v11111_v24 }
0x31c7   : > { %15188 = vmatmul.mubr.msk.bf16.vlgmr.msra.gmra.mxu1 %vm3642_vm15, %v11112_v0  ;;  %v10763_v33 = vadd.f32 %v19591_v2, %v10760_v51  ;;  %v10761_v18 = vadd.f32 %v10760_v51, %v19593_v58  ;;  %v10762_v34 = vadd.f32 %v10760_v51, %v19595_v13  ;;  %v15976_v51 = vld [vmem:[%s19992_s9 + $0x418] ss:$16 sps:$4 sm:$0xff]  }
0x31c8   : > { %15192 = vmatpush3.bf16.msra.mxu1 %v15969_v43 }
0x31c9   : > { %15193 = vmatprep.subr.bf16.mxu1 %v15970_v8 }
0x31cc   : > { %15194 = vmatpush3.bf16.msra.mxu1 %v15970_v8 }
0x31ed   : > { %v11320_v4 = vpop.xlane.xlu1 %11319 }
0x31ee   : > { %v11327_v46 = vsub.f32 %v11305_v26, %v11320_v4 }
0x31f0   : > { %v11330_v19 = vmul.f32 1.442695, %v11327_v46 }
0x31f1   : > { %v11323_v60 = vpop.xlane.xlu0 %11322 }
0x31f2   : > { %v11328_v23 = vsub.f32 %v11308_v31, %v11323_v60 }
0x31f4   : > { %v11332_v55 = vmul.f32 1.442695, %v11328_v23 }
0x31f5   : > { %v11326_v35 = vpop.xlane.xlu0 %11325 }
0x31f6   : > { %16357 = vpow2.f32 %v11332_v55  ;;  %v11329_v29 = vsub.f32 %v11313_v52, %v11326_v35 }
0x31f8   : > { %v11334_v50 = vmul.f32 1.442695, %v11329_v29 }
0x31fa   : > { %16359 = vpow2.f32 %v11334_v50 }
0x31fb   : > { %16361 = vpow2.f32 %v11330_v19 }
0x3203   : > { %v16358_v37 = vpop.eup %16357 }
0x3204   : > { %v11339_v47 = vsel %vm3642_vm15, %v16358_v37, 0.0 }
0x3205   : > { %11340 = vadd.xlane.f32.xlu0 %v11339_v47 }
0x3207   : > { %v16360_v6 = vpop.eup %16359 }
0x3208   : > { %v11342_v28 = vsel %vm3642_vm15, %v16360_v6, 0.0  ;;  %v16362_v12 = vpop.eup %16361 }
0x3209   : > { %11343 = vadd.xlane.f32.xlu1 %v11342_v28  ;;  %v11336_v5 = vsel %vm3642_vm15, %v16362_v12, 0.0 }
0x320d   : > { %11337 = vadd.xlane.f32.xlu1 %v11336_v5 }
0x321b   : > { %11355 = vrot.lane.b32.xlu0 %v19479_v40, %s20002_s14 }
0x321e   : > { %11353 = vrot.lane.b32.xlu1 %v19485_v45, %s20002_s14 }
0x3227   : > { %v15173_v16 = vpop.f32.mrf.mxu1 }
0x3228   : > { %v11009_v42 = vadd.f32 %v15173_v16, %v10763_v33 }
0x3229   : > { %v10993_v7 = vpop.f32.mrf.mxu1 }
0x322a   : > { %v11007_v14 = vadd.f32 %v10993_v7, %v10761_v18 }
0x322b   : > { %v15174_v26 = vpop.f32.mrf.mxu1 }
0x322d   : > { %v10996_v30 = vpop.f32.mrf.mxu1 }
0x322e   : > { %v11008_v4 = vadd.f32 %v10996_v30, %v10762_v34  ;;  %v16009_v34 = vld [vmem:[%s19992_s9 + $0x350] ss:$16 sps:$4 sm:$0xff]  }
0x3287   : > { %v15189_v41 = vpop.f32.mrf.mxu1 }
0x3288   : > { %v11176_v57 = vpack.c.bf16 %v15189_v41, %v15189_v41 }
0x3289   : > { %v11161_v3 = vpop.f32.mrf.mxu1 }
0x328b   : > { %v15190_v53 = vpop.f32.mrf.mxu1 }
0x328d   : > { %v11164_v40 = vpop.f32.mrf.mxu1 }
0x328e   : > { %v11175_v27 = vpack.c.bf16 %v11164_v40, %v11161_v3  ;;  %v11341_v22 = vpop.xlane.xlu0 %11340  ;;  %v15981_v40 = vld [vmem:[%s19992_s9 + $0x3f4] ss:$16 sps:$4 sm:$0xff]  }
0x3290   : > { %15195 = vmatprep.mubr.msk.bf16.mxu1 %vm3581_vm13, %v11175_v27  ;;  %v15984_v27 = vld [vmem:[%s19992_s9 + $0x3fc] ss:$16 sps:$4 sm:$0xff]  }
0x3291   : > { %15196 = vmatmul.mubr.msk.bf16.vlgmr.msra.gmra.mxu1 %vm3581_vm13, %v11176_v57  ;;  %v15982_v57 = vld [vmem:[%s19992_s9 + $0x3f8] ss:$16 sps:$4 sm:$0xff]  }
0x3292   : > { %v11344_v45 = vpop.xlane.xlu1 %11343  ;;  %v11356_v2 = vpop.permute.xlu0 %11355 }
0x3293   : > { %v11365_v58 = vsel %vm2751_vm8, %v11356_v2, 0  ;;  %15276 = vmatprep.subr.msk.bf16.mxu1 %vm2751_vm8, %v11356_v2  ;;  %16363 = vrcp.f32 %v11344_v45  ;;  %v15987_v45 = vld [vmem:[%s19992_s9 + $0x3d4] ss:$16 sps:$4 sm:$0xff]   ;;  %v15990_v2 = vld [vmem:[%s19992_s9 + $0x3dc] ss:$16 sps:$4 sm:$0xff]   ;;  %vm12360_vm8 = vcmask 1047559  }
0x3294   : > { %15208 = vmatpush3.bf16.msra.mxu1 %v11365_v58  ;;  %16365 = vrcp.f32 %v11341_v22  ;;  %v15979_v22 = vld [vmem:[%s19992_s9 + $0x3f0] ss:$16 sps:$4 sm:$0xff]  }
0x3295   : > { %v15985_v58 = vld [vmem:[%s19992_s9 + $0x3d0] ss:$16 sps:$4 sm:$0xff]  }
0x3296   : > { %v11338_v31 = vpop.xlane.xlu1 %11337 }
0x3297   : > { %16367 = vrcp.f32 %v11338_v31  ;;  %v15988_v31 = vld [vmem:[%s19992_s9 + $0x3d8] ss:$16 sps:$4 sm:$0xff]  }
0x329a   : > { %v11354_v52 = vpop.permute.xlu1 %11353 }
0x329b   : > { %15209 = vmatprep.subr.bf16.mxu1 %v11354_v52 }
0x329c   : > { %15210 = vmatpush3.bf16.msra.mxu1 %v11354_v52  ;;  %v15993_v52 = vld [vmem:[%s19992_s9 + $0x3b4] ss:$16 sps:$4 sm:$0xff]  }
0x329d   : > { %15215 = vmatprep.subr.bf16.mxu1 %v15971_v15 }
0x32a0   : > { %v16364_v48 = vpop.eup %16363 }
0x32a1   : > { %v16366_v44 = vpop.eup %16365  ;;  %v11350_v17 = vmul.f32 %v16364_v48, %v16360_v6  ;;  %v15996_v48 = vld [vmem:[%s19992_s9 + $0x3bc] ss:$16 sps:$4 sm:$0xff]  }
0x32a2   : > { %v11349_v10 = vmul.f32 %v16366_v44, %v16358_v37  ;;  %v15991_v44 = vld [vmem:[%s19992_s9 + $0x3b0] ss:$16 sps:$4 sm:$0xff]  }
0x32a3   : > { %v11352_v32 = vpack.c.bf16 %v11350_v17, %v11350_v17  ;;  %v15999_v17 = vld [vmem:[%s19992_s9 + $0x394] ss:$16 sps:$4 sm:$0xff]  }
0x32a4   : > { %v16368_v25 = vpop.eup %16367 }
0x32a5   : > { %v11348_v1 = vmul.f32 %v16368_v25, %v16362_v12  ;;  %v15994_v25 = vld [vmem:[%s19992_s9 + $0x3b8] ss:$16 sps:$4 sm:$0xff]  }
0x32a7   : > { %v11351_v62 = vpack.c.bf16 %v11349_v10, %v11348_v1  ;;  %v16002_v1 = vld [vmem:[%s19992_s9 + $0x39c] ss:$16 sps:$4 sm:$0xff]   ;;  %v15997_v10 = vld [vmem:[%s19992_s9 + $0x390] ss:$16 sps:$4 sm:$0xff]  }
0x32a9   : > { %15211 = vmatprep.mubr.msk.bf16.mxu1 %vm3642_vm15, %v11351_v62  ;;  %v16000_v62 = vld [vmem:[%s19992_s9 + $0x398] ss:$16 sps:$4 sm:$0xff]  }
0x32aa   : > { %15212 = vmatmul.mubr.msk.bf16.vlgmr.msra.gmra.mxu1 %vm3642_vm15, %v11352_v32  ;;  %v16003_v32 = vld [vmem:[%s19992_s9 + $0x370] ss:$16 sps:$4 sm:$0xff]  }
0x32ab   : > { %15216 = vmatpush3.bf16.msra.mxu1 %v15971_v15  ;;  %v16005_v15 = vld [vmem:[%s19992_s9 + $0x374] ss:$16 sps:$4 sm:$0xff]  }
0x32ac   : > { %15217 = vmatprep.subr.bf16.mxu1 %v15972_v38 }
0x32af   : > { %15218 = vmatpush3.bf16.msra.mxu1 %v15972_v38  ;;  %v16006_v38 = vld [vmem:[%s19992_s9 + $0x378] ss:$16 sps:$4 sm:$0xff]  }
0x3351   : > { %v15197_v61 = vpop.f32.mrf.mxu1 }
0x3352   : > { %v11249_v49 = vadd.f32 %v15197_v61, %v11009_v42  ;;  %v16008_v61 = vld [vmem:[%s19992_s9 + $0x37c] ss:$16 sps:$4 sm:$0xff]  }
0x3353   : > { %v11233_v59 = vpop.f32.mrf.mxu1 }
0x3354   : > { %v11247_v24 = vadd.f32 %v11233_v59, %v11007_v14  ;;  %v16014_v59 = vld [vmem:[%s19992_s9 + $0x35c] ss:$16 sps:$4 sm:$0xff]  }
0x3355   : > { %v15198_v0 = vpop.f32.mrf.mxu1 }
0x3356   : > { %v16017_v0 = vld [vmem:[%s19992_s9 + $0x334] ss:$16 sps:$4 sm:$0xff]  }
0x3357   : > { %v11236_v60 = vpop.f32.mrf.mxu1 }
0x3358   : > { %v11248_v23 = vadd.f32 %v11236_v60, %v11008_v4  ;;  %v16020_v4 = vld [vmem:[%s19992_s9 + $0x33c] ss:$16 sps:$4 sm:$0xff]   ;;  %v16015_v60 = vld [vmem:[%s19992_s9 + $0x330] ss:$16 sps:$4 sm:$0xff]  }
0x336a   : > { %v15213_v46 = vpop.f32.mrf.mxu1 }
0x336b   : > { %v11416_v50 = vpack.c.bf16 %v15213_v46, %v15213_v46 }
0x336c   : > { %v11401_v55 = vpop.f32.mrf.mxu1 }
0x336e   : > { %v15214_v35 = vpop.f32.mrf.mxu1 }
0x3370   : > { %v11404_v29 = vpop.f32.mrf.mxu1 }
0x3371   : > { %v11415_v19 = vpack.c.bf16 %v11404_v29, %v11401_v55 }
0x3373   : > { %15219 = vmatprep.mubr.msk.bf16.mxu1 %vm3581_vm13, %v11415_v19 }
0x3374   : > { %15220 = vmatmul.mubr.msk.bf16.vlgmr.msra.gmra.mxu1 %vm3581_vm13, %v11416_v50 }
0x3375   : > { %11840 = vmatprep.mubr.bf16.mxu1 %v16430_v20 }
0x3434   : > { %v15221_v37 = vpop.f32.mrf.mxu1 }
0x3435   : > { %v11489_v5 = vadd.f32 %v15221_v37, %v11249_v49  ;;  %v16011_v49 = vld [vmem:[%s19992_s9 + $0x354] ss:$16 sps:$4 sm:$0xff]  }
0x3436   : > { %v11473_v47 = vpop.f32.mrf.mxu1 }
0x3437   : > { %v11487_v13 = vadd.f32 %v11473_v47, %v11247_v24  ;;  %v19647_v63 = vadd.f32 %v11489_v5, %v19341_v39  ;;  %v16012_v24 = vld [vmem:[%s19992_s9 + $0x358] ss:$16 sps:$4 sm:$0xff]  }
0x3438   : > { %v15222_v6 = vpop.f32.mrf.mxu1 }
0x3439   : > { %v11490_v28 = vadd.f32 %v11487_v13, %v19333_v11  ;;  %v15975_v11 = vld [vmem:[%s19992_s9 + $0x414] ss:$16 sps:$4 sm:$0xff]  }
0x343a   : > { %v11476_v12 = vpop.f32.mrf.mxu1  ;;  %11757 = vmatprep.subr.bf16.mxu0 %v15975_v11 }
0x343b   : > { %v11488_v43 = vadd.f32 %v11476_v12, %v11248_v23  ;;  %11493 = vadd.xlane.f32.xlu1 %v11490_v28  ;;  %11758 = vmatpush1.bf16.msra.mxu0 %v15973_v36  ;;  %v16018_v23 = vld [vmem:[%s19992_s9 + $0x338] ss:$16 sps:$4 sm:$0xff]  }
0x343c   : > { %11759 = vmatprep.subr.bf16.mxu0 %v15981_v40  ;;  %v16029_v40 = vld [vmem:[%s19993_s10 + $0x374] sm:$0xff]  }
0x343d   : > { %v11491_v8 = vadd.f32 %v11488_v43, %v19337_v21  ;;  %v15978_v21 = vld [vmem:[%s19992_s9 + $0x41c] ss:$16 sps:$4 sm:$0xff]  }
0x343e   : > { %11808 = vmatprep.subr.bf16.mxu1 %v15978_v21 }
0x343f   : > { %11495 = vadd.xlane.f32.xlu0 %v11491_v8  ;;  %11809 = vmatpush1.bf16.msra.mxu1 %v15976_v51 }
0x3440   : > { %11810 = vmatprep.subr.bf16.mxu1 %v15984_v27  ;;  %11760 = vmatpush1.bf16.msra.mxu0 %v15979_v22  ;;  %v16030_v27 = vld [vmem:[%s19993_s10 + $0x3f4] sm:$0xff]  }
0x3441   : > { %11761 = vmatprep.subr.bf16.mxu0 %v15987_v45  ;;  %v16031_v22 = vld [vmem:[%s19993_s10 + $0x334] sm:$0xff]   ;;  %v16033_v45 = vld [vmem:[%s19993_s10 + $0x36c] sm:$0xff]  }
0x3443   : > { %11497 = vadd.xlane.f32.xlu0 %v19647_v63  ;;  %11811 = vmatpush1.bf16.msra.mxu1 %v15982_v57  ;;  %v16032_v57 = vld [vmem:[%s19993_s10 + $0x3b4] sm:$0xff]  }
0x3444   : > { %11812 = vmatprep.subr.bf16.mxu1 %v15990_v2  ;;  %11762 = vmatpush1.bf16.msra.mxu0 %v15985_v58  ;;  %v16034_v2 = vld [vmem:[%s19993_s10 + $0x3ec] sm:$0xff]  }
0x3445   : > { %11763 = vmatprep.subr.bf16.mxu0 %v15993_v52  ;;  %v16035_v58 = vld [vmem:[%s19993_s10 + $0x32c] sm:$0xff]   ;;  %v16037_v52 = vld [vmem:[%s19993_s10 + $0x364] sm:$0xff]  }
0x3447   : > { %11813 = vmatpush1.bf16.msra.mxu1 %v15988_v31  ;;  %v16036_v31 = vld [vmem:[%s19993_s10 + $0x3ac] sm:$0xff]  }
0x3448   : > { %11814 = vmatprep.subr.bf16.mxu1 %v15996_v48  ;;  %11764 = vmatpush1.bf16.msra.mxu0 %v15991_v44  ;;  %v16038_v48 = vld [vmem:[%s19993_s10 + $0x3e4] sm:$0xff]  }
0x3449   : > { %11765 = vmatprep.subr.bf16.mxu0 %v15999_v17  ;;  %v16039_v44 = vld [vmem:[%s19993_s10 + $0x324] sm:$0xff]   ;;  %v16041_v17 = vld [vmem:[%s19993_s10 + $0x35c] sm:$0xff]  }
0x344b   : > { %11815 = vmatpush1.bf16.msra.mxu1 %v15994_v25  ;;  %v16040_v25 = vld [vmem:[%s19993_s10 + $0x3a4] sm:$0xff]  }
0x344c   : > { %11816 = vmatprep.subr.bf16.mxu1 %v16002_v1  ;;  %11766 = vmatpush1.bf16.msra.mxu0 %v15997_v10  ;;  %v16042_v1 = vld [vmem:[%s19993_s10 + $0x3dc] sm:$0xff]  }
0x344d   : > { %11767 = vmatprep.subr.bf16.mxu0 %v16005_v15  ;;  %v16043_v10 = vld [vmem:[%s19993_s10 + $0x31c] sm:$0xff]   ;;  %v16046_v15 = vld [vmem:[%s19993_s10 + $0x3d4] sm:$0xff]  }
0x344f   : > { %11817 = vmatpush1.bf16.msra.mxu1 %v16000_v62  ;;  %v16044_v62 = vld [vmem:[%s19993_s10 + $0x39c] sm:$0xff]  }
0x3450   : > { %11818 = vmatprep.subr.bf16.mxu1 %v16008_v61  ;;  %11768 = vmatpush1.bf16.msra.mxu0 %v16003_v32  ;;  %v16045_v32 = vld [vmem:[%s19993_s10 + $0x354] sm:$0xff]  }
0x3451   : > { %11769 = vmatprep.subr.bf16.mxu0 %v16011_v49  ;;  %v16048_v61 = vld [vmem:[%s19993_s10 + $0x394] sm:$0xff]   ;;  %v16049_v49 = vld [vmem:[%s19993_s10 + $0x34c] sm:$0xff]  }
0x3453   : > { %11819 = vmatpush1.bf16.msra.mxu1 %v16006_v38  ;;  %v16047_v38 = vld [vmem:[%s19993_s10 + $0x314] sm:$0xff]  }
0x3454   : > { %11820 = vmatprep.subr.bf16.mxu1 %v16014_v59  ;;  %11770 = vmatpush1.bf16.msra.mxu0 %v16009_v34  ;;  %v16050_v59 = vld [vmem:[%s19993_s10 + $0x3cc] sm:$0xff]  }
0x3455   : > { %11771 = vmatprep.subr.bf16.mxu0 %v16017_v0  ;;  %v16051_v34 = vld [vmem:[%s19993_s10 + $0x30c] sm:$0xff]  }
0x3456   : > { %v13778_v0 = vld [vmem:[%s19992_s9 + $0x430] sm:$0x11] }
0x3457   : > { %11821 = vmatpush1.bf16.msra.mxu1 %v16012_v24  ;;  %v16052_v24 = vld [vmem:[%s19993_s10 + $0x38c] sm:$0xff]  }
0x3458   : > { %11822 = vmatprep.subr.bf16.mxu1 %v16020_v4  ;;  %11772 = vmatpush1.bf16.msra.mxu0 %v16015_v60  ;;  %v13779_v4 = vld [vmem:[%s19992_s9 + $0x438] sm:$0x11]  ;;  %v11577_v60 = vunpack.c.l.bf16 %v13778_v0 }
0x345b   : > { %11823 = vmatpush1.bf16.msra.mxu1 %v16018_v23  ;;  %v11579_v23 = vunpack.c.l.bf16 %v13779_v4 }
0x34c4   : > { %v11494_v39 = vpop.xlane.xlu1 %11493 }
0x34c5   : > { %v11499_v33 = vmul.f32 0.0078125, %v11494_v39 }
0x34c7   : > { %v19662_v16 = vsub.f32 %v11490_v28, %v11499_v33  ;;  %v16406_v28 = vld [vmem:[%s19990_s7 + $0xc] sm:$0xf] }
0x34c8   : > { %v11496_v18 = vpop.xlane.xlu0 %11495  ;;  %v11529_v12 = vrot.slane %v16406_v28, %v17737_v9  ;;  %v11536_v11 = vrot.slane %v16406_v28, %v17745_v54  ;;  %v16021_v54 = vld [vmem:[%s19993_s10 + $0x384] sm:$0xff]  }
0x34c9   : > { %v11500_v42 = vmul.f32 0.0078125, %v11496_v18  ;;  %v11505_v7 = vmul.f32 %v19662_v16, %v19662_v16  ;;  %14443 = vmatprep.subr.bf16.mxu0 %v16021_v54 }
0x34cb   : > { %v19666_v14 = vsub.f32 %v11491_v8, %v11500_v42  ;;  %11508 = vadd.xlane.f32.xlu1 %v11505_v7 }
0x34cc   : > { %v11498_v26 = vpop.xlane.xlu0 %11497 }
0x34cd   : > { %v11501_v30 = vmul.f32 0.0078125, %v11498_v26  ;;  %v11506_v41 = vmul.f32 %v19666_v14, %v19666_v14  ;;  %v16023_v26 = vld [vmem:[%s19993_s10 + $0x344] sm:$0xff]  }
0x34cf   : > { %v19671_v3 = vsub.f32 %v19647_v63, %v11501_v30  ;;  %11510 = vadd.xlane.f32.xlu0 %v11506_v41  ;;  %v16025_v30 = vld [vmem:[%s19993_s10 + $0x37c] sm:$0xff]  }
0x34d0   : > { %v16026_v41 = vld [vmem:[%s19993_s10 + $0x3fc] sm:$0xff]  }
0x34d1   : > { %v11507_v53 = vmul.f32 %v19671_v3, %v19671_v3 }
0x34d3   : > { %11512 = vadd.xlane.f32.xlu1 %v11507_v53  ;;  %v16028_v53 = vld [vmem:[%s19993_s10 + $0x3bc] sm:$0xff]  }
0x3554   : > { %v11509_v46 = vpop.xlane.xlu1 %11508 }
0x3555   : > { %v11514_v55 = vmul.f32 0.0078125, %v11509_v46  ;;  %v11578_v46 = vunpack.c.h.bf16 %v13778_v0 }
0x3557   : > { %v11517_v35 = vadd.f32 1e-05, %v11514_v55  ;;  %v11580_v55 = vunpack.c.h.bf16 %v13779_v4 }
0x3558   : > { %v11511_v29 = vpop.xlane.xlu0 %11510 }
0x3559   : > { %16369 = vrsqrt.f32 %v11517_v35  ;;  %v11515_v19 = vmul.f32 0.0078125, %v11511_v29  ;;  %v11584_v35 = vrot.slane %v11577_v60, %v17370_v56  ;;  %v11592_v29 = vrot.slane %v11579_v23, %v17370_v56 }
0x355b   : > { %v11518_v50 = vadd.f32 1e-05, %v11515_v19 }
0x355c   : > { %v11513_v37 = vpop.xlane.xlu1 %11512 }
0x355d   : > { %16371 = vrsqrt.f32 %v11518_v50  ;;  %v11516_v47 = vmul.f32 0.0078125, %v11513_v37  ;;  %v11588_v37 = vrot.slane %v11578_v46, %v17370_v56 }
0x355f   : > { %v11519_v13 = vadd.f32 1e-05, %v11516_v47  ;;  %v11596_v47 = vrot.slane %v11580_v55, %v17370_v56 }
0x3561   : > { %16373 = vrsqrt.f32 %v11519_v13 }
0x3566   : > { %v16370_v6 = vpop.eup %16369 }
0x3567   : > { %v11523_v43 = vmul.f32 %v16370_v6, %v19662_v16 }
0x3569   : > { %v11530_v36 = vmul.f32 %v11529_v12, %v11523_v43 }
0x356a   : > { %v16372_v5 = vpop.eup %16371 }
0x356b   : > { %v11524_v8 = vmul.f32 %v16372_v5, %v19666_v14  ;;  %v11537_v39 = vadd.f32 %v11536_v11, %v11530_v36  ;;  %v16022_v14 = vld [vmem:[%s19993_s10 + $0x404] sm:$0xff]  }
0x356c   : > { %14471 = vmatprep.subr.bf16.mxu1 %v16022_v14 }
0x356d   : > { %v11531_v51 = vmul.f32 %v11529_v12, %v11524_v8 }
0x356e   : > { %v16374_v21 = vpop.eup %16373 }
0x356f   : > { %v11538_v33 = vadd.f32 %v11536_v11, %v11531_v51  ;;  %v11525_v18 = vmul.f32 %v16374_v21, %v19671_v3  ;;  %v16027_v3 = vld [vmem:[%s19993_s10 + $0x33c] sm:$0xff]  }
0x3571   : > { %v11540_v42 = vpack.c.bf16 %v11538_v33, %v11537_v39  ;;  %v11532_v7 = vmul.f32 %v11529_v12, %v11525_v18 }
0x3573   : > { %11790 = vmatmul.mubr.bf16.vlgmr.msra.gmra.mxu0 %v11540_v42  ;;  %11841 = vmatmul.mubr.bf16.vlgmr.msra.gmra.mxu1 %v11540_v42  ;;  %v11539_v9 = vadd.f32 %v11536_v11, %v11532_v7 }
0x3574   : > { %11799 = vmatprep.mubr.bf16.mxu0 %v16430_v20  ;;  %11850 = vmatprep.mubr.bf16.mxu1 %v16430_v20  ;;  %v16024_v20 = vld [vmem:[%s19993_s10 + $0x3c4] sm:$0xff]  }
0x3575   : > { %v11541_v16 = vpack.c.bf16 %v11539_v9, %v11539_v9  ;;  %14444 = vmatpush3.bf16.msra.mxu0 %v16023_v26  ;;  %14472 = vmatpush3.bf16.msra.mxu1 %v16024_v20 }
0x3576   : > { %14445 = vmatprep.subr.bf16.mxu0 %v16025_v30  ;;  %14473 = vmatprep.subr.bf16.mxu1 %v16026_v41 }
0x3579   : > { %14446 = vmatpush3.bf16.msra.mxu0 %v16027_v3  ;;  %14474 = vmatpush3.bf16.msra.mxu1 %v16028_v53 }
0x357a   : > { %14447 = vmatprep.subr.bf16.mxu0 %v16029_v40  ;;  %14475 = vmatprep.subr.bf16.mxu1 %v16030_v27 }
0x357b   : > { %11800 = vmatmul.mubr.bf16.gmra.mxu0 %v11541_v16  ;;  %11851 = vmatmul.mubr.bf16.gmra.mxu1 %v11541_v16 }
0x357d   : > { %14448 = vmatpush3.bf16.msra.mxu0 %v16031_v22  ;;  %14476 = vmatpush3.bf16.msra.mxu1 %v16032_v57 }
0x357e   : > { %14449 = vmatprep.subr.bf16.mxu0 %v16033_v45  ;;  %14477 = vmatprep.subr.bf16.mxu1 %v16034_v2 }
0x3581   : > { %14450 = vmatpush3.bf16.msra.mxu0 %v16035_v58  ;;  %14478 = vmatpush3.bf16.msra.mxu1 %v16036_v31 }
0x3582   : > { %14451 = vmatprep.subr.bf16.mxu0 %v16037_v52  ;;  %14479 = vmatprep.subr.bf16.mxu1 %v16038_v48 }
0x3585   : > { %14452 = vmatpush3.bf16.msra.mxu0 %v16039_v44  ;;  %14480 = vmatpush3.bf16.msra.mxu1 %v16040_v25 }
0x3586   : > { %14453 = vmatprep.subr.bf16.mxu0 %v16041_v17  ;;  %14481 = vmatprep.subr.bf16.mxu1 %v16042_v1 }
0x3589   : > { %14454 = vmatpush3.bf16.msra.mxu0 %v16043_v10  ;;  %14482 = vmatpush3.bf16.msra.mxu1 %v16044_v62 }
0x358a   : > { %14455 = vmatprep.subr.bf16.mxu0 %v16045_v32  ;;  %14483 = vmatprep.subr.bf16.mxu1 %v16046_v15 }
0x358d   : > { %14456 = vmatpush3.bf16.msra.mxu0 %v16047_v38  ;;  %14484 = vmatpush3.bf16.msra.mxu1 %v16048_v61 }
0x358e   : > { %14457 = vmatprep.subr.bf16.mxu0 %v16049_v49  ;;  %14485 = vmatprep.subr.bf16.mxu1 %v16050_v59 }
0x3591   : > { %14458 = vmatpush3.bf16.msra.mxu0 %v16051_v34  ;;  %14486 = vmatpush3.bf16.msra.mxu1 %v16052_v24 }
0x3633   : > { %v11791_v19 = vpop.f32.mrf.mxu0  ;;  %v11842_v50 = vpop.f32.mrf.mxu1 }
0x3634   : > { %v19875_v13 = vadd.f32 %v11791_v19, %v11584_v35  ;;  %v19877_v6 = vadd.f32 %v11842_v50, %v11592_v29 }
0x3635   : > { %v11793_v28 = vpop.f32.mrf.mxu0  ;;  %v11844_v12 = vpop.f32.mrf.mxu1 }
0x3636   : > { %v11871_v43 = vmul.f32 0.044715, %v19875_v13  ;;  %v11873_v5 = vmul.f32 0.044715, %v19877_v6  ;;  %v19881_v8 = vadd.f32 %v11793_v28, %v11588_v37  ;;  %v19883_v36 = vadd.f32 %v11844_v12, %v11596_v47 }
0x3637   : > { %v11795_v11 = vpop.f32.mrf.mxu0  ;;  %v11846_v51 = vpop.f32.mrf.mxu1 }
0x3638   : > { %v11883_v21 = vmul.f32 %v11871_v43, %v19875_v13  ;;  %v11885_v39 = vmul.f32 %v11873_v5, %v19877_v6  ;;  %v19887_v33 = vadd.f32 %v11795_v11, %v11584_v35  ;;  %v19889_v18 = vadd.f32 %v11846_v51, %v11592_v29 }
0x3639   : > { %v11872_v42 = vmul.f32 0.044715, %v19881_v8  ;;  %v11874_v7 = vmul.f32 0.044715, %v19883_v36  ;;  %v11797_v9 = vpop.f32.mrf.mxu0  ;;  %v11848_v16 = vpop.f32.mrf.mxu1 }
0x363a   : > { %v11895_v54 = vmul.f32 %v11883_v21, %v19875_v13  ;;  %v11897_v14 = vmul.f32 %v11885_v39, %v19877_v6  ;;  %v11875_v26 = vmul.f32 0.044715, %v19887_v33  ;;  %v11877_v30 = vmul.f32 0.044715, %v19889_v18 }
0x363b   : > { %v11884_v20 = vmul.f32 %v11872_v42, %v19881_v8  ;;  %v11801_v41 = vpop.f32.mrf.mxu0  ;;  %v11852_v3 = vpop.f32.mrf.mxu1  ;;  %v11886_v40 = vmul.f32 %v11874_v7, %v19883_v36  ;;  %v19901_v22 = vadd.f32 %v11797_v9, %v11588_v37  ;;  %v19905_v2 = vadd.f32 %v11848_v16, %v11596_v47 }
0x363c   : > { %v11907_v53 = vadd.f32 %v11895_v54, %v19875_v13  ;;  %v11887_v27 = vmul.f32 %v11875_v26, %v19887_v33  ;;  %v11909_v57 = vadd.f32 %v11897_v14, %v19877_v6  ;;  %v11889_v45 = vmul.f32 %v11877_v30, %v19889_v18 }
0x363d   : > { %v11803_v58 = vpop.f32.mrf.mxu0  ;;  %v11854_v31 = vpop.f32.mrf.mxu1  ;;  %v11896_v48 = vmul.f32 %v11884_v20, %v19881_v8  ;;  %v11876_v25 = vmul.f32 0.044715, %v19901_v22  ;;  %v11878_v1 = vmul.f32 0.044715, %v19905_v2  ;;  %v19912_v10 = vadd.f32 %v11801_v41, %v11584_v35 }
0x363e   : > { %v11919_v52 = vmul.f32 0.7978846, %v11907_v53  ;;  %v11899_v44 = vmul.f32 %v11887_v27, %v19887_v33  ;;  %v11901_v17 = vmul.f32 %v11889_v45, %v19889_v18  ;;  %v19914_v62 = vadd.f32 %v11852_v3, %v11592_v29 }
0x363f   : > { %v11805_v32 = vpop.f32.mrf.mxu0  ;;  %v11856_v15 = vpop.f32.mrf.mxu1  ;;  %v11898_v38 = vmul.f32 %v11886_v40, %v19883_v36  ;;  %v11888_v49 = vmul.f32 %v11876_v25, %v19901_v22  ;;  %v19919_v59 = vadd.f32 %v11803_v58, %v11588_v37  ;;  %v11890_v24 = vmul.f32 %v11878_v1, %v19905_v2 }
0x3640   : > { %v11911_v61 = vadd.f32 %v11899_v44, %v19887_v33  ;;  %16375 = vtanh.f32 %v11919_v52  ;;  %v11913_v34 = vadd.f32 %v11901_v17, %v19889_v18  ;;  %v11879_v0 = vmul.f32 0.044715, %v19912_v10 }
0x3641   : > { %v11806_v4 = vpop.f32.mrf.mxu0  ;;  %v11857_v60 = vpop.f32.mrf.mxu1  ;;  %v11900_v46 = vmul.f32 %v11888_v49, %v19901_v22  ;;  %v11881_v55 = vmul.f32 0.044715, %v19914_v62  ;;  %v11880_v35 = vmul.f32 0.044715, %v19919_v59  ;;  %v11902_v19 = vmul.f32 %v11890_v24, %v19905_v2 }
0x3642   : > { %v11923_v23 = vmul.f32 0.7978846, %v11911_v61  ;;  %v11925_v29 = vmul.f32 0.7978846, %v11913_v34  ;;  %v11891_v50 = vmul.f32 %v11879_v0, %v19912_v10  ;;  %v19929_v37 = vadd.f32 %v11854_v31, %v11596_v47 }
0x3643   : > { %v11921_v28 = vmul.f32 0.7978846, %v11909_v57  ;;  %v11893_v12 = vmul.f32 %v11881_v55, %v19914_v62  ;;  %v11892_v5 = vmul.f32 %v11880_v35, %v19919_v59  ;;  %v11908_v51 = vadd.f32 %v11896_v48, %v19881_v8 }
0x3644   : > { %16377 = vtanh.f32 %v11923_v23  ;;  %v11903_v43 = vmul.f32 %v11891_v50, %v19912_v10  ;;  %v11882_v11 = vmul.f32 0.044715, %v19929_v37  ;;  %v11912_v39 = vadd.f32 %v11900_v46, %v19901_v22 }
0x3645   : > { %16379 = vtanh.f32 %v11925_v29  ;;  %v11905_v21 = vmul.f32 %v11893_v12, %v19914_v62  ;;  %v11910_v47 = vadd.f32 %v11898_v38, %v19883_v36  ;;  %v11920_v9 = vmul.f32 0.7978846, %v11908_v51 }
0x3646   : > { %v11915_v42 = vadd.f32 %v11903_v43, %v19912_v10  ;;  %v11894_v7 = vmul.f32 %v11882_v11, %v19929_v37  ;;  %v11914_v16 = vadd.f32 %v11902_v19, %v19905_v2  ;;  %16381 = vtanh.f32 %v11921_v28 }
0x3647   : > { %v11917_v54 = vadd.f32 %v11905_v21, %v19914_v62  ;;  %v11924_v14 = vmul.f32 0.7978846, %v11912_v39  ;;  %v11922_v26 = vmul.f32 0.7978846, %v11910_v47  ;;  %16383 = vtanh.f32 %v11920_v9 }
0x3648   : > { %v11927_v20 = vmul.f32 0.7978846, %v11915_v42  ;;  %v11926_v30 = vmul.f32 0.7978846, %v11914_v16  ;;  %v11904_v41 = vmul.f32 %v11892_v5, %v19919_v59  ;;  %v11906_v53 = vmul.f32 %v11894_v7, %v19929_v37 }
0x3649   : > { %v11929_v3 = vmul.f32 0.7978846, %v11917_v54  ;;  %16385 = vtanh.f32 %v11924_v14  ;;  %v11859_v17 = vmul.f32 0.5, %v19875_v13  ;;  %v11863_v15 = vmul.f32 0.5, %v19887_v33 }
0x364a   : > { %16387 = vtanh.f32 %v11922_v26  ;;  %v11916_v40 = vadd.f32 %v11904_v41, %v19919_v59  ;;  %v11918_v27 = vadd.f32 %v11906_v53, %v19929_v37  ;;  %v11860_v34 = vmul.f32 0.5, %v19881_v8 }
0x364b   : > { %16389 = vtanh.f32 %v11926_v30  ;;  %v11864_v24 = vmul.f32 0.5, %v19901_v22  ;;  %v11862_v4 = vmul.f32 0.5, %v19883_v36  ;;  %v11865_v55 = vmul.f32 0.5, %v19889_v18 }
0x364c   : > { %v11928_v57 = vmul.f32 0.7978846, %v11916_v40  ;;  %16391 = vtanh.f32 %v11927_v20  ;;  %v11930_v58 = vmul.f32 0.7978846, %v11918_v27  ;;  %v11866_v33 = vmul.f32 0.5, %v19905_v2 }
0x364d   : > { %v16376_v45 = vpop.eup %16375  ;;  %16393 = vtanh.f32 %v11929_v3  ;;  %v11861_v8 = vmul.f32 0.5, %v19877_v6  ;;  %v11868_v51 = vmul.f32 0.5, %v19919_v59  ;;  %v11870_v2 = vmul.f32 0.5, %v19929_v37 }
0x364e   : > { %16395 = vtanh.f32 %v11928_v57  ;;  %v11943_v32 = vadd.f32 1.0, %v16376_v45  ;;  %v11867_v54 = vmul.f32 0.5, %v19912_v10  ;;  %v11869_v30 = vmul.f32 0.5, %v19914_v62  ;;  %v13908_v62 = vld [vmem:[%s19993_s10 + $0x40c] sm:$0x1] }
0x364f   : > { %16397 = vtanh.f32 %v11930_v58 }
0x3650   : > { %v11955_v12 = vmul.f32 %v11943_v32, %v11859_v17 }
0x3651   : > { %v16378_v31 = vpop.eup %16377 }
0x3652   : > { %v16380_v52 = vpop.eup %16379  ;;  %v11947_v44 = vadd.f32 1.0, %v16378_v31 }
0x3653   : > { %v16382_v48 = vpop.eup %16381  ;;  %v11949_v38 = vadd.f32 1.0, %v16380_v52 }
0x3654   : > { %v16384_v25 = vpop.eup %16383  ;;  %v11945_v23 = vadd.f32 1.0, %v16382_v48  ;;  %v11959_v46 = vmul.f32 %v11947_v44, %v11863_v15 }
0x3655   : > { %v11944_v61 = vadd.f32 1.0, %v16384_v25  ;;  %v11961_v22 = vmul.f32 %v11949_v38, %v11865_v55 }
0x3656   : > { %v16386_v1 = vpop.eup %16385  ;;  %v11957_v18 = vmul.f32 %v11945_v23, %v11861_v8  ;;  %v11967_v39 = vpack.c.bf16 %v11959_v46, %v11955_v12 }
0x3657   : > { %v16388_v49 = vpop.eup %16387  ;;  %v11948_v0 = vadd.f32 1.0, %v16386_v1  ;;  %v11956_v29 = vmul.f32 %v11944_v61, %v11860_v34  ;;  %v12326_v1 = vunpack.c.l.bf16 %v13908_v62 }
0x3658   : > { %v16390_v60 = vpop.eup %16389  ;;  %v11946_v13 = vadd.f32 1.0, %v16388_v49  ;;  %v11969_v16 = vpack.c.bf16 %v11961_v22, %v11957_v18 }
0x3659   : > { %v16392_v35 = vpop.eup %16391  ;;  %v11960_v19 = vmul.f32 %v11948_v0, %v11864_v24  ;;  %v11950_v50 = vadd.f32 1.0, %v16390_v60  ;;  %v12330_v24 = vrot.slane %v12326_v1, %v17370_v56  ;;  %v12355_v56 = vld [vmem:[%s19989_s6 + $0x6] sm:$0x1] }
0x365a   : > { %v16394_v28 = vpop.eup %16393  ;;  %v11958_v36 = vmul.f32 %v11946_v13, %v11862_v4  ;;  %v11951_v42 = vadd.f32 1.0, %v16392_v35  ;;  %v12357_v8 = vrot.slane %v12355_v56, 1 }
0x365b   : > { %v16396_v43 = vpop.eup %16395  ;;  %v11968_v5 = vpack.c.bf16 %v11960_v19, %v11956_v29  ;;  %v11962_v11 = vmul.f32 %v11950_v50, %v11866_v33  ;;  %v11953_v14 = vadd.f32 1.0, %v16394_v28  ;;  %v13909_v50 = vld [vmem:[%s19989_s6 + $0x4] ss:$0 sm:$0xff]  ;;  %v13910_v28 = vld [vmem:[%s19989_s6 + $0x5] ss:$0 sm:$0xff] }
0x365c   : > { %v16398_v21 = vpop.eup %16397  ;;  %v11952_v47 = vadd.f32 1.0, %v16396_v43  ;;  %v11963_v20 = vmul.f32 %v11951_v42, %v11867_v54 }
0x365d   : > { %12264 = vmatprep.mubr.bf16.mxu0 %v11968_v5  ;;  %v11970_v7 = vpack.c.bf16 %v11962_v11, %v11958_v36  ;;  %v11954_v9 = vadd.f32 1.0, %v16398_v21  ;;  %v11965_v3 = vmul.f32 %v11953_v14, %v11869_v30  ;;  %v12364_v36 = vld [vmem:[%s19989_s6 + $0x7] sm:$0x1] }
0x365e   : > { %12265 = vmatmul.mubr.bf16.vlgmr.msra.gmra.mxu0 %v11967_v39  ;;  %v11964_v6 = vmul.f32 %v11952_v47, %v11868_v51  ;;  %v11971_v53 = vpack.c.bf16 %v11963_v20, %v11963_v20  ;;  %v12366_v11 = vrot.slane %v12364_v36, 1 }
0x365f   : > { %12310 = vmatprep.mubr.bf16.mxu1 %v11970_v7  ;;  %v11966_v26 = vmul.f32 %v11954_v9, %v11870_v2  ;;  %v11973_v37 = vpack.c.bf16 %v11965_v3, %v11965_v3 }
0x3660   : > { %12311 = vmatmul.mubr.bf16.vlgmr.msra.gmra.mxu1 %v11969_v16  ;;  %v11972_v59 = vpack.c.bf16 %v11964_v6, %v11964_v6 }
0x3661   : > { %v11974_v41 = vpack.c.bf16 %v11966_v26, %v11966_v26 }
0x3662   : > { %12270 = vmatprep.mubr.bf16.mxu0 %v11972_v59 }
0x3663   : > { %12316 = vmatprep.mubr.bf16.mxu1 %v11974_v41 }
0x3666   : > { %12271 = vmatmul.mubr.bf16.gmra.mxu0 %v11971_v53 }
0x3668   : > { %12317 = vmatmul.mubr.bf16.gmra.mxu1 %v11973_v37 }
0x371e   : > { %v14459_v40 = vpop.f32.mrf.mxu0 }
0x3720   : > { %v14487_v27 = vpop.f32.mrf.mxu1  ;;  %v14460_v57 = vpop.f32.mrf.mxu0 }
0x3722   : > { %v14488_v10 = vpop.f32.mrf.mxu1  ;;  %v14462_v45 = vpop.f32.mrf.mxu0 }
0x3724   : > { %v14490_v58 = vpop.f32.mrf.mxu1  ;;  %v14463_v31 = vpop.f32.mrf.mxu0 }
0x3726   : > { %v14491_v52 = vpop.f32.mrf.mxu1  ;;  %v14465_v48 = vpop.f32.mrf.mxu0 }
0x3728   : > { %v14493_v44 = vpop.f32.mrf.mxu1  ;;  %v14466_v25 = vpop.f32.mrf.mxu0 }
0x3729   : > { %v14467_v17 = vadd.f32 %v14466_v25, %v14465_v48 }
0x372a   : > { %v14494_v32 = vpop.f32.mrf.mxu1  ;;  %v14468_v15 = vpop.f32.mrf.mxu0 }
0x372b   : > { %v14495_v38 = vadd.f32 %v14494_v32, %v14493_v44 }
0x372c   : > { %v14496_v61 = vpop.f32.mrf.mxu1  ;;  %v14469_v49 = vpop.f32.mrf.mxu0 }
0x372d   : > { %v12319_v34 = vadd.f32 %v14495_v38, %v14467_v17 }
0x372e   : > { %v14497_v0 = vpop.f32.mrf.mxu1 }
0x372f   : > { %v12324_v4 = vadd.f32 %v12319_v34, %v19647_v63 }
0x3731   : > { %v12331_v60 = vadd.f32 %v12330_v24, %v12324_v4 }
0x3733   : > { %12334 = vadd.xlane.f32.xlu0 %v12331_v60 }
0x37bc   : > { %v12335_v23 = vpop.xlane.xlu0 %12334 }
0x37bd   : > { %v12336_v46 = vmul.f32 0.0078125, %v12335_v23 }
0x37bf   : > { %v12337_v55 = vsub.f32 %v12331_v60, %v12336_v46 }
0x37c1   : > { %v12338_v13 = vmul.f32 %v12337_v55, %v12337_v55 }
0x37c3   : > { %12339 = vadd.xlane.f32.xlu1 %v12338_v13 }
0x384c   : > { %v12340_v35 = vpop.xlane.xlu1 %12339 }
0x384d   : > { %v12341_v29 = vmul.f32 0.0078125, %v12340_v35 }
0x384f   : > { %v12342_v19 = vadd.f32 1e-05, %v12341_v29 }
0x3851   : > { %16399 = vrsqrt.f32 %v12342_v19 }
0x385e   : > { %v16400_v33 = vpop.eup %16399 }
0x385f   : > { %v12344_v63 = vmul.f32 %v16400_v33, %v12337_v55 }
0x3861   : > { %v12349_v12 = vmul.f32 %v13909_v50, %v12344_v63 }
0x3863   : > { %v12354_v22 = vadd.f32 %v13910_v28, %v12349_v12 }
0x3865   : > { %v12359_v43 = vmul.f32 %v12357_v8, %v12354_v22 }
0x3867   : > { %v12361_v5 = vsel %vm12360_vm8, %v12359_v43, 0.0 }
0x3868   : > { %12362 = vadd.xlane.f32.xlu0 %v12361_v5 }
0x38f1   : > { %v12363_v51 = vpop.xlane.xlu0 %12362 }
0x38f2   : > { %v12368_v21 = vadd.f32 %v12366_v11, %v12363_v51 }
0x38f4   : > { %12371 = vperm.xlu1 %15295, %v12368_v21  }
0x396f   : > { %v12372_v18 = vpop.permute.xlu1 %12371 }
0x3970   : > { %12374 = vst [vmem:[%s416_s22 - $0x7] sm:$0x80] %v12372_v18 }
0x3971 PF: > { %s29_s30 = sadd.s32 1, %s16427_s30  }
0x3972   : > { %p26_p9 = scmp.ge.s32.totalorder %s29_s30, 4  }
0x3974   :  { %28 = sbr.rel (!%p26_p9) target bundleno = 16 (0x10), region = 134 }

</bundles_post_ra>
